<compile_context>
chip_gen: v5e
topology: v5e:2x2
jax: 0.10.0
libtpu: 0.0.40
codegen_flags: <defaults>
</compile_context>

<pallas_src>
import functools

import jax
import jax.numpy as jnp
from jax import lax
from jax.experimental import pallas as pl
from jax.experimental.pallas import tpu as pltpu


def _round_up(x, m):
    return (x + m - 1) // m * m


# ---------------------------------------------------------------------------
# Fused kernel: (conv3x3 pad=1 + folded BN + ReLU) x 2 for one batch element.
#   x_ref:   (1, H+2, Wv+2, C1p) bf16   spatially padded, channel-padded input
#   w1_ref:  (3, 3, C1p, Cop)    bf16   conv1 weights (HWIO, padded)
#   s1/b1:   (1, Cop)            f32    folded BN scale / shift (incl. bias)
#   w2_ref:  (3, 3, Cop, Cop)    bf16   conv2 weights
#   s2/b2:   (1, Cop)            f32
#   o_ref:   (1, H, Wv, Cop)     f32
#   y1p_ref: (H+2, Wv+2, Cop)    bf16   VMEM scratch for the padded intermediate
# ---------------------------------------------------------------------------
def _fused_double_conv_kernel(w_true,
                              x_ref, w1_ref, s1_ref, b1_ref,
                              w2_ref, s2_ref, b2_ref,
                              o_ref, y1p_ref):
    H = o_ref.shape[1]
    Wv = o_ref.shape[2]
    C1p = x_ref.shape[3]
    Cmp = w1_ref.shape[3]
    Cop = o_ref.shape[3]

    # ---- conv1: 9 taps, each a lane-dense MXU matmul, f32 accumulation ----
    acc1 = jnp.zeros((H * Wv, Cmp), jnp.float32)
    for dy in range(3):
        for dx in range(3):
            patch = x_ref[0, dy:dy + H, dx:dx + Wv, :]       # (H, Wv, C1p) bf16
            patch = patch.reshape(H * Wv, C1p)               # layout-preserving
            acc1 = acc1 + jnp.dot(patch, w1_ref[dy, dx],
                                  preferred_element_type=jnp.float32)

    y1 = jnp.maximum(acc1 * s1_ref[...] + b1_ref[...], 0.0)
    y1 = y1.reshape(H, Wv, Cmp)
    if Wv > w_true:
        # columns >= true W must act as zero padding for conv2
        col = lax.broadcasted_iota(jnp.int32, (1, Wv, 1), 1)
        y1 = jnp.where(col < w_true, y1, 0.0)

    # intermediate stays in VMEM: zeroed border + interior write (bf16)
    y1p_ref[...] = jnp.zeros_like(y1p_ref)
    y1p_ref[1:H + 1, 1:Wv + 1, :] = y1.astype(y1p_ref.dtype)

    # ---- conv2: same structure, reading the VMEM-resident intermediate ----
    acc2 = jnp.zeros((H * Wv, Cop), jnp.float32)
    for dy in range(3):
        for dx in range(3):
            patch = y1p_ref[dy:dy + H, dx:dx + Wv, :]        # (H, Wv, Cmp) bf16
            patch = patch.reshape(H * Wv, Cmp)
            acc2 = acc2 + jnp.dot(patch, w2_ref[dy, dx],
                                  preferred_element_type=jnp.float32)

    y2 = jnp.maximum(acc2 * s2_ref[...] + b2_ref[...], 0.0)
    o_ref[0] = y2.reshape(H, Wv, Cop).astype(o_ref.dtype)


def double_conv_pallas(x_nhwc, params):
    """x_nhwc: (N, H, W, C1) f32 -> (N, H, W, out_ch) f32, one fused kernel."""
    N, H, W, C1 = x_nhwc.shape
    w1 = params["w1"]                      # (3, 3, C1, Co)  HWIO
    w2 = params["w2"]                      # (3, 3, Co, Co)
    Co = w1.shape[-1]

    C1p = _round_up(C1, 128)               # lane-dense K for conv1
    Cop = _round_up(Co, 128)               # lane-dense N / conv2 channels
    Wv = _round_up(W, 8)                   # sublane-aligned compute width

    # single prep pass: halo pad + width round-up + channel pad + bf16 cast
    xp = jnp.pad(x_nhwc, ((0, 0), (1, 1), (1, Wv + 1 - W), (0, C1p - C1)))
    xp = xp.astype(jnp.bfloat16)

    w1p = jnp.pad(w1, ((0, 0), (0, 0), (0, C1p - C1), (0, Cop - Co))
                  ).astype(jnp.bfloat16)
    w2p = jnp.pad(w2, ((0, 0), (0, 0), (0, Cop - Co), (0, Cop - Co))
                  ).astype(jnp.bfloat16)

    def pad_vec(v):
        return jnp.pad(v.astype(jnp.float32), (0, Cop - Co)).reshape(1, Cop)

    s1, b1 = pad_vec(params["scale1"]), pad_vec(params["shift1"])
    s2, b2 = pad_vec(params["scale2"]), pad_vec(params["shift2"])

    # explicit VMEM budget (v5e's default scoped limit is only 16 MiB)
    vmem_need = (2 * ((H + 2) * (Wv + 2) * C1p * 2 + H * Wv * Cop * 4)
                 + 2 * 9 * (C1p * Cop + Cop * Cop) * 2
                 + (H + 2) * (Wv + 2) * Cop * 2
                 + 4 * H * Wv * Cop * 4)
    vmem_limit = int(min(max(2 * vmem_need, 32 * 2**20), 64 * 2**20))

    kernel = functools.partial(_fused_double_conv_kernel, W)

    out = pl.pallas_call(
        kernel,
        out_shape=jax.ShapeDtypeStruct((N, H, Wv, Cop), jnp.float32),
        grid=(N,),
        in_specs=[
            pl.BlockSpec((1, H + 2, Wv + 2, C1p), lambda n: (n, 0, 0, 0)),
            pl.BlockSpec((3, 3, C1p, Cop), lambda n: (0, 0, 0, 0)),
            pl.BlockSpec((1, Cop), lambda n: (0, 0)),
            pl.BlockSpec((1, Cop), lambda n: (0, 0)),
            pl.BlockSpec((3, 3, Cop, Cop), lambda n: (0, 0, 0, 0)),
            pl.BlockSpec((1, Cop), lambda n: (0, 0)),
            pl.BlockSpec((1, Cop), lambda n: (0, 0)),
        ],
        out_specs=pl.BlockSpec((1, H, Wv, Cop), lambda n: (n, 0, 0, 0)),
        scratch_shapes=[pltpu.VMEM((H + 2, Wv + 2, Cop), jnp.bfloat16)],
        compiler_params=pltpu.CompilerParams(
            dimension_semantics=("parallel",),
            vmem_limit_bytes=vmem_limit),
    )(xp, w1p, s1, b1, w2p, s2, b2)

    return out[:, :, :W, :Co]


# ---------------------------------------------------------------------------
# Bilinear upsample (align_corners=True), matching nn.Upsample / F.interpolate.
# TODO(synk): gather+lerp data movement kept in plain JAX (no clean Pallas tiling).
# ---------------------------------------------------------------------------
def upsample_bilinear_align_corners(x_nchw, out_h, out_w):
    N, C, H, W = x_nchw.shape

    def coords(out_s, in_s):
        if out_s == 1 or in_s == 1:
            return jnp.zeros((out_s,), jnp.float32)
        return jnp.arange(out_s, dtype=jnp.float32) * (in_s - 1) / (out_s - 1)

    ys, xs = coords(out_h, H), coords(out_w, W)
    y0 = jnp.floor(ys).astype(jnp.int32)
    y1 = jnp.minimum(y0 + 1, H - 1)
    x0 = jnp.floor(xs).astype(jnp.int32)
    x1 = jnp.minimum(x0 + 1, W - 1)
    wy = (ys - y0.astype(jnp.float32))[None, None, :, None]
    wx = (xs - x0.astype(jnp.float32))[None, None, None, :]

    rows = x_nchw[:, :, y0, :] * (1.0 - wy) + x_nchw[:, :, y1, :] * wy
    return rows[:, :, :, x0] * (1.0 - wx) + rows[:, :, :, x1] * wx


# ---------------------------------------------------------------------------
# up_concate_conv forward: upsample x1 -> concat([x2, x1], ch) -> double_conv
# ---------------------------------------------------------------------------
def up_concate_conv_forward(x1_nchw, x2_nchw, params):
    H2, W2 = x2_nchw.shape[2], x2_nchw.shape[3]
    x1_up = upsample_bilinear_align_corners(
        x1_nchw, 2 * x1_nchw.shape[2], 2 * x1_nchw.shape[3])
    if x1_up.shape[2] != H2 or x1_up.shape[3] != W2:
        # matches the module: a second F.interpolate on the upsampled tensor
        x1_up = upsample_bilinear_align_corners(x1_up, H2, W2)

    x = jnp.concatenate([x2_nchw, x1_up], axis=1)          # (N, 2*in_ch, H, W)
    x_nhwc = jnp.transpose(x, (0, 2, 3, 1)).astype(jnp.float32)

    y = double_conv_pallas(x_nhwc, params)                 # (N, H, W, out_ch)
    return jnp.transpose(y, (0, 3, 1, 2))


def make_params(key, in_ch, out_ch, eps=1e-5):
    """Synthetic double_conv(in_ch*2, out_ch) params; BN folded (eval mode)."""
    k1, k2, k3, k4 = jax.random.split(key, 4)
    c_in1 = in_ch * 2
    w1_oihw = jax.random.normal(k1, (out_ch, c_in1, 3, 3), jnp.float32) * 0.1
    b1 = jax.random.normal(k2, (out_ch,), jnp.float32) * 0.1
    w2_oihw = jax.random.normal(k3, (out_ch, out_ch, 3, 3), jnp.float32) * 0.1
    b2 = jax.random.normal(k4, (out_ch,), jnp.float32) * 0.1

    # BatchNorm2d (eval) with default stats/affine; general fold formula.
    gamma = jnp.ones((out_ch,), jnp.float32)
    beta = jnp.zeros((out_ch,), jnp.float32)
    mean = jnp.zeros((out_ch,), jnp.float32)
    var = jnp.ones((out_ch,), jnp.float32)
    scale = gamma / jnp.sqrt(var + eps)

    def fold(bias):
        return (bias - mean) * scale + beta

    return {
        "w1": jnp.transpose(w1_oihw, (2, 3, 1, 0)),   # HWIO
        "scale1": scale, "shift1": fold(b1),
        "w2": jnp.transpose(w2_oihw, (2, 3, 1, 0)),
        "scale2": scale, "shift2": fold(b2),
    }


# ---------------------------------------------------------------------------
# Pure-JAX reference with identical (bf16-in, f32-acc) numerics.
# ---------------------------------------------------------------------------
def _ref_conv_bn_relu(x_bf16, w_hwio, scale, shift):
    y = lax.conv_general_dilated(
        x_bf16, w_hwio.astype(jnp.bfloat16), (1, 1), "SAME",
        dimension_numbers=("NHWC", "HWIO", "NHWC"),
        preferred_element_type=jnp.float32)
    y = y * scale[None, None, None, :] + shift[None, None, None, :]
    return jnp.maximum(y, 0.0)


def _ref_forward(x1_nchw, x2_nchw, params):
    H2, W2 = x2_nchw.shape[2], x2_nchw.shape[3]
    x1_up = upsample_bilinear_align_corners(
        x1_nchw, 2 * x1_nchw.shape[2], 2 * x1_nchw.shape[3])
    if x1_up.shape[2] != H2 or x1_up.shape[3] != W2:
        x1_up = upsample_bilinear_align_corners(x1_up, H2, W2)
    x = jnp.concatenate([x2_nchw, x1_up], axis=1)
    x_nhwc = jnp.transpose(x, (0, 2, 3, 1)).astype(jnp.float32)
    y = _ref_conv_bn_relu(x_nhwc.astype(jnp.bfloat16),
                          params["w1"], params["scale1"], params["shift1"])
    y = _ref_conv_bn_relu(y.astype(jnp.bfloat16),
                          params["w2"], params["scale2"], params["shift2"])
    return jnp.transpose(y, (0, 3, 1, 2))


if __name__ == "__main__":
    key = jax.random.PRNGKey(0)
    k_x1, k_x2, k_p = jax.random.split(key, 3)

    N, in_ch, out_ch = 2, 4, 8
    H, W = 16, 16                              # spatial size of the skip x2
    x1 = jax.random.normal(k_x1, (N, in_ch, H // 2, W // 2), jnp.float32)
    x2 = jax.random.normal(k_x2, (N, in_ch, H, W), jnp.float32)
    params = make_params(k_p, in_ch, out_ch)

    fwd = jax.jit(up_concate_conv_forward)
    out = jax.block_until_ready(fwd(x1, x2, params))
    assert out.shape == (N, out_ch, H, W), out.shape

    ref = jax.block_until_ready(_ref_forward(x1, x2, params))
    max_err = float(jnp.max(jnp.abs(out - ref)))
    assert jnp.allclose(out, ref, atol=2e-2, rtol=2e-2), max_err

    print("KERNEL_OK")
</pallas_src>

<mosaic_0001>
module attributes {stable_mosaic.version = 11 : i64} {
  func.func @_fused_double_conv_kernel(%arg0: i32, %arg1: memref<1x18x18x128xbf16, #tpu.memory_space<vmem>>, %arg2: memref<3x3x128x128xbf16, #tpu.memory_space<vmem>>, %arg3: memref<1x128xf32, #tpu.memory_space<vmem>>, %arg4: memref<1x128xf32, #tpu.memory_space<vmem>>, %arg5: memref<3x3x128x128xbf16, #tpu.memory_space<vmem>>, %arg6: memref<1x128xf32, #tpu.memory_space<vmem>>, %arg7: memref<1x128xf32, #tpu.memory_space<vmem>>, %arg8: memref<1x16x16x128xf32, #tpu.memory_space<vmem>>, %arg9: memref<18x18x128xbf16, #tpu.memory_space<vmem>>) attributes {dimension_semantics = [#tpu.dimension_semantics<parallel>], iteration_bounds = array<i64: 2>, scalar_prefetch = 0 : i64, scratch_operands = 1 : i64, tpu.core_type = #tpu.core_type<tc>, window_params = [{transform_indices = @transform_0, window_bounds = array<i64: 1, 18, 18, 128>}, {pipeline_mode = #tpu.pipeline_mode<synchronous>, transform_indices = @transform_1, window_bounds = array<i64: 3, 3, 128, 128>}, {pipeline_mode = #tpu.pipeline_mode<synchronous>, transform_indices = @transform_2, window_bounds = array<i64: 1, 128>}, {pipeline_mode = #tpu.pipeline_mode<synchronous>, transform_indices = @transform_3, window_bounds = array<i64: 1, 128>}, {pipeline_mode = #tpu.pipeline_mode<synchronous>, transform_indices = @transform_4, window_bounds = array<i64: 3, 3, 128, 128>}, {pipeline_mode = #tpu.pipeline_mode<synchronous>, transform_indices = @transform_5, window_bounds = array<i64: 1, 128>}, {pipeline_mode = #tpu.pipeline_mode<synchronous>, transform_indices = @transform_6, window_bounds = array<i64: 1, 128>}, {transform_indices = @transform_7, window_bounds = array<i64: 1, 16, 16, 128>}]} {
    %cst = arith.constant 0.000000e+00 : f32
    %0 = vector.broadcast %cst : f32 to vector<256x128xf32>
    %c0 = arith.constant 0 : index
    %c0_0 = arith.constant 0 : index
    %c0_1 = arith.constant 0 : index
    %c0_2 = arith.constant 0 : index
    %1 = vector.load %arg1[%c0, %c0_0, %c0_1, %c0_2] : memref<1x18x18x128xbf16, #tpu.memory_space<vmem>>, vector<1x16x16x128xbf16>
    %2 = vector.shape_cast %1 : vector<1x16x16x128xbf16> to vector<16x16x128xbf16>
    %3 = vector.shape_cast %2 : vector<16x16x128xbf16> to vector<256x128xbf16>
    %c0_3 = arith.constant 0 : index
    %c0_4 = arith.constant 0 : index
    %c0_5 = arith.constant 0 : index
    %c0_6 = arith.constant 0 : index
    %4 = vector.load %arg2[%c0_3, %c0_4, %c0_5, %c0_6] : memref<3x3x128x128xbf16, #tpu.memory_space<vmem>>, vector<1x1x128x128xbf16>
    %5 = vector.shape_cast %4 : vector<1x1x128x128xbf16> to vector<128x128xbf16>
    %cst_7 = arith.constant dense<0.000000e+00> : vector<256x128xf32>
    %6 = tpu.matmul %3, %5, %cst_7 {dimension_numbers = #tpu.dot_dimension_numbers<[1], [0], [0], [1], [0, 0, 1, 1], [], []>} : vector<256x128xbf16>, vector<128x128xbf16>, vector<256x128xf32> -> vector<256x128xf32>
    %7 = arith.addf %0, %6 : vector<256x128xf32>
    %c0_8 = arith.constant 0 : index
    %c0_9 = arith.constant 0 : index
    %c1 = arith.constant 1 : index
    %c0_10 = arith.constant 0 : index
    %8 = vector.load %arg1[%c0_8, %c0_9, %c1, %c0_10] : memref<1x18x18x128xbf16, #tpu.memory_space<vmem>>, vector<1x16x16x128xbf16>
    %9 = vector.shape_cast %8 : vector<1x16x16x128xbf16> to vector<16x16x128xbf16>
    %10 = vector.shape_cast %9 : vector<16x16x128xbf16> to vector<256x128xbf16>
    %c0_11 = arith.constant 0 : index
    %c1_12 = arith.constant 1 : index
    %c0_13 = arith.constant 0 : index
    %c0_14 = arith.constant 0 : index
    %11 = vector.load %arg2[%c0_11, %c1_12, %c0_13, %c0_14] : memref<3x3x128x128xbf16, #tpu.memory_space<vmem>>, vector<1x1x128x128xbf16>
    %12 = vector.shape_cast %11 : vector<1x1x128x128xbf16> to vector<128x128xbf16>
    %cst_15 = arith.constant dense<0.000000e+00> : vector<256x128xf32>
    %13 = tpu.matmul %10, %12, %cst_15 {dimension_numbers = #tpu.dot_dimension_numbers<[1], [0], [0], [1], [0, 0, 1, 1], [], []>} : vector<256x128xbf16>, vector<128x128xbf16>, vector<256x128xf32> -> vector<256x128xf32>
    %14 = arith.addf %7, %13 : vector<256x128xf32>
    %c0_16 = arith.constant 0 : index
    %c0_17 = arith.constant 0 : index
    %c2 = arith.constant 2 : index
    %c0_18 = arith.constant 0 : index
    %15 = vector.load %arg1[%c0_16, %c0_17, %c2, %c0_18] : memref<1x18x18x128xbf16, #tpu.memory_space<vmem>>, vector<1x16x16x128xbf16>
    %16 = vector.shape_cast %15 : vector<1x16x16x128xbf16> to vector<16x16x128xbf16>
    %17 = vector.shape_cast %16 : vector<16x16x128xbf16> to vector<256x128xbf16>
    %c0_19 = arith.constant 0 : index
    %c2_20 = arith.constant 2 : index
    %c0_21 = arith.constant 0 : index
    %c0_22 = arith.constant 0 : index
    %18 = vector.load %arg2[%c0_19, %c2_20, %c0_21, %c0_22] : memref<3x3x128x128xbf16, #tpu.memory_space<vmem>>, vector<1x1x128x128xbf16>
    %19 = vector.shape_cast %18 : vector<1x1x128x128xbf16> to vector<128x128xbf16>
    %cst_23 = arith.constant dense<0.000000e+00> : vector<256x128xf32>
    %20 = tpu.matmul %17, %19, %cst_23 {dimension_numbers = #tpu.dot_dimension_numbers<[1], [0], [0], [1], [0, 0, 1, 1], [], []>} : vector<256x128xbf16>, vector<128x128xbf16>, vector<256x128xf32> -> vector<256x128xf32>
    %21 = arith.addf %14, %20 : vector<256x128xf32>
    %c0_24 = arith.constant 0 : index
    %c1_25 = arith.constant 1 : index
    %c0_26 = arith.constant 0 : index
    %c0_27 = arith.constant 0 : index
    %22 = vector.load %arg1[%c0_24, %c1_25, %c0_26, %c0_27] : memref<1x18x18x128xbf16, #tpu.memory_space<vmem>>, vector<1x16x16x128xbf16>
    %23 = vector.shape_cast %22 : vector<1x16x16x128xbf16> to vector<16x16x128xbf16>
    %24 = vector.shape_cast %23 : vector<16x16x128xbf16> to vector<256x128xbf16>
    %c1_28 = arith.constant 1 : index
    %c0_29 = arith.constant 0 : index
    %c0_30 = arith.constant 0 : index
    %c0_31 = arith.constant 0 : index
    %25 = vector.load %arg2[%c1_28, %c0_29, %c0_30, %c0_31] : memref<3x3x128x128xbf16, #tpu.memory_space<vmem>>, vector<1x1x128x128xbf16>
    %26 = vector.shape_cast %25 : vector<1x1x128x128xbf16> to vector<128x128xbf16>
    %cst_32 = arith.constant dense<0.000000e+00> : vector<256x128xf32>
    %27 = tpu.matmul %24, %26, %cst_32 {dimension_numbers = #tpu.dot_dimension_numbers<[1], [0], [0], [1], [0, 0, 1, 1], [], []>} : vector<256x128xbf16>, vector<128x128xbf16>, vector<256x128xf32> -> vector<256x128xf32>
    %28 = arith.addf %21, %27 : vector<256x128xf32>
    %c0_33 = arith.constant 0 : index
    %c1_34 = arith.constant 1 : index
    %c1_35 = arith.constant 1 : index
    %c0_36 = arith.constant 0 : index
    %29 = vector.load %arg1[%c0_33, %c1_34, %c1_35, %c0_36] : memref<1x18x18x128xbf16, #tpu.memory_space<vmem>>, vector<1x16x16x128xbf16>
    %30 = vector.shape_cast %29 : vector<1x16x16x128xbf16> to vector<16x16x128xbf16>
    %31 = vector.shape_cast %30 : vector<16x16x128xbf16> to vector<256x128xbf16>
    %c1_37 = arith.constant 1 : index
    %c1_38 = arith.constant 1 : index
    %c0_39 = arith.constant 0 : index
    %c0_40 = arith.constant 0 : index
    %32 = vector.load %arg2[%c1_37, %c1_38, %c0_39, %c0_40] : memref<3x3x128x128xbf16, #tpu.memory_space<vmem>>, vector<1x1x128x128xbf16>
    %33 = vector.shape_cast %32 : vector<1x1x128x128xbf16> to vector<128x128xbf16>
    %cst_41 = arith.constant dense<0.000000e+00> : vector<256x128xf32>
    %34 = tpu.matmul %31, %33, %cst_41 {dimension_numbers = #tpu.dot_dimension_numbers<[1], [0], [0], [1], [0, 0, 1, 1], [], []>} : vector<256x128xbf16>, vector<128x128xbf16>, vector<256x128xf32> -> vector<256x128xf32>
    %35 = arith.addf %28, %34 : vector<256x128xf32>
    %c0_42 = arith.constant 0 : index
    %c1_43 = arith.constant 1 : index
    %c2_44 = arith.constant 2 : index
    %c0_45 = arith.constant 0 : index
    %36 = vector.load %arg1[%c0_42, %c1_43, %c2_44, %c0_45] : memref<1x18x18x128xbf16, #tpu.memory_space<vmem>>, vector<1x16x16x128xbf16>
    %37 = vector.shape_cast %36 : vector<1x16x16x128xbf16> to vector<16x16x128xbf16>
    %38 = vector.shape_cast %37 : vector<16x16x128xbf16> to vector<256x128xbf16>
    %c1_46 = arith.constant 1 : index
    %c2_47 = arith.constant 2 : index
    %c0_48 = arith.constant 0 : index
    %c0_49 = arith.constant 0 : index
    %39 = vector.load %arg2[%c1_46, %c2_47, %c0_48, %c0_49] : memref<3x3x128x128xbf16, #tpu.memory_space<vmem>>, vector<1x1x128x128xbf16>
    %40 = vector.shape_cast %39 : vector<1x1x128x128xbf16> to vector<128x128xbf16>
    %cst_50 = arith.constant dense<0.000000e+00> : vector<256x128xf32>
    %41 = tpu.matmul %38, %40, %cst_50 {dimension_numbers = #tpu.dot_dimension_numbers<[1], [0], [0], [1], [0, 0, 1, 1], [], []>} : vector<256x128xbf16>, vector<128x128xbf16>, vector<256x128xf32> -> vector<256x128xf32>
    %42 = arith.addf %35, %41 : vector<256x128xf32>
    %c0_51 = arith.constant 0 : index
    %c2_52 = arith.constant 2 : index
    %c0_53 = arith.constant 0 : index
    %c0_54 = arith.constant 0 : index
    %43 = vector.load %arg1[%c0_51, %c2_52, %c0_53, %c0_54] : memref<1x18x18x128xbf16, #tpu.memory_space<vmem>>, vector<1x16x16x128xbf16>
    %44 = vector.shape_cast %43 : vector<1x16x16x128xbf16> to vector<16x16x128xbf16>
    %45 = vector.shape_cast %44 : vector<16x16x128xbf16> to vector<256x128xbf16>
    %c2_55 = arith.constant 2 : index
    %c0_56 = arith.constant 0 : index
    %c0_57 = arith.constant 0 : index
    %c0_58 = arith.constant 0 : index
    %46 = vector.load %arg2[%c2_55, %c0_56, %c0_57, %c0_58] : memref<3x3x128x128xbf16, #tpu.memory_space<vmem>>, vector<1x1x128x128xbf16>
    %47 = vector.shape_cast %46 : vector<1x1x128x128xbf16> to vector<128x128xbf16>
    %cst_59 = arith.constant dense<0.000000e+00> : vector<256x128xf32>
    %48 = tpu.matmul %45, %47, %cst_59 {dimension_numbers = #tpu.dot_dimension_numbers<[1], [0], [0], [1], [0, 0, 1, 1], [], []>} : vector<256x128xbf16>, vector<128x128xbf16>, vector<256x128xf32> -> vector<256x128xf32>
    %49 = arith.addf %42, %48 : vector<256x128xf32>
    %c0_60 = arith.constant 0 : index
    %c2_61 = arith.constant 2 : index
    %c1_62 = arith.constant 1 : index
    %c0_63 = arith.constant 0 : index
    %50 = vector.load %arg1[%c0_60, %c2_61, %c1_62, %c0_63] : memref<1x18x18x128xbf16, #tpu.memory_space<vmem>>, vector<1x16x16x128xbf16>
    %51 = vector.shape_cast %50 : vector<1x16x16x128xbf16> to vector<16x16x128xbf16>
    %52 = vector.shape_cast %51 : vector<16x16x128xbf16> to vector<256x128xbf16>
    %c2_64 = arith.constant 2 : index
    %c1_65 = arith.constant 1 : index
    %c0_66 = arith.constant 0 : index
    %c0_67 = arith.constant 0 : index
    %53 = vector.load %arg2[%c2_64, %c1_65, %c0_66, %c0_67] : memref<3x3x128x128xbf16, #tpu.memory_space<vmem>>, vector<1x1x128x128xbf16>
    %54 = vector.shape_cast %53 : vector<1x1x128x128xbf16> to vector<128x128xbf16>
    %cst_68 = arith.constant dense<0.000000e+00> : vector<256x128xf32>
    %55 = tpu.matmul %52, %54, %cst_68 {dimension_numbers = #tpu.dot_dimension_numbers<[1], [0], [0], [1], [0, 0, 1, 1], [], []>} : vector<256x128xbf16>, vector<128x128xbf16>, vector<256x128xf32> -> vector<256x128xf32>
    %56 = arith.addf %49, %55 : vector<256x128xf32>
    %c0_69 = arith.constant 0 : index
    %c2_70 = arith.constant 2 : index
    %c2_71 = arith.constant 2 : index
    %c0_72 = arith.constant 0 : index
    %57 = vector.load %arg1[%c0_69, %c2_70, %c2_71, %c0_72] : memref<1x18x18x128xbf16, #tpu.memory_space<vmem>>, vector<1x16x16x128xbf16>
    %58 = vector.shape_cast %57 : vector<1x16x16x128xbf16> to vector<16x16x128xbf16>
    %59 = vector.shape_cast %58 : vector<16x16x128xbf16> to vector<256x128xbf16>
    %c2_73 = arith.constant 2 : index
    %c2_74 = arith.constant 2 : index
    %c0_75 = arith.constant 0 : index
    %c0_76 = arith.constant 0 : index
    %60 = vector.load %arg2[%c2_73, %c2_74, %c0_75, %c0_76] : memref<3x3x128x128xbf16, #tpu.memory_space<vmem>>, vector<1x1x128x128xbf16>
    %61 = vector.shape_cast %60 : vector<1x1x128x128xbf16> to vector<128x128xbf16>
    %cst_77 = arith.constant dense<0.000000e+00> : vector<256x128xf32>
    %62 = tpu.matmul %59, %61, %cst_77 {dimension_numbers = #tpu.dot_dimension_numbers<[1], [0], [0], [1], [0, 0, 1, 1], [], []>} : vector<256x128xbf16>, vector<128x128xbf16>, vector<256x128xf32> -> vector<256x128xf32>
    %63 = arith.addf %56, %62 : vector<256x128xf32>
    %c0_78 = arith.constant 0 : index
    %c0_79 = arith.constant 0 : index
    %64 = vector.load %arg3[%c0_78, %c0_79] : memref<1x128xf32, #tpu.memory_space<vmem>>, vector<1x128xf32>
    %65 = vector.broadcast %64 : vector<1x128xf32> to vector<256x128xf32>
    %66 = arith.mulf %63, %65 : vector<256x128xf32>
    %c0_80 = arith.constant 0 : index
    %c0_81 = arith.constant 0 : index
    %67 = vector.load %arg4[%c0_80, %c0_81] : memref<1x128xf32, #tpu.memory_space<vmem>>, vector<1x128xf32>
    %68 = vector.broadcast %67 : vector<1x128xf32> to vector<256x128xf32>
    %69 = arith.addf %66, %68 : vector<256x128xf32>
    %cst_82 = arith.constant 0.000000e+00 : f32
    %70 = vector.broadcast %cst_82 : f32 to vector<256x128xf32>
    %71 = arith.maximumf %69, %70 : vector<256x128xf32>
    %72 = vector.shape_cast %71 : vector<256x128xf32> to vector<16x16x128xf32>
    %cst_83 = arith.constant 0.000000e+00 : bf16
    %73 = vector.broadcast %cst_83 : bf16 to vector<18x18x128xbf16>
    %c0_84 = arith.constant 0 : index
    %c0_85 = arith.constant 0 : index
    %c0_86 = arith.constant 0 : index
    %74 = vector.load %arg9[%c0_84, %c0_85, %c0_86] : memref<18x18x128xbf16, #tpu.memory_space<vmem>>, vector<18x18x128xbf16>
    tpu.vector_store %arg9[%c0_84, %c0_85, %c0_86], %73 {strides = array<i32>} : memref<18x18x128xbf16, #tpu.memory_space<vmem>>, vector<18x18x128xbf16>,
    %75 = arith.truncf %72 : vector<16x16x128xf32> to vector<16x16x128xbf16>
    %c1_87 = arith.constant 1 : index
    %c1_88 = arith.constant 1 : index
    %c0_89 = arith.constant 0 : index
    %76 = vector.load %arg9[%c1_87, %c1_88, %c0_89] : memref<18x18x128xbf16, #tpu.memory_space<vmem>>, vector<16x16x128xbf16>
    tpu.vector_store %arg9[%c1_87, %c1_88, %c0_89], %75 {strides = array<i32>} : memref<18x18x128xbf16, #tpu.memory_space<vmem>>, vector<16x16x128xbf16>,
    %cst_90 = arith.constant 0.000000e+00 : f32
    %77 = vector.broadcast %cst_90 : f32 to vector<256x128xf32>
    %c0_91 = arith.constant 0 : index
    %c0_92 = arith.constant 0 : index
    %c0_93 = arith.constant 0 : index
    %78 = vector.load %arg9[%c0_91, %c0_92, %c0_93] : memref<18x18x128xbf16, #tpu.memory_space<vmem>>, vector<16x16x128xbf16>
    %79 = vector.shape_cast %78 : vector<16x16x128xbf16> to vector<256x128xbf16>
    %c0_94 = arith.constant 0 : index
    %c0_95 = arith.constant 0 : index
    %c0_96 = arith.constant 0 : index
    %c0_97 = arith.constant 0 : index
    %80 = vector.load %arg5[%c0_94, %c0_95, %c0_96, %c0_97] : memref<3x3x128x128xbf16, #tpu.memory_space<vmem>>, vector<1x1x128x128xbf16>
    %81 = vector.shape_cast %80 : vector<1x1x128x128xbf16> to vector<128x128xbf16>
    %cst_98 = arith.constant dense<0.000000e+00> : vector<256x128xf32>
    %82 = tpu.matmul %79, %81, %cst_98 {dimension_numbers = #tpu.dot_dimension_numbers<[1], [0], [0], [1], [0, 0, 1, 1], [], []>} : vector<256x128xbf16>, vector<128x128xbf16>, vector<256x128xf32> -> vector<256x128xf32>
    %83 = arith.addf %77, %82 : vector<256x128xf32>
    %c0_99 = arith.constant 0 : index
    %c1_100 = arith.constant 1 : index
    %c0_101 = arith.constant 0 : index
    %84 = vector.load %arg9[%c0_99, %c1_100, %c0_101] : memref<18x18x128xbf16, #tpu.memory_space<vmem>>, vector<16x16x128xbf16>
    %85 = vector.shape_cast %84 : vector<16x16x128xbf16> to vector<256x128xbf16>
    %c0_102 = arith.constant 0 : index
    %c1_103 = arith.constant 1 : index
    %c0_104 = arith.constant 0 : index
    %c0_105 = arith.constant 0 : index
    %86 = vector.load %arg5[%c0_102, %c1_103, %c0_104, %c0_105] : memref<3x3x128x128xbf16, #tpu.memory_space<vmem>>, vector<1x1x128x128xbf16>
    %87 = vector.shape_cast %86 : vector<1x1x128x128xbf16> to vector<128x128xbf16>
    %cst_106 = arith.constant dense<0.000000e+00> : vector<256x128xf32>
    %88 = tpu.matmul %85, %87, %cst_106 {dimension_numbers = #tpu.dot_dimension_numbers<[1], [0], [0], [1], [0, 0, 1, 1], [], []>} : vector<256x128xbf16>, vector<128x128xbf16>, vector<256x128xf32> -> vector<256x128xf32>
    %89 = arith.addf %83, %88 : vector<256x128xf32>
    %c0_107 = arith.constant 0 : index
    %c2_108 = arith.constant 2 : index
    %c0_109 = arith.constant 0 : index
    %90 = vector.load %arg9[%c0_107, %c2_108, %c0_109] : memref<18x18x128xbf16, #tpu.memory_space<vmem>>, vector<16x16x128xbf16>
    %91 = vector.shape_cast %90 : vector<16x16x128xbf16> to vector<256x128xbf16>
    %c0_110 = arith.constant 0 : index
    %c2_111 = arith.constant 2 : index
    %c0_112 = arith.constant 0 : index
    %c0_113 = arith.constant 0 : index
    %92 = vector.load %arg5[%c0_110, %c2_111, %c0_112, %c0_113] : memref<3x3x128x128xbf16, #tpu.memory_space<vmem>>, vector<1x1x128x128xbf16>
    %93 = vector.shape_cast %92 : vector<1x1x128x128xbf16> to vector<128x128xbf16>
    %cst_114 = arith.constant dense<0.000000e+00> : vector<256x128xf32>
    %94 = tpu.matmul %91, %93, %cst_114 {dimension_numbers = #tpu.dot_dimension_numbers<[1], [0], [0], [1], [0, 0, 1, 1], [], []>} : vector<256x128xbf16>, vector<128x128xbf16>, vector<256x128xf32> -> vector<256x128xf32>
    %95 = arith.addf %89, %94 : vector<256x128xf32>
    %c1_115 = arith.constant 1 : index
    %c0_116 = arith.constant 0 : index
    %c0_117 = arith.constant 0 : index
    %96 = vector.load %arg9[%c1_115, %c0_116, %c0_117] : memref<18x18x128xbf16, #tpu.memory_space<vmem>>, vector<16x16x128xbf16>
    %97 = vector.shape_cast %96 : vector<16x16x128xbf16> to vector<256x128xbf16>
    %c1_118 = arith.constant 1 : index
    %c0_119 = arith.constant 0 : index
    %c0_120 = arith.constant 0 : index
    %c0_121 = arith.constant 0 : index
    %98 = vector.load %arg5[%c1_118, %c0_119, %c0_120, %c0_121] : memref<3x3x128x128xbf16, #tpu.memory_space<vmem>>, vector<1x1x128x128xbf16>
    %99 = vector.shape_cast %98 : vector<1x1x128x128xbf16> to vector<128x128xbf16>
    %cst_122 = arith.constant dense<0.000000e+00> : vector<256x128xf32>
    %100 = tpu.matmul %97, %99, %cst_122 {dimension_numbers = #tpu.dot_dimension_numbers<[1], [0], [0], [1], [0, 0, 1, 1], [], []>} : vector<256x128xbf16>, vector<128x128xbf16>, vector<256x128xf32> -> vector<256x128xf32>
    %101 = arith.addf %95, %100 : vector<256x128xf32>
    %c1_123 = arith.constant 1 : index
    %c1_124 = arith.constant 1 : index
    %c0_125 = arith.constant 0 : index
    %102 = vector.load %arg9[%c1_123, %c1_124, %c0_125] : memref<18x18x128xbf16, #tpu.memory_space<vmem>>, vector<16x16x128xbf16>
    %103 = vector.shape_cast %102 : vector<16x16x128xbf16> to vector<256x128xbf16>
    %c1_126 = arith.constant 1 : index
    %c1_127 = arith.constant 1 : index
    %c0_128 = arith.constant 0 : index
    %c0_129 = arith.constant 0 : index
    %104 = vector.load %arg5[%c1_126, %c1_127, %c0_128, %c0_129] : memref<3x3x128x128xbf16, #tpu.memory_space<vmem>>, vector<1x1x128x128xbf16>
    %105 = vector.shape_cast %104 : vector<1x1x128x128xbf16> to vector<128x128xbf16>
    %cst_130 = arith.constant dense<0.000000e+00> : vector<256x128xf32>
    %106 = tpu.matmul %103, %105, %cst_130 {dimension_numbers = #tpu.dot_dimension_numbers<[1], [0], [0], [1], [0, 0, 1, 1], [], []>} : vector<256x128xbf16>, vector<128x128xbf16>, vector<256x128xf32> -> vector<256x128xf32>
    %107 = arith.addf %101, %106 : vector<256x128xf32>
    %c1_131 = arith.constant 1 : index
    %c2_132 = arith.constant 2 : index
    %c0_133 = arith.constant 0 : index
    %108 = vector.load %arg9[%c1_131, %c2_132, %c0_133] : memref<18x18x128xbf16, #tpu.memory_space<vmem>>, vector<16x16x128xbf16>
    %109 = vector.shape_cast %108 : vector<16x16x128xbf16> to vector<256x128xbf16>
    %c1_134 = arith.constant 1 : index
    %c2_135 = arith.constant 2 : index
    %c0_136 = arith.constant 0 : index
    %c0_137 = arith.constant 0 : index
    %110 = vector.load %arg5[%c1_134, %c2_135, %c0_136, %c0_137] : memref<3x3x128x128xbf16, #tpu.memory_space<vmem>>, vector<1x1x128x128xbf16>
    %111 = vector.shape_cast %110 : vector<1x1x128x128xbf16> to vector<128x128xbf16>
    %cst_138 = arith.constant dense<0.000000e+00> : vector<256x128xf32>
    %112 = tpu.matmul %109, %111, %cst_138 {dimension_numbers = #tpu.dot_dimension_numbers<[1], [0], [0], [1], [0, 0, 1, 1], [], []>} : vector<256x128xbf16>, vector<128x128xbf16>, vector<256x128xf32> -> vector<256x128xf32>
    %113 = arith.addf %107, %112 : vector<256x128xf32>
    %c2_139 = arith.constant 2 : index
    %c0_140 = arith.constant 0 : index
    %c0_141 = arith.constant 0 : index
    %114 = vector.load %arg9[%c2_139, %c0_140, %c0_141] : memref<18x18x128xbf16, #tpu.memory_space<vmem>>, vector<16x16x128xbf16>
    %115 = vector.shape_cast %114 : vector<16x16x128xbf16> to vector<256x128xbf16>
    %c2_142 = arith.constant 2 : index
    %c0_143 = arith.constant 0 : index
    %c0_144 = arith.constant 0 : index
    %c0_145 = arith.constant 0 : index
    %116 = vector.load %arg5[%c2_142, %c0_143, %c0_144, %c0_145] : memref<3x3x128x128xbf16, #tpu.memory_space<vmem>>, vector<1x1x128x128xbf16>
    %117 = vector.shape_cast %116 : vector<1x1x128x128xbf16> to vector<128x128xbf16>
    %cst_146 = arith.constant dense<0.000000e+00> : vector<256x128xf32>
    %118 = tpu.matmul %115, %117, %cst_146 {dimension_numbers = #tpu.dot_dimension_numbers<[1], [0], [0], [1], [0, 0, 1, 1], [], []>} : vector<256x128xbf16>, vector<128x128xbf16>, vector<256x128xf32> -> vector<256x128xf32>
    %119 = arith.addf %113, %118 : vector<256x128xf32>
    %c2_147 = arith.constant 2 : index
    %c1_148 = arith.constant 1 : index
    %c0_149 = arith.constant 0 : index
    %120 = vector.load %arg9[%c2_147, %c1_148, %c0_149] : memref<18x18x128xbf16, #tpu.memory_space<vmem>>, vector<16x16x128xbf16>
    %121 = vector.shape_cast %120 : vector<16x16x128xbf16> to vector<256x128xbf16>
    %c2_150 = arith.constant 2 : index
    %c1_151 = arith.constant 1 : index
    %c0_152 = arith.constant 0 : index
    %c0_153 = arith.constant 0 : index
    %122 = vector.load %arg5[%c2_150, %c1_151, %c0_152, %c0_153] : memref<3x3x128x128xbf16, #tpu.memory_space<vmem>>, vector<1x1x128x128xbf16>
    %123 = vector.shape_cast %122 : vector<1x1x128x128xbf16> to vector<128x128xbf16>
    %cst_154 = arith.constant dense<0.000000e+00> : vector<256x128xf32>
    %124 = tpu.matmul %121, %123, %cst_154 {dimension_numbers = #tpu.dot_dimension_numbers<[1], [0], [0], [1], [0, 0, 1, 1], [], []>} : vector<256x128xbf16>, vector<128x128xbf16>, vector<256x128xf32> -> vector<256x128xf32>
    %125 = arith.addf %119, %124 : vector<256x128xf32>
    %c2_155 = arith.constant 2 : index
    %c2_156 = arith.constant 2 : index
    %c0_157 = arith.constant 0 : index
    %126 = vector.load %arg9[%c2_155, %c2_156, %c0_157] : memref<18x18x128xbf16, #tpu.memory_space<vmem>>, vector<16x16x128xbf16>
    %127 = vector.shape_cast %126 : vector<16x16x128xbf16> to vector<256x128xbf16>
    %c2_158 = arith.constant 2 : index
    %c2_159 = arith.constant 2 : index
    %c0_160 = arith.constant 0 : index
    %c0_161 = arith.constant 0 : index
    %128 = vector.load %arg5[%c2_158, %c2_159, %c0_160, %c0_161] : memref<3x3x128x128xbf16, #tpu.memory_space<vmem>>, vector<1x1x128x128xbf16>
    %129 = vector.shape_cast %128 : vector<1x1x128x128xbf16> to vector<128x128xbf16>
    %cst_162 = arith.constant dense<0.000000e+00> : vector<256x128xf32>
    %130 = tpu.matmul %127, %129, %cst_162 {dimension_numbers = #tpu.dot_dimension_numbers<[1], [0], [0], [1], [0, 0, 1, 1], [], []>} : vector<256x128xbf16>, vector<128x128xbf16>, vector<256x128xf32> -> vector<256x128xf32>
    %131 = arith.addf %125, %130 : vector<256x128xf32>
    %c0_163 = arith.constant 0 : index
    %c0_164 = arith.constant 0 : index
    %132 = vector.load %arg6[%c0_163, %c0_164] : memref<1x128xf32, #tpu.memory_space<vmem>>, vector<1x128xf32>
    %133 = vector.broadcast %132 : vector<1x128xf32> to vector<256x128xf32>
    %134 = arith.mulf %131, %133 : vector<256x128xf32>
    %c0_165 = arith.constant 0 : index
    %c0_166 = arith.constant 0 : index
    %135 = vector.load %arg7[%c0_165, %c0_166] : memref<1x128xf32, #tpu.memory_space<vmem>>, vector<1x128xf32>
    %136 = vector.broadcast %135 : vector<1x128xf32> to vector<256x128xf32>
    %137 = arith.addf %134, %136 : vector<256x128xf32>
    %cst_167 = arith.constant 0.000000e+00 : f32
    %138 = vector.broadcast %cst_167 : f32 to vector<256x128xf32>
    %139 = arith.maximumf %137, %138 : vector<256x128xf32>
    %140 = vector.shape_cast %139 : vector<256x128xf32> to vector<16x16x128xf32>
    %c0_168 = arith.constant 0 : index
    %c0_169 = arith.constant 0 : index
    %c0_170 = arith.constant 0 : index
    %c0_171 = arith.constant 0 : index
    %141 = vector.load %arg8[%c0_168, %c0_169, %c0_170, %c0_171] : memref<1x16x16x128xf32, #tpu.memory_space<vmem>>, vector<1x16x16x128xf32>
    %142 = vector.shape_cast %141 : vector<1x16x16x128xf32> to vector<16x16x128xf32>
    %143 = vector.shape_cast %140 : vector<16x16x128xf32> to vector<1x16x16x128xf32>
    tpu.vector_store %arg8[%c0_168, %c0_169, %c0_170, %c0_171], %143 {strides = array<i32>} : memref<1x16x16x128xf32, #tpu.memory_space<vmem>>, vector<1x16x16x128xf32>,
    return
  }
  func.func @transform_0(%arg0: i32) -> (i32, i32, i32, i32) {
    %c0_i32 = arith.constant 0 : i32
    %c0_i32_0 = arith.constant 0 : i32
    %c0_i32_1 = arith.constant 0 : i32
    %c0_i32_2 = arith.constant 0 : i32
    return %arg0, %c0_i32, %c0_i32_0, %c0_i32_1 : i32, i32, i32, i32
  }
  func.func @transform_1(%arg0: i32) -> (i32, i32, i32, i32) {
    %c0_i32 = arith.constant 0 : i32
    %c0_i32_0 = arith.constant 0 : i32
    %c0_i32_1 = arith.constant 0 : i32
    %c0_i32_2 = arith.constant 0 : i32
    %c0_i32_3 = arith.constant 0 : i32
    return %c0_i32, %c0_i32_0, %c0_i32_1, %c0_i32_2 : i32, i32, i32, i32
  }
  func.func @transform_2(%arg0: i32) -> (i32, i32) {
    %c0_i32 = arith.constant 0 : i32
    %c0_i32_0 = arith.constant 0 : i32
    %c0_i32_1 = arith.constant 0 : i32
    return %c0_i32, %c0_i32_0 : i32, i32
  }
  func.func @transform_3(%arg0: i32) -> (i32, i32) {
    %c0_i32 = arith.constant 0 : i32
    %c0_i32_0 = arith.constant 0 : i32
    %c0_i32_1 = arith.constant 0 : i32
    return %c0_i32, %c0_i32_0 : i32, i32
  }
  func.func @transform_4(%arg0: i32) -> (i32, i32, i32, i32) {
    %c0_i32 = arith.constant 0 : i32
    %c0_i32_0 = arith.constant 0 : i32
    %c0_i32_1 = arith.constant 0 : i32
    %c0_i32_2 = arith.constant 0 : i32
    %c0_i32_3 = arith.constant 0 : i32
    return %c0_i32, %c0_i32_0, %c0_i32_1, %c0_i32_2 : i32, i32, i32, i32
  }
  func.func @transform_5(%arg0: i32) -> (i32, i32) {
    %c0_i32 = arith.constant 0 : i32
    %c0_i32_0 = arith.constant 0 : i32
    %c0_i32_1 = arith.constant 0 : i32
    return %c0_i32, %c0_i32_0 : i32, i32
  }
  func.func @transform_6(%arg0: i32) -> (i32, i32) {
    %c0_i32 = arith.constant 0 : i32
    %c0_i32_0 = arith.constant 0 : i32
    %c0_i32_1 = arith.constant 0 : i32
    return %c0_i32, %c0_i32_0 : i32, i32
  }
  func.func @transform_7(%arg0: i32) -> (i32, i32, i32, i32) {
    %c0_i32 = arith.constant 0 : i32
    %c0_i32_0 = arith.constant 0 : i32
    %c0_i32_1 = arith.constant 0 : i32
    %c0_i32_2 = arith.constant 0 : i32
    return %arg0, %c0_i32, %c0_i32_0, %c0_i32_1 : i32, i32, i32, i32
  }
}

</mosaic_0001>

<bundles_post_ra>
// kernel: up_concate_conv_forward.1
= control target key start
LH: loop header
LB: loop body
LE: loop exit
PB: predicated region body
PF: predicated region fallthrough
CT: control target
= control target key end

     0   :  { %s11281_s24 = smov 0   ;;  %s14923_s0 = inlined_call_operand.vmem [shape: bf16[2,18,18,128], index: 0, kind: input, shape index: {}]   ;;  %s14924_s1 = inlined_call_operand.vmem [shape: bf16[3,3,128,128], index: 1, kind: input, shape index: {}]   ;;  %s14925_s2 = inlined_call_operand.vmem [shape: f32[1,128], index: 2, kind: input, shape index: {}]   ;;  %s14926_s3 = inlined_call_operand.vmem [shape: f32[1,128], index: 3, kind: input, shape index: {}]   ;;  %s14927_s4 = inlined_call_operand.vmem [shape: bf16[3,3,128,128], index: 4, kind: input, shape index: {}]   ;;  %s14928_s5 = inlined_call_operand.vmem [shape: f32[1,128], index: 5, kind: input, shape index: {}]   ;;  %s14929_s6 = inlined_call_operand.vmem [shape: f32[1,128], index: 6, kind: input, shape index: {}]   ;;  %s14930_s7 = inlined_call_operand.vmem [shape: f32[2,16,16,128], index: 7, kind: output, shape index: {}]  }
   0x1 LB: > { %s9417_s25 = sadd.s32 4294967295, %s11238_s24   ;;  %p9421_p0 = scmp.ge.s32.totalorder %s11238_s24, 1  ;;  %s11238_s24 = sphi %s11281_s24, %s17_s24  }
   0x2   : > { %p237_p1 = scmp.lt.s32.totalorder %s11238_s24, 3 }
   0x4   : > { %p238_p2 = pnand %p9421_p0, %p237_p1 }
   0x6   : > { %241 = sbr.rel (%p238_p2) target bundleno = 1497 (0x5d9), region = 48 }
   0xb   : > { %v10963_v0 = vld [vmem:[%s14924_s1 + $0x78] sm:$0xff]  ;;  %p269_p3 = scmp.lt.s32.totalorder %s9417_s25, 1  ;;  %v10962_v2 = vld [vmem:[%s14924_s1 + $0x70] sm:$0xff]  ;;  %v10961_v4 = vld [vmem:[%s14924_s1 + $0x68] sm:$0xff]  ;;  %vm344_vm0 = vsmask.f32 3328 }
   0xc   : > { %v10955_v1 = vld [vmem:[%s14924_s1 + $0x38] sm:$0xff]  ;;  %860 = vmatpush.bf16.msra.mxu0 %v10963_v0  ;;  %11172 = vmatpush.bf16.msra.mxu2 %v10963_v0  ;;  %v10954_v3 = vld [vmem:[%s14924_s1 + $0x30] sm:$0xff]  ;;  %v10953_v5 = vld [vmem:[%s14924_s1 + $0x28] sm:$0xff]  ;;  %vm345_vm1 = vsmask.f32 7440  ;;  %vm1230_vm3 = vcmask 1042432  }
   0xd   : > { %s15132_s25 = smov (!%p269_p3, %s9417_s25), 1  ;;  %11180 = vmatpush.bf16.msra.mxu3 %v10955_v1  ;;  %1093 = vmatpush.bf16.msra.mxu1 %v10955_v1  ;;  %v10960_v16 = vld [vmem:[%s14924_s1 + $0x60] sm:$0xff]  ;;  %v10959_v32 = vld [vmem:[%s14924_s1 + $0x58] sm:$0xff]  ;;  %vm11335_vm2 = vmor %vm344_vm0, %vm345_vm1  ;;  %vm1231_vm4 = vcmask 1046532   ;;  %vm4955_vm6 = vcmask 1043456   ;;  %vm4962_vm11 = vcmask 1040384  }
   0xe   : > { %s11188_s11 = smul.u32 216, %s15132_s25  ;;  %v10952_v21 = vld [vmem:[%s14924_s1 + $0x20] sm:$0xff]  ;;  %v10951_v35 = vld [vmem:[%s14924_s1 + $0x18] sm:$0xff]  ;;  %v10958_v45 = vld [vmem:[%s14924_s1 + $0x50] sm:$0xff]  ;;  %vm4956_vm7 = vsmask.f32 7938 }
   0xf   : > { %v10950_v49 = vld [vmem:[%s14924_s1 + $0x10] sm:$0xff]  ;;  %v10957_v59 = vld [vmem:[%s14924_s1 + $0x48] sm:$0xff]  ;;  %vm11636_vm5 = vmor %vm1230_vm3, %vm1231_vm4  ;;  %vm4631_vm8 = vsmask.f32 256  ;;  %vm4632_vm9 = vsmask.f32 4368 }
  0x10   : > { %861 = vmatpush.bf16.msra.mxu0 %v10962_v2  ;;  %11173 = vmatpush.bf16.msra.mxu2 %v10962_v2  ;;  %s11310_s16 = scalar_lea.vmem %s14923_s0, %s11188_s11  ;;  %v10949_v0 = vld [vmem:[%s14924_s1 + $0x8] sm:$0xff]  ;;  %vm12598_vm10 = vmand %vm4955_vm6, %vm4956_vm7  ;;  %s10931_s29 = sshll.u32 %s15132_s25, 8 }
  0x11   : > { %11181 = vmatpush.bf16.msra.mxu3 %v10954_v3  ;;  %1094 = vmatpush.bf16.msra.mxu1 %v10954_v3  ;;  %v280_v6 = vld [vmem:[%s11310_s16] sm:$0xf]  ;;  %v281_v7 = vld [vmem:[%s11310_s16 + $0x4] sm:$0xf]  ;;  %v328_v13 = vld [vmem:[%s11310_s16 + $0x8] sm:$0x1]  ;;  %s14765_s8 = scalar_lea.vmem %s14930_s7, %s10931_s29 }
  0x12   : > { %v348_v8 = vshrl.u32 %v280_v6, 16  ;;  %v351_v9 = vshll.u32 %v280_v6, 16  ;;  %v357_v10 = vshll.u32 %v281_v7, 16  ;;  %v361_v11 = vshrl.u32 %v281_v7, 16  ;;  %v296_v12 = vld [vmem:[%s11310_s16 + $0x60] sm:$0xf]  ;;  %vm12658_vm12 = vmor %vm4631_vm8, %vm4632_vm9 }
  0x13   : > { %v297_v14 = vld [vmem:[%s11310_s16 + $0x64] sm:$0xf]  ;;  %v540_v15 = vshrl.u32 %v296_v12, 16  ;;  %v336_v22 = vld [vmem:[%s11310_s16 + $0x68] sm:$0x1]  ;;  %v543_v24 = vshll.u32 %v296_v12, 16  ;;  %vm12668_vm13 = vmand %vm4962_vm11, %vm4631_vm8 }
  0x14   : > { %862 = vmatpush.bf16.msra.mxu0 %v10961_v4  ;;  %11174 = vmatpush.bf16.msra.mxu2 %v10961_v4  ;;  %v350_v17 = vrot.slane %v348_v8, 4  ;;  %v353_v18 = vrot.slane %v351_v9, 5  ;;  %v359_v19 = vrot.slane %v357_v10, 5  ;;  %v363_v20 = vrot.slane %v361_v11, 4  ;;  %v282_v37 = vld [vmem:[%s11310_s16 + $0xc] sm:$0xf] }
  0x15   : > { %11182 = vmatpush.bf16.msra.mxu3 %v10953_v5  ;;  %1095 = vmatpush.bf16.msra.mxu1 %v10953_v5  ;;  %v542_v23 = vrot.slane %v540_v15, 4  ;;  %v549_v25 = vshll.u32 %v297_v14, 16  ;;  %v367_v27 = vshll.u32 %v328_v13, 16  ;;  %v553_v28 = vshrl.u32 %v297_v14, 16  ;;  %v283_v44 = vld [vmem:[%s11310_s16 + $0x10] sm:$0xf] }
  0x16   : > { %v354_v26 = vor.u32 %v353_v18, %v350_v17  ;;  %v364_v29 = vor.u32 %v363_v20, %v359_v19  ;;  %v545_v30 = vrot.slane %v543_v24, 5  ;;  %v559_v34 = vshll.u32 %v336_v22, 16  ;;  %v298_v48 = vld [vmem:[%s11310_s16 + $0x6c] sm:$0xf]  ;;  %v299_v50 = vld [vmem:[%s11310_s16 + $0x70] sm:$0xf] }
  0x17   : > { %v551_v31 = vrot.slane %v549_v25, 5  ;;  %v555_v33 = vrot.slane %v553_v28, 4  ;;  %v369_v39 = vrot.slane %v367_v27, 5  ;;  %v372_v52 = vshrl.u32 %v282_v37, 16  ;;  %v10956_v5 = vld [vmem:[%s14924_s1 + $0x40] sm:$0xff]  ;;  %v10971_v17 = vld [vmem:[%s14924_s1 + $0xb8] sm:$0xff] }
  0x18   : > { %863 = vmatpush.bf16.msra.mxu0 %v10960_v16  ;;  %11175 = vmatpush.bf16.msra.mxu2 %v10960_v16  ;;  %v546_v36 = vor.u32 %v545_v30, %v542_v23  ;;  %v355_v38 = vrot.slane %v354_v26, 4  ;;  %v365_v42 = vrot.slane %v364_v29, 4  ;;  %v561_v47 = vrot.slane %v559_v34, 5  ;;  %v11368_v10 = vld [vmem:[%s11310_s16 + $0x14] sm:$0x1]  ;;  %v10948_v15 = vld [vmem:[%s14924_s1] sm:$0xff] }
  0x19   : > { %11183 = vmatpush.bf16.msra.mxu3 %v10952_v21  ;;  %1096 = vmatpush.bf16.msra.mxu1 %v10952_v21  ;;  %v556_v40 = vor.u32 %v555_v33, %v551_v31  ;;  %v375_v53 = vshll.u32 %v282_v37, 16  ;;  %v381_v54 = vshll.u32 %v283_v44, 16  ;;  %v385_v57 = vshrl.u32 %v283_v44, 16  ;;  %v337_v16 = vld [vmem:[%s11310_s16 + $0x74] sm:$0x1]  ;;  %v10995_v18 = vld [vmem:[%s14924_s1 + $0xf8] sm:$0xff] }
  0x1a   : > { %v547_v43 = vrot.slane %v546_v36, 4  ;;  %v360_v51 = vsel %vm11335_vm2, %v355_v38, %v359_v19  ;;  %v370_v55 = vsel %vm11335_vm2, %v365_v42, %v369_v39  ;;  %v564_v58 = vshrl.u32 %v298_v48, 16  ;;  %v10940_v24 = vld [vmem:[%s11310_s16 + $0x60] sm:$0xff]  ;;  %v11003_v29 = vld [vmem:[%s14924_s1 + $0x138] sm:$0xff]  ;;  %v10970_v30 = vld [vmem:[%s14924_s1 + $0xb0] sm:$0xff] }
  0x1b   : > { %v557_v46 = vrot.slane %v556_v40, 4  ;;  %v567_v61 = vshll.u32 %v298_v48, 16  ;;  %v573_v62 = vshll.u32 %v299_v50, 16  ;;  %v577_v63 = vshrl.u32 %v299_v50, 16  ;;  %v10932_v25 = vld [vmem:[%s11310_s16] sm:$0xff]  ;;  %v10969_v50 = vld [vmem:[%s14924_s1 + $0xa8] sm:$0xff] }
  0x1c   : > { %864 = vmatpush.bf16.msra.mxu0 %v10959_v32  ;;  %11176 = vmatpush.bf16.msra.mxu2 %v10959_v32  ;;  %v552_v56 = vsel %vm11335_vm2, %v547_v43, %v551_v31  ;;  %v748_v1 = vunpack.c.l.b16 %v360_v51  ;;  %v749_v2 = vunpack.c.l.b16 %v370_v55  ;;  %v374_v3 = vrot.slane %v372_v52, 4  ;;  %v10994_v31 = vld [vmem:[%s14924_s1 + $0xf0] sm:$0xff]  ;;  %v284_v32 = vld [vmem:[%s11310_s16 + $0x18] sm:$0xf]  ;;  %v11398_v33 = vld [vmem:[%s11310_s16 + $0x1c] sm:$0xf] }
  0x1d   : > { %11184 = vmatpush.bf16.msra.mxu3 %v10951_v35  ;;  %1097 = vmatpush.bf16.msra.mxu1 %v10951_v35  ;;  %v562_v60 = vsel %vm11335_vm2, %v557_v46, %v561_v47  ;;  %v377_v4 = vrot.slane %v375_v53, 5  ;;  %v764_v6 = vunpack.c.l.b16 %v552_v56  ;;  %v11365_v8 = vrot.slane %v381_v54, 5  ;;  %v300_v37 = vld [vmem:[%s11310_s16 + $0x78] sm:$0xf]  ;;  %v301_v42 = vld [vmem:[%s11310_s16 + $0x7c] sm:$0xf] }
  0x1e   : > { %v765_v7 = vunpack.c.l.b16 %v562_v60  ;;  %v387_v9 = vrot.slane %v385_v57, 4  ;;  %v566_v11 = vrot.slane %v564_v58, 4  ;;  %v569_v12 = vrot.slane %v567_v61, 5  ;;  %v11002_v43 = vld [vmem:[%s14924_s1 + $0x130] sm:$0xff]  ;;  %v10993_v51 = vld [vmem:[%s14924_s1 + $0xe8] sm:$0xff] }
  0x1f   : > { %v11370_v13 = vrot.slane %v573_v62, 5  ;;  %v579_v14 = vrot.slane %v577_v63, 4  ;;  %v378_v19 = vor.u32 %v377_v4, %v374_v3  ;;  %v780_v20 = vpack.c.b16 %v749_v2, %v748_v1  ;;  %v11001_v62 = vld [vmem:[%s14924_s1 + $0x128] sm:$0xff]  ;;  %v11427_v1 = vld [vmem:[%s11310_s16 + $0x20] sm:$0x1] }
  0x20   : > { %865 = vmatpush.bf16.msra.mxu0 %v10958_v45  ;;  %11177 = vmatpush.bf16.msra.mxu2 %v10958_v45  ;;  %v788_v21 = vpack.c.b16 %v765_v7, %v764_v6  ;;  %v388_v22 = vor.u32 %v387_v9, %v11365_v8  ;;  %v391_v23 = vshll.u32 %v11368_v10, 16  ;;  %v570_v26 = vor.u32 %v569_v12, %v566_v11 }
  0x21   : > { %11185 = vmatpush.bf16.msra.mxu3 %v10950_v49  ;;  %1098 = vmatpush.bf16.msra.mxu1 %v10950_v49  ;;  %v580_v27 = vor.u32 %v579_v14, %v11370_v13  ;;  %v583_v28 = vshll.u32 %v337_v16, 16  ;;  %v379_v34 = vrot.slane %v378_v19, 4  ;;  %v396_v44 = vshrl.u32 %v284_v32, 16  ;;  %v10933_v19 = vld [vmem:[%s11310_s16 + $0xc] sm:$0xff] }
  0x22   : > { %v389_v35 = vrot.slane %v388_v22, 4  ;;  %v393_v36 = vrot.slane %v391_v23, 5  ;;  %v571_v38 = vrot.slane %v570_v26, 4  ;;  %v399_v45 = vshll.u32 %v284_v32, 16 }
  0x23   : > { %v581_v39 = vrot.slane %v580_v27, 4  ;;  %v585_v40 = vrot.slane %v583_v28, 5  ;;  %v405_v46 = vshll.u32 %v11398_v33, 16  ;;  %v409_v47 = vshrl.u32 %v11398_v33, 16  ;;  %v11435_v27 = vld [vmem:[%s11310_s16 + $0x28] sm:$0xf] }
  0x24   : > { %866 = vmatpush.bf16.msra.mxu0 %v10957_v59  ;;  %11178 = vmatpush.bf16.msra.mxu2 %v10957_v59  ;;  %v588_v48 = vshrl.u32 %v300_v37, 16  ;;  %v591_v49 = vshll.u32 %v300_v37, 16  ;;  %v384_v52 = vsel %vm11335_vm2, %v379_v34, %v11365_v8  ;;  %v394_v53 = vsel %vm11335_vm2, %v389_v35, %v393_v36  ;;  %v338_v8 = vld [vmem:[%s11310_s16 + $0x80] sm:$0x1]  ;;  %v302_v28 = vld [vmem:[%s11310_s16 + $0x84] sm:$0xf] }
  0x25   : > { %11186 = vmatpush.bf16.msra.mxu3 %v10949_v0  ;;  %1099 = vmatpush.bf16.msra.mxu1 %v10949_v0  ;;  %v597_v54 = vshll.u32 %v301_v42, 16  ;;  %v601_v55 = vshrl.u32 %v301_v42, 16  ;;  %v576_v56 = vsel %vm11335_vm2, %v571_v38, %v11370_v13  ;;  %v586_v57 = vsel %vm11335_vm2, %v581_v39, %v585_v40  ;;  %v11000_v37 = vld [vmem:[%s14924_s1 + $0x120] sm:$0xff] }
  0x26   : > { %v398_v58 = vrot.slane %v396_v44, 4  ;;  %v401_v59 = vrot.slane %v399_v45, 5  ;;  %v407_v60 = vrot.slane %v405_v46, 5  ;;  %v411_v61 = vrot.slane %v409_v47, 4 }
  0x27   : > { %v750_v63 = vunpack.c.l.b16 %v384_v52  ;;  %v751_v0 = vunpack.c.l.b16 %v394_v53  ;;  %v590_v2 = vrot.slane %v588_v48, 4  ;;  %v593_v3 = vrot.slane %v591_v49, 5 }
  0x28   : > { %867 = vmatpush.bf16.msra.mxu0 %v10956_v5  ;;  %11179 = vmatpush.bf16.msra.mxu2 %v10956_v5  ;;  %v766_v4 = vunpack.c.l.b16 %v576_v56  ;;  %v767_v5 = vunpack.c.l.b16 %v586_v57  ;;  %v599_v6 = vrot.slane %v597_v54, 5  ;;  %v603_v7 = vrot.slane %v601_v55, 4  ;;  %v11459_v55 = vld [vmem:[%s11310_s16 + $0x2c] sm:$0x1] }
  0x29   : > { %11187 = vmatpush.bf16.msra.mxu3 %v10948_v15  ;;  %1100 = vmatpush.bf16.msra.mxu1 %v10948_v15  ;;  %v402_v9 = vor.u32 %v401_v59, %v398_v58  ;;  %v412_v11 = vor.u32 %v411_v61, %v407_v60  ;;  %v415_v12 = vshll.u32 %v11427_v1, 16  ;;  %v594_v13 = vor.u32 %v593_v3, %v590_v2 }
  0x2a   : > { %v781_v14 = vpack.c.b16 %v751_v0, %v750_v63  ;;  %v789_v15 = vpack.c.b16 %v767_v5, %v766_v4  ;;  %v604_v16 = vor.u32 %v603_v7, %v599_v6  ;;  %v429_v39 = vshll.u32 %v11435_v27, 16  ;;  %v10934_v7 = vld [vmem:[%s11310_s16 + $0x18] sm:$0xff] }
  0x2b   : > { %868 = vmatmul.bf16.vlgmr.msra.gmra.mxu0 %v780_v20  ;;  %908 = vmatmul.bf16.vlgmr.msra.gmra.mxu2 %v788_v21  ;;  %v403_v20 = vrot.slane %v402_v9, 4  ;;  %v413_v21 = vrot.slane %v412_v11, 4  ;;  %v417_v22 = vrot.slane %v415_v12, 5  ;;  %v595_v23 = vrot.slane %v594_v13, 4  ;;  %v289_v9 = vld [vmem:[%s11310_s16 + $0x34] sm:$0xf] }
  0x2c   : > { %1474 = vmatpush.bf16.msrb.mxu2 %v10971_v17  ;;  %1141 = vmatmul.bf16.vlgmr.msra.gmra.mxu3 %v10940_v24  ;;  %v607_v17 = vshll.u32 %v338_v8, 16  ;;  %v286_v24 = vld [vmem:[%s11310_s16 + $0x24] sm:$0xf]  ;;  %v433_v40 = vshrl.u32 %v11435_v27, 16  ;;  %v612_v42 = vshrl.u32 %v302_v28, 16  ;;  %v615_v44 = vshll.u32 %v302_v28, 16 }
  0x2d   : > { %1789 = vmatpush.bf16.msrb.mxu3 %v10995_v18  ;;  %1101 = vmatmul.bf16.vlgmr.msra.gmra.mxu1 %v10932_v25  ;;  %v10941_v18 = vld [vmem:[%s11310_s16 + $0x6c] sm:$0xff]  ;;  %v605_v25 = vrot.slane %v604_v16, 4  ;;  %v408_v32 = vsel %vm11335_vm2, %v403_v20, %v407_v60  ;;  %v418_v34 = vsel %vm11335_vm2, %v413_v21, %v417_v22  ;;  %v420_v35 = vshrl.u32 %v286_v24, 16 }
  0x2e   : > { %2471 = vmatpush.bf16.msrb.mxu0 %v11003_v29  ;;  %v609_v26 = vrot.slane %v607_v17, 5  ;;  %v303_v29 = vld [vmem:[%s11310_s16 + $0x88] sm:$0xf]  ;;  %v423_v36 = vshll.u32 %v286_v24, 16  ;;  %v600_v38 = vsel %vm11335_vm2, %v595_v23, %v599_v6  ;;  %v752_v47 = vunpack.c.l.b16 %v408_v32  ;;  %v339_v60 = vld [vmem:[%s11310_s16 + $0x8c] sm:$0x1] }
  0x2f   : > { %v621_v45 = vshll.u32 %v303_v29, 16  ;;  %v625_v46 = vshrl.u32 %v303_v29, 16  ;;  %v753_v48 = vunpack.c.l.b16 %v418_v34  ;;  %v768_v49 = vunpack.c.l.b16 %v600_v38  ;;  %v10942_v6 = vld [vmem:[%s11310_s16 + $0x78] sm:$0xff]  ;;  %v288_v8 = vld [vmem:[%s11310_s16 + $0x30] sm:$0xf] }
  0x30   : > { %1475 = vmatpush.bf16.msrb.mxu2 %v10970_v30  ;;  %v10968_v30 = vld [vmem:[%s14924_s1 + $0xa0] sm:$0xff]  ;;  %v425_v52 = vrot.slane %v423_v36, 5  ;;  %v431_v53 = vrot.slane %v429_v39, 5  ;;  %v435_v54 = vrot.slane %v433_v40, 4  ;;  %v614_v56 = vrot.slane %v612_v42, 4  ;;  %v10967_v23 = vld [vmem:[%s14924_s1 + $0x98] sm:$0xff] }
  0x31   : > { %1790 = vmatpush.bf16.msrb.mxu3 %v10994_v31  ;;  %v10992_v31 = vld [vmem:[%s14924_s1 + $0xe0] sm:$0xff]  ;;  %v617_v57 = vrot.slane %v615_v44, 5  ;;  %v623_v58 = vrot.slane %v621_v45, 5  ;;  %v627_v59 = vrot.slane %v625_v46, 4  ;;  %v782_v61 = vpack.c.b16 %v753_v48, %v752_v47  ;;  %v304_v13 = vld [vmem:[%s11310_s16 + $0x90] sm:$0xf] }
  0x32   : > { %2472 = vmatpush.bf16.msrb.mxu0 %v11002_v43  ;;  %v610_v43 = vsel %vm11335_vm2, %v605_v25, %v609_v26  ;;  %v436_v63 = vor.u32 %v435_v54, %v431_v53  ;;  %v439_v0 = vshll.u32 %v11459_v55, 16  ;;  %v631_v5 = vshll.u32 %v339_v60, 16  ;;  %v10991_v24 = vld [vmem:[%s14924_s1 + $0xd8] sm:$0xff]  ;;  %v10943_v60 = vld [vmem:[%s11310_s16 + $0x84] sm:$0xff] }
  0x33   : > { %v618_v3 = vor.u32 %v617_v57, %v614_v56  ;;  %v628_v4 = vor.u32 %v627_v59, %v623_v58  ;;  %v447_v20 = vshll.u32 %v288_v8, 16  ;;  %v453_v21 = vshll.u32 %v289_v9, 16  ;;  %v11487_v40 = vld [vmem:[%s11310_s16 + $0x38] sm:$0x1] }
  0x34   : > { %1476 = vmatpush.bf16.msrb.mxu2 %v10969_v50  ;;  %v422_v50 = vrot.slane %v420_v35, 4  ;;  %v441_v12 = vrot.slane %v439_v0, 5  ;;  %v457_v22 = vshrl.u32 %v289_v9, 16  ;;  %v636_v25 = vshrl.u32 %v304_v13, 16  ;;  %v340_v46 = vld [vmem:[%s11310_s16 + $0x98] sm:$0x1] }
  0x35   : > { %1791 = vmatpush.bf16.msrb.mxu3 %v10993_v51  ;;  %v769_v51 = vunpack.c.l.b16 %v610_v43  ;;  %v619_v16 = vrot.slane %v618_v3, 4  ;;  %v629_v17 = vrot.slane %v628_v4, 4  ;;  %v639_v26 = vshll.u32 %v304_v13, 16  ;;  %v10966_v9 = vld [vmem:[%s14924_s1 + $0x90] sm:$0xff] }
  0x36   : > { %2473 = vmatpush.bf16.msrb.mxu0 %v11001_v62  ;;  %v426_v62 = vor.u32 %v425_v52, %v422_v50  ;;  %v455_v38 = vrot.slane %v453_v21, 5  ;;  %v459_v39 = vrot.slane %v457_v22, 4  ;;  %v638_v42 = vrot.slane %v636_v25, 4 }
  0x37   : > { %v790_v2 = vpack.c.b16 %v769_v51, %v768_v49  ;;  %v624_v34 = vsel %vm11335_vm2, %v619_v16, %v623_v58  ;;  %v641_v43 = vrot.slane %v639_v26, 5  ;;  %v463_v52 = vshll.u32 %v11487_v40, 16  ;;  %v10998_v16 = vld [vmem:[%s14924_s1 + $0x110] sm:$0xff] }
  0x38   : > { %1477 = vmatpush.bf16.msrb.mxu2 %v10968_v30  ;;  %v427_v11 = vrot.slane %v426_v62, 4  ;;  %v10999_v30 = vld [vmem:[%s14924_s1 + $0x118] sm:$0xff]  ;;  %v770_v49 = vunpack.c.l.b16 %v624_v34  ;;  %v655_v57 = vshll.u32 %v340_v46, 16 }
  0x39   : > { %1792 = vmatpush.bf16.msrb.mxu3 %v10992_v31  ;;  %v642_v54 = vor.u32 %v641_v43, %v638_v42  ;;  %v341_v42 = vld [vmem:[%s11310_s16 + $0xa4] sm:$0x1] }
  0x3a   : > { %2474 = vmatpush.bf16.msrb.mxu0 %v11000_v37  ;;  %v432_v31 = vsel %vm11335_vm2, %v427_v11, %v431_v53  ;;  %v449_v37 = vrot.slane %v447_v20, 5  ;;  %v460_v53 = vor.u32 %v459_v39, %v455_v38  ;;  %v657_v4 = vrot.slane %v655_v57, 5  ;;  %v10990_v11 = vld [vmem:[%s14924_s1 + $0xd0] sm:$0xff] }
  0x3b   : > { %873 = vmatmul.bf16.gmra.mxu0 %v781_v14  ;;  %913 = vmatmul.bf16.gmra.mxu2 %v789_v15  ;;  %v305_v14 = vld [vmem:[%s11310_s16 + $0x94] sm:$0xf]  ;;  %v437_v15 = vrot.slane %v436_v63, 4  ;;  %v754_v47 = vunpack.c.l.b16 %v432_v31  ;;  %v465_v63 = vrot.slane %v463_v52, 5 }
  0x3c   : > { %1146 = vmatmul.bf16.gmra.mxu3 %v10941_v18  ;;  %v633_v18 = vrot.slane %v631_v5, 5  ;;  %v645_v28 = vshll.u32 %v305_v14, 16  ;;  %v649_v29 = vshrl.u32 %v305_v14, 16  ;;  %1478 = vmatpush.bf16.msrb.mxu2 %v10967_v23  ;;  %v461_v0 = vrot.slane %v460_v53, 4  ;;  %v290_v5 = vld [vmem:[%s11310_s16 + $0x3c] sm:$0xf] }
  0x3d   : > { %1106 = vmatmul.bf16.gmra.mxu1 %v10933_v19  ;;  %v444_v19 = vshrl.u32 %v288_v8, 16  ;;  %1793 = vmatpush.bf16.msrb.mxu3 %v10991_v24  ;;  %v442_v32 = vsel %vm11335_vm2, %v437_v15, %v441_v12  ;;  %v307_v8 = vld [vmem:[%s11310_s16 + $0xa0] sm:$0xf]  ;;  %v10936_v52 = vld [vmem:[%s11310_s16 + $0x30] sm:$0xff]  ;;  %v292_v53 = vld [vmem:[%s11310_s16 + $0x48] sm:$0xf] }
  0x3e   : > { %v634_v35 = vsel %vm11335_vm2, %v629_v17, %v633_v18  ;;  %2475 = vmatpush.bf16.msrb.mxu0 %v10999_v30  ;;  %v647_v44 = vrot.slane %v645_v28, 5  ;;  %v651_v45 = vrot.slane %v649_v29, 4  ;;  %v755_v48 = vunpack.c.l.b16 %v442_v32 }
  0x3f   : > { %v446_v36 = vrot.slane %v444_v19, 4  ;;  %v771_v50 = vunpack.c.l.b16 %v634_v35  ;;  %v466_v13 = vsel %vm11335_vm2, %v461_v0, %v465_v63  ;;  %v468_v17 = vshrl.u32 %v290_v5, 16  ;;  %v11519_v35 = vld [vmem:[%s11310_s16 + $0x44] sm:$0x1] }
  0x40   : > { %v652_v56 = vor.u32 %v651_v45, %v647_v44  ;;  %v783_v58 = vpack.c.b16 %v755_v48, %v754_v47  ;;  %v471_v18 = vshll.u32 %v290_v5, 16  ;;  %1479 = vmatpush.bf16.msrb.mxu2 %v10966_v9  ;;  %v669_v23 = vshll.u32 %v307_v8, 16  ;;  %v10965_v5 = vld [vmem:[%s14924_s1 + $0x88] sm:$0xff] }
  0x41   : > { %v450_v51 = vor.u32 %v449_v37, %v446_v36  ;;  %v791_v59 = vpack.c.b16 %v771_v50, %v770_v49  ;;  %1794 = vmatpush.bf16.msrb.mxu3 %v10990_v11  ;;  %v673_v24 = vshrl.u32 %v307_v8, 16  ;;  %v757_v26 = vunpack.c.l.b16 %v466_v13  ;;  %v10997_v13 = vld [vmem:[%s14924_s1 + $0x108] sm:$0xff] }
  0x42   : > { %v653_v3 = vrot.slane %v652_v56, 4  ;;  %2476 = vmatpush.bf16.msrb.mxu0 %v10998_v16  ;;  %v470_v30 = vrot.slane %v468_v17, 4  ;;  %v473_v31 = vrot.slane %v471_v18, 5  ;;  %v487_v46 = vshll.u32 %v11519_v35, 16 }
  0x43   : > { %v451_v62 = vrot.slane %v450_v51, 4  ;;  %v675_v39 = vrot.slane %v673_v24, 4  ;;  %v679_v50 = vshll.u32 %v341_v42, 16  ;;  %v10944_v51 = vld [vmem:[%s11310_s16 + $0x90] sm:$0xff]  ;;  %v492_v0 = vshrl.u32 %v292_v53, 16 }
  0x44   : > { %v658_v15 = vsel %vm11335_vm2, %v653_v3, %v657_v4  ;;  %v474_v45 = vor.u32 %v473_v31, %v470_v30  ;;  %v489_v57 = vrot.slane %v487_v46, 5  ;;  %1480 = vmatpush.bf16.msrb.mxu2 %v10965_v5  ;;  %v10945_v46 = vld [vmem:[%s11310_s16 + $0x9c] sm:$0xff] }
  0x45   : > { %v456_v12 = vsel %vm11335_vm2, %v451_v62, %v455_v38  ;;  %v773_v29 = vunpack.c.l.b16 %v658_v15  ;;  %v671_v38 = vrot.slane %v669_v23, 5  ;;  %v681_v63 = vrot.slane %v679_v50, 5  ;;  %v11550_v23 = vld [vmem:[%s11310_s16 + $0x50] sm:$0x1] }
  0x46   : > { %v756_v25 = vunpack.c.l.b16 %v456_v12  ;;  %v475_v56 = vrot.slane %v474_v45, 4  ;;  %2477 = vmatpush.bf16.msrb.mxu0 %v10997_v13 }
  0x47   : > { %v676_v49 = vor.u32 %v675_v39, %v671_v38 }
  0x48   : > { %v784_v43 = vpack.c.b16 %v757_v26, %v756_v25 }
  0x49   : > { %v677_v62 = vrot.slane %v676_v49, 4 }
  0x4b   : > { %878 = vmatmul.bf16.gmra.mxu0 %v782_v61  ;;  %918 = vmatmul.bf16.gmra.mxu2 %v790_v2  ;;  %v10935_v61 = vld [vmem:[%s11310_s16 + $0x24] sm:$0xff]  ;;  %v643_v2 = vrot.slane %v642_v54, 4  ;;  %v293_v54 = vld [vmem:[%s11310_s16 + $0x4c] sm:$0xf]  ;;  %v682_v18 = vsel %vm11335_vm2, %v677_v62, %v681_v63 }
  0x4c   : > { %1151 = vmatmul.bf16.gmra.mxu3 %v10942_v6  ;;  %v11495_v6 = vld [vmem:[%s11310_s16 + $0x40] sm:$0xf]  ;;  %v501_v3 = vshll.u32 %v293_v54, 16  ;;  %v505_v4 = vshrl.u32 %v293_v54, 16  ;;  %v294_v54 = vld [vmem:[%s11310_s16 + $0x54] sm:$0xf] }
  0x4d   : > { %1111 = vmatmul.bf16.gmra.mxu1 %v10934_v7  ;;  %v306_v7 = vld [vmem:[%s11310_s16 + $0x9c] sm:$0xf]  ;;  %v648_v14 = vsel %vm11335_vm2, %v643_v2, %v647_v44  ;;  %v477_v19 = vshll.u32 %v11495_v6, 16  ;;  %v481_v20 = vshrl.u32 %v11495_v6, 16  ;;  %v495_v2 = vshll.u32 %v292_v53, 16 }
  0x4e   : > { %v660_v21 = vshrl.u32 %v306_v7, 16  ;;  %v663_v22 = vshll.u32 %v306_v7, 16  ;;  %v772_v28 = vunpack.c.l.b16 %v648_v14  ;;  %v10989_v7 = vld [vmem:[%s14924_s1 + $0xc8] sm:$0xff]  ;;  %v11011_v14 = vld [vmem:[%s14924_s1 + $0x178] sm:$0xff]  ;;  %v516_v5 = vshrl.u32 %v294_v54, 16 }
  0x4f   : > { %v479_v32 = vrot.slane %v477_v19, 5  ;;  %v483_v34 = vrot.slane %v481_v20, 4  ;;  %1795 = vmatpush.bf16.msrb.mxu3 %v10989_v7  ;;  %2897 = vmatpush.bf16.msrb.mxu1 %v11011_v14  ;;  %v494_v19 = vrot.slane %v492_v0, 4  ;;  %v497_v20 = vrot.slane %v495_v2, 5 }
  0x50   : > { %v662_v36 = vrot.slane %v660_v21, 4  ;;  %v665_v37 = vrot.slane %v663_v22, 5  ;;  %v792_v44 = vpack.c.b16 %v773_v29, %v772_v28  ;;  %v503_v21 = vrot.slane %v501_v3, 5  ;;  %v342_v29 = vld [vmem:[%s11310_s16 + $0xb0] sm:$0x1]  ;;  %v11009_v3 = vld [vmem:[%s14924_s1 + $0x168] sm:$0xff] }
  0x51   : > { %v484_v47 = vor.u32 %v483_v34, %v479_v32  ;;  %v480_v15 = vsel %vm11335_vm2, %v475_v56, %v479_v32  ;;  %v507_v22 = vrot.slane %v505_v4, 4  ;;  %v775_v34 = vunpack.c.l.b16 %v682_v18  ;;  %v295_v56 = vld [vmem:[%s11310_s16 + $0x58] sm:$0xf]  ;;  %v10996_v4 = vld [vmem:[%s14924_s1 + $0x100] sm:$0xff] }
  0x52   : > { %v666_v48 = vor.u32 %v665_v37, %v662_v36  ;;  %v758_v30 = vunpack.c.l.b16 %v480_v15  ;;  %v498_v36 = vor.u32 %v497_v20, %v494_v19  ;;  %v511_v37 = vshll.u32 %v11550_v23, 16  ;;  %2478 = vmatpush.bf16.msrb.mxu0 %v10996_v4  ;;  %v11008_v19 = vld [vmem:[%s14924_s1 + $0x160] sm:$0xff] }
  0x53   : > { %v519_v7 = vshll.u32 %v294_v54, 16  ;;  %v518_v20 = vrot.slane %v516_v5, 4  ;;  %v11035_v54 = vld [vmem:[%s14924_s1 + $0x1b8] sm:$0xff]  ;;  %v11004_v5 = vld [vmem:[%s14924_s1 + $0x140] sm:$0xff] }
  0x54   : > { %v513_v49 = vrot.slane %v511_v37, 5 }
  0x5b   : > { %883 = vmatmul.bf16.gmra.mxu0 %v783_v58  ;;  %923 = vmatmul.bf16.gmra.mxu2 %v791_v59  ;;  %v308_v58 = vld [vmem:[%s11310_s16 + $0xa8] sm:$0xf]  ;;  %v309_v59 = vld [vmem:[%s11310_s16 + $0xac] sm:$0xf] }
  0x5c   : > { %1156 = vmatmul.bf16.gmra.mxu3 %v10943_v60  ;;  %v485_v60 = vrot.slane %v484_v47, 4  ;;  %v684_v8 = vshrl.u32 %v308_v58, 16  ;;  %v687_v9 = vshll.u32 %v308_v58, 16  ;;  %v693_v11 = vshll.u32 %v309_v59, 16  ;;  %v10937_v47 = vld [vmem:[%s11310_s16 + $0x3c] sm:$0xff]  ;;  %v11010_v58 = vld [vmem:[%s14924_s1 + $0x170] sm:$0xff] }
  0x5d   : > { %1116 = vmatmul.bf16.gmra.mxu1 %v10935_v61  ;;  %v667_v61 = vrot.slane %v666_v48, 4  ;;  %v697_v12 = vshrl.u32 %v309_v59, 16  ;;  %v499_v48 = vrot.slane %v498_v36, 4  ;;  %v311_v59 = vld [vmem:[%s11310_s16 + $0xb8] sm:$0xf] }
  0x5e   : > { %v490_v16 = vsel %vm11335_vm2, %v485_v60, %v489_v57  ;;  %v686_v24 = vrot.slane %v684_v8, 4  ;;  %v689_v25 = vrot.slane %v687_v9, 5  ;;  %v695_v26 = vrot.slane %v693_v11, 5  ;;  %v310_v57 = vld [vmem:[%s11310_s16 + $0xb4] sm:$0xf]  ;;  %v10964_v60 = vld [vmem:[%s14924_s1 + $0x80] sm:$0xff]  ;;  %2898 = vmatpush.bf16.msrb.mxu1 %v11010_v58 }
  0x5f   : > { %v672_v17 = vsel %vm11335_vm2, %v667_v61, %v671_v38  ;;  %v699_v28 = vrot.slane %v697_v12, 4  ;;  %v759_v31 = vunpack.c.l.b16 %v490_v16  ;;  %v508_v38 = vor.u32 %v507_v22, %v503_v21  ;;  %v10988_v61 = vld [vmem:[%s14924_s1 + $0xc0] sm:$0xff]  ;;  %1481 = vmatpush.bf16.msrb.mxu2 %v10964_v60  ;;  %v11607_v58 = vld [vmem:[%s11310_s16 + $0x10] sm:$0xf] }
  0x60   : > { %v774_v32 = vunpack.c.l.b16 %v672_v17  ;;  %v690_v39 = vor.u32 %v689_v25, %v686_v24  ;;  %v504_v62 = vsel %vm11335_vm2, %v499_v48, %v503_v21  ;;  %v525_v8 = vshll.u32 %v295_v56, 16  ;;  %1796 = vmatpush.bf16.msrb.mxu3 %v10988_v61  ;;  %v11587_v25 = vld [vmem:[%s11310_s16 + $0x5c] sm:$0x1] }
  0x61   : > { %v700_v42 = vor.u32 %v699_v28, %v695_v26  ;;  %v509_v50 = vrot.slane %v508_v38, 4  ;;  %v529_v9 = vshrl.u32 %v295_v56, 16  ;;  %v708_v11 = vshrl.u32 %v310_v57, 16  ;;  %v11043_v56 = vld [vmem:[%s14924_s1 + $0x1f8] sm:$0xff] }
  0x62   : > { %v793_v45 = vpack.c.b16 %v775_v34, %v774_v32  ;;  %v711_v12 = vshll.u32 %v310_v57, 16  ;;  %v717_v13 = vshll.u32 %v311_v59, 16  ;;  %v721_v14 = vshrl.u32 %v311_v59, 16  ;;  %2899 = vmatpush.bf16.msrb.mxu1 %v11009_v3  ;;  %v9777_v57 = vld [vmem:[%s11310_s16 + $0xc] sm:$0xf] }
  0x63   : > { %v514_v63 = vsel %vm11335_vm2, %v509_v50, %v513_v49  ;;  %v760_v15 = vunpack.c.l.b16 %v504_v62  ;;  %v521_v21 = vrot.slane %v519_v7, 5  ;;  %v527_v22 = vrot.slane %v525_v8, 5  ;;  %3212 = vmatpush.bf16.msra.mxu2 %v11035_v54  ;;  %v11051_v7 = vld [vmem:[%s14924_s1 + $0x238] sm:$0xff] }
  0x64   : > { %v761_v16 = vunpack.c.l.b16 %v514_v63  ;;  %v531_v24 = vrot.slane %v529_v9, 4  ;;  %v713_v28 = vrot.slane %v711_v12, 5  ;;  %v535_v37 = vshll.u32 %v11587_v25, 16  ;;  %3894 = vmatpush.bf16.msra.mxu3 %v11043_v56  ;;  %v11005_v63 = vld [vmem:[%s14924_s1 + $0x148] sm:$0xff]  ;;  %4320 = vmatpush.bf16.msra.mxu0 %v11051_v7 }
  0x65   : > { %v522_v36 = vor.u32 %v521_v21, %v518_v20  ;;  %v1968_v3 = vshll.u32 %v11607_v58, 16  ;;  %v1972_v4 = vshrl.u32 %v11607_v58, 16  ;;  %v11202_v20 = vld [vmem:[%s11310_s16 + $0x4] sm:$0xf] }
  0x66   : > { %2900 = vmatpush.bf16.msrb.mxu1 %v11008_v19  ;;  %v786_v32 = vpack.c.b16 %v761_v16, %v760_v15  ;;  %v532_v38 = vor.u32 %v531_v24, %v527_v22  ;;  %v537_v48 = vrot.slane %v535_v37, 5  ;;  %v1235_v21 = vrot.slane %v11202_v20, 5  ;;  %v10939_v24 = vld [vmem:[%s11310_s16 + $0x54] sm:$0xff]  ;;  %v11203_v37 = vld [vmem:[%s11310_s16 + $0x8] sm:$0x1] }
  0x67   : > { %v1970_v15 = vrot.slane %v1968_v3, 5  ;;  %v1974_v16 = vrot.slane %v1972_v4, 4 }
  0x68   : > { %v533_v49 = vrot.slane %v532_v38, 4  ;;  %v1238_v38 = vrot.slane %v11203_v37, 5  ;;  %v9783_v37 = vld [vmem:[%s11310_s16 + $0x24] sm:$0xf] }
  0x6a   : > { %v538_v60 = vsel %vm11335_vm2, %v533_v49, %v537_v48  ;;  %v11642_v49 = vld [vmem:[%s11310_s16 + $0x1c] sm:$0xf] }
  0x6b   : > { %888 = vmatmul.bf16.gmra.mxu0 %v784_v43  ;;  %928 = vmatmul.bf16.gmra.mxu2 %v792_v44  ;;  %v703_v43 = vshll.u32 %v342_v29, 16  ;;  %v785_v44 = vpack.c.b16 %v759_v31, %v758_v30  ;;  %v719_v29 = vrot.slane %v717_v13, 5  ;;  %v723_v30 = vrot.slane %v721_v14, 4  ;;  %v343_v31 = vld [vmem:[%s11310_s16 + $0xbc] sm:$0x1] }
  0x6c   : > { %1161 = vmatmul.bf16.gmra.mxu3 %v10944_v51  ;;  %v691_v51 = vrot.slane %v690_v39, 4  ;;  %v763_v9 = vunpack.c.l.b16 %v538_v60 }
  0x6d   : > { %1121 = vmatmul.bf16.gmra.mxu1 %v10936_v52  ;;  %v701_v52 = vrot.slane %v700_v42, 4  ;;  %v705_v53 = vrot.slane %v703_v43, 5  ;;  %v724_v42 = vor.u32 %v723_v30, %v719_v29  ;;  %v727_v43 = vshll.u32 %v343_v31, 16 }
  0x6e   : > { %v696_v0 = vsel %vm11335_vm2, %v691_v51, %v695_v26  ;;  %v710_v26 = vrot.slane %v708_v11, 4  ;;  %v2658_v31 = vrot.slane %v11607_v58, 5  ;;  %v1996_v58 = vshrl.u32 %v11642_v49, 16 }
  0x6f   : > { %v706_v2 = vsel %vm11335_vm2, %v701_v52, %v705_v53  ;;  %v776_v17 = vunpack.c.l.b16 %v696_v0  ;;  %v725_v51 = vrot.slane %v724_v42, 4  ;;  %v729_v52 = vrot.slane %v727_v43, 5  ;;  %v11006_v53 = vld [vmem:[%s14924_s1 + $0x150] sm:$0xff] }
  0x70   : > { %v777_v18 = vunpack.c.l.b16 %v706_v2  ;;  %v714_v39 = vor.u32 %v713_v28, %v710_v26  ;;  %v1959_v0 = vshrl.u32 %v9777_v57, 16  ;;  %v1962_v2 = vshll.u32 %v9777_v57, 16  ;;  %v1182_v26 = vld [vmem:[%s11310_s16] sm:$0xe] }
  0x71   : > { %v730_v62 = vsel %vm11335_vm2, %v725_v51, %v729_v52  ;;  %v1992_v57 = vshll.u32 %v11642_v49, 16 }
  0x72   : > { %v794_v34 = vpack.c.b16 %v777_v18, %v776_v17  ;;  %v715_v50 = vrot.slane %v714_v39, 4  ;;  %v779_v12 = vunpack.c.l.b16 %v730_v62  ;;  %v1961_v13 = vrot.slane %v1959_v0, 4  ;;  %v9779_v17 = vld [vmem:[%s11310_s16 + $0x14] sm:$0x1] }
  0x73   : > { %v1964_v14 = vrot.slane %v1962_v2, 5  ;;  %v1978_v30 = vshll.u32 %v9779_v17, 16  ;;  %v2661_v48 = vrot.slane %v9779_v17, 5  ;;  %v1994_v7 = vrot.slane %v1992_v57, 5 }
  0x74   : > { %v720_v61 = vsel %vm11335_vm2, %v715_v50, %v719_v29  ;;  %v1975_v29 = vor.u32 %v1974_v16, %v1970_v15 }
  0x75   : > { %v778_v11 = vunpack.c.l.b16 %v720_v61  ;;  %v1965_v28 = vor.u32 %v1964_v14, %v1961_v13  ;;  %v1183_v13 = vld [vmem:[%s11310_s16 + $0xc] sm:$0xe]  ;;  %v11204_v14 = vld [vmem:[%s11310_s16 + $0x10] sm:$0xf] }
  0x76   : > { %v1976_v43 = vrot.slane %v1975_v29, 4  ;;  %v9874_v29 = vld [vmem:[%s11310_s16 + $0x18] sm:$0xe] }
  0x77   : > { %v795_v19 = vpack.c.b16 %v779_v12, %v778_v11  ;;  %v1966_v42 = vrot.slane %v1965_v28, 4  ;;  %v9570_v28 = vrot.slane %v1183_v13, 9  ;;  %v9785_v13 = vld [vmem:[%s11310_s16 + $0x2c] sm:$0x1] }
  0x79   : > { %v1971_v54 = vsel %vm11335_vm2, %v1966_v42, %v1970_v15  ;;  %v1242_v15 = vrot.slane %v11204_v14, 5  ;;  %v11042_v42 = vld [vmem:[%s14924_s1 + $0x1f0] sm:$0xff] }
  0x7a   : > { %3895 = vmatpush.bf16.msra.mxu3 %v11042_v42 }
  0x7b   : > { %893 = vmatmul.bf16.gmra.mxu0 %v785_v44  ;;  %933 = vmatmul.bf16.gmra.mxu2 %v793_v45  ;;  %v11007_v44 = vld [vmem:[%s14924_s1 + $0x158] sm:$0xff]  ;;  %v10946_v45 = vld [vmem:[%s11310_s16 + $0xa8] sm:$0xff] }
  0x7c   : > { %1166 = vmatmul.bf16.gmra.mxu3 %v10945_v46  ;;  %v10938_v46 = vld [vmem:[%s11310_s16 + $0x48] sm:$0xff]  ;;  %2901 = vmatpush.bf16.msrb.mxu1 %v11007_v44  ;;  %v1980_v44 = vrot.slane %v1978_v30, 5  ;;  %v1244_v30 = vrot.slane %v1242_v15, 4 }
  0x7d   : > { %1126 = vmatmul.bf16.gmra.mxu1 %v10937_v47  ;;  %v523_v47 = vrot.slane %v522_v36, 4  ;;  %v1237_v36 = vrot.slane %v1235_v21, 4 }
  0x7e   : > { %v1981_v56 = vsel %vm11335_vm2, %v1976_v43, %v1980_v44  ;;  %v9890_v43 = vrot.slane %v9874_v29, 9 }
  0x7f   : > { %v528_v59 = vsel %vm11335_vm2, %v523_v47, %v527_v22  ;;  %v10947_v22 = vld [vmem:[%s11310_s16 + $0xb4] sm:$0xff]  ;;  %v2660_v47 = vrot.slane %v2658_v31, 4  ;;  %v1239_v51 = vsel %vm11636_vm5, %v1237_v36, %v1238_v38  ;;  %v2360_v0 = vunpack.c.l.b16 %v1981_v56 }
  0x80   : > { %2902 = vmatpush.bf16.msrb.mxu1 %v11006_v53  ;;  %v762_v8 = vunpack.c.l.b16 %v528_v59  ;;  %v1363_v62 = vunpack.c.l.b16 %v1239_v51  ;;  %v11034_v38 = vld [vmem:[%s14924_s1 + $0x1b0] sm:$0xff]  ;;  %v2007_v51 = vshrl.u32 %v9783_v37, 16 }
  0x81   : > { %v2662_v60 = vsel %vm11636_vm5, %v2660_v47, %v2661_v48  ;;  %v1243_v47 = vsel %vm11636_vm5, %v9570_v28, %v1242_v15  ;;  %3213 = vmatpush.bf16.msra.mxu2 %v11034_v38  ;;  %v1252_v38 = vrot.slane %v11427_v1, 5 }
  0x82   : > { %v787_v18 = vpack.c.b16 %v763_v9, %v762_v8  ;;  %v1998_v8 = vrot.slane %v1996_v58, 4  ;;  %v9782_v9 = vld [vmem:[%s11310_s16 + $0x20] sm:$0x1] }
  0x84   : > { %2903 = vmatpush.bf16.msrb.mxu1 %v11005_v63  ;;  %v2359_v63 = vunpack.c.l.b16 %v1971_v54  ;;  %v1999_v20 = vor.u32 %v1998_v8, %v1994_v7 }
  0x86   : > { %v2391_v12 = vpack.c.b16 %v2360_v0, %v2359_v63  ;;  %v1364_v63 = vunpack.c.l.b16 %v1243_v47 }
  0x88   : > { %2904 = vmatpush.bf16.msrb.mxu1 %v11004_v5  ;;  %v2786_v5 = vunpack.c.l.b16 %v2662_v60 }
  0x8b   : > { %898 = vmatmul.bf16.gmra.mxu0 %v786_v32  ;;  %938 = vmatmul.bf16.gmra.mxu2 %v794_v34  ;;  %v9873_v32 = vld [vmem:[%s11310_s16 + $0xc] sm:$0xe]  ;;  %v9569_v34 = vrot.slane %v1182_v26, 9 }
  0x8c   : > { %1171 = vmatmul.bf16.gmra.mxu3 %v10946_v45  ;;  %v9780_v45 = vld [vmem:[%s11310_s16 + $0x18] sm:$0xf] }
  0x8d   : > { %1131 = vmatmul.bf16.gmra.mxu1 %v10938_v46  ;;  %v9889_v46 = vrot.slane %v9873_v32, 9  ;;  %v1236_v50 = vsel %vm11636_vm5, %v9569_v34, %v1235_v21  ;;  %v1983_v52 = vshrl.u32 %v9780_v45, 16  ;;  %v1986_v53 = vshll.u32 %v9780_v45, 16 }
  0x8e   : > { %v1362_v61 = vunpack.c.l.b16 %v1236_v50  ;;  %v2002_v21 = vshll.u32 %v9782_v9, 16  ;;  %v2000_v34 = vrot.slane %v1999_v20, 4  ;;  %v2668_v45 = vrot.slane %v9782_v9, 5 }
  0x8f   : > { %v2659_v59 = vsel %vm11636_vm5, %v9889_v46, %v2658_v31  ;;  %v1985_v2 = vrot.slane %v1983_v52, 4  ;;  %v1988_v3 = vrot.slane %v1986_v53, 5  ;;  %v1245_v31 = vrot.slane %v11368_v10, 5  ;;  %v11675_v46 = vld [vmem:[%s11310_s16 + $0x28] sm:$0xf] }
  0x90   : > { %v2785_v4 = vunpack.c.l.b16 %v2659_v59  ;;  %v1394_v11 = vpack.c.b16 %v1363_v62, %v1362_v61  ;;  %v2004_v36 = vrot.slane %v2002_v21, 5  ;;  %v2010_v52 = vshll.u32 %v9783_v37, 16  ;;  %v9875_v37 = vld [vmem:[%s11310_s16 + $0x24] sm:$0xe] }
  0x91   : > { %v1989_v16 = vor.u32 %v1988_v3, %v1985_v2  ;;  %v2016_v57 = vshll.u32 %v11675_v46, 16  ;;  %v2020_v58 = vshrl.u32 %v11675_v46, 16  ;;  %v11050_v2 = vld [vmem:[%s14924_s1 + $0x230] sm:$0xff] }
  0x92   : > { %v2005_v56 = vsel %vm11335_vm2, %v2000_v34, %v2004_v36  ;;  %4321 = vmatpush.bf16.msra.mxu0 %v11050_v2 }
  0x93   : > { %v1990_v32 = vrot.slane %v1989_v16, 4 }
  0x95   : > { %v1995_v50 = vsel %vm11335_vm2, %v1990_v32, %v1994_v7  ;;  %v2012_v7 = vrot.slane %v2010_v52, 5  ;;  %v2672_v32 = vrot.slane %v11675_v46, 5  ;;  %v11711_v46 = vld [vmem:[%s11310_s16 + $0x34] sm:$0xf] }
  0x96   : > { %v2361_v3 = vunpack.c.l.b16 %v1995_v50 }
  0x97   : > { %v2674_v47 = vrot.slane %v2672_v32, 4 }
  0x9b   : > { %903 = vmatmul.bf16.gmra.mxu0 %v787_v18  ;;  %943 = vmatmul.bf16.gmra.mxu2 %v795_v19  ;;  %v10972_v18 = vld [vmem:[%s11310_s16 + $0xc] sm:$0xff]  ;;  %v2817_v19 = vpack.c.b16 %v2786_v5, %v2785_v4  ;;  %v2362_v4 = vunpack.c.l.b16 %v2005_v56  ;;  %v2009_v5 = vrot.slane %v2007_v51, 4 }
  0x9c   : > { %1176 = vmatmul.bf16.gmra.mxu3 %v10947_v22 }
  0x9d   : > { %1136 = vmatmul.bf16.gmra.mxu1 %v10939_v24  ;;  %v2665_v24 = vrot.slane %v11642_v49, 5  ;;  %v1246_v49 = vsel %vm11636_vm5, %v1244_v30, %v1245_v31  ;;  %v2013_v20 = vor.u32 %v2012_v7, %v2009_v5  ;;  %v2026_v30 = vshll.u32 %v9785_v13, 16 }
  0x9e   : > { %v1365_v0 = vunpack.c.l.b16 %v1246_v49 }
  0x9f   : > { %v2667_v44 = vrot.slane %v2665_v24, 4  ;;  %v2666_v60 = vsel %vm11636_vm5, %v9890_v43, %v2665_v24  ;;  %v10973_v24 = vld [vmem:[%s11310_s16 + $0x18] sm:$0xff]  ;;  %v2014_v42 = vrot.slane %v2013_v20, 4 }
  0xa0   : > { %v2787_v8 = vunpack.c.l.b16 %v2666_v60  ;;  %v1395_v16 = vpack.c.b16 %v1365_v0, %v1364_v63  ;;  %v2040_v60 = vshll.u32 %v11711_v46, 16 }
  0xa1   : > { %v2669_v61 = vsel %vm11636_vm5, %v2667_v44, %v2668_v45  ;;  %v2028_v44 = vrot.slane %v2026_v30, 5  ;;  %v9786_v45 = vld [vmem:[%s11310_s16 + $0x30] sm:$0xf] }
  0xa2   : > { %v2788_v9 = vunpack.c.l.b16 %v2669_v61  ;;  %v2034_v56 = vshll.u32 %v9786_v45, 16  ;;  %v2044_v61 = vshrl.u32 %v11711_v46, 16 }
  0xa4   : > { %v2818_v28 = vpack.c.b16 %v2788_v9, %v2787_v8 }
  0xa8   : > { %v869_v17 = vpop.f32.mrf.mxu0 }
  0xaa   : > { %v1102_v22 = vpop.f32.mrf.mxu1 }
  0xab   : > { %v11663_v26 = vadd.f32 %v1102_v22, %v869_v17  ;;  %1482 = vmatmul.bf16.vlgmr.msrb.gmra.mxu2 %v1394_v11  ;;  %2479 = vmatmul.bf16.vlgmr.msrb.gmra.mxu0 %v2391_v12  ;;  %v2018_v11 = vrot.slane %v2016_v57, 5  ;;  %v2022_v12 = vrot.slane %v2020_v58, 4  ;;  %v2392_v17 = vpack.c.b16 %v2362_v4, %v2361_v3 }
  0xac   : > { %1797 = vmatmul.bf16.vlgmr.msrb.gmra.mxu3 %v10972_v18  ;;  %v1184_v18 = vld [vmem:[%s11310_s16 + $0x18] sm:$0xe] }
  0xad   : > { %2905 = vmatmul.bf16.vlgmr.msrb.gmra.mxu1 %v2817_v19  ;;  %v1249_v19 = vrot.slane %v11398_v33, 5  ;;  %v2023_v29 = vor.u32 %v2022_v12, %v2018_v11  ;;  %v9571_v36 = vrot.slane %v1184_v18, 9  ;;  %v2019_v1 = vsel %vm11335_vm2, %v2014_v42, %v2018_v11 }
  0xae   : > { %v909_v10 = vpop.f32.mrf.mxu2  ;;  %v2363_v7 = vunpack.c.l.b16 %v2019_v1  ;;  %v2036_v11 = vrot.slane %v2034_v56, 5 }
  0xaf   : > { %v1142_v48 = vpop.f32.mrf.mxu3  ;;  %v1251_v33 = vrot.slane %v1249_v19, 4  ;;  %v2024_v43 = vrot.slane %v2023_v29, 4  ;;  %v1250_v50 = vsel %vm11636_vm5, %v9571_v36, %v1249_v19 }
  0xb0   : > { %v11683_v53 = vadd.f32 %v1142_v48, %v909_v10  ;;  %v871_v54 = vpop.f32.mrf.mxu0  ;;  %v9891_v10 = vrot.slane %v9875_v37, 9  ;;  %v2675_v48 = vrot.slane %v9785_v13, 5  ;;  %v1366_v4 = vunpack.c.l.b16 %v1250_v50  ;;  %v11041_v50 = vld [vmem:[%s14924_s1 + $0x1e8] sm:$0xff] }
  0xb1   : > { %v1253_v52 = vsel %vm11636_vm5, %v1251_v33, %v1252_v38  ;;  %v2679_v38 = vrot.slane %v11711_v46, 5  ;;  %v11033_v46 = vld [vmem:[%s14924_s1 + $0x1a8] sm:$0xff]  ;;  %3896 = vmatpush.bf16.msra.mxu3 %v11041_v50 }
  0xb2   : > { %v1104_v59 = vpop.f32.mrf.mxu1  ;;  %v2673_v0 = vsel %vm11636_vm5, %v9891_v10, %v2672_v32  ;;  %v2676_v2 = vsel %vm11636_vm5, %v2674_v47, %v2675_v48  ;;  %v1367_v5 = vunpack.c.l.b16 %v1253_v52  ;;  %3214 = vmatpush.bf16.msra.mxu2 %v11033_v46 }
  0xb3   : > { %v11693_v62 = vadd.f32 %v1104_v59, %v871_v54  ;;  %v2031_v54 = vshrl.u32 %v9786_v45, 16  ;;  %v2029_v59 = vsel %vm11335_vm2, %v2024_v43, %v2028_v44  ;;  %v2789_v12 = vunpack.c.l.b16 %v2673_v0  ;;  %v9876_v44 = vld [vmem:[%s11310_s16 + $0x30] sm:$0xe] }
  0xb4   : > { %v2364_v8 = vunpack.c.l.b16 %v2029_v59  ;;  %v2790_v13 = vunpack.c.l.b16 %v2676_v2  ;;  %v1396_v19 = vpack.c.b16 %v1367_v5, %v1366_v4  ;;  %v1259_v45 = vrot.slane %v11459_v55, 5 }
  0xb5   : > { %v2033_v9 = vrot.slane %v2031_v54, 4  ;;  %v2681_v52 = vrot.slane %v2679_v38, 4  ;;  %v11750_v54 = vld [vmem:[%s11310_s16 + $0x40] sm:$0xf] }
  0xb6   : > { %v911_v14 = vpop.f32.mrf.mxu2  ;;  %v2393_v20 = vpack.c.b16 %v2364_v8, %v2363_v7  ;;  %v2819_v32 = vpack.c.b16 %v2790_v13, %v2789_v12  ;;  %v2064_v5 = vshll.u32 %v11750_v54, 16  ;;  %v2068_v7 = vshrl.u32 %v11750_v54, 16 }
  0xb7   : > { %v1144_v15 = vpop.f32.mrf.mxu3  ;;  %v2686_v50 = vrot.slane %v11750_v54, 5  ;;  %v11786_v54 = vld [vmem:[%s11310_s16 + $0x4c] sm:$0xf] }
  0xb8   : > { %v11701_v21 = vadd.f32 %v1144_v15, %v911_v14  ;;  %v874_v22 = vpop.f32.mrf.mxu0  ;;  %v2042_v14 = vrot.slane %v2040_v60, 5  ;;  %v2046_v15 = vrot.slane %v2044_v61, 4 }
  0xba   : > { %v1107_v31 = vpop.f32.mrf.mxu1  ;;  %v2047_v36 = vor.u32 %v2046_v15, %v2042_v14  ;;  %v11049_v15 = vld [vmem:[%s14924_s1 + $0x228] sm:$0xff] }
  0xbb   : > { %v11705_v34 = vadd.f32 %v1107_v31, %v874_v22  ;;  %1487 = vmatmul.bf16.gmra.mxu2 %v1395_v16  ;;  %2484 = vmatmul.bf16.gmra.mxu0 %v2392_v17  ;;  %v9788_v16 = vld [vmem:[%s11310_s16 + $0x38] sm:$0x1]  ;;  %v1185_v22 = vld [vmem:[%s11310_s16 + $0x24] sm:$0xe] }
  0xbc   : > { %1802 = vmatmul.bf16.gmra.mxu3 %v10973_v24  ;;  %v1256_v24 = vrot.slane %v11435_v27, 5  ;;  %v10974_v31 = vld [vmem:[%s11310_s16 + $0x24] sm:$0xff]  ;;  %v2050_v37 = vshll.u32 %v9788_v16, 16  ;;  %v9572_v43 = vrot.slane %v1185_v22, 9  ;;  %v2048_v47 = vrot.slane %v2047_v36, 4  ;;  %4322 = vmatpush.bf16.msra.mxu0 %v11049_v15 }
  0xbd   : > { %2910 = vmatmul.bf16.gmra.mxu1 %v2818_v28  ;;  %v2037_v28 = vor.u32 %v2036_v11, %v2033_v9  ;;  %v2682_v1 = vrot.slane %v9788_v16, 5 }
  0xbe   : > { %v914_v49 = vpop.f32.mrf.mxu2  ;;  %v1258_v27 = vrot.slane %v1256_v24, 4  ;;  %v2052_v48 = vrot.slane %v2050_v37, 5  ;;  %v1257_v56 = vsel %vm11636_vm5, %v9572_v43, %v1256_v24  ;;  %v2066_v24 = vrot.slane %v2064_v5, 5 }
  0xbf   : > { %v1147_v51 = vpop.f32.mrf.mxu3  ;;  %v2038_v10 = vrot.slane %v2037_v28, 4  ;;  %v2683_v11 = vsel %vm11636_vm5, %v2681_v52, %v2682_v1  ;;  %v1368_v13 = vunpack.c.l.b16 %v1257_v56  ;;  %v2070_v28 = vrot.slane %v2068_v7, 4  ;;  %v9877_v1 = vld [vmem:[%s11310_s16 + $0x3c] sm:$0xe] }
  0xc0   : > { %v11719_v57 = vadd.f32 %v1147_v51, %v914_v49  ;;  %v876_v58 = vpop.f32.mrf.mxu0  ;;  %v9789_v49 = vld [vmem:[%s11310_s16 + $0x3c] sm:$0xf]  ;;  %v9892_v51 = vrot.slane %v9876_v44, 9  ;;  %v1260_v59 = vsel %vm11636_vm5, %v1258_v27, %v1259_v45  ;;  %v2053_v4 = vsel %vm11335_vm2, %v2048_v47, %v2052_v48 }
  0xc1   : > { %v2043_v60 = vsel %vm11335_vm2, %v2038_v10, %v2042_v14  ;;  %v2055_v61 = vshrl.u32 %v9789_v49, 16  ;;  %v1369_v14 = vunpack.c.l.b16 %v1260_v59  ;;  %v2792_v22 = vunpack.c.l.b16 %v2683_v11  ;;  %v10975_v10 = vld [vmem:[%s11310_s16 + $0x30] sm:$0xff] }
  0xc2   : > { %v1109_v63 = vpop.f32.mrf.mxu1  ;;  %v2680_v9 = vsel %vm11636_vm5, %v9892_v51, %v2679_v38  ;;  %v2365_v16 = vunpack.c.l.b16 %v2043_v60  ;;  %v11205_v38 = vld [vmem:[%s11310_s16 + $0x34] sm:$0xf]  ;;  %v2071_v48 = vor.u32 %v2070_v28, %v2066_v24  ;;  %v1266_v56 = vrot.slane %v11487_v40, 5 }
  0xc3   : > { %v11729_v3 = vadd.f32 %v1109_v63, %v876_v58  ;;  %v2058_v63 = vshll.u32 %v9789_v49, 16  ;;  %v1397_v36 = vpack.c.b16 %v1369_v14, %v1368_v13  ;;  %v1263_v43 = vrot.slane %v11205_v38, 5 }
  0xc4   : > { %v2072_v59 = vrot.slane %v2071_v48, 4 }
  0xc6   : > { %v916_v17 = vpop.f32.mrf.mxu2 }
  0xc7   : > { %v1149_v18 = vpop.f32.mrf.mxu3 }
  0xc8   : > { %v11734_v29 = vadd.f32 %v1149_v18, %v916_v17  ;;  %v879_v30 = vpop.f32.mrf.mxu0  ;;  %v2366_v17 = vunpack.c.l.b16 %v2053_v4  ;;  %v2057_v18 = vrot.slane %v2055_v61, 4  ;;  %v9792_v61 = vld [vmem:[%s11310_s16 + $0x48] sm:$0xf] }
  0xc9   : > { %v2079_v11 = vshrl.u32 %v9792_v61, 16  ;;  %v2082_v13 = vshll.u32 %v9792_v61, 16 }
  0xca   : > { %v1112_v33 = vpop.f32.mrf.mxu1  ;;  %v2394_v37 = vpack.c.b16 %v2366_v17, %v2365_v16  ;;  %v2088_v17 = vshll.u32 %v11786_v54, 16 }
  0xcb   : > { %v11738_v42 = vadd.f32 %v1112_v33, %v879_v30  ;;  %1492 = vmatmul.bf16.gmra.mxu2 %v1396_v19  ;;  %2489 = vmatmul.bf16.gmra.mxu0 %v2393_v20  ;;  %v2060_v19 = vrot.slane %v2058_v63, 5  ;;  %v2791_v20 = vunpack.c.l.b16 %v2680_v9  ;;  %v9791_v30 = vld [vmem:[%s11310_s16 + $0x44] sm:$0x1]  ;;  %v1186_v33 = vld [vmem:[%s11310_s16 + $0x30] sm:$0xe]  ;;  %v9893_v63 = vrot.slane %v9877_v1, 9 }
  0xcc   : > { %1807 = vmatmul.bf16.gmra.mxu3 %v10974_v31  ;;  %v2074_v49 = vshll.u32 %v9791_v30, 16  ;;  %v9573_v52 = vrot.slane %v1186_v33, 9  ;;  %v2689_v4 = vrot.slane %v9791_v30, 5 }
  0xcd   : > { %2915 = vmatmul.bf16.gmra.mxu1 %v2819_v32  ;;  %v2061_v44 = vor.u32 %v2060_v19, %v2057_v18  ;;  %v2820_v47 = vpack.c.b16 %v2792_v22, %v2791_v20  ;;  %v2092_v18 = vshrl.u32 %v11786_v54, 16  ;;  %v2687_v20 = vsel %vm11636_vm5, %v9893_v63, %v2686_v50 }
  0xce   : > { %v919_v55 = vpop.f32.mrf.mxu2  ;;  %v2076_v60 = vrot.slane %v2074_v49, 5  ;;  %v1264_v7 = vsel %vm11636_vm5, %v9573_v52, %v1263_v43  ;;  %v2793_v33 = vunpack.c.l.b16 %v2687_v20  ;;  %v2693_v63 = vrot.slane %v11786_v54, 5  ;;  %v11032_v54 = vld [vmem:[%s14924_s1 + $0x1a0] sm:$0xff] }
  0xcf   : > { %v1152_v58 = vpop.f32.mrf.mxu3  ;;  %v1370_v28 = vunpack.c.l.b16 %v1264_v7  ;;  %v1273_v7 = vrot.slane %v11519_v35, 5  ;;  %3215 = vmatpush.bf16.msra.mxu2 %v11032_v54 }
  0xd0   : > { %v11758_v0 = vadd.f32 %v1152_v58, %v919_v55  ;;  %v881_v2 = vpop.f32.mrf.mxu0  ;;  %v1265_v55 = vrot.slane %v1263_v43, 4  ;;  %v2062_v58 = vrot.slane %v2061_v44, 4  ;;  %v2077_v16 = vsel %vm11335_vm2, %v2072_v59, %v2076_v60 }
  0xd1   : > { %v2090_v43 = vrot.slane %v2088_v17, 5  ;;  %v2094_v44 = vrot.slane %v2092_v18, 4  ;;  %v11825_v18 = vld [vmem:[%s11310_s16 + $0x58] sm:$0xf] }
  0xd2   : > { %v1114_v8 = vpop.f32.mrf.mxu1  ;;  %v1267_v9 = vsel %vm11636_vm5, %v1265_v55, %v1266_v56  ;;  %v2067_v40 = vsel %vm11335_vm2, %v2062_v58, %v2066_v24  ;;  %v10976_v56 = vld [vmem:[%s11310_s16 + $0x3c] sm:$0xff] }
  0xd3   : > { %v11768_v12 = vadd.f32 %v1114_v8, %v881_v2  ;;  %v2688_v2 = vrot.slane %v2686_v50, 4  ;;  %v1371_v30 = vunpack.c.l.b16 %v1267_v9  ;;  %v1270_v50 = vrot.slane %v11495_v6, 5 }
  0xd4   : > { %v2095_v59 = vor.u32 %v2094_v44, %v2090_v43 }
  0xd5   : > { %v2690_v22 = vsel %vm11636_vm5, %v2688_v2, %v2689_v4  ;;  %v1398_v48 = vpack.c.b16 %v1371_v30, %v1370_v28  ;;  %v1272_v6 = vrot.slane %v1270_v50, 4 }
  0xd6   : > { %v921_v31 = vpop.f32.mrf.mxu2  ;;  %v2794_v38 = vunpack.c.l.b16 %v2690_v22  ;;  %v2096_v9 = vrot.slane %v2095_v59, 4 }
  0xd7   : > { %v1154_v32 = vpop.f32.mrf.mxu3  ;;  %v1274_v22 = vsel %vm11636_vm5, %v1272_v6, %v1273_v7  ;;  %v1188_v7 = vld [vmem:[%s11310_s16 + $0x48] sm:$0xe] }
  0xd8   : > { %v11776_v27 = vadd.f32 %v1154_v32, %v921_v31  ;;  %v884_v45 = vpop.f32.mrf.mxu0  ;;  %v2367_v31 = vunpack.c.l.b16 %v2067_v40  ;;  %v2368_v32 = vunpack.c.l.b16 %v2077_v16  ;;  %v2821_v58 = vpack.c.b16 %v2794_v38, %v2793_v33 }
  0xd9   : > { %v2695_v16 = vrot.slane %v2693_v63, 4  ;;  %v2112_v33 = vshll.u32 %v11825_v18, 16  ;;  %v2116_v38 = vshrl.u32 %v11825_v18, 16 }
  0xda   : > { %v1117_v46 = vpop.f32.mrf.mxu1  ;;  %v2395_v49 = vpack.c.b16 %v2368_v32, %v2367_v31 }
  0xdb   : > { %v11780_v51 = vadd.f32 %v1117_v46, %v884_v45  ;;  %1497 = vmatmul.bf16.gmra.mxu2 %v1397_v36  ;;  %2494 = vmatmul.bf16.gmra.mxu0 %v2394_v37  ;;  %v2081_v36 = vrot.slane %v2079_v11, 4  ;;  %v2084_v37 = vrot.slane %v2082_v13, 5  ;;  %v9794_v45 = vld [vmem:[%s11310_s16 + $0x50] sm:$0x1]  ;;  %v1187_v46 = vld [vmem:[%s11310_s16 + $0x3c] sm:$0xe] }
  0xdc   : > { %1812 = vmatmul.bf16.gmra.mxu3 %v10975_v10  ;;  %v2098_v60 = vshll.u32 %v9794_v45, 16  ;;  %v9574_v4 = vrot.slane %v1187_v46, 9  ;;  %v9795_v11 = vld [vmem:[%s11310_s16 + $0x54] sm:$0xf]  ;;  %v11040_v13 = vld [vmem:[%s14924_s1 + $0x1e0] sm:$0xff]  ;;  %v2696_v17 = vrot.slane %v9794_v45, 5 }
  0xdd   : > { %2920 = vmatmul.bf16.gmra.mxu1 %v2820_v47  ;;  %v2085_v52 = vor.u32 %v2084_v37, %v2081_v36  ;;  %3897 = vmatpush.bf16.msra.mxu3 %v11040_v13  ;;  %v2103_v30 = vshrl.u32 %v9795_v11, 16  ;;  %v2106_v31 = vshll.u32 %v9795_v11, 16  ;;  %v2114_v59 = vrot.slane %v2112_v33, 5  ;;  %v10977_v13 = vld [vmem:[%s11310_s16 + $0x48] sm:$0xff] }
  0xde   : > { %v924_v5 = vpop.f32.mrf.mxu2  ;;  %v2100_v40 = vrot.slane %v2098_v60, 5  ;;  %v2118_v60 = vrot.slane %v2116_v38, 4  ;;  %v9798_v38 = vld [vmem:[%s11310_s16 + $0x60] sm:$0xf] }
  0xdf   : > { %v1157_v8 = vpop.f32.mrf.mxu3 }
  0xe0   : > { %v11794_v14 = vadd.f32 %v1157_v8, %v924_v5  ;;  %v886_v15 = vpop.f32.mrf.mxu0  ;;  %v9878_v5 = vld [vmem:[%s11310_s16 + $0x48] sm:$0xe]  ;;  %v2086_v8 = vrot.slane %v2085_v52, 4  ;;  %v2101_v37 = vsel %vm11335_vm2, %v2096_v9, %v2100_v40  ;;  %v2105_v52 = vrot.slane %v2103_v30, 4 }
  0xe2   : > { %v1119_v19 = vpop.f32.mrf.mxu1  ;;  %v2091_v28 = vsel %vm11335_vm2, %v2086_v8, %v2090_v43  ;;  %v2697_v43 = vsel %vm11636_vm5, %v2695_v16, %v2696_v17  ;;  %v11206_v8 = vld [vmem:[%s11310_s16 + $0x4c] sm:$0xf]  ;;  %v2119_v16 = vor.u32 %v2118_v60, %v2114_v59 }
  0xe3   : > { %v11804_v24 = vadd.f32 %v1119_v19, %v886_v15  ;;  %v9894_v15 = vrot.slane %v9878_v5, 9  ;;  %v1271_v19 = vsel %vm11636_vm5, %v9574_v4, %v1270_v50  ;;  %v2369_v46 = vunpack.c.l.b16 %v2091_v28  ;;  %v9879_v28 = vld [vmem:[%s11310_s16 + $0x54] sm:$0xe] }
  0xe4   : > { %v2370_v50 = vunpack.c.l.b16 %v2101_v37  ;;  %v1277_v9 = vrot.slane %v11206_v8, 5  ;;  %v2120_v37 = vrot.slane %v2119_v16, 4 }
  0xe5   : > { %v2694_v45 = vsel %vm11636_vm5, %v9894_v15, %v2693_v63 }
  0xe6   : > { %v926_v10 = vpop.f32.mrf.mxu2  ;;  %v2396_v6 = vpack.c.b16 %v2370_v50, %v2369_v46  ;;  %v1279_v30 = vrot.slane %v1277_v9, 4  ;;  %v2127_v50 = vshrl.u32 %v9798_v38, 16 }
  0xe7   : > { %v1159_v47 = vpop.f32.mrf.mxu3 }
  0xe8   : > { %v11809_v1 = vadd.f32 %v1159_v47, %v926_v10  ;;  %v889_v55 = vpop.f32.mrf.mxu0  ;;  %v1372_v47 = vunpack.c.l.b16 %v1271_v19  ;;  %v2700_v19 = vrot.slane %v11825_v18, 5  ;;  %v11861_v18 = vld [vmem:[%s11310_s16 + $0x64] sm:$0xf] }
  0xe9   : > { %v2136_v60 = vshll.u32 %v11861_v18, 16 }
  0xea   : > { %v1122_v61 = vpop.f32.mrf.mxu1 }
  0xeb   : > { %v11813_v2 = vadd.f32 %v1122_v61, %v889_v55  ;;  %1502 = vmatmul.bf16.gmra.mxu2 %v1398_v48  ;;  %2499 = vmatmul.bf16.gmra.mxu0 %v2395_v49  ;;  %v1373_v48 = vunpack.c.l.b16 %v1274_v22  ;;  %v11048_v49 = vld [vmem:[%s14924_s1 + $0x220] sm:$0xff]  ;;  %v2108_v55 = vrot.slane %v2106_v31, 5  ;;  %v9797_v61 = vld [vmem:[%s11310_s16 + $0x5c] sm:$0x1]  ;;  %v9575_v22 = vrot.slane %v1188_v7, 9 }
  0xec   : > { %1817 = vmatmul.bf16.gmra.mxu3 %v10976_v56  ;;  %v2795_v56 = vunpack.c.l.b16 %v2694_v45  ;;  %4323 = vmatpush.bf16.msra.mxu0 %v11048_v49  ;;  %v2122_v17 = vshll.u32 %v9797_v61, 16  ;;  %v1280_v31 = vrot.slane %v11550_v23, 5  ;;  %v2702_v45 = vrot.slane %v2700_v19, 4 }
  0xed   : > { %2925 = vmatmul.bf16.gmra.mxu1 %v2821_v58  ;;  %v2796_v58 = vunpack.c.l.b16 %v2697_v43  ;;  %v1399_v5 = vpack.c.b16 %v1373_v48, %v1372_v47  ;;  %v2109_v40 = vor.u32 %v2108_v55, %v2105_v52  ;;  %v2703_v43 = vrot.slane %v9797_v61, 5 }
  0xee   : > { %v929_v35 = vpop.f32.mrf.mxu2  ;;  %v2124_v33 = vrot.slane %v2122_v17, 5  ;;  %v1278_v48 = vsel %vm11636_vm5, %v9575_v22, %v1277_v9  ;;  %v1281_v46 = vsel %vm11636_vm5, %v1279_v30, %v1280_v31  ;;  %v2130_v52 = vshll.u32 %v9798_v38, 16  ;;  %v1189_v31 = vld [vmem:[%s11310_s16 + $0x54] sm:$0xe] }
  0xef   : > { %v1162_v20 = vpop.f32.mrf.mxu3  ;;  %v2822_v15 = vpack.c.b16 %v2796_v58, %v2795_v56  ;;  %v2140_v61 = vshrl.u32 %v11861_v18, 16  ;;  %v1375_v7 = vunpack.c.l.b16 %v1281_v46  ;;  %v2138_v16 = vrot.slane %v2136_v60, 5 }
  0xf0   : > { %v11833_v32 = vadd.f32 %v1162_v20, %v929_v35  ;;  %v891_v36 = vpop.f32.mrf.mxu0  ;;  %v2125_v58 = vsel %vm11335_vm2, %v2120_v37, %v2124_v33  ;;  %v2707_v46 = vrot.slane %v11861_v18, 5  ;;  %v11031_v18 = vld [vmem:[%s14924_s1 + $0x198] sm:$0xff] }
  0xf1   : > { %v2372_v9 = vunpack.c.l.b16 %v2125_v58  ;;  %v2142_v17 = vrot.slane %v2140_v61, 4  ;;  %v1287_v58 = vrot.slane %v11587_v25, 5  ;;  %3216 = vmatpush.bf16.msra.mxu2 %v11031_v18 }
  0xf2   : > { %v1124_v44 = vpop.f32.mrf.mxu1 }
  0xf3   : > { %v11843_v10 = vadd.f32 %v1124_v44, %v891_v36  ;;  %v2110_v36 = vrot.slane %v2109_v40, 4  ;;  %v9895_v44 = vrot.slane %v9879_v28, 9  ;;  %v2129_v40 = vrot.slane %v2127_v50, 4 }
  0xf4   : > { %v9576_v50 = vrot.slane %v1189_v31, 9 }
  0xf5   : > { %v2115_v23 = vsel %vm11335_vm2, %v2110_v36, %v2114_v59  ;;  %v2704_v59 = vsel %vm11636_vm5, %v2702_v45, %v2703_v43  ;;  %v11207_v36 = vld [vmem:[%s11310_s16 + $0x58] sm:$0xf] }
  0xf6   : > { %v931_v63 = vpop.f32.mrf.mxu2  ;;  %v2371_v8 = vunpack.c.l.b16 %v2115_v23  ;;  %v1284_v37 = vrot.slane %v11207_v36, 5  ;;  %v10978_v45 = vld [vmem:[%s11310_s16 + $0x54] sm:$0xff] }
  0xf7   : > { %v1164_v4 = vpop.f32.mrf.mxu3 }
  0xf8   : > { %v11851_v11 = vadd.f32 %v1164_v4, %v931_v63  ;;  %v894_v54 = vpop.f32.mrf.mxu0  ;;  %v2701_v4 = vsel %vm11636_vm5, %v9895_v44, %v2700_v19  ;;  %v2397_v30 = vpack.c.b16 %v2372_v9, %v2371_v8  ;;  %v11900_v9 = vld [vmem:[%s11310_s16 + $0x70] sm:$0xf] }
  0xf9   : > { %v2164_v31 = vshrl.u32 %v11900_v9, 16 }
  0xfa   : > { %v1127_v35 = vpop.f32.mrf.mxu1 }
  0xfb   : > { %v11855_v20 = vadd.f32 %v1127_v35, %v894_v54  ;;  %1507 = vmatmul.bf16.gmra.mxu2 %v1399_v5  ;;  %2504 = vmatmul.bf16.gmra.mxu0 %v2396_v6  ;;  %v1374_v6 = vunpack.c.l.b16 %v1278_v48  ;;  %v2132_v54 = vrot.slane %v2130_v52, 5  ;;  %v9800_v35 = vld [vmem:[%s11310_s16 + $0x68] sm:$0x1]  ;;  %v9880_v52 = vld [vmem:[%s11310_s16 + $0x60] sm:$0xe] }
  0xfc   : > { %1822 = vmatmul.bf16.gmra.mxu3 %v10977_v13  ;;  %v2797_v13 = vunpack.c.l.b16 %v2701_v4  ;;  %v2146_v48 = vshll.u32 %v9800_v35, 16  ;;  %v9801_v4 = vld [vmem:[%s11310_s16 + $0x6c] sm:$0xf]  ;;  %v2710_v8 = vrot.slane %v9800_v35, 5 }
  0xfd   : > { %2930 = vmatmul.bf16.gmra.mxu1 %v2822_v15  ;;  %v2798_v15 = vunpack.c.l.b16 %v2704_v59  ;;  %v1400_v28 = vpack.c.b16 %v1375_v7, %v1374_v6  ;;  %v2133_v33 = vor.u32 %v2132_v54, %v2129_v40  ;;  %v11039_v59 = vld [vmem:[%s14924_s1 + $0x1d8] sm:$0xff]  ;;  %v9896_v6 = vrot.slane %v9880_v52, 9 }
  0xfe   : > { %v934_v47 = vpop.f32.mrf.mxu2  ;;  %v2709_v7 = vrot.slane %v2707_v46, 4  ;;  %v1285_v40 = vsel %vm11636_vm5, %v9576_v50, %v1284_v37  ;;  %3898 = vmatpush.bf16.msra.mxu3 %v11039_v59  ;;  %v1190_v59 = vld [vmem:[%s11310_s16 + $0x60] sm:$0xe] }
  0xff   : > { %v1167_v49 = vpop.f32.mrf.mxu3  ;;  %v2823_v43 = vpack.c.b16 %v2798_v15, %v2797_v13  ;;  %v2134_v60 = vrot.slane %v2133_v33, 4 }
 0x100   : > { %v11869_v55 = vadd.f32 %v1167_v49, %v934_v47  ;;  %v896_v56 = vpop.f32.mrf.mxu0  ;;  %v2143_v47 = vor.u32 %v2142_v17, %v2138_v16  ;;  %v2151_v17 = vshrl.u32 %v9801_v4, 16 }
 0x101   : > { %v2139_v15 = vsel %vm11335_vm2, %v2134_v60, %v2138_v16  ;;  %v2711_v16 = vsel %vm11636_vm5, %v2709_v7, %v2710_v8  ;;  %v9803_v60 = vld [vmem:[%s11310_s16 + $0x74] sm:$0x1] }
 0x102   : > { %v1129_v63 = vpop.f32.mrf.mxu1  ;;  %v2144_v61 = vrot.slane %v2143_v47, 4  ;;  %v2800_v52 = vunpack.c.l.b16 %v2711_v16 }
 0x103   : > { %v11879_v5 = vadd.f32 %v1129_v63, %v896_v56  ;;  %v1286_v56 = vrot.slane %v1284_v37, 4  ;;  %v2148_v63 = vrot.slane %v2146_v48, 5  ;;  %v2708_v37 = vsel %vm11636_vm5, %v9896_v6, %v2707_v46  ;;  %v11047_v46 = vld [vmem:[%s14924_s1 + $0x218] sm:$0xff]  ;;  %v11208_v6 = vld [vmem:[%s11310_s16 + $0x64] sm:$0xf] }
 0x104   : > { %v2153_v48 = vrot.slane %v2151_v17, 4  ;;  %v2799_v50 = vunpack.c.l.b16 %v2708_v37  ;;  %v1291_v7 = vrot.slane %v11208_v6, 5  ;;  %4324 = vmatpush.bf16.msra.mxu0 %v11047_v46  ;;  %v2170_v17 = vshll.u32 %v9803_v60, 16  ;;  %v11209_v37 = vld [vmem:[%s11310_s16 + $0x68] sm:$0x1] }
 0x105   : > { %v1288_v13 = vsel %vm11636_vm5, %v1286_v56, %v1287_v58  ;;  %v2166_v58 = vrot.slane %v2164_v31, 4  ;;  %v9881_v31 = vld [vmem:[%s11310_s16 + $0x6c] sm:$0xe]  ;;  %v1294_v16 = vrot.slane %v11209_v37, 5 }
 0x106   : > { %v936_v19 = vpop.f32.mrf.mxu2 }
 0x107   : > { %v1169_v22 = vpop.f32.mrf.mxu3 }
 0x108   : > { %v11884_v38 = vadd.f32 %v1169_v22, %v936_v19  ;;  %v899_v44 = vpop.f32.mrf.mxu0  ;;  %v2154_v19 = vshll.u32 %v9801_v4, 16 }
 0x10a   : > { %v1132_v49 = vpop.f32.mrf.mxu1 }
 0x10b   : > { %v11888_v23 = vadd.f32 %v1132_v49, %v899_v44  ;;  %1512 = vmatmul.bf16.gmra.mxu2 %v1400_v28  ;;  %2509 = vmatmul.bf16.gmra.mxu0 %v2397_v30  ;;  %v2149_v28 = vsel %vm11335_vm2, %v2144_v61, %v2148_v63  ;;  %v2160_v30 = vshll.u32 %v11900_v9, 16  ;;  %v1376_v44 = vunpack.c.l.b16 %v1285_v40 }
 0x10c   : > { %1827 = vmatmul.bf16.gmra.mxu3 %v10978_v45  ;;  %v1377_v45 = vunpack.c.l.b16 %v1288_v13  ;;  %v2374_v47 = vunpack.c.l.b16 %v2149_v28  ;;  %v2156_v49 = vrot.slane %v2154_v19, 5  ;;  %v2824_v13 = vpack.c.b16 %v2800_v52, %v2799_v50 }
 0x10d   : > { %2935 = vmatmul.bf16.gmra.mxu1 %v2823_v43  ;;  %v2373_v43 = vunpack.c.l.b16 %v2139_v15  ;;  %v2162_v56 = vrot.slane %v2160_v30, 5  ;;  %v9577_v30 = vrot.slane %v1190_v59, 9  ;;  %v2717_v50 = vrot.slane %v9803_v60, 5 }
 0x10e   : > { %v939_v25 = vpop.f32.mrf.mxu2  ;;  %v1401_v4 = vpack.c.b16 %v1377_v45, %v1376_v44  ;;  %v2157_v8 = vor.u32 %v2156_v49, %v2153_v48  ;;  %v9897_v48 = vrot.slane %v9881_v31, 9 }
 0x10f   : > { %v1172_v54 = vpop.f32.mrf.mxu3  ;;  %v2398_v18 = vpack.c.b16 %v2374_v47, %v2373_v43  ;;  %v2167_v15 = vor.u32 %v2166_v58, %v2162_v56  ;;  %v2172_v43 = vrot.slane %v2170_v17, 5  ;;  %v9804_v47 = vld [vmem:[%s11310_s16 + $0x78] sm:$0xf]  ;;  %v1292_v58 = vsel %vm11636_vm5, %v9577_v30, %v1291_v7 }
 0x110   : > { %v11908_v22 = vadd.f32 %v1172_v54, %v939_v25  ;;  %v901_v35 = vpop.f32.mrf.mxu0  ;;  %v10979_v54 = vld [vmem:[%s11310_s16 + $0x60] sm:$0xff]  ;;  %v2158_v44 = vrot.slane %v2157_v8, 4 }
 0x111   : > { %v2168_v45 = vrot.slane %v2167_v15, 4  ;;  %v1378_v15 = vunpack.c.l.b16 %v1292_v58  ;;  %v1191_v58 = vld [vmem:[%s11310_s16 + $0x6c] sm:$0xe] }
 0x112   : > { %v1134_v36 = vpop.f32.mrf.mxu1 }
 0x113   : > { %v11918_v33 = vadd.f32 %v1134_v36, %v901_v35  ;;  %v2714_v35 = vrot.slane %v11900_v9, 5  ;;  %v1293_v36 = vrot.slane %v1291_v7, 4  ;;  %v11936_v9 = vld [vmem:[%s11310_s16 + $0x7c] sm:$0xf]  ;;  %v2173_v60 = vsel %vm11335_vm2, %v2168_v45, %v2172_v43  ;;  %v9806_v43 = vld [vmem:[%s11310_s16 + $0x80] sm:$0x1] }
 0x114   : > { %v2184_v8 = vshll.u32 %v11936_v9, 16  ;;  %v2188_v7 = vshrl.u32 %v11936_v9, 16  ;;  %v2376_v30 = vunpack.c.l.b16 %v2173_v60  ;;  %v2194_v60 = vshll.u32 %v9806_v43, 16 }
 0x115   : > { %v2716_v49 = vrot.slane %v2714_v35, 4 }
 0x116   : > { %v941_v61 = vpop.f32.mrf.mxu2  ;;  %v2190_v45 = vrot.slane %v2188_v7, 4  ;;  %v2721_v7 = vrot.slane %v11936_v9, 5 }
 0x117   : > { %v1174_v63 = vpop.f32.mrf.mxu3 }
 0x118   : > { %v11926_v25 = vadd.f32 %v1174_v63, %v941_v61  ;;  %v904_v40 = vpop.f32.mrf.mxu0  ;;  %v1295_v61 = vsel %vm11636_vm5, %v1293_v36, %v1294_v16  ;;  %v2163_v63 = vsel %vm11335_vm2, %v2158_v44, %v2162_v56  ;;  %v2718_v56 = vsel %vm11636_vm5, %v2716_v49, %v2717_v50 }
 0x119   : > { %v1379_v17 = vunpack.c.l.b16 %v1295_v61  ;;  %v2802_v16 = vunpack.c.l.b16 %v2718_v56  ;;  %v2186_v44 = vrot.slane %v2184_v8, 5  ;;  %v11211_v56 = vld [vmem:[%s11310_s16 + $0x74] sm:$0x1]  ;;  %v2723_v9 = vrot.slane %v2721_v7, 4 }
 0x11a   : > { %v1137_v19 = vpop.f32.mrf.mxu1 }
 0x11b   : > { %v11930_v28 = vadd.f32 %v1137_v19, %v904_v40  ;;  %1517 = vmatmul.bf16.gmra.mxu2 %v1401_v4  ;;  %2514 = vmatmul.bf16.gmra.mxu0 %v2398_v18  ;;  %v2175_v4 = vshrl.u32 %v9804_v47, 16  ;;  %v2178_v18 = vshll.u32 %v9804_v47, 16  ;;  %v2375_v19 = vunpack.c.l.b16 %v2163_v63 }
 0x11c   : > { %1832 = vmatmul.bf16.gmra.mxu3 %v10979_v54  ;;  %v2715_v54 = vsel %vm11636_vm5, %v9897_v48, %v2714_v35  ;;  %v11210_v35 = vld [vmem:[%s11310_s16 + $0x70] sm:$0xf]  ;;  %v1402_v50 = vpack.c.b16 %v1379_v17, %v1378_v15  ;;  %v1301_v15 = vrot.slane %v11211_v56, 5  ;;  %v9882_v17 = vld [vmem:[%s11310_s16 + $0x78] sm:$0xe] }
 0x11d   : > { %2940 = vmatmul.bf16.gmra.mxu1 %v2824_v13  ;;  %v2177_v31 = vrot.slane %v2175_v4, 4  ;;  %v2180_v36 = vrot.slane %v2178_v18, 5  ;;  %v2801_v37 = vunpack.c.l.b16 %v2715_v54  ;;  %v1298_v48 = vrot.slane %v11210_v35, 5  ;;  %v10980_v4 = vld [vmem:[%s11310_s16 + $0x6c] sm:$0xff] }
 0x11e   : > { %v944_v52 = vpop.f32.mrf.mxu2  ;;  %v11038_v35 = vld [vmem:[%s14924_s1 + $0x1d0] sm:$0xff] }
 0x11f   : > { %v1177_v46 = vpop.f32.mrf.mxu3  ;;  %v2825_v18 = vpack.c.b16 %v2802_v16, %v2801_v37  ;;  %v1300_v54 = vrot.slane %v1298_v48, 4  ;;  %v11030_v37 = vld [vmem:[%s14924_s1 + $0x190] sm:$0xff]  ;;  %v9898_v16 = vrot.slane %v9882_v17, 9  ;;  %3899 = vmatpush.bf16.msra.mxu3 %v11038_v35 }
 0x120   : > { %v11944_v59 = vadd.f32 %v1177_v46, %v944_v52  ;;  %v906_v6 = vpop.f32.mrf.mxu0  ;;  %v2399_v52 = vpack.c.b16 %v2376_v30, %v2375_v19  ;;  %v2181_v46 = vor.u32 %v2180_v36, %v2177_v31  ;;  %v2196_v31 = vrot.slane %v2194_v60, 5  ;;  %v9807_v36 = vld [vmem:[%s11310_s16 + $0x84] sm:$0xf]  ;;  %3217 = vmatpush.bf16.msra.mxu2 %v11030_v37 }
 0x122   : > { %v1139_v40 = vpop.f32.mrf.mxu1  ;;  %v2182_v19 = vrot.slane %v2181_v46, 4 }
 0x123   : > { %v11954_v13 = vadd.f32 %v1139_v40, %v906_v6  ;;  %v2191_v6 = vor.u32 %v2190_v45, %v2186_v44  ;;  %v9578_v40 = vrot.slane %v1191_v58, 9  ;;  %v2724_v45 = vrot.slane %v9806_v43, 5 }
 0x124   : > { %v2187_v43 = vsel %vm11335_vm2, %v2182_v19, %v2186_v44 }
 0x125   : > { %v2192_v30 = vrot.slane %v2191_v6, 4  ;;  %v2725_v44 = vsel %vm11636_vm5, %v2723_v9, %v2724_v45  ;;  %v9809_v45 = vld [vmem:[%s11310_s16 + $0x8c] sm:$0x1] }
 0x126   : > { %v946_v47 = vpop.f32.mrf.mxu2 }
 0x127   : > { %v1179_v49 = vpop.f32.mrf.mxu3  ;;  %v2197_v60 = vsel %vm11335_vm2, %v2192_v30, %v2196_v31  ;;  %v2377_v30 = vunpack.c.l.b16 %v2187_v43 }
 0x128   : > { %v11959_v61 = vadd.f32 %v1179_v49, %v946_v47  ;;  %v2480_v63 = vpop.f32.mrf.mxu0  ;;  %v11970_v47 = vld [vmem:[%s11310_s16 + $0x88] sm:$0xf] }
 0x129   : > { %v2208_v56 = vshll.u32 %v11970_v47, 16 }
 0x12a   : > { %14935 = vst [vmem:[#allocation3_spill] sm:$0xff] %v11959_v61  ;;  %v2906_v8 = vpop.f32.mrf.mxu1 }
 0x12b   : > { %1522 = vmatmul.bf16.gmra.mxu2 %v1402_v50  ;;  %2519 = vmatmul.bf16.gmra.mxu0 %v2399_v52  ;;  %v1299_v50 = vsel %vm11636_vm5, %v9578_v40, %v1298_v48  ;;  %v1302_v52 = vsel %vm11636_vm5, %v1300_v54, %v1301_v15  ;;  %v2212_v48 = vshrl.u32 %v11970_v47, 16  ;;  %v11083_v15 = vld [vmem:[%s14927_s4 + $0x78] sm:$0xff] }
 0x12c   : > { %1837 = vmatmul.bf16.gmra.mxu3 %v10980_v4  ;;  %v2199_v4 = vshrl.u32 %v9807_v36, 16  ;;  %v1380_v17 = vunpack.c.l.b16 %v1299_v50  ;;  %v1381_v19 = vunpack.c.l.b16 %v1302_v52  ;;  %5649 = vmatpush.bf16.msra.mxu1 %v11083_v15  ;;  %v11046_v50 = vld [vmem:[%s14924_s1 + $0x210] sm:$0xff]  ;;  %v2218_v15 = vshll.u32 %v9809_v45, 16 }
 0x12d   : > { %2945 = vmatmul.bf16.gmra.mxu1 %v2825_v18  ;;  %v2202_v18 = vshll.u32 %v9807_v36, 16  ;;  %v2378_v36 = vunpack.c.l.b16 %v2197_v60  ;;  %4325 = vmatpush.bf16.msra.mxu0 %v11046_v50 }
 0x12e   : > { %v1483_v49 = vpop.f32.mrf.mxu2  ;;  %v2201_v37 = vrot.slane %v2199_v4, 4 }
 0x12f   : > { %v1563_v58 = vadd.f32 %v1483_v49, %v11663_v26  ;;  %v1798_v46 = vpop.f32.mrf.mxu3  ;;  %v2722_v26 = vsel %vm11636_vm5, %v9898_v16, %v2721_v7  ;;  %v2204_v35 = vrot.slane %v2202_v18, 5  ;;  %v2804_v7 = vunpack.c.l.b16 %v2725_v44 }
 0x130   : > { %v2482_v6 = vpop.f32.mrf.mxu0  ;;  %v2803_v49 = vunpack.c.l.b16 %v2722_v26  ;;  %v2210_v16 = vrot.slane %v2208_v56, 5  ;;  %v1403_v18 = vpack.c.b16 %v1381_v19, %v1380_v17  ;;  %v2400_v60 = vpack.c.b16 %v2378_v36, %v2377_v30  ;;  %v1192_v56 = vld [vmem:[%s11310_s16 + $0x78] sm:$0xe]  ;;  %v9883_v19 = vld [vmem:[%s11310_s16 + $0x84] sm:$0xe] }
 0x131   : > { %v1878_v40 = vadd.f32 %v1798_v46, %v1563_v58  ;;  %v2214_v58 = vrot.slane %v2212_v48, 4  ;;  %v11212_v46 = vld [vmem:[%s11310_s16 + $0x7c] sm:$0xf]  ;;  %v9579_v61 = vrot.slane %v1192_v56, 9 }
 0x132   : > { %v2908_v54 = vpop.f32.mrf.mxu1  ;;  %v10981_v48 = vld [vmem:[%s11310_s16 + $0x78] sm:$0xff]  ;;  %v2826_v26 = vpack.c.b16 %v2804_v7, %v2803_v49  ;;  %v9810_v49 = vld [vmem:[%s11310_s16 + $0x90] sm:$0xf] }
 0x133   : > { %v2560_v31 = vadd.f32 %v2480_v63, %v1878_v40  ;;  %v1305_v63 = vrot.slane %v11212_v46, 5  ;;  %v2205_v40 = vor.u32 %v2204_v35, %v2201_v37  ;;  %v2215_v44 = vor.u32 %v2214_v58, %v2210_v16 }
 0x134   : > { %v2728_v46 = vrot.slane %v11970_v47, 5  ;;  %v2220_v35 = vrot.slane %v2218_v15, 5  ;;  %v9899_v58 = vrot.slane %v9883_v19, 9  ;;  %v2731_v47 = vrot.slane %v9809_v45, 5 }
 0x135   : > { %v11993_v9 = vadd.f32 %v2906_v8, %v2560_v31  ;;  %v2206_v36 = vrot.slane %v2205_v40, 4  ;;  %v2216_v37 = vrot.slane %v2215_v44, 4  ;;  %v1306_v56 = vsel %vm11636_vm5, %v9579_v61, %v1305_v63 }
 0x136   : > { %v1485_v52 = vpop.f32.mrf.mxu2  ;;  %v2730_v50 = vrot.slane %v2728_v46, 4 }
 0x137   : > { %14936 = vst [vmem:[#allocation4_spill] sm:$0xff] %v11993_v9  ;;  %v1564_v43 = vadd.f32 %v1485_v52, %v11693_v62  ;;  %v1800_v4 = vpop.f32.mrf.mxu3  ;;  %v1307_v62 = vrot.slane %v1305_v63, 4  ;;  %v11213_v52 = vld [vmem:[%s11310_s16 + $0x80] sm:$0x1]  ;;  %v2211_v40 = vsel %vm11335_vm2, %v2206_v36, %v2210_v16  ;;  %v2221_v45 = vsel %vm11335_vm2, %v2216_v37, %v2220_v35 }
 0x138   : > { %v2485_v8 = vpop.f32.mrf.mxu0  ;;  %v1308_v17 = vrot.slane %v11213_v52, 5  ;;  %v2732_v16 = vsel %vm11636_vm5, %v2730_v50, %v2731_v47  ;;  %v2379_v52 = vunpack.c.l.b16 %v2211_v40  ;;  %v2380_v19 = vunpack.c.l.b16 %v2221_v45  ;;  %v1193_v40 = vld [vmem:[%s11310_s16 + $0x84] sm:$0xe] }
 0x139   : > { %v1879_v31 = vadd.f32 %v1800_v4, %v1564_v43  ;;  %v12010_v43 = vld [vmem:[%s11310_s16 + $0x94] sm:$0xf]  ;;  %v2806_v35 = vunpack.c.l.b16 %v2732_v16  ;;  %v10982_v45 = vld [vmem:[%s11310_s16 + $0x84] sm:$0xff] }
 0x13a   : > { %v2911_v9 = vpop.f32.mrf.mxu1  ;;  %v2232_v44 = vshll.u32 %v12010_v43, 16  ;;  %v2236_v15 = vshrl.u32 %v12010_v43, 16  ;;  %v2735_v16 = vrot.slane %v12010_v43, 5 }
 0x13b   : > { %1527 = vmatmul.bf16.gmra.mxu2 %v1403_v18  ;;  %2524 = vmatmul.bf16.gmra.mxu0 %v2400_v60  ;;  %v2561_v30 = vadd.f32 %v2482_v6, %v1879_v31  ;;  %v1309_v6 = vsel %vm11636_vm5, %v1307_v62, %v1308_v17  ;;  %v1382_v31 = vunpack.c.l.b16 %v1306_v56 }
 0x13c   : > { %1842 = vmatmul.bf16.gmra.mxu3 %v10981_v48  ;;  %v2226_v48 = vshll.u32 %v9810_v49, 16  ;;  %v1383_v62 = vunpack.c.l.b16 %v1309_v6  ;;  %v2401_v6 = vpack.c.b16 %v2380_v19, %v2379_v52 }
 0x13d   : > { %2950 = vmatmul.bf16.gmra.mxu1 %v2826_v26  ;;  %v12007_v7 = vadd.f32 %v2908_v54, %v2561_v30  ;;  %v2223_v54 = vshrl.u32 %v9810_v49, 16  ;;  %v12027_v49 = vrot.slane %v2232_v44, 5 }
 0x13e   : > { %v1488_v4 = vpop.f32.mrf.mxu2  ;;  %v2228_v36 = vrot.slane %v2226_v48, 5  ;;  %v1404_v56 = vpack.c.b16 %v1383_v62, %v1382_v31  ;;  %v9884_v31 = vld [vmem:[%s11310_s16 + $0x90] sm:$0xe] }
 0x13f   : > { %v1565_v18 = vadd.f32 %v1488_v4, %v11705_v34  ;;  %v1803_v60 = vpop.f32.mrf.mxu3  ;;  %v2729_v34 = vsel %vm11636_vm5, %v9899_v58, %v2728_v46  ;;  %v2225_v30 = vrot.slane %v2223_v54, 4  ;;  %v2238_v4 = vrot.slane %v2236_v15, 4  ;;  %v9812_v46 = vld [vmem:[%s11310_s16 + $0x98] sm:$0x1] }
 0x140   : > { %v2487_v26 = vpop.f32.mrf.mxu0  ;;  %v2805_v37 = vunpack.c.l.b16 %v2729_v34 }
 0x141   : > { %v1880_v61 = vadd.f32 %v1803_v60, %v1565_v18  ;;  %v11214_v60 = vld [vmem:[%s11310_s16 + $0x88] sm:$0xf]  ;;  %v2229_v54 = vor.u32 %v2228_v36, %v2225_v30  ;;  %v2239_v15 = vor.u32 %v2238_v4, %v12027_v49  ;;  %v9813_v36 = vld [vmem:[%s11310_s16 + $0x9c] sm:$0xf]  ;;  %v2737_v4 = vrot.slane %v2735_v16, 4 }
 0x142   : > { %v2913_v63 = vpop.f32.mrf.mxu1  ;;  %v1312_v50 = vrot.slane %v11214_v60, 5  ;;  %v2827_v44 = vpack.c.b16 %v2806_v35, %v2805_v37  ;;  %v11029_v37 = vld [vmem:[%s14924_s1 + $0x188] sm:$0xff]  ;;  %v9900_v35 = vrot.slane %v9884_v31, 9 }
 0x143   : > { %v2562_v17 = vadd.f32 %v2485_v8, %v1880_v61  ;;  %v2230_v52 = vrot.slane %v2229_v54, 4  ;;  %v2240_v19 = vrot.slane %v2239_v15, 4  ;;  %3218 = vmatpush.bf16.msra.mxu2 %v11029_v37 }
 0x145   : > { %v12029_v18 = vadd.f32 %v2911_v9, %v2562_v17  ;;  %v2242_v9 = vshll.u32 %v9812_v46, 16  ;;  %v9580_v17 = vrot.slane %v1193_v40, 9 }
 0x146   : > { %v1490_v58 = vpop.f32.mrf.mxu2 }
 0x147   : > { %v1566_v47 = vadd.f32 %v1490_v58, %v11729_v3  ;;  %v1805_v8 = vpop.f32.mrf.mxu3  ;;  %v1314_v3 = vrot.slane %v1312_v50, 4  ;;  %v11215_v58 = vld [vmem:[%s11310_s16 + $0x8c] sm:$0x1]  ;;  %v2244_v30 = vrot.slane %v2242_v9, 5 }
 0x148   : > { %v2490_v48 = vpop.f32.mrf.mxu0  ;;  %v1315_v60 = vrot.slane %v11215_v58, 5  ;;  %v11082_v58 = vld [vmem:[%s14927_s4 + $0x70] sm:$0xff] }
 0x149   : > { %v1881_v61 = vadd.f32 %v1805_v8, %v1566_v47  ;;  %v2738_v47 = vrot.slane %v9812_v46, 5  ;;  %v12047_v8 = vld [vmem:[%s11310_s16 + $0xa0] sm:$0xf]  ;;  %v2235_v46 = vsel %vm11335_vm2, %v2230_v52, %v12027_v49  ;;  %v2245_v9 = vsel %vm11335_vm2, %v2240_v19, %v2244_v30  ;;  %5650 = vmatpush.bf16.msra.mxu1 %v11082_v58 }
 0x14a   : > { %v2916_v34 = vpop.f32.mrf.mxu1  ;;  %v1316_v40 = vsel %vm11636_vm5, %v1314_v3, %v1315_v60  ;;  %v2382_v19 = vunpack.c.l.b16 %v2245_v9 }
 0x14b   : > { %1532 = vmatmul.bf16.gmra.mxu2 %v1404_v56  ;;  %2529 = vmatmul.bf16.gmra.mxu0 %v2401_v6  ;;  %v2563_v62 = vadd.f32 %v2487_v26, %v1881_v61  ;;  %v11037_v26 = vld [vmem:[%s14924_s1 + $0x1c8] sm:$0xff]  ;;  %v1313_v6 = vsel %vm11636_vm5, %v9580_v17, %v1312_v50  ;;  %v2256_v50 = vshll.u32 %v12047_v8, 16  ;;  %v2260_v61 = vshrl.u32 %v12047_v8, 16 }
 0x14c   : > { %1847 = vmatmul.bf16.gmra.mxu3 %v10982_v45  ;;  %v2247_v45 = vshrl.u32 %v9813_v36, 16  ;;  %v2739_v49 = vsel %vm11636_vm5, %v2737_v4, %v2738_v47  ;;  %v1384_v60 = vunpack.c.l.b16 %v1313_v6  ;;  %v1385_v31 = vunpack.c.l.b16 %v1316_v40  ;;  %v9815_v47 = vld [vmem:[%s11310_s16 + $0xa4] sm:$0x1]  ;;  %v11216_v40 = vld [vmem:[%s11310_s16 + $0x94] sm:$0xf] }
 0x14d   : > { %2955 = vmatmul.bf16.gmra.mxu1 %v2827_v44  ;;  %v12044_v43 = vadd.f32 %v2913_v63, %v2563_v62  ;;  %v2250_v44 = vshll.u32 %v9813_v36, 16  ;;  %3900 = vmatpush.bf16.msra.mxu3 %v11037_v26  ;;  %v2381_v62 = vunpack.c.l.b16 %v2235_v46  ;;  %v2262_v26 = vrot.slane %v2260_v61, 4 }
 0x14e   : > { %v1493_v56 = vpop.f32.mrf.mxu2  ;;  %v2249_v30 = vrot.slane %v2247_v45, 4  ;;  %v1405_v46 = vpack.c.b16 %v1385_v31, %v1384_v60  ;;  %v9885_v31 = vld [vmem:[%s11310_s16 + $0x9c] sm:$0xe] }
 0x14f   : > { %v1567_v63 = vadd.f32 %v1493_v56, %v11738_v42  ;;  %v1808_v54 = vpop.f32.mrf.mxu3  ;;  %v2736_v42 = vsel %vm11636_vm5, %v9900_v35, %v2735_v16  ;;  %v2252_v36 = vrot.slane %v2250_v44, 5  ;;  %v2808_v16 = vunpack.c.l.b16 %v2739_v49  ;;  %v11045_v56 = vld [vmem:[%s14924_s1 + $0x208] sm:$0xff]  ;;  %v1194_v44 = vld [vmem:[%s11310_s16 + $0x90] sm:$0xe] }
 0x150   : > { %v2492_v15 = vpop.f32.mrf.mxu0  ;;  %v2807_v37 = vunpack.c.l.b16 %v2736_v42  ;;  %v2258_v35 = vrot.slane %v2256_v50, 5  ;;  %v2402_v45 = vpack.c.b16 %v2382_v19, %v2381_v62  ;;  %4326 = vmatpush.bf16.msra.mxu0 %v11045_v56  ;;  %v10983_v50 = vld [vmem:[%s11310_s16 + $0x90] sm:$0xff]  ;;  %v2266_v42 = vshll.u32 %v9815_v47, 16 }
 0x151   : > { %v1882_v17 = vadd.f32 %v1808_v54, %v1567_v63  ;;  %v2253_v9 = vor.u32 %v2252_v36, %v2249_v30 }
 0x152   : > { %v2918_v3 = vpop.f32.mrf.mxu1  ;;  %v2828_v61 = vpack.c.b16 %v2808_v16, %v2807_v37  ;;  %v2268_v36 = vrot.slane %v2266_v42, 5  ;;  %v9816_v37 = vld [vmem:[%s11310_s16 + $0xa8] sm:$0xf] }
 0x153   : > { %v2564_v52 = vadd.f32 %v2490_v48, %v1882_v17  ;;  %v1319_v48 = vrot.slane %v11216_v40, 5  ;;  %v2263_v17 = vor.u32 %v2262_v26, %v2258_v35  ;;  %v9581_v40 = vrot.slane %v1194_v44, 9 }
 0x154   : > { %v2254_v19 = vrot.slane %v2253_v9, 4  ;;  %v9901_v26 = vrot.slane %v9885_v31, 9 }
 0x155   : > { %v12071_v4 = vadd.f32 %v2916_v34, %v2564_v52  ;;  %v2742_v52 = vrot.slane %v12047_v8, 5  ;;  %v2264_v30 = vrot.slane %v2263_v17, 4  ;;  %v2745_v8 = vrot.slane %v9815_v47, 5 }
 0x156   : > { %v1495_v6 = vpop.f32.mrf.mxu2  ;;  %v1320_v44 = vsel %vm11636_vm5, %v9581_v40, %v1319_v48  ;;  %v2259_v9 = vsel %vm11335_vm2, %v2254_v19, %v2258_v35 }
 0x157   : > { %v1568_v63 = vadd.f32 %v1495_v6, %v11768_v12  ;;  %v1810_v54 = vpop.f32.mrf.mxu3  ;;  %v1321_v12 = vrot.slane %v1319_v48, 4  ;;  %v11217_v6 = vld [vmem:[%s11310_s16 + $0x98] sm:$0x1]  ;;  %v2744_v56 = vrot.slane %v2742_v52, 4  ;;  %v2269_v47 = vsel %vm11335_vm2, %v2264_v30, %v2268_v36 }
 0x158   : > { %v2495_v34 = vpop.f32.mrf.mxu0  ;;  %v1322_v60 = vrot.slane %v11217_v6, 5  ;;  %v1386_v40 = vunpack.c.l.b16 %v1320_v44  ;;  %v2383_v6 = vunpack.c.l.b16 %v2259_v9  ;;  %v2384_v31 = vunpack.c.l.b16 %v2269_v47  ;;  %v1195_v9 = vld [vmem:[%s11310_s16 + $0x9c] sm:$0xe] }
 0x159   : > { %v1883_v49 = vadd.f32 %v1810_v54, %v1568_v63  ;;  %v12088_v63 = vld [vmem:[%s11310_s16 + $0xac] sm:$0xf]  ;;  %v2746_v35 = vsel %vm11636_vm5, %v2744_v56, %v2745_v8  ;;  %v10984_v47 = vld [vmem:[%s11310_s16 + $0x9c] sm:$0xff] }
 0x15a   : > { %v2921_v58 = vpop.f32.mrf.mxu1  ;;  %v2280_v17 = vshll.u32 %v12088_v63, 16  ;;  %v2284_v42 = vshrl.u32 %v12088_v63, 16  ;;  %v2810_v36 = vunpack.c.l.b16 %v2746_v35  ;;  %v2749_v35 = vrot.slane %v12088_v63, 5 }
 0x15b   : > { %1537 = vmatmul.bf16.gmra.mxu2 %v1405_v46  ;;  %2534 = vmatmul.bf16.gmra.mxu0 %v2402_v45  ;;  %v2565_v62 = vadd.f32 %v2492_v15, %v1883_v49  ;;  %v1323_v15 = vsel %vm11636_vm5, %v1321_v12, %v1322_v60 }
 0x15c   : > { %1852 = vmatmul.bf16.gmra.mxu3 %v10983_v50  ;;  %v2274_v50 = vshll.u32 %v9816_v37, 16  ;;  %v1387_v12 = vunpack.c.l.b16 %v1323_v15  ;;  %v2403_v15 = vpack.c.b16 %v2384_v31, %v2383_v6 }
 0x15d   : > { %2960 = vmatmul.bf16.gmra.mxu1 %v2828_v61  ;;  %v12085_v16 = vadd.f32 %v2918_v3, %v2565_v62  ;;  %v2271_v3 = vshrl.u32 %v9816_v37, 16  ;;  %v12105_v37 = vrot.slane %v2280_v17, 5 }
 0x15e   : > { %v1498_v54 = vpop.f32.mrf.mxu2  ;;  %v2276_v19 = vrot.slane %v2274_v50, 5  ;;  %v1406_v44 = vpack.c.b16 %v1387_v12, %v1386_v40  ;;  %v9886_v40 = vld [vmem:[%s11310_s16 + $0xa8] sm:$0xe] }
 0x15f   : > { %v1569_v46 = vadd.f32 %v1498_v54, %v11780_v51  ;;  %v1813_v45 = vpop.f32.mrf.mxu3  ;;  %v2743_v51 = vsel %vm11636_vm5, %v9901_v26, %v2742_v52  ;;  %v2273_v62 = vrot.slane %v2271_v3, 4  ;;  %v2286_v54 = vrot.slane %v2284_v42, 4  ;;  %v9818_v52 = vld [vmem:[%s11310_s16 + $0xb0] sm:$0x1] }
 0x160   : > { %v2497_v61 = vpop.f32.mrf.mxu0  ;;  %v2809_v30 = vunpack.c.l.b16 %v2743_v51 }
 0x161   : > { %v1884_v48 = vadd.f32 %v1813_v45, %v1569_v46  ;;  %v11218_v45 = vld [vmem:[%s11310_s16 + $0xa0] sm:$0xf]  ;;  %v2277_v3 = vor.u32 %v2276_v19, %v2273_v62  ;;  %v2287_v42 = vor.u32 %v2286_v54, %v12105_v37  ;;  %v9819_v19 = vld [vmem:[%s11310_s16 + $0xb4] sm:$0xf]  ;;  %v2751_v54 = vrot.slane %v2749_v35, 4 }
 0x162   : > { %v2923_v49 = vpop.f32.mrf.mxu1  ;;  %v1326_v56 = vrot.slane %v11218_v45, 5  ;;  %v2829_v17 = vpack.c.b16 %v2810_v36, %v2809_v30  ;;  %v11028_v30 = vld [vmem:[%s14924_s1 + $0x180] sm:$0xff]  ;;  %v9902_v36 = vrot.slane %v9886_v40, 9 }
 0x163   : > { %v2566_v60 = vadd.f32 %v2495_v34, %v1884_v48  ;;  %v2278_v6 = vrot.slane %v2277_v3, 4  ;;  %v2288_v31 = vrot.slane %v2287_v42, 4  ;;  %3219 = vmatpush.bf16.msra.mxu2 %v11028_v30 }
 0x165   : > { %v12107_v46 = vadd.f32 %v2921_v58, %v2566_v60  ;;  %v2290_v58 = vshll.u32 %v9818_v52, 16  ;;  %v9582_v60 = vrot.slane %v1195_v9, 9 }
 0x166   : > { %v1500_v26 = vpop.f32.mrf.mxu2 }
 0x167   : > { %v1570_v8 = vadd.f32 %v1500_v26, %v11804_v24  ;;  %v1815_v34 = vpop.f32.mrf.mxu3  ;;  %v1328_v24 = vrot.slane %v1326_v56, 4  ;;  %v11219_v26 = vld [vmem:[%s11310_s16 + $0xa4] sm:$0x1]  ;;  %v2292_v62 = vrot.slane %v2290_v58, 5 }
 0x168   : > { %v2500_v50 = vpop.f32.mrf.mxu0  ;;  %v1329_v45 = vrot.slane %v11219_v26, 5  ;;  %v11081_v26 = vld [vmem:[%s14927_s4 + $0x68] sm:$0xff] }
 0x169   : > { %v1885_v48 = vadd.f32 %v1815_v34, %v1570_v8  ;;  %v2752_v8 = vrot.slane %v9818_v52, 5  ;;  %v12125_v34 = vld [vmem:[%s11310_s16 + $0xb8] sm:$0xf]  ;;  %v2283_v52 = vsel %vm11335_vm2, %v2278_v6, %v12105_v37  ;;  %v2293_v58 = vsel %vm11335_vm2, %v2288_v31, %v2292_v62  ;;  %5651 = vmatpush.bf16.msra.mxu1 %v11081_v26 }
 0x16a   : > { %v2926_v51 = vpop.f32.mrf.mxu1  ;;  %v1330_v9 = vsel %vm11636_vm5, %v1328_v24, %v1329_v45  ;;  %v2386_v31 = vunpack.c.l.b16 %v2293_v58 }
 0x16b   : > { %1542 = vmatmul.bf16.gmra.mxu2 %v1406_v44  ;;  %2539 = vmatmul.bf16.gmra.mxu0 %v2403_v15  ;;  %v2567_v12 = vadd.f32 %v2497_v61, %v1885_v48  ;;  %v11036_v61 = vld [vmem:[%s14924_s1 + $0x1c0] sm:$0xff]  ;;  %v1327_v15 = vsel %vm11636_vm5, %v9582_v60, %v1326_v56  ;;  %v2304_v56 = vshll.u32 %v12125_v34, 16  ;;  %v2308_v48 = vshrl.u32 %v12125_v34, 16 }
 0x16c   : > { %1857 = vmatmul.bf16.gmra.mxu3 %v10984_v47  ;;  %v2295_v47 = vshrl.u32 %v9819_v19, 16  ;;  %v2753_v37 = vsel %vm11636_vm5, %v2751_v54, %v2752_v8  ;;  %v1388_v45 = vunpack.c.l.b16 %v1327_v15  ;;  %v1389_v40 = vunpack.c.l.b16 %v1330_v9  ;;  %v9821_v8 = vld [vmem:[%s11310_s16 + $0xbc] sm:$0x1]  ;;  %v11220_v9 = vld [vmem:[%s11310_s16 + $0xac] sm:$0xf] }
 0x16d   : > { %2965 = vmatmul.bf16.gmra.mxu1 %v2829_v17  ;;  %v12122_v63 = vadd.f32 %v2923_v49, %v2567_v12  ;;  %v2298_v17 = vshll.u32 %v9819_v19, 16  ;;  %3901 = vmatpush.bf16.msra.mxu3 %v11036_v61  ;;  %v2385_v12 = vunpack.c.l.b16 %v2283_v52  ;;  %v2310_v61 = vrot.slane %v2308_v48, 4 }
 0x16e   : > { %v1503_v44 = vpop.f32.mrf.mxu2  ;;  %v2297_v62 = vrot.slane %v2295_v47, 4  ;;  %v1407_v52 = vpack.c.b16 %v1389_v40, %v1388_v45  ;;  %v9887_v40 = vld [vmem:[%s11310_s16 + $0xb4] sm:$0xe] }
 0x16f   : > { %v1571_v49 = vadd.f32 %v1503_v44, %v11813_v2  ;;  %v1818_v3 = vpop.f32.mrf.mxu3  ;;  %v2750_v2 = vsel %vm11636_vm5, %v9902_v36, %v2749_v35  ;;  %v2300_v19 = vrot.slane %v2298_v17, 5  ;;  %v2812_v35 = vunpack.c.l.b16 %v2753_v37  ;;  %v11044_v44 = vld [vmem:[%s14924_s1 + $0x200] sm:$0xff]  ;;  %v1196_v17 = vld [vmem:[%s11310_s16 + $0xa8] sm:$0xe] }
 0x170   : > { %v2502_v42 = vpop.f32.mrf.mxu0  ;;  %v2811_v30 = vunpack.c.l.b16 %v2750_v2  ;;  %v2306_v36 = vrot.slane %v2304_v56, 5  ;;  %v2404_v47 = vpack.c.b16 %v2386_v31, %v2385_v12  ;;  %4327 = vmatpush.bf16.msra.mxu0 %v11044_v44  ;;  %v10985_v56 = vld [vmem:[%s11310_s16 + $0xa8] sm:$0xff]  ;;  %v2314_v2 = vshll.u32 %v9821_v8, 16 }
 0x171   : > { %v1886_v60 = vadd.f32 %v1818_v3, %v1571_v49  ;;  %v2301_v58 = vor.u32 %v2300_v19, %v2297_v62  ;;  %v2759_v44 = vrot.slane %v9821_v8, 5 }
 0x172   : > { %v12142_v24 = vpop.f32.mrf.mxu1  ;;  %v2830_v48 = vpack.c.b16 %v2812_v35, %v2811_v30  ;;  %v2316_v19 = vrot.slane %v2314_v2, 5  ;;  %v9822_v30 = vld [vmem:[%s11310_s16 + $0xc0] sm:$0xf]  ;;  %v9903_v35 = vrot.slane %v9887_v40, 9 }
 0x173   : > { %v2568_v6 = vadd.f32 %v2500_v50, %v1886_v60  ;;  %v1333_v50 = vrot.slane %v11220_v9, 5  ;;  %v2311_v60 = vor.u32 %v2310_v61, %v2306_v36  ;;  %v9583_v9 = vrot.slane %v1196_v17, 9 }
 0x174   : > { %v2302_v31 = vrot.slane %v2301_v58, 4  ;;  %v2319_v58 = vshrl.u32 %v9822_v30, 16 }
 0x175   : > { %v12151_v54 = vadd.f32 %v2926_v51, %v2568_v6  ;;  %v2756_v6 = vrot.slane %v12125_v34, 5  ;;  %v2312_v62 = vrot.slane %v2311_v60, 4  ;;  %v12168_v34 = vld [vmem:[%s11310_s16 + $0xc4] sm:$0xf] }
 0x176   : > { %v1505_v15 = vpop.f32.mrf.mxu2  ;;  %v2307_v17 = vsel %vm11335_vm2, %v2302_v31, %v2306_v36  ;;  %v2328_v60 = vshll.u32 %v12168_v34, 16  ;;  %v2332_v2 = vshrl.u32 %v12168_v34, 16  ;;  %v2321_v31 = vrot.slane %v2319_v58, 4 }
 0x177   : > { %14937 = vst [vmem:[#allocation5_spill] sm:$0xff] %v12151_v54  ;;  %v1572_v49 = vadd.f32 %v1505_v15, %v11843_v10  ;;  %v1820_v3 = vpop.f32.mrf.mxu3  ;;  %v1335_v10 = vrot.slane %v1333_v50, 4  ;;  %v11221_v15 = vld [vmem:[%s11310_s16 + $0xb0] sm:$0x1]  ;;  %v2758_v61 = vrot.slane %v2756_v6, 4  ;;  %v2317_v8 = vsel %vm11335_vm2, %v2312_v62, %v2316_v19 }
 0x178   : > { %v2505_v51 = vpop.f32.mrf.mxu0  ;;  %v1336_v45 = vrot.slane %v11221_v15, 5  ;;  %v2387_v15 = vunpack.c.l.b16 %v2307_v17  ;;  %v2388_v40 = vunpack.c.l.b16 %v2317_v8  ;;  %v10986_v8 = vld [vmem:[%s11310_s16 + $0xb4] sm:$0xff] }
 0x179   : > { %v1887_v37 = vadd.f32 %v1820_v3, %v1572_v49  ;;  %v1334_v3 = vsel %vm11636_vm5, %v9583_v9, %v1333_v50  ;;  %v2760_v36 = vsel %vm11636_vm5, %v2758_v61, %v2759_v44 }
 0x17a   : > { %v2931_v26 = vpop.f32.mrf.mxu1  ;;  %v1390_v9 = vunpack.c.l.b16 %v1334_v3  ;;  %v2405_v3 = vpack.c.b16 %v2388_v40, %v2387_v15 }
 0x17b   : > { %1547 = vmatmul.bf16.gmra.mxu2 %v1407_v52  ;;  %2544 = vmatmul.bf16.gmra.mxu0 %v2404_v47  ;;  %v12164_v12 = vadd.f32 %v2502_v42, %v1887_v37  ;;  %v1337_v52 = vsel %vm11636_vm5, %v1335_v10, %v1336_v45 }
 0x17c   : > { %1862 = vmatmul.bf16.gmra.mxu3 %v10985_v56  ;;  %v2322_v56 = vshll.u32 %v9822_v30, 16  ;;  %v1391_v10 = vunpack.c.l.b16 %v1337_v52  ;;  %v2814_v30 = vunpack.c.l.b16 %v2760_v36  ;;  %v11222_v52 = vld [vmem:[%s11310_s16 + $0xb8] sm:$0xf]  ;;  %v2763_v36 = vrot.slane %v12168_v34, 5  ;;  %v12201_v34 = vld [vmem:[%s11310_s16 + $0x1c] sm:$0xf] }
 0x17d   : > { %2970 = vmatmul.bf16.gmra.mxu1 %v2830_v48  ;;  %v1340_v17 = vrot.slane %v11222_v52, 5 }
 0x17e   : > { %v1508_v49 = vpop.f32.mrf.mxu2  ;;  %v2324_v62 = vrot.slane %v2322_v56, 5  ;;  %v1408_v54 = vpack.c.b16 %v1391_v10, %v1390_v9 }
 0x17f   : > { %v1573_v42 = vadd.f32 %v1508_v49, %v11855_v20  ;;  %v1823_v47 = vpop.f32.mrf.mxu3  ;;  %v2757_v20 = vsel %vm11636_vm5, %v9903_v35, %v2756_v6  ;;  %v2330_v49 = vrot.slane %v2328_v60, 5  ;;  %v9824_v6 = vld [vmem:[%s11310_s16 + $0xc8] sm:$0x1]  ;;  %v1342_v15 = vrot.slane %v1340_v17, 4 }
 0x180   : > { %v2507_v48 = vpop.f32.mrf.mxu0  ;;  %v2813_v19 = vunpack.c.l.b16 %v2757_v20  ;;  %v2325_v58 = vor.u32 %v2324_v62, %v2321_v31 }
 0x181   : > { %v1888_v50 = vadd.f32 %v1823_v47, %v1573_v42  ;;  %v2334_v42 = vrot.slane %v2332_v2, 4  ;;  %v2338_v2 = vshll.u32 %v9824_v6, 16 }
 0x182   : > { %v12181_v37 = vpop.f32.mrf.mxu1  ;;  %v2326_v31 = vrot.slane %v2325_v58, 4 }
 0x183   : > { %v2570_v45 = vadd.f32 %v2505_v51, %v1888_v50  ;;  %v1197_v51 = vld [vmem:[%s11310_s16 + $0xb4] sm:$0xe]  ;;  %v2831_v50 = vpack.c.b16 %v2814_v30, %v2813_v19  ;;  %v2335_v60 = vor.u32 %v2334_v42, %v2330_v49  ;;  %v2340_v19 = vrot.slane %v2338_v2, 5  ;;  %v10097_v30 = vld [vmem:[%s11310_s16 + $0x18] sm:$0xf] }
 0x184   : > { %v9584_v9 = vrot.slane %v1197_v51, 9  ;;  %v2331_v52 = vsel %vm11335_vm2, %v2326_v31, %v2330_v49  ;;  %v11080_v49 = vld [vmem:[%s14927_s4 + $0x60] sm:$0xff] }
 0x185   : > { %v12187_v47 = vadd.f32 %v2931_v26, %v2570_v45  ;;  %v11223_v45 = vld [vmem:[%s11310_s16 + $0xbc] sm:$0x1]  ;;  %v2336_v62 = vrot.slane %v2335_v60, 4  ;;  %v3391_v60 = vshll.u32 %v12201_v34, 16  ;;  %5652 = vmatpush.bf16.msra.mxu1 %v11080_v49 }
 0x186   : > { %v1510_v35 = vpop.f32.mrf.mxu2  ;;  %v1343_v40 = vrot.slane %v11223_v45, 5 }
 0x187   : > { %v1574_v61 = vadd.f32 %v1510_v35, %v11879_v5  ;;  %v1825_v44 = vpop.f32.mrf.mxu3  ;;  %v9888_v5 = vld [vmem:[%s11310_s16 + $0xc0] sm:$0xe]  ;;  %v2765_v35 = vrot.slane %v2763_v36, 4 }
 0x188   : > { %v2510_v56 = vpop.f32.mrf.mxu0  ;;  %v9904_v42 = vrot.slane %v9888_v5, 9  ;;  %v1344_v51 = vsel %vm11636_vm5, %v1342_v15, %v1343_v40  ;;  %v2389_v40 = vunpack.c.l.b16 %v2331_v52 }
 0x189   : > { %v1889_v26 = vadd.f32 %v1825_v44, %v1574_v61  ;;  %v2766_v61 = vrot.slane %v9824_v6, 5  ;;  %v3382_v6 = vshrl.u32 %v10097_v30, 16  ;;  %v1393_v45 = vunpack.c.l.b16 %v1344_v51 }
 0x18a   : > { %v2936_v20 = vpop.f32.mrf.mxu1 }
 0x18b   : > { %1552 = vmatmul.bf16.gmra.mxu2 %v1408_v54  ;;  %2549 = vmatmul.bf16.gmra.mxu0 %v2405_v3  ;;  %v12196_v10 = vadd.f32 %v2507_v48, %v1889_v26  ;;  %v1341_v48 = vsel %vm11636_vm5, %v9584_v9, %v1340_v17  ;;  %v2764_v17 = vsel %vm11636_vm5, %v9904_v42, %v2763_v36  ;;  %v3395_v9 = vshrl.u32 %v12201_v34, 16 }
 0x18c   : > { %1867 = vmatmul.bf16.gmra.mxu3 %v10986_v8  ;;  %v2341_v8 = vsel %vm11335_vm2, %v2336_v62, %v2340_v19  ;;  %v2767_v26 = vsel %vm11636_vm5, %v2765_v35, %v2766_v61  ;;  %v1392_v5 = vunpack.c.l.b16 %v1341_v48  ;;  %v2815_v62 = vunpack.c.l.b16 %v2764_v17  ;;  %v10193_v17 = vld [vmem:[%s11310_s16 + $0x18] sm:$0xe] }
 0x18d   : > { %2975 = vmatmul.bf16.gmra.mxu1 %v2831_v50  ;;  %v3385_v50 = vshll.u32 %v10097_v30, 16  ;;  %v2390_v31 = vunpack.c.l.b16 %v2341_v8  ;;  %v2816_v19 = vunpack.c.l.b16 %v2767_v26  ;;  %v3384_v36 = vrot.slane %v3382_v6, 4  ;;  %v10987_v8 = vld [vmem:[%s11310_s16 + $0xc0] sm:$0xff] }
 0x18e   : > { %v1513_v44 = vpop.f32.mrf.mxu2  ;;  %v3393_v35 = vrot.slane %v3391_v60, 5  ;;  %v3397_v61 = vrot.slane %v3395_v9, 4  ;;  %v4081_v26 = vrot.slane %v12201_v34, 5 }
 0x18f   : > { %v1575_v54 = vadd.f32 %v1513_v44, %v11888_v23  ;;  %v1828_v3 = vpop.f32.mrf.mxu3  ;;  %v3387_v30 = vrot.slane %v3385_v50, 5  ;;  %v2406_v51 = vpack.c.b16 %v2390_v31, %v2389_v40 }
 0x190   : > { %v2512_v58 = vpop.f32.mrf.mxu0  ;;  %v3398_v50 = vor.u32 %v3397_v61, %v3393_v35 }
 0x191   : > { %v1890_v2 = vadd.f32 %v1828_v3, %v1575_v54  ;;  %v10099_v54 = vld [vmem:[%s11310_s16 + $0x20] sm:$0x1]  ;;  %v3388_v49 = vor.u32 %v3387_v30, %v3384_v36 }
 0x192   : > { %v12213_v23 = vpop.f32.mrf.mxu1  ;;  %v3401_v60 = vshll.u32 %v10099_v54, 16  ;;  %v3399_v40 = vrot.slane %v3398_v50, 4 }
 0x193   : > { %v2572_v15 = vadd.f32 %v2510_v56, %v1890_v2  ;;  %v1409_v56 = vpack.c.b16 %v1393_v45, %v1392_v5  ;;  %v2832_v2 = vpack.c.b16 %v2816_v19, %v2815_v62  ;;  %v3389_v5 = vrot.slane %v3388_v49, 4  ;;  %v10100_v62 = vld [vmem:[%s11310_s16 + $0x24] sm:$0xf]  ;;  %v10101_v19 = vld [vmem:[%s11310_s16 + $0x28] sm:$0xf] }
 0x194   : > { %v4084_v45 = vrot.slane %v10099_v54, 5  ;;  %v3403_v31 = vrot.slane %v3401_v60, 5  ;;  %v3409_v54 = vshll.u32 %v10100_v62, 16 }
 0x195   : > { %v12223_v42 = vadd.f32 %v2936_v20, %v2572_v15  ;;  %v4083_v15 = vrot.slane %v4081_v26, 4 }
 0x196   : > { %v1515_v44 = vpop.f32.mrf.mxu2  ;;  %v3411_v60 = vrot.slane %v3409_v54, 5 }
 0x197   : > { %v1576_v3 = vadd.f32 %v1515_v44, %v11918_v33  ;;  %v1830_v48 = vpop.f32.mrf.mxu3  ;;  %v10209_v33 = vrot.slane %v10193_v17, 9 }
 0x198   : > { %v2515_v52 = vpop.f32.mrf.mxu0 }
 0x199   : > { %v1891_v6 = vadd.f32 %v1830_v48, %v1576_v3  ;;  %v4082_v61 = vsel %vm11636_vm5, %v10209_v33, %v4081_v26  ;;  %v4085_v3 = vsel %vm11636_vm5, %v4083_v15, %v4084_v45  ;;  %v3406_v48 = vshrl.u32 %v10100_v62, 16  ;;  %v10102_v62 = vld [vmem:[%s11310_s16 + $0x2c] sm:$0x1] }
 0x19a   : > { %v2941_v20 = vpop.f32.mrf.mxu1  ;;  %v4208_v17 = vunpack.c.l.b16 %v4082_v61  ;;  %v4209_v26 = vunpack.c.l.b16 %v4085_v3  ;;  %v4088_v3 = vrot.slane %v10101_v19, 5  ;;  %v3425_v54 = vshll.u32 %v10102_v62, 16 }
 0x19b   : > { %1557 = vmatmul.bf16.gmra.mxu2 %v1409_v56  ;;  %2554 = vmatmul.bf16.gmra.mxu0 %v2406_v51  ;;  %v12230_v9 = vadd.f32 %v2512_v58, %v1891_v6  ;;  %v3394_v58 = vsel %vm11335_vm2, %v3389_v5, %v3393_v35  ;;  %v3404_v51 = vsel %vm11335_vm2, %v3399_v40, %v3403_v31  ;;  %v3408_v50 = vrot.slane %v3406_v48, 4 }
 0x19c   : > { %1872 = vmatmul.bf16.gmra.mxu3 %v10987_v8  ;;  %v3782_v6 = vunpack.c.l.b16 %v3394_v58  ;;  %v3783_v35 = vunpack.c.l.b16 %v3404_v51  ;;  %v10194_v58 = vld [vmem:[%s11310_s16 + $0x24] sm:$0xe] }
 0x19d   : > { %2980 = vmatmul.bf16.gmra.mxu1 %v2832_v2  ;;  %v3419_v2 = vshrl.u32 %v10101_v19, 16  ;;  %v3412_v61 = vor.u32 %v3411_v60, %v3408_v50  ;;  %v10104_v50 = vld [vmem:[%s11310_s16 + $0x34] sm:$0xf] }
 0x19e   : > { %v1518_v34 = vpop.f32.mrf.mxu2 }
 0x19f   : > { %v1577_v36 = vadd.f32 %v1518_v34, %v11930_v28  ;;  %v1833_v30 = vpop.f32.mrf.mxu3  ;;  %v3415_v28 = vshll.u32 %v10101_v19, 16  ;;  %v3421_v15 = vrot.slane %v3419_v2, 4  ;;  %v11012_v34 = vld [vmem:[%s11310_s16 + $0x18] sm:$0xff]  ;;  %v4090_v2 = vrot.slane %v4088_v3, 4 }
 0x1a0   : > { %v2517_v44 = vpop.f32.mrf.mxu0 }
 0x1a1   : > { %v1892_v56 = vadd.f32 %v1833_v30, %v1577_v36  ;;  %v3417_v5 = vrot.slane %v3415_v28, 5  ;;  %v4240_v36 = vpack.c.b16 %v4209_v26, %v4208_v17  ;;  %v10210_v28 = vrot.slane %v10194_v58, 9  ;;  %v10103_v17 = vld [vmem:[%s11310_s16 + $0x30] sm:$0xf]  ;;  %v11079_v58 = vld [vmem:[%s14927_s4 + $0x58] sm:$0xff] }
 0x1a2   : > { %v12243_v8 = vpop.f32.mrf.mxu1  ;;  %5653 = vmatpush.bf16.msra.mxu1 %v11079_v58 }
 0x1a3   : > { %v2574_v49 = vadd.f32 %v2515_v52, %v1892_v56  ;;  %v3814_v52 = vpack.c.b16 %v3783_v35, %v3782_v6  ;;  %v3427_v6 = vrot.slane %v3425_v54, 5 }
 0x1a5   : > { %v12245_v33 = vadd.f32 %v2941_v20, %v2574_v49  ;;  %v3422_v20 = vor.u32 %v3421_v15, %v3417_v5  ;;  %v4091_v49 = vrot.slane %v10102_v62, 5  ;;  %v4089_v15 = vsel %vm11636_vm5, %v10210_v28, %v4088_v3 }
 0x1a6   : > { %v1520_v45 = vpop.f32.mrf.mxu2  ;;  %v4210_v3 = vunpack.c.l.b16 %v4089_v15 }
 0x1a7   : > { %v1578_v40 = vadd.f32 %v1520_v45, %v11954_v13  ;;  %v1835_v31 = vpop.f32.mrf.mxu3  ;;  %v3413_v13 = vrot.slane %v3412_v61, 4  ;;  %v3423_v26 = vrot.slane %v3422_v20, 4  ;;  %v3430_v45 = vshrl.u32 %v10103_v17, 16 }
 0x1a8   : > { %v2520_v30 = vpop.f32.mrf.mxu0  ;;  %v4092_v62 = vsel %vm11636_vm5, %v4090_v2, %v4091_v49  ;;  %v3443_v61 = vshrl.u32 %v10104_v50, 16 }
 0x1a9   : > { %v1893_v56 = vadd.f32 %v1835_v31, %v1578_v40  ;;  %v3433_v40 = vshll.u32 %v10103_v17, 16  ;;  %v3418_v31 = vsel %vm11335_vm2, %v3413_v13, %v3417_v5  ;;  %v4211_v5 = vunpack.c.l.b16 %v4092_v62 }
 0x1aa   : > { %v2946_v48 = vpop.f32.mrf.mxu1  ;;  %v3432_v20 = vrot.slane %v3430_v45, 4  ;;  %v3784_v28 = vunpack.c.l.b16 %v3418_v31  ;;  %v3445_v17 = vrot.slane %v3443_v61, 4  ;;  %v4095_v45 = vrot.slane %v10104_v50, 5 }
 0x1ab   : > { %3220 = vmatmul.bf16.vlgmr.msra.gmra.mxu2 %v11012_v34  ;;  %4328 = vmatmul.bf16.vlgmr.msra.gmra.mxu0 %v4240_v36  ;;  %v12251_v51 = vadd.f32 %v2517_v44, %v1893_v56  ;;  %v3428_v36 = vsel %vm11335_vm2, %v3423_v26, %v3427_v6  ;;  %v3435_v54 = vrot.slane %v3433_v40, 5  ;;  %v10105_v6 = vld [vmem:[%s11310_s16 + $0x38] sm:$0x1] }
 0x1ac   : > { %3902 = vmatmul.bf16.vlgmr.msra.gmra.mxu3 %v3814_v52  ;;  %v3785_v13 = vunpack.c.l.b16 %v3428_v36  ;;  %v10195_v36 = vld [vmem:[%s11310_s16 + $0x30] sm:$0xe]  ;;  %v4097_v58 = vrot.slane %v4095_v45, 4 }
 0x1ad   : > { %v3436_v15 = vor.u32 %v3435_v54, %v3432_v20  ;;  %v10106_v20 = vld [vmem:[%s11310_s16 + $0x3c] sm:$0xf]  ;;  %v10107_v54 = vld [vmem:[%s11310_s16 + $0x40] sm:$0xf] }
 0x1ae   : > { %v1523_v35 = vpop.f32.mrf.mxu2  ;;  %v3815_v62 = vpack.c.b16 %v3785_v13, %v3784_v28 }
 0x1af   : > { %v1579_v19 = vadd.f32 %v1523_v35, %v11683_v53  ;;  %v1838_v60 = vpop.f32.mrf.mxu3  ;;  %v3439_v53 = vshll.u32 %v10104_v50, 16  ;;  %v3437_v61 = vrot.slane %v3436_v15, 4 }
 0x1b0   : > { %v2522_v44 = vpop.f32.mrf.mxu0 }
 0x1b1   : > { %v1894_v34 = vadd.f32 %v1838_v60, %v1579_v19  ;;  %v3441_v49 = vrot.slane %v3439_v53, 5  ;;  %v11013_v60 = vld [vmem:[%s11310_s16 + $0x24] sm:$0xff] }
 0x1b2   : > { %v12264_v52 = vpop.f32.mrf.mxu1 }
 0x1b3   : > { %14938 = vst [vmem:[#allocation6_spill] sm:$0xff] %v12264_v52  ;;  %v2576_v56 = vadd.f32 %v2520_v30, %v1894_v34  ;;  %v4241_v52 = vpack.c.b16 %v4211_v5, %v4210_v3  ;;  %v3449_v34 = vshll.u32 %v10105_v6, 16  ;;  %v4098_v3 = vrot.slane %v10105_v6, 5 }
 0x1b4   : > { %v3457_v6 = vshll.u32 %v10106_v20, 16 }
 0x1b5   : > { %v12269_v2 = vadd.f32 %v2946_v48, %v2576_v56  ;;  %v3446_v48 = vor.u32 %v3445_v17, %v3441_v49  ;;  %v3451_v5 = vrot.slane %v3449_v34, 5  ;;  %v3442_v17 = vsel %vm11335_vm2, %v3437_v61, %v3441_v49 }
 0x1b6   : > { %v1525_v26 = vpop.f32.mrf.mxu2  ;;  %v3786_v34 = vunpack.c.l.b16 %v3442_v17  ;;  %v3459_v61 = vrot.slane %v3457_v6, 5  ;;  %v10196_v17 = vld [vmem:[%s11310_s16 + $0x3c] sm:$0xe] }
 0x1b7   : > { %v1580_v35 = vadd.f32 %v1525_v26, %v11701_v21  ;;  %v1840_v19 = vpop.f32.mrf.mxu3  ;;  %v10211_v21 = vrot.slane %v10195_v36, 9  ;;  %v3447_v56 = vrot.slane %v3446_v48, 4 }
 0x1b8   : > { %v2525_v30 = vpop.f32.mrf.mxu0 }
 0x1b9   : > { %v1895_v40 = vadd.f32 %v1840_v19, %v1580_v35  ;;  %v3454_v35 = vshrl.u32 %v10106_v20, 16 }
 0x1ba   : > { %v2951_v31 = vpop.f32.mrf.mxu1 }
 0x1bb   : > { %3225 = vmatmul.bf16.gmra.mxu2 %v11013_v60  ;;  %4333 = vmatmul.bf16.gmra.mxu0 %v4241_v52  ;;  %v12275_v53 = vadd.f32 %v2522_v44, %v1895_v40  ;;  %v4096_v44 = vsel %vm11636_vm5, %v10211_v21, %v4095_v45  ;;  %v4099_v52 = vsel %vm11636_vm5, %v4097_v58, %v4098_v3  ;;  %v3456_v36 = vrot.slane %v3454_v35, 4 }
 0x1bc   : > { %3907 = vmatmul.bf16.gmra.mxu3 %v3815_v62  ;;  %v3452_v60 = vsel %vm11335_vm2, %v3447_v56, %v3451_v5  ;;  %v3467_v62 = vshrl.u32 %v10107_v54, 16  ;;  %v4212_v40 = vunpack.c.l.b16 %v4096_v44  ;;  %v4213_v48 = vunpack.c.l.b16 %v4099_v52 }
 0x1bd   : > { %v3787_v45 = vunpack.c.l.b16 %v3452_v60  ;;  %v3460_v44 = vor.u32 %v3459_v61, %v3456_v36  ;;  %v4102_v52 = vrot.slane %v10107_v54, 5  ;;  %v10110_v36 = vld [vmem:[%s11310_s16 + $0x4c] sm:$0xf] }
 0x1be   : > { %v1528_v50 = vpop.f32.mrf.mxu2  ;;  %v3469_v3 = vrot.slane %v3467_v62, 4 }
 0x1bf   : > { %v1581_v28 = vadd.f32 %v1528_v50, %v11719_v57  ;;  %v1843_v13 = vpop.f32.mrf.mxu3  ;;  %v3463_v57 = vshll.u32 %v10107_v54, 16  ;;  %v10108_v50 = vld [vmem:[%s11310_s16 + $0x44] sm:$0x1]  ;;  %v4104_v62 = vrot.slane %v4102_v52, 4 }
 0x1c0   : > { %v2527_v26 = vpop.f32.mrf.mxu0  ;;  %v3473_v6 = vshll.u32 %v10108_v50, 16 }
 0x1c1   : > { %v1896_v19 = vadd.f32 %v1843_v13, %v1581_v28  ;;  %v3465_v58 = vrot.slane %v3463_v57, 5  ;;  %v11014_v28 = vld [vmem:[%s11310_s16 + $0x30] sm:$0xff]  ;;  %v4242_v13 = vpack.c.b16 %v4213_v48, %v4212_v40  ;;  %v10212_v57 = vrot.slane %v10196_v17, 9  ;;  %v10109_v40 = vld [vmem:[%s11310_s16 + $0x48] sm:$0xf] }
 0x1c2   : > { %v12288_v15 = vpop.f32.mrf.mxu1  ;;  %v11078_v17 = vld [vmem:[%s14927_s4 + $0x50] sm:$0xff] }
 0x1c3   : > { %14939 = vst [vmem:[#allocation7_spill] sm:$0xff] %v12288_v15  ;;  %v2578_v49 = vadd.f32 %v2525_v30, %v1896_v19  ;;  %v3816_v30 = vpack.c.b16 %v3787_v45, %v3786_v34  ;;  %v3475_v34 = vrot.slane %v3473_v6, 5  ;;  %5654 = vmatpush.bf16.msra.mxu1 %v11078_v17 }
 0x1c5   : > { %v12290_v21 = vadd.f32 %v2951_v31, %v2578_v49  ;;  %v3470_v31 = vor.u32 %v3469_v3, %v3465_v58  ;;  %v4105_v49 = vrot.slane %v10108_v50, 5  ;;  %v4103_v3 = vsel %vm11636_vm5, %v10212_v57, %v4102_v52 }
 0x1c6   : > { %v1530_v20 = vpop.f32.mrf.mxu2  ;;  %v4214_v52 = vunpack.c.l.b16 %v4103_v3 }
 0x1c7   : > { %v1582_v56 = vadd.f32 %v1530_v20, %v11734_v29  ;;  %v1845_v5 = vpop.f32.mrf.mxu3  ;;  %v3461_v29 = vrot.slane %v3460_v44, 4  ;;  %v3471_v48 = vrot.slane %v3470_v31, 4  ;;  %v3478_v20 = vshrl.u32 %v10109_v40, 16 }
 0x1c8   : > { %v2530_v15 = vpop.f32.mrf.mxu0  ;;  %v4106_v50 = vsel %vm11636_vm5, %v4104_v62, %v4105_v49  ;;  %v3491_v44 = vshrl.u32 %v10110_v36, 16 }
 0x1c9   : > { %v1897_v19 = vadd.f32 %v1845_v5, %v1582_v56  ;;  %v3481_v56 = vshll.u32 %v10109_v40, 16  ;;  %v3466_v5 = vsel %vm11335_vm2, %v3461_v29, %v3465_v58  ;;  %v4215_v58 = vunpack.c.l.b16 %v4106_v50 }
 0x1ca   : > { %v2956_v35 = vpop.f32.mrf.mxu1  ;;  %v3480_v31 = vrot.slane %v3478_v20, 4  ;;  %v3788_v57 = vunpack.c.l.b16 %v3466_v5  ;;  %v3493_v40 = vrot.slane %v3491_v44, 4  ;;  %v4109_v20 = vrot.slane %v10110_v36, 5 }
 0x1cb   : > { %3230 = vmatmul.bf16.gmra.mxu2 %v11014_v28  ;;  %4338 = vmatmul.bf16.gmra.mxu0 %v4242_v13  ;;  %v12296_v60 = vadd.f32 %v2527_v26, %v1897_v19  ;;  %v3476_v13 = vsel %vm11335_vm2, %v3471_v48, %v3475_v34  ;;  %v3483_v6 = vrot.slane %v3481_v56, 5  ;;  %v10111_v34 = vld [vmem:[%s11310_s16 + $0x50] sm:$0x1] }
 0x1cc   : > { %3912 = vmatmul.bf16.gmra.mxu3 %v3816_v30  ;;  %v3789_v29 = vunpack.c.l.b16 %v3476_v13  ;;  %v10197_v13 = vld [vmem:[%s11310_s16 + $0x48] sm:$0xe]  ;;  %v4111_v17 = vrot.slane %v4109_v20, 4 }
 0x1cd   : > { %v3484_v3 = vor.u32 %v3483_v6, %v3480_v31  ;;  %v10112_v31 = vld [vmem:[%s11310_s16 + $0x54] sm:$0xf]  ;;  %v10113_v6 = vld [vmem:[%s11310_s16 + $0x58] sm:$0xf] }
 0x1ce   : > { %v1533_v45 = vpop.f32.mrf.mxu2  ;;  %v3817_v50 = vpack.c.b16 %v3789_v29, %v3788_v57 }
 0x1cf   : > { %v1583_v54 = vadd.f32 %v1533_v45, %v11758_v0  ;;  %v1848_v61 = vpop.f32.mrf.mxu3  ;;  %v3487_v0 = vshll.u32 %v10110_v36, 16  ;;  %v3485_v44 = vrot.slane %v3484_v3, 4 }
 0x1d0   : > { %v2532_v26 = vpop.f32.mrf.mxu0 }
 0x1d1   : > { %v1898_v28 = vadd.f32 %v1848_v61, %v1583_v54  ;;  %v3489_v49 = vrot.slane %v3487_v0, 5  ;;  %v11015_v61 = vld [vmem:[%s11310_s16 + $0x3c] sm:$0xff] }
 0x1d2   : > { %v12309_v30 = vpop.f32.mrf.mxu1 }
 0x1d3   : > { %14940 = vst [vmem:[#allocation8_spill] sm:$0xff] %v12309_v30  ;;  %v2580_v19 = vadd.f32 %v2530_v15, %v1898_v28  ;;  %v4243_v30 = vpack.c.b16 %v4215_v58, %v4214_v52  ;;  %v3497_v28 = vshll.u32 %v10111_v34, 16  ;;  %v4112_v52 = vrot.slane %v10111_v34, 5 }
 0x1d4   : > { %v3505_v34 = vshll.u32 %v10112_v31, 16 }
 0x1d5   : > { %v12314_v62 = vadd.f32 %v2956_v35, %v2580_v19  ;;  %v3494_v35 = vor.u32 %v3493_v40, %v3489_v49  ;;  %v3499_v58 = vrot.slane %v3497_v28, 5  ;;  %v3490_v40 = vsel %vm11335_vm2, %v3485_v44, %v3489_v49 }
 0x1d6   : > { %v1535_v48 = vpop.f32.mrf.mxu2  ;;  %v3790_v28 = vunpack.c.l.b16 %v3490_v40  ;;  %v3507_v44 = vrot.slane %v3505_v34, 5  ;;  %v10198_v40 = vld [vmem:[%s11310_s16 + $0x54] sm:$0xe] }
 0x1d7   : > { %v1584_v45 = vadd.f32 %v1535_v48, %v11776_v27  ;;  %v1850_v54 = vpop.f32.mrf.mxu3  ;;  %v10213_v27 = vrot.slane %v10197_v13, 9  ;;  %v3495_v19 = vrot.slane %v3494_v35, 4 }
 0x1d8   : > { %v2535_v15 = vpop.f32.mrf.mxu0 }
 0x1d9   : > { %v1899_v56 = vadd.f32 %v1850_v54, %v1584_v45  ;;  %v3502_v45 = vshrl.u32 %v10112_v31, 16 }
 0x1da   : > { %v2961_v5 = vpop.f32.mrf.mxu1 }
 0x1db   : > { %3235 = vmatmul.bf16.gmra.mxu2 %v11015_v61  ;;  %4343 = vmatmul.bf16.gmra.mxu0 %v4243_v30  ;;  %v12320_v0 = vadd.f32 %v2532_v26, %v1899_v56  ;;  %v4110_v26 = vsel %vm11636_vm5, %v10213_v27, %v4109_v20  ;;  %v4113_v30 = vsel %vm11636_vm5, %v4111_v17, %v4112_v52  ;;  %v3504_v13 = vrot.slane %v3502_v45, 4 }
 0x1dc   : > { %3917 = vmatmul.bf16.gmra.mxu3 %v3817_v50  ;;  %v3500_v61 = vsel %vm11335_vm2, %v3495_v19, %v3499_v58  ;;  %v3515_v50 = vshrl.u32 %v10113_v6, 16  ;;  %v4216_v56 = vunpack.c.l.b16 %v4110_v26  ;;  %v4217_v35 = vunpack.c.l.b16 %v4113_v30 }
 0x1dd   : > { %14941 = vst [vmem:[#allocation9_spill] sm:$0xff] %v12320_v0  ;;  %v3791_v20 = vunpack.c.l.b16 %v3500_v61  ;;  %v3508_v26 = vor.u32 %v3507_v44, %v3504_v13  ;;  %v4116_v30 = vrot.slane %v10113_v6, 5  ;;  %v10116_v13 = vld [vmem:[%s11310_s16 + $0x64] sm:$0xf]  ;;  %v12750_v0 = vld [vmem:[%s11310_s16 + $0xbc] sm:$0x1] }
 0x1de   : > { %v1538_v36 = vpop.f32.mrf.mxu2  ;;  %v3517_v52 = vrot.slane %v3515_v50, 4 }
 0x1df   : > { %v1585_v57 = vadd.f32 %v1538_v36, %v11794_v14  ;;  %v1853_v29 = vpop.f32.mrf.mxu3  ;;  %v3511_v14 = vshll.u32 %v10113_v6, 16  ;;  %v10114_v36 = vld [vmem:[%s11310_s16 + $0x5c] sm:$0x1]  ;;  %v4118_v50 = vrot.slane %v4116_v30, 4 }
 0x1e0   : > { %v2537_v48 = vpop.f32.mrf.mxu0  ;;  %v3521_v34 = vshll.u32 %v10114_v36, 16 }
 0x1e1   : > { %v1900_v54 = vadd.f32 %v1853_v29, %v1585_v57  ;;  %v3513_v17 = vrot.slane %v3511_v14, 5  ;;  %v11016_v57 = vld [vmem:[%s11310_s16 + $0x48] sm:$0xff]  ;;  %v4244_v29 = vpack.c.b16 %v4217_v35, %v4216_v56  ;;  %v10214_v14 = vrot.slane %v10198_v40, 9  ;;  %v10115_v56 = vld [vmem:[%s11310_s16 + $0x60] sm:$0xf] }
 0x1e2   : > { %v12333_v3 = vpop.f32.mrf.mxu1  ;;  %v11077_v40 = vld [vmem:[%s14927_s4 + $0x48] sm:$0xff] }
 0x1e3   : > { %14942 = vst [vmem:[#allocation10_spill] sm:$0xff] %v12333_v3  ;;  %v2582_v49 = vadd.f32 %v2535_v15, %v1900_v54  ;;  %v3818_v15 = vpack.c.b16 %v3791_v20, %v3790_v28  ;;  %v3523_v28 = vrot.slane %v3521_v34, 5  ;;  %5655 = vmatpush.bf16.msra.mxu1 %v11077_v40 }
 0x1e5   : > { %v12335_v27 = vadd.f32 %v2961_v5, %v2582_v49  ;;  %v3518_v5 = vor.u32 %v3517_v52, %v3513_v17  ;;  %v4119_v49 = vrot.slane %v10114_v36, 5  ;;  %v4117_v52 = vsel %vm11636_vm5, %v10214_v14, %v4116_v30 }
 0x1e6   : > { %v1540_v31 = vpop.f32.mrf.mxu2  ;;  %v4218_v30 = vunpack.c.l.b16 %v4117_v52 }
 0x1e7   : > { %14943 = vst [vmem:[#allocation11_spill] sm:$0xff] %v12335_v27  ;;  %v1586_v19 = vadd.f32 %v1540_v31, %v11809_v1  ;;  %v1855_v58 = vpop.f32.mrf.mxu3  ;;  %v3509_v1 = vrot.slane %v3508_v26, 4  ;;  %v3519_v35 = vrot.slane %v3518_v5, 4  ;;  %v3526_v31 = vshrl.u32 %v10115_v56, 16 }
 0x1e8   : > { %v2540_v3 = vpop.f32.mrf.mxu0  ;;  %v4120_v36 = vsel %vm11636_vm5, %v4118_v50, %v4119_v49  ;;  %v3539_v26 = vshrl.u32 %v10116_v13, 16 }
 0x1e9   : > { %v1901_v54 = vadd.f32 %v1855_v58, %v1586_v19  ;;  %v3529_v19 = vshll.u32 %v10115_v56, 16  ;;  %v3514_v58 = vsel %vm11335_vm2, %v3509_v1, %v3513_v17  ;;  %v4219_v17 = vunpack.c.l.b16 %v4120_v36 }
 0x1ea   : > { %v2966_v45 = vpop.f32.mrf.mxu1  ;;  %v3528_v5 = vrot.slane %v3526_v31, 4  ;;  %v3792_v14 = vunpack.c.l.b16 %v3514_v58  ;;  %v3541_v56 = vrot.slane %v3539_v26, 4  ;;  %v4123_v31 = vrot.slane %v10116_v13, 5 }
 0x1eb   : > { %3240 = vmatmul.bf16.gmra.mxu2 %v11016_v57  ;;  %4348 = vmatmul.bf16.gmra.mxu0 %v4244_v29  ;;  %v12341_v61 = vadd.f32 %v2537_v48, %v1901_v54  ;;  %v3524_v29 = vsel %vm11335_vm2, %v3519_v35, %v3523_v28  ;;  %v3531_v34 = vrot.slane %v3529_v19, 5  ;;  %v10117_v28 = vld [vmem:[%s11310_s16 + $0x68] sm:$0x1] }
 0x1ec   : > { %3922 = vmatmul.bf16.gmra.mxu3 %v3818_v15  ;;  %v3793_v1 = vunpack.c.l.b16 %v3524_v29  ;;  %v4125_v40 = vrot.slane %v4123_v31, 4 }
 0x1ed   : > { %14944 = vst [vmem:[#allocation12_spill] sm:$0xff] %v12341_v61  ;;  %v3532_v52 = vor.u32 %v3531_v34, %v3528_v5  ;;  %v10118_v5 = vld [vmem:[%s11310_s16 + $0x6c] sm:$0xf]  ;;  %v10119_v34 = vld [vmem:[%s11310_s16 + $0x70] sm:$0xf] }
 0x1ee   : > { %v1543_v20 = vpop.f32.mrf.mxu2  ;;  %v3819_v36 = vpack.c.b16 %v3793_v1, %v3792_v14 }
 0x1ef   : > { %v1587_v6 = vadd.f32 %v1543_v20, %v11833_v32  ;;  %v1858_v44 = vpop.f32.mrf.mxu3  ;;  %v3535_v32 = vshll.u32 %v10116_v13, 16  ;;  %v3533_v26 = vrot.slane %v3532_v52, 4  ;;  %v3559_v52 = vshll.u32 %v10119_v34, 16 }
 0x1f0   : > { %v2542_v48 = vpop.f32.mrf.mxu0 }
 0x1f1   : > { %v1902_v57 = vadd.f32 %v1858_v44, %v1587_v6  ;;  %v3537_v49 = vrot.slane %v3535_v32, 5  ;;  %v11017_v44 = vld [vmem:[%s11310_s16 + $0x54] sm:$0xff] }
 0x1f2   : > { %v12354_v15 = vpop.f32.mrf.mxu1 }
 0x1f3   : > { %14945 = vst [vmem:[#allocation13_spill] sm:$0xff] %v12354_v15  ;;  %v2584_v54 = vadd.f32 %v2540_v3, %v1902_v57  ;;  %v4245_v15 = vpack.c.b16 %v4219_v17, %v4218_v30  ;;  %v3542_v58 = vor.u32 %v3541_v56, %v3537_v49  ;;  %v10199_v57 = vld [vmem:[%s11310_s16 + $0x60] sm:$0xe]  ;;  %v4126_v30 = vrot.slane %v10117_v28, 5 }
 0x1f4   : > { %v3538_v56 = vsel %vm11335_vm2, %v3533_v26, %v3537_v49 }
 0x1f5   : > { %v12359_v50 = vadd.f32 %v2966_v45, %v2584_v54  ;;  %v3545_v45 = vshll.u32 %v10117_v28, 16  ;;  %v3543_v54 = vrot.slane %v3542_v58, 4  ;;  %v3553_v28 = vshll.u32 %v10118_v5, 16 }
 0x1f6   : > { %v1545_v35 = vpop.f32.mrf.mxu2  ;;  %v3794_v58 = vunpack.c.l.b16 %v3538_v56 }
 0x1f7   : > { %14946 = vst [vmem:[#allocation14_spill] sm:$0xff] %v12359_v50  ;;  %v1588_v20 = vadd.f32 %v1545_v35, %v11851_v11  ;;  %v1860_v6 = vpop.f32.mrf.mxu3  ;;  %v10215_v11 = vrot.slane %v10199_v57, 9  ;;  %v3547_v17 = vrot.slane %v3545_v45, 5  ;;  %v3555_v26 = vrot.slane %v3553_v28, 5 }
 0x1f8   : > { %v2545_v3 = vpop.f32.mrf.mxu0 }
 0x1f9   : > { %v1903_v19 = vadd.f32 %v1860_v6, %v1588_v20  ;;  %v3550_v20 = vshrl.u32 %v10118_v5, 16 }
 0x1fa   : > { %v2971_v29 = vpop.f32.mrf.mxu1 }
 0x1fb   : > { %3245 = vmatmul.bf16.gmra.mxu2 %v11017_v44  ;;  %4353 = vmatmul.bf16.gmra.mxu0 %v4245_v15  ;;  %v12365_v32 = vadd.f32 %v2542_v48, %v1903_v19  ;;  %v4124_v48 = vsel %vm11636_vm5, %v10215_v11, %v4123_v31  ;;  %v4127_v15 = vsel %vm11636_vm5, %v4125_v40, %v4126_v30  ;;  %v3552_v31 = vrot.slane %v3550_v20, 4 }
 0x1fc   : > { %3927 = vmatmul.bf16.gmra.mxu3 %v3819_v36  ;;  %v3548_v44 = vsel %vm11335_vm2, %v3543_v54, %v3547_v17  ;;  %v4220_v19 = vunpack.c.l.b16 %v4124_v48  ;;  %v4221_v49 = vunpack.c.l.b16 %v4127_v15  ;;  %v3561_v40 = vrot.slane %v3559_v52, 5  ;;  %v10120_v54 = vld [vmem:[%s11310_s16 + $0x74] sm:$0x1] }
 0x1fd   : > { %14947 = vst [vmem:[#allocation15_spill] sm:$0xff] %v12365_v32  ;;  %v3795_v45 = vunpack.c.l.b16 %v3548_v44  ;;  %v3556_v48 = vor.u32 %v3555_v26, %v3552_v31  ;;  %v4130_v15 = vrot.slane %v10119_v34, 5  ;;  %v10121_v44 = vld [vmem:[%s11310_s16 + $0x78] sm:$0xf] }
 0x1fe   : > { %v1548_v13 = vpop.f32.mrf.mxu2 }
 0x1ff   : > { %v1589_v14 = vadd.f32 %v1548_v13, %v11869_v55  ;;  %v1863_v1 = vpop.f32.mrf.mxu3  ;;  %v3563_v55 = vshrl.u32 %v10119_v34, 16  ;;  %v11018_v13 = vld [vmem:[%s11310_s16 + $0x60] sm:$0xff]  ;;  %v3820_v56 = vpack.c.b16 %v3795_v45, %v3794_v58  ;;  %v3574_v45 = vshrl.u32 %v10121_v44, 16 }
 0x200   : > { %v2547_v35 = vpop.f32.mrf.mxu0  ;;  %v3577_v34 = vshll.u32 %v10121_v44, 16 }
 0x201   : > { %v1904_v6 = vadd.f32 %v1863_v1, %v1589_v14  ;;  %v3565_v30 = vrot.slane %v3563_v55, 4  ;;  %v4246_v14 = vpack.c.b16 %v4221_v49, %v4220_v19  ;;  %v12390_v55 = vld [vmem:[%s11310_s16 + $0x7c] sm:$0xf]  ;;  %v4133_v19 = vrot.slane %v10120_v54, 5 }
 0x202   : > { %v12378_v57 = vpop.f32.mrf.mxu1 }
 0x203   : > { %v2586_v36 = vadd.f32 %v2545_v3, %v1904_v6  ;;  %14948 = vst [vmem:[#allocation16_spill] sm:$0xff] %v12378_v57  ;;  %v3566_v28 = vor.u32 %v3565_v30, %v3561_v40  ;;  %v10200_v6 = vld [vmem:[%s11310_s16 + $0x6c] sm:$0xe]  ;;  %v3583_v30 = vshll.u32 %v12390_v55, 16 }
 0x205   : > { %v12380_v11 = vadd.f32 %v2971_v29, %v2586_v36  ;;  %v3569_v29 = vshll.u32 %v10120_v54, 16  ;;  %v10216_v36 = vrot.slane %v10200_v6, 9  ;;  %v3567_v49 = vrot.slane %v3566_v28, 4  ;;  %v10123_v6 = vld [vmem:[%s11310_s16 + $0x80] sm:$0x1] }
 0x206   : > { %v1550_v5 = vpop.f32.mrf.mxu2  ;;  %v3576_v28 = vrot.slane %v3574_v45, 4  ;;  %v12404_v44 = vrot.slane %v3583_v30, 5 }
 0x207   : > { %14949 = vst [vmem:[#allocation17_spill] sm:$0xff] %v12380_v11  ;;  %v1590_v17 = vadd.f32 %v1550_v5, %v11884_v38  ;;  %v1865_v3 = vpop.f32.mrf.mxu3  ;;  %v3557_v38 = vrot.slane %v3556_v48, 4  ;;  %v4132_v5 = vrot.slane %v4130_v15, 4  ;;  %v3571_v58 = vrot.slane %v3569_v29, 5 }
 0x208   : > { %v2550_v1 = vpop.f32.mrf.mxu0  ;;  %v4131_v54 = vsel %vm11636_vm5, %v10216_v36, %v4130_v15  ;;  %v3579_v29 = vrot.slane %v3577_v34, 5  ;;  %v11019_v34 = vld [vmem:[%s11310_s16 + $0x6c] sm:$0xff] }
 0x209   : > { %v1905_v20 = vadd.f32 %v1865_v3, %v1590_v17  ;;  %v3587_v17 = vshrl.u32 %v12390_v55, 16  ;;  %v4222_v57 = vunpack.c.l.b16 %v4131_v54 }
 0x20a   : > { %v2976_v26 = vpop.f32.mrf.mxu1 }
 0x20b   : > { %3250 = vmatmul.bf16.gmra.mxu2 %v11018_v13  ;;  %4358 = vmatmul.bf16.gmra.mxu0 %v4246_v14  ;;  %v12387_v52 = vadd.f32 %v2547_v35, %v1905_v20  ;;  %v3562_v14 = vsel %vm11335_vm2, %v3557_v38, %v3561_v40  ;;  %v3572_v20 = vsel %vm11335_vm2, %v3567_v49, %v3571_v58 }
 0x20c   : > { %3932 = vmatmul.bf16.gmra.mxu3 %v3820_v56  ;;  %v4134_v56 = vsel %vm11636_vm5, %v4132_v5, %v4133_v19  ;;  %v3796_v38 = vunpack.c.l.b16 %v3562_v14  ;;  %v3797_v15 = vunpack.c.l.b16 %v3572_v20  ;;  %v3580_v5 = vor.u32 %v3579_v29, %v3576_v28  ;;  %v12423_v29 = vld [vmem:[%s11310_s16 + $0x88] sm:$0xf] }
 0x20d   : > { %14950 = vst [vmem:[#allocation18_spill] sm:$0xff] %v12387_v52  ;;  %v4223_v40 = vunpack.c.l.b16 %v4134_v56  ;;  %v3593_v19 = vshll.u32 %v10123_v6, 16 }
 0x20e   : > { %v1553_v31 = vpop.f32.mrf.mxu2  ;;  %v3821_v14 = vpack.c.b16 %v3797_v15, %v3796_v38 }
 0x20f   : > { %v1591_v35 = vadd.f32 %v1553_v31, %v11908_v22  ;;  %v1868_v3 = vpop.f32.mrf.mxu3  ;;  %v3589_v22 = vrot.slane %v3587_v17, 4  ;;  %v4247_v30 = vpack.c.b16 %v4223_v40, %v4222_v57  ;;  %v10201_v17 = vld [vmem:[%s11310_s16 + $0x78] sm:$0xe]  ;;  %v3595_v20 = vrot.slane %v3593_v19, 5 }
 0x210   : > { %v2552_v13 = vpop.f32.mrf.mxu0  ;;  %v10217_v57 = vrot.slane %v10201_v17, 9 }
 0x211   : > { %v1906_v48 = vadd.f32 %v1868_v3, %v1591_v35  ;;  %v11240_v35 = vmov 0   ;;  %v3590_v58 = vor.u32 %v3589_v22, %v12404_v44 }
 0x212   : > { %4548 = vst [vmem:[#allocation2 + $0xc] sm:$0xf] %v11240_v35  ;;  %v12416_v54 = vpop.f32.mrf.mxu1 }
 0x213   : > { %v2588_v31 = vadd.f32 %v2550_v1, %v1906_v48  ;;  %4545 = vst [vmem:[#allocation2] sm:$0xf] %v11240_v35  ;;  %v3581_v48 = vrot.slane %v3580_v5, 4  ;;  %v3591_v28 = vrot.slane %v3590_v58, 4  ;;  %v3607_v5 = vshll.u32 %v12423_v29, 16 }
 0x214   : > { %4546 = vst [vmem:[#allocation2 + $0x4] sm:$0xf] %v11240_v35 }
 0x215   : > { %v12406_v36 = vadd.f32 %v2976_v26, %v2588_v31  ;;  %v4137_v26 = vrot.slane %v12390_v55, 5  ;;  %14952 = vst [vmem:[#allocation20_spill] sm:$0xff] %v12416_v54  ;;  %v4140_v31 = vrot.slane %v10123_v6, 5  ;;  %v3586_v15 = vsel %vm11335_vm2, %v3581_v48, %v12404_v44 }
 0x216   : > { %v1555_v49 = vpop.f32.mrf.mxu2  ;;  %4547 = vst [vmem:[#allocation2 + $0x8] sm:$0x1] %v11240_v35  ;;  %v3596_v6 = vsel %vm11335_vm2, %v3591_v28, %v3595_v20 }
 0x217   : > { %14951 = vst [vmem:[#allocation19_spill] sm:$0xff] %v12406_v36  ;;  %v1592_v1 = vadd.f32 %v1555_v49, %v11926_v25  ;;  %v1870_v45 = vpop.f32.mrf.mxu3  ;;  %v10124_v25 = vld [vmem:[%s11310_s16 + $0x84] sm:$0xf]  ;;  %v4139_v22 = vrot.slane %v4137_v26, 4  ;;  %v4138_v58 = vsel %vm11636_vm5, %v10217_v57, %v4137_v26 }
 0x218   : > { %v2555_v3 = vpop.f32.mrf.mxu0  ;;  %4549 = vst [vmem:[#allocation2 + $0x10] sm:$0xf] %v11240_v35  ;;  %v3598_v40 = vshrl.u32 %v10124_v25, 16  ;;  %v3601_v38 = vshll.u32 %v10124_v25, 16  ;;  %v4224_v36 = vunpack.c.l.b16 %v4138_v58 }
 0x219   : > { %v1907_v56 = vadd.f32 %v1870_v45, %v1592_v1  ;;  %4550 = vst [vmem:[#allocation2 + $0x14] sm:$0x1] %v11240_v35  ;;  %v4141_v17 = vsel %vm11636_vm5, %v4139_v22, %v4140_v31 }
 0x21a   : > { %4551 = vst [vmem:[#allocation2 + $0x18] sm:$0xf] %v11240_v35  ;;  %v5072_v19 = vld [vmem:[#allocation2] sm:$0xf]  ;;  %v3600_v26 = vrot.slane %v3598_v40, 4  ;;  %v3603_v20 = vrot.slane %v3601_v38, 5  ;;  %v2981_v54 = vpop.f32.mrf.mxu1  ;;  %v4225_v52 = vunpack.c.l.b16 %v4141_v17 }
 0x21b   : > { %3255 = vmatmul.bf16.gmra.mxu2 %v11019_v34  ;;  %4363 = vmatmul.bf16.gmra.mxu0 %v4247_v30  ;;  %v12425_v55 = vadd.f32 %v2552_v13, %v1907_v56  ;;  %4552 = vst [vmem:[#allocation2 + $0x1c] sm:$0xf] %v11240_v35  ;;  %v3611_v13 = vshrl.u32 %v12423_v29, 16  ;;  %v5073_v1 = vld [vmem:[#allocation2 + $0x4] sm:$0xf]  ;;  %v5137_v45 = vshrl.u32 %v5072_v19, 16 }
 0x21c   : > { %3937 = vmatmul.bf16.gmra.mxu3 %v3821_v14  ;;  %4553 = vst [vmem:[#allocation2 + $0x20] sm:$0x1] %v11240_v35  ;;  %v5140_v34 = vshll.u32 %v5072_v19, 16  ;;  %v5146_v14 = vshll.u32 %v5073_v1, 16  ;;  %v5150_v56 = vshrl.u32 %v5073_v1, 16  ;;  %v12447_v19 = vrot.slane %v3607_v5, 5 }
 0x21d   : > { %14953 = vst [vmem:[#allocation21_spill] sm:$0xff] %v12425_v55  ;;  %v5139_v25 = vrot.slane %v5137_v45, 4  ;;  %v5120_v22 = vld [vmem:[#allocation2 + $0x8] sm:$0x1]  ;;  %v12452_v40 = vld [vmem:[%s11310_s16 + $0x8c] sm:$0x1]  ;;  %v3798_v45 = vunpack.c.l.b16 %v3586_v15  ;;  %v3799_v5 = vunpack.c.l.b16 %v3596_v6  ;;  %v3604_v58 = vor.u32 %v3603_v20, %v3600_v26 }
 0x21e   : > { %v1558_v49 = vpop.f32.mrf.mxu2  ;;  %4554 = vst [vmem:[#allocation2 + $0x24] sm:$0xf] %v11240_v35  ;;  %v5142_v28 = vrot.slane %v5140_v34, 5  ;;  %v5152_v1 = vrot.slane %v5150_v56, 4  ;;  %v5156_v38 = vshll.u32 %v5120_v22, 16  ;;  %v3617_v6 = vshll.u32 %v12452_v40, 16 }
 0x21f   : > { %v1593_v44 = vadd.f32 %v1558_v49, %v11944_v59  ;;  %v1873_v30 = vpop.f32.mrf.mxu3  ;;  %4555 = vst [vmem:[#allocation2 + $0x28] sm:$0xf] %v11240_v35  ;;  %v3613_v59 = vrot.slane %v3611_v13, 4  ;;  %v5148_v49 = vrot.slane %v5146_v14, 5  ;;  %v10202_v14 = vld [vmem:[%s11310_s16 + $0x84] sm:$0xe]  ;;  %v4248_v26 = vpack.c.b16 %v4225_v52, %v4224_v36 }
 0x220   : > { %v12444_v48 = vpop.f32.mrf.mxu0  ;;  %4556 = vst [vmem:[#allocation2 + $0x2c] sm:$0x1] %v11240_v35  ;;  %v5143_v31 = vor.u32 %v5142_v28, %v5139_v25  ;;  %v5158_v17 = vrot.slane %v5156_v38, 5  ;;  %v14955_v56 = vld [vmem:[#allocation3_spill] sm:$0xff]  ;;  %v4144_v20 = vrot.slane %v12423_v29, 5  ;;  %v3619_v29 = vrot.slane %v3617_v6, 5 }
 0x221   : > { %v1908_v57 = vadd.f32 %v1873_v30, %v1593_v44  ;;  %4557 = vst [vmem:[#allocation2 + $0x30] sm:$0xf] %v11240_v35  ;;  %v5153_v34 = vor.u32 %v5152_v1, %v5148_v49  ;;  %v3614_v30 = vor.u32 %v3613_v59, %v12447_v19  ;;  %v10127_v22 = vld [vmem:[%s11310_s16 + $0x90] sm:$0xf]  ;;  %v3822_v1 = vpack.c.b16 %v3799_v5, %v3798_v45  ;;  %v12477_v36 = vld [vmem:[%s11310_s16 + $0x94] sm:$0xf] }
 0x222   : > { %4558 = vst [vmem:[#allocation2 + $0x34] sm:$0xf] %v11240_v35  ;;  %v5144_v13 = vrot.slane %v5143_v31, 4  ;;  %v4146_v5 = vrot.slane %v4144_v20, 4  ;;  %v3635_v6 = vshrl.u32 %v12477_v36, 16 }
 0x223   : > { %v2590_v55 = vadd.f32 %v2555_v3, %v1908_v57  ;;  %4559 = vst [vmem:[#allocation2 + $0x38] sm:$0x1] %v11240_v35  ;;  %v11076_v3 = vld [vmem:[%s14927_s4 + $0x40] sm:$0xff]  ;;  %v11020_v57 = vld [vmem:[%s11310_s16 + $0x78] sm:$0xff] }
 0x224   : > { %4560 = vst [vmem:[#allocation2 + $0x3c] sm:$0xf] %v11240_v35  ;;  %5656 = vmatpush.bf16.msra.mxu1 %v11076_v3  ;;  %v10218_v3 = vrot.slane %v10202_v14, 9  ;;  %v12494_v14 = vld [vmem:[%s11310_s16 + $0x98] sm:$0x1] }
 0x225   : > { %v12455_v44 = vadd.f32 %v2981_v54, %v2590_v55  ;;  %4561 = vst [vmem:[#allocation2 + $0x40] sm:$0xf] %v11240_v35  ;;  %v5149_v54 = vsel %vm11335_vm2, %v5144_v13, %v5148_v49  ;;  %v5154_v55 = vrot.slane %v5153_v34, 4  ;;  %v3605_v13 = vrot.slane %v3604_v58, 4 }
 0x226   : > { %v1560_v15 = vpop.f32.mrf.mxu2  ;;  %4562 = vst [vmem:[#allocation2 + $0x44] sm:$0x1] %v11240_v35  ;;  %v5537_v59 = vunpack.c.l.b16 %v5149_v54  ;;  %v3615_v34 = vrot.slane %v3614_v30, 4  ;;  %v3625_v54 = vshll.u32 %v10127_v22, 16  ;;  %v4147_v58 = vrot.slane %v12452_v40, 5 }
 0x227   : > { %14954 = vst [vmem:[#allocation22_spill] sm:$0xff] %v12455_v44  ;;  %v1594_v25 = vadd.f32 %v1560_v15, %v14955_v56  ;;  %v1875_v28 = vpop.f32.mrf.mxu3  ;;  %v5159_v49 = vsel %vm11335_vm2, %v5154_v55, %v5158_v17  ;;  %v3622_v15 = vshrl.u32 %v10127_v22, 16  ;;  %v3631_v17 = vshll.u32 %v12477_v36, 16 }
 0x228   : > { %v4329_v31 = vpop.f32.mrf.mxu0  ;;  %4563 = vst [vmem:[#allocation2 + $0x48] sm:$0xf] %v11240_v35  ;;  %v5538_v52 = vunpack.c.l.b16 %v5159_v49  ;;  %v3610_v40 = vsel %vm11335_vm2, %v3605_v13, %v12447_v19  ;;  %v3627_v56 = vrot.slane %v3625_v54, 5  ;;  %v4148_v22 = vsel %vm11636_vm5, %v4146_v5, %v4147_v58  ;;  %v12506_v19 = vld [vmem:[%s11310_s16 + $0xa0] sm:$0xf] }
 0x229   : > { %v1909_v38 = vadd.f32 %v1875_v28, %v1594_v25  ;;  %4564 = vst [vmem:[#allocation2 + $0x4c] sm:$0xf] %v11240_v35  ;;  %v3624_v55 = vrot.slane %v3622_v15, 4  ;;  %v14957_v25 = vld [vmem:[#allocation4_spill] sm:$0xff]  ;;  %v3637_v13 = vrot.slane %v3635_v6, 4  ;;  %v3659_v54 = vshrl.u32 %v12506_v19, 16 }
 0x22a   : > { %4565 = vst [vmem:[#allocation2 + $0x50] sm:$0x1] %v11240_v35  ;;  %v5569_v30 = vpack.c.b16 %v5538_v52, %v5537_v59  ;;  %v4145_v59 = vsel %vm11636_vm5, %v10218_v3, %v4144_v20  ;;  %v12516_v20 = vld [vmem:[%s14925_s2] ss:$0 sm:$0xff]  ;;  %v3655_v3 = vshll.u32 %v12506_v19, 16 }
 0x22b   : > { %3260 = vmatmul.bf16.gmra.mxu2 %v11020_v57  ;;  %4368 = vmatmul.bf16.gmra.mxu0 %v4248_v26  ;;  %v12481_v45 = vadd.f32 %v12444_v48, %v1909_v38  ;;  %4566 = vst [vmem:[#allocation2 + $0x54] sm:$0xf] %v11240_v35  ;;  %v3620_v26 = vsel %vm11335_vm2, %v3615_v34, %v3619_v29  ;;  %v12511_v38 = vrot.slane %v3631_v17, 5  ;;  %v12519_v29 = vunpack.c.l.b16 %v3610_v40 }
 0x22c   : > { %3942 = vmatmul.bf16.gmra.mxu3 %v3822_v1  ;;  %4567 = vst [vmem:[#allocation2 + $0x58] sm:$0xf] %v11240_v35  ;;  %5657 = vmatmul.bf16.vlgmr.msra.gmra.mxu1 %v5569_v30  ;;  %v10130_v1 = vld [vmem:[%s11310_s16 + $0x9c] sm:$0xf]  ;;  %v3801_v5 = vunpack.c.l.b16 %v3620_v26  ;;  %v4226_v58 = vunpack.c.l.b16 %v4145_v59  ;;  %v4227_v30 = vunpack.c.l.b16 %v4148_v22  ;;  %v3641_v17 = vshll.u32 %v12494_v14, 16 }
 0x22d   : > { %14956 = vst [vmem:[#allocation3_spill] sm:$0xff] %v12481_v45  ;;  %v3646_v52 = vshrl.u32 %v10130_v1, 16  ;;  %v3649_v15 = vshll.u32 %v10130_v1, 16  ;;  %v3628_v40 = vor.u32 %v3627_v56, %v3624_v55  ;;  %v12540_v55 = vrot.slane %v3655_v3, 5 }
 0x22e   : > { %4568 = vst [vmem:[#allocation2 + $0x5c] sm:$0x1] %v11240_v35  ;;  %v3221_v48 = vpop.f32.mrf.mxu2  ;;  %v3661_v56 = vrot.slane %v3659_v54, 4  ;;  %v4249_v45 = vpack.c.b16 %v4227_v30, %v4226_v58  ;;  %v4154_v58 = vrot.slane %v12494_v14, 5 }
 0x22f   : > { %4569 = vst [vmem:[#allocation2 + $0x60] sm:$0xf] %v11240_v35  ;;  %v3301_v28 = vadd.f32 %v3221_v48, %v14957_v25  ;;  %v3903_v57 = vpop.f32.mrf.mxu3  ;;  %v12528_v48 = vld [vmem:[%s14926_s3] ss:$0 sm:$0xff]  ;;  %v10203_v25 = vld [vmem:[%s11310_s16 + $0x90] sm:$0xe] }
 0x230   : > { %4570 = vst [vmem:[#allocation2 + $0x64] sm:$0xf] %v11240_v35  ;;  %v12509_v49 = vpop.f32.mrf.mxu0  ;;  %v3648_v26 = vrot.slane %v3646_v52, 4  ;;  %v3651_v59 = vrot.slane %v3649_v15, 5  ;;  %v3629_v54 = vrot.slane %v3628_v40, 4  ;;  %v10219_v44 = vrot.slane %v10203_v25, 9 }
 0x231   : > { %4571 = vst [vmem:[#allocation2 + $0x68] sm:$0x1] %v11240_v35  ;;  %v3983_v34 = vadd.f32 %v3903_v57, %v3301_v28  ;;  %v11075_v28 = vld [vmem:[%s14927_s4 + $0x38] sm:$0xff]  ;;  %v3638_v57 = vor.u32 %v3637_v13, %v12511_v38  ;;  %v12544_v13 = vrot.slane %v3641_v17, 5  ;;  %v12562_v40 = vadd.f32 %v12142_v24, %v12164_v12 }
 0x232   : > { %4572 = vst [vmem:[#allocation2 + $0x6c] sm:$0xf] %v11240_v35  ;;  %5882 = vmatpush.bf16.msrb.mxu2 %v11075_v28  ;;  %v3652_v30 = vor.u32 %v3651_v59, %v3648_v26  ;;  %v4158_v25 = vrot.slane %v12506_v19, 5  ;;  %v3634_v26 = vsel %vm11335_vm2, %v3629_v54, %v12511_v38  ;;  %v10204_v59 = vld [vmem:[%s11310_s16 + $0x9c] sm:$0xe] }
 0x233   : > { %4573 = vst [vmem:[#allocation2 + $0x70] sm:$0xf] %v11240_v35  ;;  %v4409_v6 = vadd.f32 %v4329_v31, %v3983_v34  ;;  %v4151_v31 = vrot.slane %v12477_v36, 5  ;;  %v3823_v34 = vpack.c.b16 %v3801_v5, %v12519_v29  ;;  %v12547_v36 = vld [vmem:[%s11310_s16 + $0xa4] sm:$0x1]  ;;  %v3639_v29 = vrot.slane %v3638_v57, 4 }
 0x234   : > { %4574 = vst [vmem:[#allocation2 + $0x74] sm:$0x1] %v11240_v35 }
 0x235   : > { %4575 = vst [vmem:[#allocation2 + $0x78] sm:$0xf] %v11240_v35  ;;  %v4445_v22 = vmul.f32 %v12516_v20, %v4409_v6  ;;  %v11021_v6 = vld [vmem:[%s11310_s16 + $0x84] sm:$0xff]  ;;  %v4153_v5 = vrot.slane %v4151_v31, 4  ;;  %v3644_v24 = vsel %vm11335_vm2, %v3639_v29, %v12544_v13  ;;  %v4152_v12 = vsel %vm11636_vm5, %v10219_v44, %v4151_v31  ;;  %v4958_v29 = vld [vmem:[#allocation2 + $0xc] sm:$0xf] }
 0x236   : > { %4576 = vst [vmem:[#allocation2 + $0x7c] sm:$0xf] %v11240_v35  ;;  %v3223_v1 = vpop.f32.mrf.mxu2  ;;  %v10220_v44 = vrot.slane %v10204_v59, 9  ;;  %v4160_v31 = vrot.slane %v4158_v25, 4 }
 0x237   : > { %4577 = vst [vmem:[#allocation2 + $0x80] sm:$0x1] %v11240_v35  ;;  %v4481_v52 = vadd.f32 %v12528_v48, %v4445_v22  ;;  %v3302_v15 = vadd.f32 %v3223_v1, %v12007_v7  ;;  %v3905_v3 = vpop.f32.mrf.mxu3  ;;  %v3662_v7 = vor.u32 %v3661_v56, %v12540_v55  ;;  %v3665_v22 = vshll.u32 %v12547_v36, 16  ;;  %v11091_v1 = vld [vmem:[%s14927_s4 + $0xb8] sm:$0xff] }
 0x238   : > { %4578 = vst [vmem:[#allocation2 + $0x84] sm:$0xf] %v11240_v35  ;;  %v12554_v11 = vpop.f32.mrf.mxu0  ;;  %6260 = vmatpush.bf16.msrb.mxu3 %v11091_v1 }
 0x239   : > { %4579 = vst [vmem:[#allocation2 + $0x88] sm:$0xf] %v11240_v35  ;;  %v4513_v17 = vmax.f32 %v4481_v52, 0.0  ;;  %v3984_v28 = vadd.f32 %v3905_v3, %v3302_v15  ;;  %v3667_v52 = vrot.slane %v3665_v22, 5  ;;  %v12586_v15 = vunpack.c.l.b16 %v3634_v26 }
 0x23a   : > { %4580 = vst [vmem:[#allocation2 + $0x8c] sm:$0x1] %v11240_v35  ;;  %v4161_v3 = vrot.slane %v12547_v36, 5 }
 0x23b   : > { %4581 = vst [vmem:[#allocation2 + $0x90] sm:$0xf] %v11240_v35  ;;  %v4599_v14 = vpack.c.bf16 %v4513_v17, %v4513_v17  ;;  %v4410_v57 = vadd.f32 %v12509_v49, %v3984_v28  ;;  %3265 = vmatmul.bf16.gmra.mxu2 %v11021_v6  ;;  %4373 = vmatmul.bf16.gmra.mxu0 %v4249_v45  ;;  %v3653_v49 = vrot.slane %v3652_v30, 4  ;;  %v12605_v28 = vunpack.c.l.b16 %v3644_v24  ;;  %v11163_v17 = vld [vmem:[%s14927_s4 + $0x1f8] sm:$0xff] }
 0x23c   : > { %4582 = vst [vmem:[#allocation2 + $0x94] sm:$0xf] %v11240_v35  ;;  %3947 = vmatmul.bf16.gmra.mxu3 %v3823_v34  ;;  %v4155_v45 = vsel %vm11636_vm5, %v4153_v5, %v4154_v58  ;;  %v3663_v34 = vrot.slane %v3662_v7, 4  ;;  %v4228_v7 = vunpack.c.l.b16 %v4152_v12  ;;  %v12651_v19 = vsel %vm11636_vm5, %v4160_v31, %v4161_v3 }
 0x23d   : > { %4583 = vst [vmem:[#allocation2 + $0x98] sm:$0x1] %v11240_v35  ;;  %v4635_v56 = vshrl.u32 %v4599_v14, 16  ;;  %v4446_v38 = vmul.f32 %v12516_v20, %v4410_v57  ;;  %v4638_v54 = vshll.u32 %v4599_v14, 16  ;;  %v4229_v22 = vunpack.c.l.b16 %v4155_v45  ;;  %v10133_v14 = vld [vmem:[%s11310_s16 + $0xa8] sm:$0xf] }
 0x23e   : > { %4584 = vst [vmem:[#allocation2 + $0x9c] sm:$0xf] %v11240_v35  ;;  %v3226_v13 = vpop.f32.mrf.mxu2  ;;  %v12612_v57 = vld [vmem:[%s11310_s16 + $0xac] sm:$0xf]  ;;  %v3670_v24 = vshrl.u32 %v10133_v14, 16  ;;  %v3673_v12 = vshll.u32 %v10133_v14, 16 }
 0x23f   : > { %4585 = vst [vmem:[#allocation2 + $0xa0] sm:$0xf] %v11240_v35  ;;  %v12591_v6 = vrot.slane %v4635_v56, 7  ;;  %v4482_v5 = vadd.f32 %v12528_v48, %v4446_v38  ;;  %v3303_v58 = vadd.f32 %v3226_v13, %v12029_v18  ;;  %v3908_v30 = vpop.f32.mrf.mxu3  ;;  %v3658_v18 = vsel %vm11335_vm2, %v3653_v49, %v12540_v55 }
 0x240   : > { %4586 = vst [vmem:[#allocation2 + $0xa4] sm:$0x1] %v11240_v35  ;;  %v12603_v36 = vpop.f32.mrf.mxu0  ;;  %v3668_v38 = vsel %vm11335_vm2, %v3663_v34, %v3667_v52  ;;  %v3679_v45 = vshll.u32 %v12612_v57, 16  ;;  %v3683_v55 = vshrl.u32 %v12612_v57, 16  ;;  %v3824_v34 = vpack.c.b16 %v12605_v28, %v12586_v15  ;;  %v12646_v28 = vld [vmem:[%s11310_s16 + $0xb0] sm:$0x1] }
 0x241   : > { %4587 = vst [vmem:[#allocation2 + $0xa8] sm:$0xf] %v11240_v35  ;;  %v4640_v26 = vor.u32 %v4638_v54, %v12591_v6  ;;  %v4514_v59 = vmax.f32 %v4482_v5, 0.0  ;;  %v3985_v56 = vadd.f32 %v3908_v30, %v3303_v58  ;;  %v4250_v52 = vpack.c.b16 %v4229_v22, %v4228_v7  ;;  %v11115_v54 = vld [vmem:[%s14927_s4 + $0xf8] sm:$0xff] }
 0x242   : > { %4588 = vst [vmem:[#allocation2 + $0xac] sm:$0xf] %v11240_v35  ;;  %v12633_v5 = vunpack.c.l.b16 %v3658_v18  ;;  %v12643_v30 = vunpack.c.l.b16 %v3668_v38  ;;  %v3672_v7 = vrot.slane %v3670_v24, 4  ;;  %6574 = vmatpush.bf16.msrb.mxu0 %v11115_v54  ;;  %v3685_v18 = vrot.slane %v3683_v55, 4  ;;  %v11022_v55 = vld [vmem:[%s11310_s16 + $0x90] sm:$0xff] }
 0x243   : > { %4589 = vst [vmem:[#allocation2 + $0xb0] sm:$0x1] %v11240_v35  ;;  %v4959_v49 = vsel %vm12598_vm10, %v4640_v26, %v4958_v29  ;;  %v4600_v1 = vpack.c.bf16 %v4514_v59, %v4514_v59  ;;  %v4411_v13 = vadd.f32 %v12554_v11, %v3985_v56  ;;  %v11123_v29 = vld [vmem:[%s14927_s4 + $0x138] sm:$0xff]  ;;  %v12639_v11 = vsel %vm11636_vm5, %v10220_v44, %v4158_v25  ;;  %v4964_v56 = vld [vmem:[#allocation2 + $0x14] sm:$0x1] }
 0x244   : > { %4590 = vst [vmem:[#allocation2 + $0xb4] sm:$0xf] %v11240_v35  ;;  %7256 = vmatpush.bf16.msrb.mxu1 %v11123_v29  ;;  %v3675_v25 = vrot.slane %v3673_v12, 5  ;;  %v12653_v44 = vrot.slane %v3679_v45, 5  ;;  %v4641_v24 = vrot.slane %v12591_v6, 4 }
 0x245   : > { %4960 = vst [vmem:[#allocation2 + $0xc] sm:$0xf] %v4959_v49  ;;  %v4643_v15 = vshrl.u32 %v4600_v1, 16  ;;  %v4447_v58 = vmul.f32 %v12516_v20, %v4411_v13  ;;  %v4646_v59 = vshll.u32 %v4600_v1, 16  ;;  %v3689_v13 = vshll.u32 %v12646_v28, 16 }
 0x246   : > { %4591 = vst [vmem:[#allocation2 + $0xb8] sm:$0xf] %v11240_v35  ;;  %v3228_v22 = vpop.f32.mrf.mxu2  ;;  %v3676_v49 = vor.u32 %v3675_v25, %v3672_v7  ;;  %v3686_v1 = vor.u32 %v3685_v18, %v12653_v44  ;;  %v4231_v7 = vunpack.c.l.b16 %v12651_v19  ;;  %v4165_v25 = vrot.slane %v12612_v57, 5 }
 0x247   : > { %4592 = vst [vmem:[#allocation2 + $0xbc] sm:$0x1] %v11240_v35  ;;  %v4645_v26 = vrot.slane %v4643_v15, 7  ;;  %v4483_v38 = vadd.f32 %v12528_v48, %v4447_v58  ;;  %v3304_v31 = vadd.f32 %v3228_v22, %v12044_v43  ;;  %v3910_v3 = vpop.f32.mrf.mxu3  ;;  %v10205_v15 = vld [vmem:[%s11310_s16 + $0xa8] sm:$0xe]  ;;  %v4230_v22 = vunpack.c.l.b16 %v12639_v11 }
 0x248   : > { %4593 = vst [vmem:[#allocation2 + $0xc0] sm:$0xf] %v11240_v35  ;;  %v12672_v45 = vpop.f32.mrf.mxu0  ;;  %v10221_v57 = vrot.slane %v10205_v15, 9 }
 0x249   : > { %4594 = vst [vmem:[#allocation2 + $0xc4] sm:$0xf] %v11240_v35  ;;  %v4648_v43 = vor.u32 %v4646_v59, %v4645_v26  ;;  %v4650_v6 = vrot.slane %v4645_v26, 4  ;;  %v4515_v54 = vmax.f32 %v4483_v38, 0.0  ;;  %v3986_v29 = vadd.f32 %v3910_v3, %v3304_v31 }
 0x24a   : > { %4595 = vst [vmem:[#allocation2 + $0xc8] sm:$0x1] %v11240_v35  ;;  %v3677_v3 = vrot.slane %v3676_v49, 4 }
 0x24b   : > { %4596 = vst [vmem:[#allocation2 + $0xcc] sm:$0xf] %v11240_v35  ;;  %v4649_v18 = vsel %vm12658_vm12, %v4641_v24, %v4648_v43  ;;  %v4965_v26 = vsel %vm12668_vm13, %v4650_v6, %v4964_v56  ;;  %v4601_v59 = vpack.c.bf16 %v4515_v54, %v4515_v54  ;;  %v4412_v38 = vadd.f32 %v12603_v36, %v3986_v29 }
 0x24c   : > { %4597 = vst [vmem:[#allocation2 + $0xd0] sm:$0xf] %v11240_v35  ;;  %v5074_v31 = vld [vmem:[#allocation2 + $0xc] sm:$0xf]  ;;  %3270 = vmatmul.bf16.gmra.mxu2 %v11022_v55  ;;  %3952 = vmatmul.bf16.gmra.mxu3 %v3824_v34  ;;  %v3687_v24 = vrot.slane %v3686_v1, 4  ;;  %v3691_v43 = vrot.slane %v3689_v13, 5  ;;  %v12698_v1 = vpack.c.b16 %v4231_v7, %v4230_v22 }
 0x24d   : > { %4598 = vst [vmem:[#allocation2 + $0xd4] sm:$0x1] %v11240_v35  ;;  %v5161_v11 = vshrl.u32 %v5074_v31, 16  ;;  %v5164_v19 = vshll.u32 %v5074_v31, 16  ;;  %v4652_v58 = vshrl.u32 %v4601_v59, 16  ;;  %v4448_v32 = vmul.f32 %v12516_v20, %v4412_v38  ;;  %4378 = vmatmul.bf16.gmra.mxu0 %v4250_v52 }
 0x24e   : > { %4961 = vst [vmem:[#allocation2 + $0x10] sm:$0xf] %v4649_v18  ;;  %v3231_v56 = vpop.f32.mrf.mxu2  ;;  %v4167_v54 = vrot.slane %v4165_v25, 4  ;;  %v4168_v35 = vrot.slane %v12646_v28, 5  ;;  %v4655_v55 = vshll.u32 %v4601_v59, 16  ;;  %v12705_v28 = vsel %vm11636_vm5, %v10221_v57, %v4165_v25 }
 0x24f   : > { %4966 = vst [vmem:[#allocation2 + $0x14] sm:$0x1] %v4965_v26  ;;  %v5163_v36 = vrot.slane %v5161_v11, 4  ;;  %v5166_v6 = vrot.slane %v5164_v19, 5  ;;  %v12694_v34 = vrot.slane %v4652_v58, 7  ;;  %v4484_v49 = vadd.f32 %v12528_v48, %v4448_v32  ;;  %v3913_v15 = vpop.f32.mrf.mxu3 }
 0x250   : > { %v3305_v29 = vadd.f32 %v3231_v56, %v12071_v4  ;;  %v4967_v18 = vld [vmem:[#allocation2 + $0x18] sm:$0xf]  ;;  %v4341_v52 = vpop.f32.mrf.mxu0  ;;  %v3682_v26 = vsel %vm11335_vm2, %v3677_v3, %v12653_v44  ;;  %v10136_v58 = vld [vmem:[%s11310_s16 + $0xb4] sm:$0xf]  ;;  %v3692_v38 = vsel %vm11335_vm2, %v3687_v24, %v3691_v43  ;;  %v12714_v7 = vsel %vm11636_vm5, %v4167_v54, %v4168_v35 }
 0x251   : > { %v5167_v13 = vor.u32 %v5166_v6, %v5163_v36  ;;  %v4657_v32 = vor.u32 %v4655_v55, %v12694_v34  ;;  %v4516_v59 = vmax.f32 %v4484_v49, 0.0  ;;  %v4658_v22 = vrot.slane %v12694_v34, 4  ;;  %v12720_v57 = vld [vmem:[%s11310_s16 + $0xb8] sm:$0xf]  ;;  %v11074_v24 = vld [vmem:[%s14927_s4 + $0x30] sm:$0xff] }
 0x252   : > { %v3987_v4 = vadd.f32 %v3913_v15, %v3305_v29  ;;  %v3694_v31 = vshrl.u32 %v10136_v58, 16  ;;  %v3697_v44 = vshll.u32 %v10136_v58, 16  ;;  %v12727_v43 = vunpack.c.l.b16 %v3682_v26  ;;  %5883 = vmatpush.bf16.msrb.mxu2 %v11074_v24 }
 0x253   : > { %v4968_v25 = vsel %vm12598_vm10, %v4657_v32, %v4967_v18  ;;  %v4602_v11 = vpack.c.bf16 %v4516_v59, %v4516_v59  ;;  %v5168_v3 = vrot.slane %v5167_v13, 4  ;;  %v12729_v36 = vunpack.c.l.b16 %v3692_v38 }
 0x254   : > { %v4413_v19 = vadd.f32 %v12672_v45, %v3987_v4  ;;  %4969 = vst [vmem:[#allocation2 + $0x18] sm:$0xf] %v4968_v25  ;;  %v3696_v54 = vrot.slane %v3694_v31, 4  ;;  %v3699_v13 = vrot.slane %v3697_v44, 5  ;;  %v3703_v26 = vshll.u32 %v12720_v57, 16 }
 0x255   : > { %v12722_v56 = vld [vmem:[#allocation2 + $0x10] sm:$0xf]  ;;  %v4660_v35 = vshrl.u32 %v4602_v11, 16  ;;  %v4663_v29 = vshll.u32 %v4602_v11, 16  ;;  %v4971_v31 = vld [vmem:[#allocation2 + $0x20] sm:$0x1] }
 0x256   : > { %v4449_v45 = vmul.f32 %v12516_v20, %v4413_v19  ;;  %v5121_v34 = vld [vmem:[#allocation2 + $0x14] sm:$0x1]  ;;  %v5170_v55 = vshll.u32 %v12722_v56, 16  ;;  %v3233_v15 = vpop.f32.mrf.mxu2  ;;  %v5174_v18 = vshrl.u32 %v12722_v56, 16  ;;  %v11023_v19 = vld [vmem:[%s11310_s16 + $0x9c] sm:$0xff]  ;;  %v3700_v6 = vor.u32 %v3699_v13, %v3696_v54 }
 0x257   : > { %v4662_v58 = vrot.slane %v4660_v35, 7  ;;  %v3306_v59 = vadd.f32 %v3233_v15, %v12085_v16  ;;  %v3915_v4 = vpop.f32.mrf.mxu3  ;;  %v5180_v11 = vshll.u32 %v5121_v34, 16  ;;  %v3707_v24 = vshrl.u32 %v12720_v57, 16 }
 0x258   : > { %v4485_v32 = vadd.f32 %v12528_v48, %v4449_v45  ;;  %v5172_v38 = vrot.slane %v5170_v55, 5  ;;  %v12739_v25 = vpop.f32.mrf.mxu0  ;;  %v5176_v49 = vrot.slane %v5174_v18, 4  ;;  %v3705_v15 = vrot.slane %v3703_v26, 5 }
 0x259   : > { %v4665_v44 = vor.u32 %v4663_v29, %v4662_v58  ;;  %v4667_v50 = vrot.slane %v4662_v58, 4  ;;  %v3988_v35 = vadd.f32 %v3915_v4, %v3306_v59  ;;  %v3709_v55 = vrot.slane %v3707_v24, 4 }
 0x25a   : > { %v4517_v61 = vmax.f32 %v4485_v32, 0.0  ;;  %v5173_v45 = vsel %vm11335_vm2, %v5168_v3, %v5172_v38  ;;  %v5177_v16 = vor.u32 %v5176_v49, %v5172_v38  ;;  %v14964_v29 = vpack.c.b16 %v12643_v30, %v12633_v5 }
 0x25b   : > { %v4666_v27 = vsel %vm12658_vm12, %v4658_v22, %v4665_v44  ;;  %v4972_v34 = vsel %vm12668_vm13, %v4667_v50, %v4971_v31  ;;  %v4414_v54 = vadd.f32 %v4341_v52, %v3988_v35  ;;  %v5076_v13 = vld [vmem:[#allocation2 + $0x18] sm:$0xf]  ;;  %v5182_v49 = vrot.slane %v5180_v11, 5  ;;  %v4974_v11 = vld [vmem:[#allocation2 + $0x24] sm:$0xf] }
 0x25c   : > { %v4603_v18 = vpack.c.bf16 %v4517_v61, %v4517_v61  ;;  %4970 = vst [vmem:[#allocation2 + $0x1c] sm:$0xf] %v4666_v27  ;;  %3275 = vmatmul.bf16.gmra.mxu2 %v11023_v19  ;;  %3957 = vmatmul.bf16.gmra.mxu3 %v14964_v29  ;;  %v5178_v3 = vrot.slane %v5177_v16, 4  ;;  %v5185_v26 = vshrl.u32 %v5076_v13, 16  ;;  %v3701_v58 = vrot.slane %v3700_v6, 4  ;;  %v11090_v27 = vld [vmem:[%s14927_s4 + $0xb0] sm:$0xff] }
 0x25d   : > { %4973 = vst [vmem:[#allocation2 + $0x20] sm:$0x1] %v4972_v34  ;;  %v4450_v32 = vmul.f32 %v12516_v20, %v4414_v54  ;;  %4383 = vmatmul.bf16.gmra.mxu0 %v12698_v1  ;;  %v5539_v61 = vunpack.c.l.b16 %v5173_v45  ;;  %v5188_v50 = vshll.u32 %v5076_v13, 16  ;;  %v3710_v30 = vor.u32 %v3709_v55, %v3705_v15  ;;  %6261 = vmatpush.bf16.msrb.mxu3 %v11090_v27  ;;  %v10206_v13 = vld [vmem:[%s11310_s16 + $0xb4] sm:$0xe] }
 0x25e   : > { %v4669_v22 = vshrl.u32 %v4603_v18, 16  ;;  %v4672_v52 = vshll.u32 %v4603_v18, 16  ;;  %v3236_v59 = vpop.f32.mrf.mxu2  ;;  %v5183_v5 = vsel %vm11335_vm2, %v5178_v3, %v5182_v49  ;;  %v3713_v6 = vshll.u32 %v12750_v0, 16 }
 0x25f   : > { %v4486_v38 = vadd.f32 %v12528_v48, %v4450_v32  ;;  %v3307_v1 = vadd.f32 %v3236_v59, %v12107_v46  ;;  %v3918_v31 = vpop.f32.mrf.mxu3  ;;  %v5540_v19 = vunpack.c.l.b16 %v5183_v5  ;;  %v5187_v44 = vrot.slane %v5185_v26, 4 }
 0x260   : > { %v12763_v4 = vrot.slane %v4669_v22, 7  ;;  %v4346_v24 = vpop.f32.mrf.mxu0  ;;  %v5190_v35 = vrot.slane %v5188_v50, 5  ;;  %v3711_v45 = vrot.slane %v3710_v30, 4  ;;  %v3715_v16 = vrot.slane %v3713_v6, 5 }
 0x261   : > { %v4518_v34 = vmax.f32 %v4486_v38, 0.0  ;;  %v3989_v18 = vadd.f32 %v3918_v31, %v3307_v1  ;;  %v3706_v54 = vsel %vm11335_vm2, %v3701_v58, %v3705_v15  ;;  %v12773_v46 = vadd.f32 %v12181_v37, %v12196_v10 }
 0x262   : > { %v4674_v55 = vor.u32 %v4672_v52, %v12763_v4  ;;  %v5570_v29 = vpack.c.b16 %v5540_v19, %v5539_v61  ;;  %v3826_v3 = vpack.c.b16 %v12729_v36, %v12727_v43  ;;  %v3716_v49 = vsel %vm11335_vm2, %v3711_v45, %v3715_v16  ;;  %v11114_v36 = vld [vmem:[%s14927_s4 + $0xf0] sm:$0xff]  ;;  %v4978_v45 = vld [vmem:[#allocation2 + $0x2c] sm:$0x1] }
 0x263   : > { %v4675_v26 = vrot.slane %v12763_v4, 4  ;;  %v4604_v32 = vpack.c.bf16 %v4518_v34, %v4518_v34  ;;  %v4415_v15 = vadd.f32 %v12739_v25, %v3989_v18  ;;  %v12783_v58 = vld [vmem:[#allocation2 + $0x1c] sm:$0xf]  ;;  %v14965_v37 = vunpack.c.l.b16 %v12705_v28  ;;  %v11122_v28 = vld [vmem:[%s14927_s4 + $0x130] sm:$0xff]  ;;  %6575 = vmatpush.bf16.msrb.mxu0 %v11114_v36 }
 0x264   : > { %v4975_v22 = vsel %vm12598_vm10, %v4674_v55, %v4974_v11  ;;  %5662 = vmatmul.bf16.gmra.mxu1 %v5570_v29  ;;  %v14966_v10 = vunpack.c.l.b16 %v12714_v7  ;;  %v12792_v61 = vld [vmem:[#allocation2 + $0x20] sm:$0x1]  ;;  %v5191_v27 = vor.u32 %v5190_v35, %v5187_v44  ;;  %v12794_v50 = vunpack.c.l.b16 %v3706_v54  ;;  %v11024_v55 = vld [vmem:[%s11310_s16 + $0xa8] sm:$0xff] }
 0x265   : > { %4976 = vst [vmem:[#allocation2 + $0x24] sm:$0xf] %v4975_v22  ;;  %v10222_v52 = vrot.slane %v10206_v13, 9  ;;  %v4677_v25 = vshrl.u32 %v4604_v32, 16  ;;  %v4451_v59 = vmul.f32 %v12516_v20, %v4415_v15  ;;  %v5194_v5 = vshll.u32 %v12783_v58, 16  ;;  %7257 = vmatpush.bf16.msrb.mxu1 %v11122_v28 }
 0x266   : > { %v4252_v43 = vpack.c.b16 %v14966_v10, %v14965_v37  ;;  %v12801_v7 = vunpack.c.l.b16 %v3716_v49  ;;  %v4680_v30 = vshll.u32 %v4604_v32, 16  ;;  %v3238_v6 = vpop.f32.mrf.mxu2  ;;  %v5198_v4 = vshrl.u32 %v12783_v58, 16 }
 0x267   : > { %v5204_v38 = vshll.u32 %v12792_v61, 16  ;;  %v4172_v1 = vrot.slane %v12720_v57, 5  ;;  %v4679_v31 = vrot.slane %v4677_v25, 7  ;;  %v4487_v19 = vadd.f32 %v12528_v48, %v4451_v59  ;;  %v3920_v44 = vpop.f32.mrf.mxu3  ;;  %v10139_v59 = vld [vmem:[%s11310_s16 + $0xc0] sm:$0xf] }
 0x268   : > { %v3308_v11 = vadd.f32 %v3238_v6, %v12122_v63  ;;  %v5196_v35 = vrot.slane %v5194_v5, 5  ;;  %v4349_v16 = vpop.f32.mrf.mxu0  ;;  %v5192_v34 = vrot.slane %v5191_v27, 4  ;;  %v5200_v18 = vrot.slane %v5198_v4, 4 }
 0x269   : > { %v4173_v54 = vsel %vm11636_vm5, %v10222_v52, %v4172_v1  ;;  %v4174_v13 = vrot.slane %v4172_v1, 4  ;;  %v4682_v29 = vor.u32 %v4680_v30, %v4679_v31  ;;  %v4684_v57 = vrot.slane %v4679_v31, 4 }
 0x26a   : > { %v4519_v49 = vmax.f32 %v4487_v19, 0.0  ;;  %v3990_v22 = vadd.f32 %v3920_v44, %v3308_v11  ;;  %v5197_v63 = vsel %vm11335_vm2, %v5192_v34, %v5196_v35  ;;  %v5201_v32 = vor.u32 %v5200_v18, %v5196_v35  ;;  %v14967_v35 = vld [vmem:[#allocation5_spill] sm:$0xff]  ;;  %v12829_v18 = vld [vmem:[%s11310_s16 + $0xc4] sm:$0xf] }
 0x26b   : > { %v5206_v15 = vrot.slane %v5204_v38, 5  ;;  %v4175_v37 = vrot.slane %v12750_v0, 5  ;;  %v4683_v10 = vsel %vm12658_vm12, %v4675_v26, %v4682_v29  ;;  %v4979_v36 = vsel %vm12668_vm13, %v4684_v57, %v4978_v45 }
 0x26c   : > { %v4605_v27 = vpack.c.bf16 %v4519_v49, %v4519_v49  ;;  %v4416_v52 = vadd.f32 %v4346_v24, %v3990_v22  ;;  %v5078_v25 = vld [vmem:[#allocation2 + $0x24] sm:$0xf]  ;;  %4977 = vst [vmem:[#allocation2 + $0x28] sm:$0xf] %v4683_v10  ;;  %3280 = vmatmul.bf16.gmra.mxu2 %v11024_v55  ;;  %3962 = vmatmul.bf16.gmra.mxu3 %v3826_v3  ;;  %v5202_v5 = vrot.slane %v5201_v32, 4  ;;  %v5541_v28 = vunpack.c.l.b16 %v5197_v63 }
 0x26d   : > { %v4234_v30 = vunpack.c.l.b16 %v4173_v54  ;;  %v5209_v6 = vshrl.u32 %v5078_v25, 16  ;;  %4980 = vst [vmem:[#allocation2 + $0x2c] sm:$0x1] %v4979_v36  ;;  %4388 = vmatmul.bf16.gmra.mxu0 %v4252_v43  ;;  %v4176_v38 = vsel %vm11636_vm5, %v4174_v13, %v4175_v37  ;;  %v5212_v3 = vshll.u32 %v5078_v25, 16  ;;  %v4981_v43 = vld [vmem:[#allocation2 + $0x30] sm:$0xf] }
 0x26e   : > { %v4686_v0 = vshrl.u32 %v4605_v27, 16  ;;  %v4689_v4 = vshll.u32 %v4605_v27, 16  ;;  %v4452_v26 = vmul.f32 %v12516_v20, %v4416_v52  ;;  %v3241_v24 = vpop.f32.mrf.mxu2  ;;  %v5207_v1 = vsel %vm11335_vm2, %v5202_v5, %v5206_v15 }
 0x26f   : > { %v5211_v31 = vrot.slane %v5209_v6, 4  ;;  %v3718_v19 = vshrl.u32 %v10139_v59, 16  ;;  %v3309_v45 = vadd.f32 %v3241_v24, %v14967_v35  ;;  %v3923_v55 = vpop.f32.mrf.mxu3  ;;  %v5542_v34 = vunpack.c.l.b16 %v5207_v1 }
 0x270   : > { %v12824_v11 = vrot.slane %v4686_v0, 7  ;;  %v4488_v44 = vadd.f32 %v12528_v48, %v4452_v26  ;;  %v12831_v54 = vpop.f32.mrf.mxu0  ;;  %v4235_v13 = vunpack.c.l.b16 %v4176_v38  ;;  %v5214_v29 = vrot.slane %v5212_v3, 5 }
 0x271   : > { %v3720_v57 = vrot.slane %v3718_v19, 4  ;;  %v3721_v49 = vshll.u32 %v10139_v59, 16  ;;  %v12835_v22 = vadd.f32 %v12213_v23, %v12230_v9  ;;  %v3991_v15 = vadd.f32 %v3923_v55, %v3309_v45 }
 0x272   : > { %v4691_v63 = vor.u32 %v4689_v4, %v12824_v11  ;;  %v4520_v32 = vmax.f32 %v4488_v44, 0.0  ;;  %v5571_v37 = vpack.c.b16 %v5542_v34, %v5541_v28  ;;  %v5215_v10 = vor.u32 %v5214_v29, %v5211_v31 }
 0x273   : > { %v3723_v36 = vrot.slane %v3721_v49, 5  ;;  %v3727_v27 = vshll.u32 %v12829_v18, 16  ;;  %v4417_v5 = vadd.f32 %v4349_v16, %v3991_v15  ;;  %v3827_v59 = vpack.c.b16 %v12801_v7, %v12794_v50  ;;  %v12843_v6 = vld [vmem:[#allocation2 + $0x28] sm:$0xf] }
 0x274   : > { %v4982_v52 = vsel %vm12598_vm10, %v4691_v63, %v4981_v43  ;;  %v4606_v25 = vpack.c.bf16 %v4520_v32, %v4520_v32  ;;  %5667 = vmatmul.bf16.gmra.mxu1 %v5571_v37  ;;  %v4253_v23 = vpack.c.b16 %v4235_v13, %v4234_v30  ;;  %v5123_v9 = vld [vmem:[#allocation2 + $0x2c] sm:$0x1]  ;;  %v5218_v28 = vshll.u32 %v12843_v6, 16  ;;  %v12863_v13 = vld [vmem:[%s11310_s16 + $0xc8] sm:$0x1]  ;;  %v11025_v63 = vld [vmem:[%s11310_s16 + $0xb4] sm:$0xff] }
 0x275   : > { %4983 = vst [vmem:[#allocation2 + $0x30] sm:$0xf] %v4982_v52  ;;  %v3724_v0 = vor.u32 %v3723_v36, %v3720_v57  ;;  %v3731_v4 = vshrl.u32 %v12829_v18, 16  ;;  %v4453_v38 = vmul.f32 %v12516_v20, %v4417_v5  ;;  %v5216_v24 = vrot.slane %v5215_v10, 4  ;;  %v11073_v50 = vld [vmem:[%s14927_s4 + $0x28] sm:$0xff] }
 0x276   : > { %v4694_v26 = vshrl.u32 %v4606_v25, 16  ;;  %v5222_v16 = vshrl.u32 %v12843_v6, 16  ;;  %v11089_v7 = vld [vmem:[%s14927_s4 + $0xa8] sm:$0xff]  ;;  %v4697_v1 = vshll.u32 %v4606_v25, 16  ;;  %v3243_v31 = vpop.f32.mrf.mxu2  ;;  %v5220_v3 = vrot.slane %v5218_v28, 5  ;;  %5884 = vmatpush.bf16.msrb.mxu2 %v11073_v50 }
 0x277   : > { %v11113_v30 = vld [vmem:[%s14927_s4 + $0xe8] sm:$0xff]  ;;  %v5228_v19 = vshll.u32 %v5123_v9, 16  ;;  %v12858_v44 = vrot.slane %v3727_v27, 5  ;;  %v4489_v45 = vadd.f32 %v12528_v48, %v4453_v38  ;;  %v3310_v55 = vadd.f32 %v3243_v31, %v12562_v40  ;;  %v3925_v34 = vpop.f32.mrf.mxu3  ;;  %6262 = vmatpush.bf16.msrb.mxu3 %v11089_v7  ;;  %v4985_v57 = vld [vmem:[#allocation2 + $0x38] sm:$0x1] }
 0x278   : > { %v4696_v35 = vrot.slane %v4694_v26, 7  ;;  %v5224_v43 = vrot.slane %v5222_v16, 4  ;;  %v4692_v29 = vrot.slane %v12824_v11, 4  ;;  %v12866_v49 = vpop.f32.mrf.mxu0  ;;  %v5221_v32 = vsel %vm11335_vm2, %v5216_v24, %v5220_v3  ;;  %6576 = vmatpush.bf16.msrb.mxu0 %v11113_v30 }
 0x279   : > { %v3725_v15 = vrot.slane %v3724_v0, 4  ;;  %v3733_v37 = vrot.slane %v3731_v4, 4  ;;  %v4521_v36 = vmax.f32 %v4489_v45, 0.0  ;;  %v3992_v27 = vadd.f32 %v3925_v34, %v3310_v55  ;;  %v10207_v4 = vld [vmem:[%s11310_s16 + $0xc0] sm:$0xe] }
 0x27a   : > { %v4699_v40 = vor.u32 %v4697_v1, %v4696_v35  ;;  %v4701_v10 = vrot.slane %v4696_v35, 4  ;;  %v5225_v52 = vor.u32 %v5224_v43, %v5220_v3  ;;  %v5230_v25 = vrot.slane %v5228_v19, 5  ;;  %v11088_v55 = vld [vmem:[%s14927_s4 + $0xa0] sm:$0xff] }
 0x27b   : > { %v3734_v5 = vor.u32 %v3733_v37, %v12858_v44  ;;  %v3737_v11 = vshll.u32 %v12863_v13, 16  ;;  %v4607_v26 = vpack.c.bf16 %v4521_v36, %v4521_v36  ;;  %v4418_v0 = vadd.f32 %v12831_v54, %v3992_v27  ;;  %6263 = vmatpush.bf16.msrb.mxu3 %v11088_v55 }
 0x27c   : > { %v4700_v9 = vsel %vm12658_vm12, %v4692_v29, %v4699_v40  ;;  %v4986_v28 = vsel %vm12668_vm13, %v4701_v10, %v4985_v57  ;;  %3285 = vmatmul.bf16.gmra.mxu2 %v11025_v63  ;;  %3967 = vmatmul.bf16.gmra.mxu3 %v3827_v59  ;;  %v5226_v38 = vrot.slane %v5225_v52, 4  ;;  %v5543_v24 = vunpack.c.l.b16 %v5221_v32  ;;  %v12882_v7 = vld [vmem:[#allocation2 + $0x30] sm:$0xf]  ;;  %v4988_v57 = vld [vmem:[#allocation2 + $0x3c] sm:$0xf] }
 0x27d   : > { %4984 = vst [vmem:[#allocation2 + $0x34] sm:$0xf] %v4700_v9  ;;  %v3730_v16 = vsel %vm11335_vm2, %v3725_v15, %v12858_v44  ;;  %v3735_v50 = vrot.slane %v3734_v5, 4  ;;  %v4703_v30 = vshrl.u32 %v4607_v26, 16  ;;  %v4706_v1 = vshll.u32 %v4607_v26, 16  ;;  %4393 = vmatmul.bf16.gmra.mxu0 %v4253_v23  ;;  %v11072_v44 = vld [vmem:[%s14927_s4 + $0x20] sm:$0xff] }
 0x27e   : > { %4987 = vst [vmem:[#allocation2 + $0x38] sm:$0x1] %v4986_v28  ;;  %v4454_v31 = vmul.f32 %v12516_v20, %v4418_v0  ;;  %v3739_v54 = vrot.slane %v3737_v11, 5  ;;  %v3246_v3 = vpop.f32.mrf.mxu2  ;;  %v5231_v59 = vsel %vm11335_vm2, %v5226_v38, %v5230_v25  ;;  %v10223_v19 = vrot.slane %v10207_v4, 9  ;;  %v11112_v23 = vld [vmem:[%s14927_s4 + $0xe0] sm:$0xff]  ;;  %5885 = vmatpush.bf16.msrb.mxu2 %v11072_v44  ;;  %v11071_v9 = vld [vmem:[%s14927_s4 + $0x18] sm:$0xff] }
 0x27f   : > { %v4179_v35 = vrot.slane %v12829_v18, 5  ;;  %v4182_v45 = vrot.slane %v12863_v13, 5  ;;  %v12898_v34 = vrot.slane %v4703_v30, 7  ;;  %v3311_v18 = vadd.f32 %v3246_v3, %v12187_v47  ;;  %v3928_v29 = vpop.f32.mrf.mxu3  ;;  %6577 = vmatpush.bf16.msrb.mxu0 %v11112_v23  ;;  %v11087_v28 = vld [vmem:[%s14927_s4 + $0x98] sm:$0xff]  ;;  %v11086_v23 = vld [vmem:[%s14927_s4 + $0x90] sm:$0xff] }
 0x280   : > { %v4490_v43 = vadd.f32 %v12528_v48, %v4454_v31  ;;  %v5544_v13 = vunpack.c.l.b16 %v5231_v59  ;;  %v12902_v63 = vpop.f32.mrf.mxu0  ;;  %v3740_v32 = vsel %vm11335_vm2, %v3735_v50, %v3739_v54  ;;  %v5233_v40 = vshrl.u32 %v12882_v7, 16  ;;  %v11111_v26 = vld [vmem:[%s14927_s4 + $0xd8] sm:$0xff]  ;;  %v10142_v50 = vld [vmem:[%s11310_s16 + $0xcc] sm:$0xf]  ;;  %6264 = vmatpush.bf16.msrb.mxu3 %v11087_v28 }
 0x281   : > { %v4180_v15 = vsel %vm11636_vm5, %v10223_v19, %v4179_v35  ;;  %v4181_v37 = vrot.slane %v4179_v35, 4  ;;  %v4708_v10 = vor.u32 %v4706_v1, %v12898_v34  ;;  %v3993_v47 = vadd.f32 %v3928_v29, %v3311_v18 }
 0x282   : > { %v4522_v36 = vmax.f32 %v4490_v43, 0.0  ;;  %v12910_v27 = vunpack.c.l.b16 %v3730_v16  ;;  %v5572_v52 = vpack.c.b16 %v5544_v13, %v5543_v24  ;;  %v12912_v25 = vunpack.c.l.b16 %v3740_v32  ;;  %5886 = vmatpush.bf16.msrb.mxu2 %v11071_v9  ;;  %v4992_v32 = vld [vmem:[#allocation2 + $0x44] sm:$0x1] }
 0x283   : > { %v4183_v5 = vsel %vm11636_vm5, %v4181_v37, %v4182_v45  ;;  %v4236_v11 = vunpack.c.l.b16 %v4180_v15  ;;  %v4989_v0 = vsel %vm12598_vm10, %v4708_v10, %v4988_v57  ;;  %v4419_v38 = vadd.f32 %v12866_v49, %v3993_v47  ;;  %6578 = vmatpush.bf16.msrb.mxu0 %v11111_v26  ;;  %v11110_v57 = vld [vmem:[%s14927_s4 + $0xd0] sm:$0xff]  ;;  %v11026_v37 = vld [vmem:[%s11310_s16 + $0xc0] sm:$0xff] }
 0x284   : > { %v4608_v4 = vpack.c.bf16 %v4522_v36, %v4522_v36  ;;  %v4237_v24 = vunpack.c.l.b16 %v4183_v5  ;;  %v12928_v16 = vld [vmem:[#allocation2 + $0x34] sm:$0xf]  ;;  %v12933_v30 = vadd.f32 %v12243_v8, %v12251_v51  ;;  %v4709_v1 = vrot.slane %v12898_v34, 4  ;;  %4990 = vst [vmem:[#allocation2 + $0x3c] sm:$0xf] %v4989_v0  ;;  %5672 = vmatmul.bf16.gmra.mxu1 %v5572_v52  ;;  %v11121_v8 = vld [vmem:[%s14927_s4 + $0x128] sm:$0xff]  ;;  %6265 = vmatpush.bf16.msrb.mxu3 %v11086_v23 }
 0x285   : > { %v5235_v31 = vrot.slane %v5233_v40, 4  ;;  %v5236_v54 = vshll.u32 %v12882_v7, 16  ;;  %v4455_v49 = vmul.f32 %v12516_v20, %v4419_v38  ;;  %v3828_v19 = vpack.c.b16 %v12912_v25, %v12910_v27  ;;  %v12940_v35 = vld [vmem:[#allocation2 + $0x38] sm:$0x1]  ;;  %v11070_v20 = vld [vmem:[%s14927_s4 + $0x10] sm:$0xff]  ;;  %7258 = vmatpush.bf16.msrb.mxu1 %v11121_v8 }
 0x286   : > { %v4711_v3 = vshrl.u32 %v4608_v4, 16  ;;  %v4714_v59 = vshll.u32 %v4608_v4, 16  ;;  %v3248_v51 = vpop.f32.mrf.mxu2  ;;  %v4254_v45 = vpack.c.b16 %v4237_v24, %v4236_v11  ;;  %v5242_v44 = vshll.u32 %v12928_v16, 16  ;;  %5887 = vmatpush.bf16.msrb.mxu2 %v11070_v20  ;;  %v12968_v38 = vld [vmem:[%s11310_s16 + $0xd0] sm:$0xf] }
 0x287   : > { %v5238_v7 = vrot.slane %v5236_v54, 5  ;;  %v5246_v55 = vshrl.u32 %v12928_v16, 16  ;;  %v4491_v43 = vadd.f32 %v12528_v48, %v4455_v49  ;;  %v3312_v18 = vadd.f32 %v3248_v51, %v12773_v46  ;;  %v3930_v29 = vpop.f32.mrf.mxu3  ;;  %6579 = vmatpush.bf16.msrb.mxu0 %v11110_v57  ;;  %v12971_v24 = vld [vmem:[%s11310_s16 + $0xd4] sm:$0x1]  ;;  %v11085_v51 = vld [vmem:[%s14927_s4 + $0x88] sm:$0xff] }
 0x288   : > { %v4713_v34 = vrot.slane %v4711_v3, 7  ;;  %v3742_v13 = vshrl.u32 %v10142_v50, 16  ;;  %v12958_v15 = vpop.f32.mrf.mxu0  ;;  %v5244_v10 = vrot.slane %v5242_v44, 5  ;;  %v5252_v47 = vshll.u32 %v12940_v35, 16  ;;  %6266 = vmatpush.bf16.msrb.mxu3 %v11085_v51 }
 0x289   : > { %v5239_v40 = vor.u32 %v5238_v7, %v5235_v31  ;;  %v5248_v36 = vrot.slane %v5246_v55, 4  ;;  %v4523_v27 = vmax.f32 %v4491_v43, 0.0  ;;  %v3994_v52 = vadd.f32 %v3930_v29, %v3312_v18  ;;  %v4995_v43 = vld [vmem:[#allocation2 + $0x48] sm:$0xf]  ;;  %v12999_v18 = vld [vmem:[%s14926_s3] ss:$0 sm:$0xff] }
 0x28a   : > { %v4716_v48 = vor.u32 %v4714_v59, %v4713_v34  ;;  %v4718_v46 = vrot.slane %v4713_v34, 4  ;;  %v3744_v11 = vrot.slane %v3742_v13, 4  ;;  %v3745_v9 = vshll.u32 %v10142_v50, 16 }
 0x28b   : > { %v5240_v25 = vrot.slane %v5239_v40, 4  ;;  %v5249_v5 = vor.u32 %v5248_v36, %v5244_v10  ;;  %v4609_v0 = vpack.c.bf16 %v4523_v27, %v4523_v27  ;;  %v4420_v4 = vadd.f32 %v12902_v63, %v3994_v52  ;;  %v12978_v63 = vld [vmem:[%s14925_s2] ss:$0 sm:$0xff] }
 0x28c   : > { %v4717_v28 = vsel %vm12658_vm12, %v4709_v1, %v4716_v48  ;;  %v4993_v26 = vsel %vm12668_vm13, %v4718_v46, %v4992_v32  ;;  %3290 = vmatmul.bf16.gmra.mxu2 %v11026_v37  ;;  %3972 = vmatmul.bf16.gmra.mxu3 %v3828_v19  ;;  %v5254_v54 = vrot.slane %v5252_v47, 5  ;;  %v3747_v3 = vrot.slane %v3745_v9, 5  ;;  %v11069_v19 = vld [vmem:[%s14927_s4 + $0x8] sm:$0xff]  ;;  %v11068_v48 = vld [vmem:[%s14927_s4] sm:$0xff] }
 0x28d   : > { %4991 = vst [vmem:[#allocation2 + $0x40] sm:$0xf] %v4717_v28  ;;  %v5245_v31 = vsel %vm11335_vm2, %v5240_v25, %v5244_v10  ;;  %v5250_v50 = vrot.slane %v5249_v5, 4  ;;  %v4720_v1 = vshrl.u32 %v4609_v0, 16  ;;  %v4723_v59 = vshll.u32 %v4609_v0, 16  ;;  %4398 = vmatmul.bf16.gmra.mxu0 %v4254_v45  ;;  %v11109_v45 = vld [vmem:[%s14927_s4 + $0xc8] sm:$0xff]  ;;  %5888 = vmatpush.bf16.msrb.mxu2 %v11069_v19 }
 0x28e   : > { %4994 = vst [vmem:[#allocation2 + $0x44] sm:$0x1] %v4993_v26  ;;  %v4456_v49 = vmul.f32 %v12978_v63, %v4420_v4  ;;  %v5545_v8 = vunpack.c.l.b16 %v5245_v31  ;;  %v3251_v7 = vpop.f32.mrf.mxu2  ;;  %v3748_v55 = vor.u32 %v3747_v3, %v3744_v11  ;;  %v3751_v20 = vshll.u32 %v12968_v38, 16  ;;  %6580 = vmatpush.bf16.msrb.mxu0 %v11109_v45  ;;  %v10208_v5 = vld [vmem:[%s11310_s16 + $0xcc] sm:$0xe]  ;;  %v11108_v11 = vld [vmem:[%s14927_s4 + $0xc0] sm:$0xff] }
 0x28f   : > { %v5255_v44 = vsel %vm11335_vm2, %v5250_v50, %v5254_v54  ;;  %v3755_v23 = vshrl.u32 %v12968_v38, 16  ;;  %v12994_v34 = vrot.slane %v4720_v1, 7  ;;  %v3313_v13 = vadd.f32 %v3251_v7, %v12223_v42  ;;  %v3933_v57 = vpop.f32.mrf.mxu3  ;;  %v11084_v42 = vld [vmem:[%s14927_s4 + $0x80] sm:$0xff]  ;;  %v5082_v4 = vld [vmem:[#allocation2 + $0x3c] sm:$0xf] }
 0x290   : > { %v4492_v29 = vadd.f32 %v12999_v18, %v4456_v49  ;;  %v5546_v32 = vunpack.c.l.b16 %v5255_v44  ;;  %v13003_v37 = vpop.f32.mrf.mxu0  ;;  %v3749_v40 = vrot.slane %v3748_v55, 4  ;;  %v3753_v10 = vrot.slane %v3751_v20, 5  ;;  %6267 = vmatpush.bf16.msrb.mxu3 %v11084_v42 }
 0x291   : > { %v3757_v36 = vrot.slane %v3755_v23, 4  ;;  %v3761_v47 = vshll.u32 %v12971_v24, 16  ;;  %v4725_v46 = vor.u32 %v4723_v59, %v12994_v34  ;;  %v4726_v27 = vrot.slane %v12994_v34, 4  ;;  %5889 = vmatpush.bf16.msrb.mxu2 %v11068_v48 }
 0x292   : > { %v4524_v52 = vmax.f32 %v4492_v29, 0.0  ;;  %v3995_v25 = vadd.f32 %v3933_v57, %v3313_v13  ;;  %v5573_v9 = vpack.c.b16 %v5546_v32, %v5545_v8  ;;  %v3754_v28 = vsel %vm11335_vm2, %v3749_v40, %v3753_v10  ;;  %6581 = vmatpush.bf16.msrb.mxu0 %v11108_v11  ;;  %v4999_v57 = vld [vmem:[#allocation2 + $0x50] sm:$0x1] }
 0x293   : > { %v3758_v26 = vor.u32 %v3757_v36, %v3753_v10  ;;  %v3763_v0 = vrot.slane %v3761_v47, 5  ;;  %v4996_v31 = vsel %vm12598_vm10, %v4725_v46, %v4995_v43  ;;  %v3812_v3 = vunpack.c.l.b16 %v3754_v28  ;;  %v11027_v40 = vld [vmem:[%s11310_s16 + $0xcc] sm:$0xff] }
 0x294   : > { %v4610_v50 = vpack.c.bf16 %v4524_v52, %v4524_v52  ;;  %v4421_v54 = vadd.f32 %v12958_v15, %v3995_v25  ;;  %4997 = vst [vmem:[#allocation2 + $0x48] sm:$0xf] %v4996_v31  ;;  %5677 = vmatmul.bf16.gmra.mxu1 %v5573_v9  ;;  %v10224_v59 = vrot.slane %v10208_v5, 9  ;;  %v4186_v49 = vrot.slane %v12968_v38, 5  ;;  %v13032_v13 = vld [vmem:[#allocation2 + $0x40] sm:$0xf] }
 0x295   : > { %v3759_v1 = vrot.slane %v3758_v26, 4  ;;  %v4189_v8 = vrot.slane %v12971_v24, 5  ;;  %v5257_v44 = vshrl.u32 %v5082_v4, 16  ;;  %v5260_v45 = vshll.u32 %v5082_v4, 16 }
 0x296   : > { %v4728_v19 = vshrl.u32 %v4610_v50, 16  ;;  %v4731_v51 = vshll.u32 %v4610_v50, 16  ;;  %v4457_v7 = vmul.f32 %v12978_v63, %v4421_v54  ;;  %v3253_v55 = vpop.f32.mrf.mxu2  ;;  %v4187_v20 = vsel %vm11636_vm5, %v10224_v59, %v4186_v49  ;;  %v5971_v50 = vld [vmem:[#allocation2] sm:$0xe]  ;;  %8679 = vmatpush.bf16.msra.mxu0 %v11163_v17 }
 0x297   : > { %v3764_v15 = vsel %vm11335_vm2, %v3759_v1, %v3763_v0  ;;  %v4188_v23 = vrot.slane %v4186_v49, 4  ;;  %v3314_v24 = vadd.f32 %v3253_v55, %v12835_v22  ;;  %v3935_v43 = vpop.f32.mrf.mxu3  ;;  %v4238_v36 = vunpack.c.l.b16 %v4187_v20  ;;  %v13037_v22 = vld [vmem:[#allocation2 + $0x44] sm:$0x1] }
 0x298   : > { %v4730_v34 = vrot.slane %v4728_v19, 7  ;;  %v4493_v38 = vadd.f32 %v12999_v18, %v4457_v7  ;;  %v3813_v29 = vunpack.c.l.b16 %v3764_v15  ;;  %v4364_v32 = vpop.f32.mrf.mxu0  ;;  %v5259_v47 = vrot.slane %v5257_v44, 4  ;;  %v11226_v55 = vld [vmem:[#allocation2 + $0x4] sm:$0xf] }
 0x299   : > { %v4190_v10 = vsel %vm11636_vm5, %v4188_v23, %v4189_v8  ;;  %v5262_v48 = vrot.slane %v5260_v45, 5  ;;  %v3996_v25 = vadd.f32 %v3935_v43, %v3314_v24  ;;  %v5266_v28 = vshll.u32 %v13032_v13, 16  ;;  %v5002_v43 = vld [vmem:[#allocation2 + $0x54] sm:$0xf] }
 0x29a   : > { %v4733_v42 = vor.u32 %v4731_v51, %v4730_v34  ;;  %v4735_v46 = vrot.slane %v4730_v34, 4  ;;  %v4525_v52 = vmax.f32 %v4493_v38, 0.0  ;;  %v3829_v5 = vpack.c.b16 %v3813_v29, %v3812_v3 }
 0x29b   : > { %v4239_v11 = vunpack.c.l.b16 %v4190_v10  ;;  %v5263_v9 = vor.u32 %v5262_v48, %v5259_v47  ;;  %v4422_v31 = vadd.f32 %v13003_v37, %v3996_v25  ;;  %v5268_v1 = vrot.slane %v5266_v28, 5  ;;  %v5084_v24 = vld [vmem:[#allocation2 + $0x48] sm:$0xf] }
 0x29c   : > { %v4734_v26 = vsel %vm12658_vm12, %v4726_v27, %v4733_v42  ;;  %v5000_v0 = vsel %vm12668_vm13, %v4735_v46, %v4999_v57  ;;  %v4611_v4 = vpack.c.bf16 %v4525_v52, %v4525_v52  ;;  %3295 = vmatmul.bf16.gmra.mxu2 %v11027_v40  ;;  %3977 = vmatmul.bf16.gmra.mxu3 %v3829_v5  ;;  %v5270_v59 = vshrl.u32 %v13032_v13, 16  ;;  %v11227_v25 = vld [vmem:[#allocation2 + $0x8] sm:$0x1] }
 0x29d   : > { %4998 = vst [vmem:[#allocation2 + $0x4c] sm:$0xf] %v4734_v26  ;;  %v4255_v54 = vpack.c.b16 %v4239_v11, %v4238_v36  ;;  %v5264_v3 = vrot.slane %v5263_v9, 4  ;;  %v4458_v27 = vmul.f32 %v12978_v63, %v4422_v31  ;;  %v5276_v19 = vshll.u32 %v13037_v22, 16 }
 0x29e   : > { %5001 = vst [vmem:[#allocation2 + $0x50] sm:$0x1] %v5000_v0  ;;  %v4737_v49 = vshrl.u32 %v4611_v4, 16  ;;  %v4740_v8 = vshll.u32 %v4611_v4, 16  ;;  %v3256_v51 = vpop.f32.mrf.mxu2  ;;  %v5272_v7 = vrot.slane %v5270_v59, 4  ;;  %v10417_v44 = vrot.slane %v5971_v50, 9 }
 0x29f   : > { %4403 = vmatmul.bf16.gmra.mxu0 %v4255_v54  ;;  %v5269_v37 = vsel %vm11335_vm2, %v5264_v3, %v5268_v1  ;;  %v6021_v15 = vrot.slane %v11226_v55, 5  ;;  %v4494_v23 = vadd.f32 %v12999_v18, %v4458_v27  ;;  %v3315_v45 = vadd.f32 %v3256_v51, %v12245_v33  ;;  %v3938_v34 = vpop.f32.mrf.mxu3 }
 0x2a0   : > { %v13050_v20 = vrot.slane %v4737_v49, 7  ;;  %v5278_v38 = vrot.slane %v5276_v19, 5  ;;  %v4366_v29 = vpop.f32.mrf.mxu0  ;;  %v5273_v57 = vor.u32 %v5272_v7, %v5268_v1  ;;  %v5547_v40 = vunpack.c.l.b16 %v5269_v37 }
 0x2a1   : > { %v6022_v10 = vsel %vm11636_vm5, %v10417_v44, %v6021_v15  ;;  %v6023_v36 = vrot.slane %v6021_v15, 4  ;;  %v4526_v42 = vmax.f32 %v4494_v23, 0.0  ;;  %v3997_v46 = vadd.f32 %v3938_v34, %v3315_v45  ;;  %v5006_v34 = vld [vmem:[#allocation2 + $0x5c] sm:$0x1] }
 0x2a2   : > { %v4742_v47 = vor.u32 %v4740_v8, %v13050_v20  ;;  %v4743_v48 = vrot.slane %v13050_v20, 4  ;;  %v5274_v52 = vrot.slane %v5273_v57, 4  ;;  %v6024_v33 = vrot.slane %v11227_v25, 5 }
 0x2a3   : > { %v6148_v5 = vunpack.c.l.b16 %v6022_v10  ;;  %v5281_v11 = vshrl.u32 %v5084_v24, 16  ;;  %v4612_v28 = vpack.c.bf16 %v4526_v42, %v4526_v42  ;;  %v4423_v26 = vadd.f32 %v4364_v32, %v3997_v46  ;;  %v11120_v32 = vld [vmem:[%s14927_s4 + $0x120] sm:$0xff] }
 0x2a4   : > { %v5003_v9 = vsel %vm12598_vm10, %v4742_v47, %v5002_v43  ;;  %v13060_v0 = vld [vmem:[#allocation2 + $0x4c] sm:$0xf]  ;;  %v5284_v4 = vshll.u32 %v5084_v24, 16  ;;  %v5279_v31 = vsel %vm11335_vm2, %v5274_v52, %v5278_v38  ;;  %v6025_v50 = vsel %vm11636_vm5, %v6023_v36, %v6024_v33  ;;  %7259 = vmatpush.bf16.msrb.mxu1 %v11120_v32  ;;  %v11052_v24 = vld [vmem:[#allocation2] sm:$0xff] }
 0x2a5   : > { %5004 = vst [vmem:[#allocation2 + $0x54] sm:$0xf] %v5003_v9  ;;  %v5283_v54 = vrot.slane %v5281_v11, 4  ;;  %v5290_v3 = vshll.u32 %v13060_v0, 16  ;;  %v4745_v1 = vshrl.u32 %v4612_v28, 16  ;;  %v4748_v59 = vshll.u32 %v4612_v28, 16 }
 0x2a6   : > { %v4459_v49 = vmul.f32 %v12978_v63, %v4423_v26  ;;  %v5548_v8 = vunpack.c.l.b16 %v5279_v31  ;;  %v13068_v27 = vld [vmem:[#allocation2 + $0x50] sm:$0x1]  ;;  %v3258_v19 = vpop.f32.mrf.mxu2  ;;  %v6149_v51 = vunpack.c.l.b16 %v6025_v50  ;;  %v5286_v37 = vrot.slane %v5284_v4, 5  ;;  %v5972_v28 = vld [vmem:[#allocation2 + $0xc] sm:$0xe] }
 0x2a7   : > { %v5292_v7 = vrot.slane %v5290_v3, 5  ;;  %v5294_v44 = vshrl.u32 %v13060_v0, 16  ;;  %v4747_v55 = vrot.slane %v4745_v1, 7  ;;  %v3316_v23 = vadd.f32 %v3258_v19, %v12933_v30  ;;  %v3940_v45 = vpop.f32.mrf.mxu3  ;;  %v11092_v9 = vld [vmem:[#allocation2 + $0xc] sm:$0xff] }
 0x2a8   : > { %v4495_v15 = vadd.f32 %v12999_v18, %v4459_v49  ;;  %v5574_v20 = vpack.c.b16 %v5548_v8, %v5547_v40  ;;  %v4369_v38 = vpop.f32.mrf.mxu0  ;;  %v6180_v43 = vpack.c.b16 %v6149_v51, %v6148_v5  ;;  %v5287_v57 = vor.u32 %v5286_v37, %v5283_v54 }
 0x2a9   : > { %v5296_v10 = vrot.slane %v5294_v44, 4  ;;  %v5300_v36 = vshll.u32 %v13068_v27, 16  ;;  %v4750_v47 = vor.u32 %v4748_v59, %v4747_v55  ;;  %v4752_v42 = vrot.slane %v4747_v55, 4  ;;  %v11228_v59 = vld [vmem:[#allocation2 + $0x14] sm:$0x1] }
 0x2aa   : > { %v4527_v46 = vmax.f32 %v4495_v15, 0.0  ;;  %5682 = vmatmul.bf16.gmra.mxu1 %v5574_v20  ;;  %v3998_v52 = vadd.f32 %v3940_v45, %v3316_v23  ;;  %v6028_v40 = vrot.slane %v12722_v56, 5  ;;  %v5288_v26 = vrot.slane %v5287_v57, 4  ;;  %v5009_v44 = vld [vmem:[#allocation2 + $0x60] sm:$0xf] }
 0x2ab   : > { %v5297_v25 = vor.u32 %v5296_v10, %v5292_v7  ;;  %v4751_v30 = vsel %vm12658_vm12, %v4743_v48, %v4750_v47  ;;  %v5007_v33 = vsel %vm12668_vm13, %v4752_v42, %v5006_v34  ;;  %v5302_v31 = vrot.slane %v5300_v36, 5  ;;  %v14968_v47 = vld [vmem:[#allocation6_spill] sm:$0xff] }
 0x2ac   : > { %v4613_v11 = vpack.c.bf16 %v4527_v46, %v4527_v46  ;;  %v4424_v5 = vadd.f32 %v4366_v29, %v3998_v52  ;;  %5005 = vst [vmem:[#allocation2 + $0x58] sm:$0xf] %v4751_v30  ;;  %5890 = vmatmul.bf16.vlgmr.msrb.gmra.mxu2 %v11052_v24  ;;  %6268 = vmatmul.bf16.vlgmr.msrb.gmra.mxu3 %v6180_v43  ;;  %v6030_v50 = vrot.slane %v6028_v40, 4  ;;  %v10418_v1 = vrot.slane %v5972_v28, 9 }
 0x2ad   : > { %v5298_v4 = vrot.slane %v5297_v25, 4  ;;  %5008 = vst [vmem:[#allocation2 + $0x5c] sm:$0x1] %v5007_v33  ;;  %v5293_v3 = vsel %vm11335_vm2, %v5288_v26, %v5292_v7  ;;  %v6031_v49 = vrot.slane %v11228_v59, 5  ;;  %v6035_v24 = vrot.slane %v12783_v58, 5 }
 0x2ae   : > { %v4754_v54 = vshrl.u32 %v4613_v11, 16  ;;  %v4460_v56 = vmul.f32 %v12978_v63, %v4424_v5  ;;  %v3261_v48 = vpop.f32.mrf.mxu2  ;;  %v4757_v32 = vshll.u32 %v4613_v11, 16  ;;  %v6029_v20 = vsel %vm11636_vm5, %v10418_v1, %v6028_v40  ;;  %v5086_v40 = vld [vmem:[#allocation2 + $0x54] sm:$0xf] }
 0x2af   : > { %6582 = vmatmul.bf16.vlgmr.msrb.gmra.mxu0 %v11092_v9  ;;  %v5303_v29 = vsel %vm11335_vm2, %v5298_v4, %v5302_v31  ;;  %v3317_v51 = vadd.f32 %v3261_v48, %v12269_v2  ;;  %v3943_v37 = vpop.f32.mrf.mxu3  ;;  %v6032_v7 = vsel %vm11636_vm5, %v6030_v50, %v6031_v49  ;;  %v5549_v43 = vunpack.c.l.b16 %v5293_v3 }
 0x2b0   : > { %v4756_v8 = vrot.slane %v4754_v54, 7  ;;  %v4496_v19 = vadd.f32 %v12999_v18, %v4460_v56  ;;  %v4371_v55 = vpop.f32.mrf.mxu0  ;;  %v5550_v15 = vunpack.c.l.b16 %v5303_v29  ;;  %v3003_v42 = vadd.f32 %v14968_v47, %v12275_v53  ;;  %v5013_v29 = vld [vmem:[#allocation2 + $0x68] sm:$0x1]  ;;  %v11093_v47 = vld [vmem:[#allocation2 + $0x18] sm:$0xff] }
 0x2b1   : > { %v3999_v34 = vadd.f32 %v3943_v37, %v3317_v51  ;;  %v6150_v52 = vunpack.c.l.b16 %v6029_v20  ;;  %v6151_v25 = vunpack.c.l.b16 %v6032_v7  ;;  %v5305_v9 = vshrl.u32 %v5086_v40, 16  ;;  %v11053_v20 = vld [vmem:[#allocation2 + $0xc] sm:$0xff] }
 0x2b2   : > { %v4759_v23 = vor.u32 %v4757_v32, %v4756_v8  ;;  %v4528_v45 = vmax.f32 %v4496_v19, 0.0  ;;  %v4760_v57 = vrot.slane %v4756_v8, 4  ;;  %v5575_v46 = vpack.c.b16 %v5550_v15, %v5549_v43  ;;  %v5973_v15 = vld [vmem:[#allocation2 + $0x18] sm:$0xe] }
 0x2b3   : > { %v4425_v36 = vadd.f32 %v4369_v38, %v3999_v34  ;;  %v13098_v30 = vld [vmem:[#allocation2 + $0x58] sm:$0xf]  ;;  %v6037_v28 = vrot.slane %v6035_v24, 4  ;;  %v5308_v4 = vshll.u32 %v5086_v40, 16  ;;  %v5307_v3 = vrot.slane %v5305_v9, 4 }
 0x2b4   : > { %v5010_v2 = vsel %vm12598_vm10, %v4759_v23, %v5009_v44  ;;  %v4614_v10 = vpack.c.bf16 %v4528_v45, %v4528_v45  ;;  %v13101_v5 = vld [vmem:[#allocation2 + $0x5c] sm:$0x1]  ;;  %v5314_v53 = vshll.u32 %v13098_v30, 16  ;;  %v5318_v31 = vshrl.u32 %v13098_v30, 16 }
 0x2b5   : > { %5011 = vst [vmem:[#allocation2 + $0x60] sm:$0xf] %v5010_v2  ;;  %v4461_v11 = vmul.f32 %v12978_v63, %v4425_v36  ;;  %v5310_v59 = vrot.slane %v5308_v4, 5  ;;  %v5324_v32 = vshll.u32 %v13101_v5, 16  ;;  %v6181_v7 = vpack.c.b16 %v6151_v25, %v6150_v52 }
 0x2b6   : > { %v4762_v33 = vshrl.u32 %v4614_v10, 16  ;;  %v4765_v38 = vshll.u32 %v4614_v10, 16  ;;  %v3263_v26 = vpop.f32.mrf.mxu2  ;;  %v5316_v49 = vrot.slane %v5314_v53, 5  ;;  %v5320_v8 = vrot.slane %v5318_v31, 4 }
 0x2b7   : > { %v4497_v54 = vadd.f32 %v12999_v18, %v4461_v11  ;;  %v3318_v56 = vadd.f32 %v3263_v26, %v3003_v42  ;;  %v3945_v48 = vpop.f32.mrf.mxu3  ;;  %v5311_v23 = vor.u32 %v5310_v59, %v5307_v3  ;;  %v6038_v34 = vrot.slane %v12792_v61, 5  ;;  %v14969_v11 = vld [vmem:[#allocation7_spill] sm:$0xff] }
 0x2b8   : > { %v4764_v50 = vrot.slane %v4762_v33, 7  ;;  %v4374_v1 = vpop.f32.mrf.mxu0  ;;  %v5321_v45 = vor.u32 %v5320_v8, %v5316_v49  ;;  %v10419_v40 = vrot.slane %v5973_v15, 9  ;;  %v13117_v33 = vld [vmem:[#allocation2 + $0x24] sm:$0xe]  ;;  %v6049_v59 = vrot.slane %v12928_v16, 5 }
 0x2b9   : > { %v4529_v37 = vmax.f32 %v4497_v54, 0.0  ;;  %v4000_v44 = vadd.f32 %v3945_v48, %v3318_v56  ;;  %v5312_v61 = vrot.slane %v5311_v23, 4  ;;  %v5975_v54 = vld [vmem:[#allocation2 + $0x30] sm:$0xe]  ;;  %v5016_v56 = vld [vmem:[#allocation2 + $0x6c] sm:$0xf] }
 0x2ba   : > { %v4767_v19 = vor.u32 %v4765_v38, %v4764_v50  ;;  %v4769_v51 = vrot.slane %v4764_v50, 4  ;;  %5687 = vmatmul.bf16.gmra.mxu1 %v5575_v46  ;;  %v5322_v42 = vrot.slane %v5321_v45, 4  ;;  %v5326_v46 = vrot.slane %v5324_v32, 5 }
 0x2bb   : > { %v4615_v10 = vpack.c.bf16 %v4529_v37, %v4529_v37  ;;  %v4426_v36 = vadd.f32 %v4371_v55, %v4000_v44  ;;  %v3005_v55 = vadd.f32 %v14969_v11, %v12296_v60  ;;  %v6036_v4 = vsel %vm11636_vm5, %v10419_v40, %v6035_v24 }
 0x2bc   : > { %v4768_v43 = vsel %vm12658_vm12, %v4760_v57, %v4767_v19  ;;  %v5014_v2 = vsel %vm12668_vm13, %v4769_v51, %v5013_v29  ;;  %5895 = vmatmul.bf16.gmra.mxu2 %v11053_v20  ;;  %6273 = vmatmul.bf16.gmra.mxu3 %v6181_v7  ;;  %v6039_v57 = vsel %vm11636_vm5, %v6037_v28, %v6038_v34  ;;  %v10420_v58 = vrot.slane %v13117_v33, 9 }
 0x2bd   : > { %5012 = vst [vmem:[#allocation2 + $0x64] sm:$0xf] %v4768_v43  ;;  %v4771_v52 = vshrl.u32 %v4615_v10, 16  ;;  %v4462_v25 = vmul.f32 %v12978_v63, %v4426_v36  ;;  %v4774_v9 = vshll.u32 %v4615_v10, 16  ;;  %v5327_v26 = vsel %vm11335_vm2, %v5322_v42, %v5326_v46  ;;  %v5088_v36 = vld [vmem:[#allocation2 + $0x60] sm:$0xf]  ;;  %v13148_v42 = vpop.f32.mrf.mxu1 }
 0x2be   : > { %5015 = vst [vmem:[#allocation2 + $0x68] sm:$0x1] %v5014_v2  ;;  %v3266_v38 = vpop.f32.mrf.mxu2  ;;  %v5317_v60 = vsel %vm11335_vm2, %v5312_v61, %v5316_v49  ;;  %v5552_v3 = vunpack.c.l.b16 %v5327_v26  ;;  %v6153_v29 = vunpack.c.l.b16 %v6039_v57  ;;  %v6152_v19 = vunpack.c.l.b16 %v6036_v4  ;;  %v11119_v4 = vld [vmem:[%s14927_s4 + $0x118] sm:$0xff] }
 0x2bf   : > { %6587 = vmatmul.bf16.gmra.mxu0 %v11093_v47  ;;  %v13127_v53 = vrot.slane %v4771_v52, 7  ;;  %v4498_v28 = vadd.f32 %v12999_v18, %v4462_v25  ;;  %v3319_v31 = vadd.f32 %v3266_v38, %v12290_v21  ;;  %v3948_v50 = vpop.f32.mrf.mxu3  ;;  %v5551_v51 = vunpack.c.l.b16 %v5317_v60  ;;  %7260 = vmatpush.bf16.msrb.mxu1 %v11119_v4 }
 0x2c0   : > { %v4376_v48 = vpop.f32.mrf.mxu0  ;;  %v6042_v21 = vrot.slane %v12843_v6, 5  ;;  %v10421_v37 = vrot.slane %v5975_v54, 9  ;;  %v6051_v44 = vrot.slane %v6049_v59, 4  ;;  %v6052_v7 = vrot.slane %v12940_v35, 5 }
 0x2c1   : > { %v4776_v24 = vor.u32 %v4774_v9, %v13127_v53  ;;  %v4530_v8 = vmax.f32 %v4498_v28, 0.0  ;;  %v4001_v32 = vadd.f32 %v3948_v50, %v3319_v31  ;;  %v4777_v23 = vrot.slane %v13127_v53, 4  ;;  %v5020_v53 = vld [vmem:[#allocation2 + $0x74] sm:$0x1] }
 0x2c2   : > { %v5576_v16 = vpack.c.b16 %v5552_v3, %v5551_v51  ;;  %v6182_v45 = vpack.c.b16 %v6153_v29, %v6152_v19  ;;  %v6050_v34 = vsel %vm11636_vm5, %v10421_v37, %v6049_v59  ;;  %v5329_v40 = vshrl.u32 %v5088_v36, 16 }
 0x2c3   : > { %v5017_v49 = vsel %vm12598_vm10, %v4776_v24, %v5016_v56  ;;  %v4616_v15 = vpack.c.bf16 %v4530_v8, %v4530_v8  ;;  %v4427_v20 = vadd.f32 %v4374_v1, %v4001_v32  ;;  %v6053_v1 = vsel %vm11636_vm5, %v6051_v44, %v6052_v7  ;;  %v11054_v24 = vld [vmem:[#allocation2 + $0x18] sm:$0xff] }
 0x2c4   : > { %5018 = vst [vmem:[#allocation2 + $0x6c] sm:$0xf] %v5017_v49  ;;  %v13144_v47 = vld [vmem:[#allocation2 + $0x64] sm:$0xf]  ;;  %v5332_v52 = vshll.u32 %v5088_v36, 16  ;;  %v5331_v28 = vrot.slane %v5329_v40, 4  ;;  %v6156_v32 = vunpack.c.l.b16 %v6050_v34  ;;  %v6157_v19 = vunpack.c.l.b16 %v6053_v1 }
 0x2c5   : > { %v4779_v43 = vshrl.u32 %v4616_v15, 16  ;;  %v4782_v2 = vshll.u32 %v4616_v15, 16  ;;  %v4463_v10 = vmul.f32 %v12978_v63, %v4427_v20  ;;  %v13150_v46 = vld [vmem:[#allocation2 + $0x68] sm:$0x1]  ;;  %v5338_v25 = vshll.u32 %v13144_v47, 16 }
 0x2c6   : > { %v3268_v35 = vpop.f32.mrf.mxu2  ;;  %v5342_v61 = vshrl.u32 %v13144_v47, 16  ;;  %v5348_v26 = vshll.u32 %v13150_v46, 16  ;;  %v5334_v31 = vrot.slane %v5332_v52, 5  ;;  %v5976_v15 = vld [vmem:[#allocation2 + $0x3c] sm:$0xe]  ;;  %v11094_v20 = vld [vmem:[#allocation2 + $0x24] sm:$0xff]  ;;  %v13169_v34 = vsel %vm11636_vm5, %v10420_v58, %v6042_v21 }
 0x2c7   : > { %v4781_v57 = vrot.slane %v4779_v43, 7  ;;  %v4499_v11 = vadd.f32 %v12999_v18, %v4463_v10  ;;  %v3320_v9 = vadd.f32 %v3268_v35, %v3005_v55  ;;  %v3950_v38 = vpop.f32.mrf.mxu3  ;;  %v5340_v50 = vrot.slane %v5338_v25, 5  ;;  %v13176_v10 = vpop.f32.mrf.mxu1  ;;  %v11229_v36 = vld [vmem:[#allocation2 + $0x2c] sm:$0x1] }
 0x2c8   : > { %v5344_v60 = vrot.slane %v5342_v61, 4  ;;  %v5335_v55 = vor.u32 %v5334_v31, %v5331_v28  ;;  %v6045_v1 = vrot.slane %v11229_v36, 5  ;;  %v10422_v58 = vrot.slane %v5976_v15, 9 }
 0x2c9   : > { %v4784_v54 = vor.u32 %v4782_v2, %v4781_v57  ;;  %v4786_v56 = vrot.slane %v4781_v57, 4  ;;  %v4531_v3 = vmax.f32 %v4499_v11, 0.0  ;;  %v4002_v29 = vadd.f32 %v3950_v38, %v3320_v9 }
 0x2ca   : > { %5692 = vmatmul.bf16.gmra.mxu1 %v5576_v16  ;;  %v4379_v59 = vpop.f32.mrf.mxu0  ;;  %v5345_v8 = vor.u32 %v5344_v60, %v5340_v50  ;;  %v5350_v16 = vrot.slane %v5348_v26, 5  ;;  %v5336_v2 = vrot.slane %v5335_v55, 4  ;;  %v6056_v35 = vrot.slane %v13032_v13, 5 }
 0x2cb   : > { %v4785_v51 = vsel %vm12658_vm12, %v4777_v23, %v4784_v54  ;;  %v5021_v37 = vsel %vm12668_vm13, %v4786_v56, %v5020_v53  ;;  %v4617_v44 = vpack.c.bf16 %v4531_v3, %v4531_v3  ;;  %v4428_v49 = vadd.f32 %v4376_v48, %v4002_v29 }
 0x2cc   : > { %5019 = vst [vmem:[#allocation2 + $0x70] sm:$0xf] %v4785_v51  ;;  %5900 = vmatmul.bf16.gmra.mxu2 %v11054_v24  ;;  %6278 = vmatmul.bf16.gmra.mxu3 %v6182_v45  ;;  %v5346_v7 = vrot.slane %v5345_v8, 4  ;;  %v13171_v23 = vpack.c.b16 %v6157_v19, %v6156_v32  ;;  %v6044_v45 = vrot.slane %v6042_v21, 4  ;;  %v5341_v6 = vsel %vm11335_vm2, %v5336_v2, %v5340_v50  ;;  %v5023_v21 = vld [vmem:[#allocation2 + $0x78] sm:$0xf] }
 0x2cd   : > { %5022 = vst [vmem:[#allocation2 + $0x74] sm:$0x1] %v5021_v37  ;;  %v4788_v43 = vshrl.u32 %v4617_v44, 16  ;;  %v4464_v48 = vmul.f32 %v12978_v63, %v4428_v49  ;;  %v4791_v52 = vshll.u32 %v4617_v44, 16  ;;  %v6057_v9 = vsel %vm11636_vm5, %v10422_v58, %v6056_v35  ;;  %v14971_v24 = vld [vmem:[#allocation8_spill] sm:$0xff] }
 0x2ce   : > { %v5351_v33 = vsel %vm11335_vm2, %v5346_v7, %v5350_v16  ;;  %v6058_v38 = vrot.slane %v6056_v35, 4  ;;  %v6059_v26 = vrot.slane %v13037_v22, 5  ;;  %v6046_v28 = vsel %vm11636_vm5, %v6044_v45, %v6045_v1  ;;  %v14970_v22 = vld [vmem:[#allocation9_spill] sm:$0xff]  ;;  %v5027_v58 = vld [vmem:[#allocation2 + $0x80] sm:$0x1] }
 0x2cf   : > { %6592 = vmatmul.bf16.gmra.mxu0 %v11094_v20  ;;  %v13181_v40 = vrot.slane %v4788_v43, 7  ;;  %v4500_v25 = vadd.f32 %v12999_v18, %v4464_v48  ;;  %v3271_v61 = vpop.f32.mrf.mxu2  ;;  %v3953_v57 = vpop.f32.mrf.mxu3  ;;  %v5554_v53 = vunpack.c.l.b16 %v5351_v33  ;;  %v5553_v54 = vunpack.c.l.b16 %v5341_v6  ;;  %v5090_v49 = vld [vmem:[#allocation2 + $0x6c] sm:$0xf] }
 0x2d0   : > { %v3321_v11 = vadd.f32 %v3271_v61, %v12314_v62  ;;  %v6060_v50 = vsel %vm11636_vm5, %v6058_v38, %v6059_v26  ;;  %v6158_v3 = vunpack.c.l.b16 %v6057_v9  ;;  %v3007_v55 = vadd.f32 %v14971_v24, %v14970_v22  ;;  %v13212_v6 = vpop.f32.mrf.mxu1 }
 0x2d1   : > { %v4793_v13 = vor.u32 %v4791_v52, %v13181_v40  ;;  %v4532_v4 = vmax.f32 %v4500_v25, 0.0  ;;  %v6159_v29 = vunpack.c.l.b16 %v6060_v50  ;;  %v6154_v32 = vunpack.c.l.b16 %v13169_v34 }
 0x2d2   : > { %v4003_v31 = vadd.f32 %v3953_v57, %v3321_v11  ;;  %v4381_v60 = vpop.f32.mrf.mxu0  ;;  %v6155_v19 = vunpack.c.l.b16 %v6046_v28  ;;  %v4794_v51 = vrot.slane %v13181_v40, 4  ;;  %v5577_v44 = vpack.c.b16 %v5554_v53, %v5553_v54 }
 0x2d3   : > { %v5024_v62 = vsel %vm12598_vm10, %v4793_v13, %v5023_v21  ;;  %v4618_v56 = vpack.c.bf16 %v4532_v4, %v4532_v4  ;;  %v13201_v15 = vld [vmem:[#allocation2 + $0x70] sm:$0xf]  ;;  %v13203_v20 = vpack.c.b16 %v6159_v29, %v6158_v3  ;;  %v5353_v43 = vshrl.u32 %v5090_v49, 16  ;;  %v11055_v13 = vld [vmem:[#allocation2 + $0x24] sm:$0xff] }
 0x2d4   : > { %5025 = vst [vmem:[#allocation2 + $0x78] sm:$0xf] %v5024_v62  ;;  %v4429_v8 = vadd.f32 %v4379_v59, %v4003_v31  ;;  %v13206_v16 = vld [vmem:[#allocation2 + $0x74] sm:$0x1]  ;;  %v5356_v48 = vshll.u32 %v5090_v49, 16  ;;  %v5362_v59 = vshll.u32 %v13201_v15, 16  ;;  %v6183_v4 = vpack.c.b16 %v6155_v19, %v6154_v32 }
 0x2d5   : > { %v4796_v37 = vshrl.u32 %v4618_v56, 16  ;;  %v4799_v34 = vshll.u32 %v4618_v56, 16  ;;  %v5366_v36 = vshrl.u32 %v13201_v15, 16  ;;  %v5372_v1 = vshll.u32 %v13206_v16, 16  ;;  %v11095_v56 = vld [vmem:[#allocation2 + $0x30] sm:$0xff] }
 0x2d6   : > { %v4465_v7 = vmul.f32 %v12978_v63, %v4429_v8  ;;  %v5355_v52 = vrot.slane %v5353_v43, 4  ;;  %v5358_v25 = vrot.slane %v5356_v48, 5  ;;  %v5364_v21 = vrot.slane %v5362_v59, 5  ;;  %v5977_v3 = vld [vmem:[#allocation2 + $0x48] sm:$0xe]  ;;  %v14972_v43 = vld [vmem:[#allocation11_spill] sm:$0xff] }
 0x2d7   : > { %v4798_v2 = vrot.slane %v4796_v37, 7  ;;  %v3273_v45 = vpop.f32.mrf.mxu2  ;;  %v3955_v33 = vpop.f32.mrf.mxu3  ;;  %v5368_v11 = vrot.slane %v5366_v36, 4  ;;  %v5374_v22 = vrot.slane %v5372_v1, 5  ;;  %v6066_v36 = vrot.slane %v13068_v27, 5 }
 0x2d8   : > { %v4501_v35 = vadd.f32 %v12999_v18, %v4465_v7  ;;  %v3322_v40 = vadd.f32 %v3273_v45, %v3007_v55  ;;  %v5359_v53 = vor.u32 %v5358_v25, %v5355_v52 }
 0x2d9   : > { %v4801_v61 = vor.u32 %v4799_v34, %v4798_v2  ;;  %v4803_v57 = vrot.slane %v4798_v2, 4  ;;  %v5369_v54 = vor.u32 %v5368_v11, %v5364_v21  ;;  %v5030_v2 = vld [vmem:[#allocation2 + $0x84] sm:$0xf] }
 0x2da   : > { %5697 = vmatmul.bf16.gmra.mxu1 %v5577_v44  ;;  %v4533_v9 = vmax.f32 %v4501_v35, 0.0  ;;  %v4004_v38 = vadd.f32 %v3955_v33, %v3322_v40  ;;  %v4384_v26 = vpop.f32.mrf.mxu0  ;;  %v5360_v8 = vrot.slane %v5359_v53, 4  ;;  %v10423_v44 = vrot.slane %v5977_v3, 9 }
 0x2db   : > { %v4802_v28 = vsel %vm12658_vm12, %v4794_v51, %v4801_v61  ;;  %v5028_v31 = vsel %vm12668_vm13, %v4803_v57, %v5027_v58  ;;  %v5370_v29 = vrot.slane %v5369_v54, 4 }
 0x2dc   : > { %5026 = vst [vmem:[#allocation2 + $0x7c] sm:$0xf] %v4802_v28  ;;  %v4619_v50 = vpack.c.bf16 %v4533_v9, %v4533_v9  ;;  %v4430_v62 = vadd.f32 %v4381_v60, %v4004_v38  ;;  %5905 = vmatmul.bf16.gmra.mxu2 %v11055_v13  ;;  %6283 = vmatmul.bf16.gmra.mxu3 %v6183_v4  ;;  %v6063_v60 = vrot.slane %v13060_v0, 5  ;;  %v14973_v9 = vld [vmem:[#allocation12_spill] sm:$0xff]  ;;  %v14974_v38 = vld [vmem:[#allocation10_spill] sm:$0xff] }
 0x2dd   : > { %5029 = vst [vmem:[#allocation2 + $0x80] sm:$0x1] %v5028_v31  ;;  %v5375_v37 = vsel %vm11335_vm2, %v5370_v29, %v5374_v22  ;;  %v5365_v59 = vsel %vm11335_vm2, %v5360_v8, %v5364_v21  ;;  %v3009_v27 = vadd.f32 %v14974_v38, %v14973_v9  ;;  %v5092_v4 = vld [vmem:[#allocation2 + $0x78] sm:$0xf] }
 0x2de   : > { %v4805_v24 = vshrl.u32 %v4619_v50, 16  ;;  %v4466_v55 = vmul.f32 %v12978_v63, %v4430_v62  ;;  %v4808_v32 = vshll.u32 %v4619_v50, 16  ;;  %v5556_v45 = vunpack.c.l.b16 %v5375_v37  ;;  %v5034_v37 = vld [vmem:[#allocation2 + $0x8c] sm:$0x1] }
 0x2df   : > { %6597 = vmatmul.bf16.gmra.mxu0 %v11095_v56  ;;  %v3276_v19 = vpop.f32.mrf.mxu2  ;;  %v3958_v51 = vpop.f32.mrf.mxu3  ;;  %v6065_v33 = vrot.slane %v6063_v60, 4  ;;  %v6064_v0 = vsel %vm11636_vm5, %v10423_v44, %v6063_v60  ;;  %v5555_v52 = vunpack.c.l.b16 %v5365_v59  ;;  %v5377_v62 = vshrl.u32 %v5092_v4, 16  ;;  %v11118_v56 = vld [vmem:[%s14927_s4 + $0x110] sm:$0xff] }
 0x2e0   : > { %v4807_v49 = vrot.slane %v4805_v24, 7  ;;  %v4502_v7 = vadd.f32 %v12999_v18, %v4466_v55  ;;  %v3323_v48 = vadd.f32 %v3276_v19, %v14972_v43  ;;  %v6160_v28 = vunpack.c.l.b16 %v6064_v0  ;;  %7261 = vmatpush.bf16.msrb.mxu1 %v11118_v56  ;;  %v13270_v56 = vld [vmem:[%s14926_s3] ss:$0 sm:$0xff] }
 0x2e1   : > { %v13226_v34 = vpop.f32.mrf.mxu1  ;;  %v6067_v25 = vsel %vm11636_vm5, %v6065_v33, %v6066_v36  ;;  %v5578_v13 = vpack.c.b16 %v5556_v45, %v5555_v52  ;;  %v5380_v24 = vshll.u32 %v5092_v4, 16  ;;  %v11056_v36 = vld [vmem:[#allocation2 + $0x30] sm:$0xff] }
 0x2e2   : > { %v4810_v1 = vor.u32 %v4808_v32, %v4807_v49  ;;  %v4534_v58 = vmax.f32 %v4502_v7, 0.0  ;;  %v4005_v35 = vadd.f32 %v3958_v51, %v3323_v48  ;;  %v4386_v40 = vpop.f32.mrf.mxu0  ;;  %v4811_v61 = vrot.slane %v4807_v49, 4 }
 0x2e3   : > { %v13237_v53 = vld [vmem:[#allocation2 + $0x7c] sm:$0xf]  ;;  %v5379_v51 = vrot.slane %v5377_v62, 4  ;;  %v5382_v60 = vrot.slane %v5380_v24, 5  ;;  %v5037_v24 = vld [vmem:[#allocation2 + $0x90] sm:$0xf] }
 0x2e4   : > { %v5031_v57 = vsel %vm12598_vm10, %v4810_v1, %v5030_v2  ;;  %v4620_v21 = vpack.c.bf16 %v4534_v58, %v4534_v58  ;;  %v4431_v11 = vadd.f32 %v4384_v26, %v4005_v35  ;;  %v13240_v50 = vld [vmem:[#allocation2 + $0x80] sm:$0x1]  ;;  %v6161_v26 = vunpack.c.l.b16 %v6067_v25 }
 0x2e5   : > { %5032 = vst [vmem:[#allocation2 + $0x84] sm:$0xf] %v5031_v57  ;;  %v5386_v55 = vshll.u32 %v13237_v53, 16  ;;  %v5390_v8 = vshrl.u32 %v13237_v53, 16  ;;  %v5396_v43 = vshll.u32 %v13240_v50, 16  ;;  %v5383_v1 = vor.u32 %v5382_v60, %v5379_v51  ;;  %v11096_v57 = vld [vmem:[#allocation2 + $0x3c] sm:$0xff] }
 0x2e6   : > { %v4813_v31 = vshrl.u32 %v4620_v21, 16  ;;  %v4467_v54 = vmul.f32 %v12978_v63, %v4431_v11  ;;  %v4816_v3 = vshll.u32 %v4620_v21, 16  ;;  %v13251_v58 = vpack.c.b16 %v6161_v26, %v6160_v28  ;;  %v5978_v21 = vld [vmem:[#allocation2 + $0x54] sm:$0xe] }
 0x2e7   : > { %v3278_v29 = vpop.f32.mrf.mxu2  ;;  %v3960_v22 = vpop.f32.mrf.mxu3  ;;  %v5388_v49 = vrot.slane %v5386_v55, 5  ;;  %v5392_v7 = vrot.slane %v5390_v8, 4  ;;  %v5398_v9 = vrot.slane %v5396_v43, 5 }
 0x2e8   : > { %v4815_v32 = vrot.slane %v4813_v31, 7  ;;  %v4503_v19 = vadd.f32 %v12999_v18, %v4467_v54  ;;  %v3324_v63 = vadd.f32 %v3278_v29, %v3009_v27  ;;  %v13261_v27 = vld [vmem:[%s14925_s2] ss:$0 sm:$0xff]  ;;  %v6070_v54 = vrot.slane %v13098_v30, 5 }
 0x2e9   : > { %v13248_v44 = vpop.f32.mrf.mxu1  ;;  %v5393_v18 = vor.u32 %v5392_v7, %v5388_v49  ;;  %v6073_v30 = vrot.slane %v13101_v5, 5 }
 0x2ea   : > { %5702 = vmatmul.bf16.gmra.mxu1 %v5578_v13  ;;  %v4818_v48 = vor.u32 %v4816_v3, %v4815_v32  ;;  %v4820_v59 = vrot.slane %v4815_v32, 4  ;;  %v4535_v2 = vmax.f32 %v4503_v19, 0.0  ;;  %v4006_v45 = vadd.f32 %v3960_v22, %v3324_v63  ;;  %v4389_v33 = vpop.f32.mrf.mxu0  ;;  %v14975_v3 = vld [vmem:[#allocation14_spill] sm:$0xff] }
 0x2eb   : > { %v5394_v11 = vrot.slane %v5393_v18, 4  ;;  %v5384_v13 = vrot.slane %v5383_v1, 4  ;;  %v6072_v32 = vrot.slane %v6070_v54, 4 }
 0x2ec   : > { %v4819_v35 = vsel %vm12658_vm12, %v4811_v61, %v4818_v48  ;;  %v5035_v0 = vsel %vm12668_vm13, %v4820_v59, %v5034_v37  ;;  %v4621_v52 = vpack.c.bf16 %v4535_v2, %v4535_v2  ;;  %v4432_v25 = vadd.f32 %v4386_v40, %v4006_v45  ;;  %5910 = vmatmul.bf16.gmra.mxu2 %v11056_v36  ;;  %v14976_v45 = vld [vmem:[#allocation15_spill] sm:$0xff]  ;;  %v14977_v36 = vld [vmem:[#allocation13_spill] sm:$0xff]  ;;  %v5094_v18 = vld [vmem:[#allocation2 + $0x84] sm:$0xf] }
 0x2ed   : > { %5033 = vst [vmem:[#allocation2 + $0x88] sm:$0xf] %v4819_v35  ;;  %6288 = vmatmul.bf16.gmra.mxu3 %v13171_v23  ;;  %v5399_v31 = vsel %vm11335_vm2, %v5394_v11, %v5398_v9  ;;  %v10424_v23 = vrot.slane %v5978_v21, 9  ;;  %v5389_v22 = vsel %vm11335_vm2, %v5384_v13, %v5388_v49  ;;  %v6074_v43 = vsel %vm11636_vm5, %v6072_v32, %v6073_v30 }
 0x2ee   : > { %5036 = vst [vmem:[#allocation2 + $0x8c] sm:$0x1] %v5035_v0  ;;  %v4822_v38 = vshrl.u32 %v4621_v52, 16  ;;  %v4468_v61 = vmul.f32 %v13261_v27, %v4432_v25  ;;  %v4825_v40 = vshll.u32 %v4621_v52, 16  ;;  %v5558_v8 = vunpack.c.l.b16 %v5399_v31 }
 0x2ef   : > { %6602 = vmatmul.bf16.gmra.mxu0 %v11096_v57  ;;  %v3281_v4 = vpop.f32.mrf.mxu2  ;;  %v3963_v28 = vpop.f32.mrf.mxu3  ;;  %v6071_v60 = vsel %vm11636_vm5, %v10424_v23, %v6070_v54  ;;  %v5557_v7 = vunpack.c.l.b16 %v5389_v22  ;;  %v3011_v5 = vadd.f32 %v14977_v36, %v14976_v45  ;;  %v5401_v21 = vshrl.u32 %v5094_v18, 16  ;;  %v5041_v54 = vld [vmem:[#allocation2 + $0x98] sm:$0x1]  ;;  %v11097_v45 = vld [vmem:[#allocation2 + $0x48] sm:$0xff]  ;;  %v5979_v36 = vld [vmem:[#allocation2 + $0x60] sm:$0xe] }
 0x2f0   : > { %v4824_v62 = vrot.slane %v4822_v38, 7  ;;  %v4504_v26 = vadd.f32 %v13270_v56, %v4468_v61  ;;  %v3325_v29 = vadd.f32 %v3281_v4, %v14975_v3  ;;  %v6162_v0 = vunpack.c.l.b16 %v6071_v60 }
 0x2f1   : > { %v13276_v55 = vpop.f32.mrf.mxu1  ;;  %v5579_v1 = vpack.c.b16 %v5558_v8, %v5557_v7  ;;  %v6163_v11 = vunpack.c.l.b16 %v6074_v43  ;;  %v5403_v23 = vrot.slane %v5401_v21, 4 }
 0x2f2   : > { %v4827_v19 = vor.u32 %v4825_v40, %v4824_v62  ;;  %v4536_v63 = vmax.f32 %v4504_v26, 0.0  ;;  %v4007_v51 = vadd.f32 %v3963_v28, %v3325_v29  ;;  %v4391_v37 = vpop.f32.mrf.mxu0  ;;  %v4828_v48 = vrot.slane %v4824_v62, 4 }
 0x2f3   : > { %v13298_v7 = vpack.c.b16 %v6163_v11, %v6162_v0  ;;  %v10425_v11 = vrot.slane %v5979_v36, 9 }
 0x2f4   : > { %v5038_v49 = vsel %vm12598_vm10, %v4827_v19, %v5037_v24  ;;  %v4622_v59 = vpack.c.bf16 %v4536_v63, %v4536_v63  ;;  %v4433_v2 = vadd.f32 %v4389_v33, %v4007_v51  ;;  %v13287_v35 = vld [vmem:[#allocation2 + $0x88] sm:$0xf]  ;;  %v5404_v33 = vshll.u32 %v5094_v18, 16  ;;  %v11057_v63 = vld [vmem:[#allocation2 + $0x3c] sm:$0xff] }
 0x2f5   : > { %5039 = vst [vmem:[#allocation2 + $0x90] sm:$0xf] %v5038_v49  ;;  %v13290_v57 = vld [vmem:[#allocation2 + $0x8c] sm:$0x1]  ;;  %v5410_v13 = vshll.u32 %v13287_v35, 16  ;;  %v5414_v40 = vshrl.u32 %v13287_v35, 16 }
 0x2f6   : > { %v4830_v52 = vshrl.u32 %v4622_v59, 16  ;;  %v4469_v25 = vmul.f32 %v13261_v27, %v4433_v2  ;;  %v4833_v9 = vshll.u32 %v4622_v59, 16  ;;  %v5406_v26 = vrot.slane %v5404_v33, 5 }
 0x2f7   : > { %v3283_v38 = vpop.f32.mrf.mxu2  ;;  %v3965_v61 = vpop.f32.mrf.mxu3  ;;  %v5412_v3 = vrot.slane %v5410_v13, 5  ;;  %v5416_v29 = vrot.slane %v5414_v40, 4  ;;  %v5420_v22 = vshll.u32 %v13290_v57, 16  ;;  %v5044_v40 = vld [vmem:[#allocation2 + $0x9c] sm:$0xf] }
 0x2f8   : > { %v4832_v4 = vrot.slane %v4830_v52, 7  ;;  %v4505_v28 = vadd.f32 %v13270_v56, %v4469_v25  ;;  %v3326_v31 = vadd.f32 %v3283_v38, %v3011_v5  ;;  %v5407_v51 = vor.u32 %v5406_v26, %v5403_v23 }
 0x2f9   : > { %v13295_v62 = vpop.f32.mrf.mxu1  ;;  %v5417_v60 = vor.u32 %v5416_v29, %v5412_v3  ;;  %v6080_v23 = vrot.slane %v13150_v46, 5 }
 0x2fa   : > { %5707 = vmatmul.bf16.gmra.mxu1 %v5579_v1  ;;  %v4835_v24 = vor.u32 %v4833_v9, %v4832_v4  ;;  %v4837_v8 = vrot.slane %v4832_v4, 4  ;;  %v4537_v32 = vmax.f32 %v4505_v28, 0.0  ;;  %v4008_v30 = vadd.f32 %v3965_v61, %v3326_v31  ;;  %v4394_v19 = vpop.f32.mrf.mxu0  ;;  %v14978_v61 = vld [vmem:[#allocation17_spill] sm:$0xff] }
 0x2fb   : > { %v5418_v5 = vrot.slane %v5417_v60, 4  ;;  %v5422_v1 = vrot.slane %v5420_v22, 5  ;;  %v5408_v52 = vrot.slane %v5407_v51, 4  ;;  %v6077_v9 = vrot.slane %v13144_v47, 5  ;;  %v14979_v51 = vld [vmem:[#allocation18_spill] sm:$0xff]  ;;  %v14980_v60 = vld [vmem:[#allocation16_spill] sm:$0xff] }
 0x2fc   : > { %v4836_v43 = vsel %vm12658_vm12, %v4828_v48, %v4835_v24  ;;  %v5042_v49 = vsel %vm12668_vm13, %v4837_v8, %v5041_v54  ;;  %v4623_v59 = vpack.c.bf16 %v4537_v32, %v4537_v32  ;;  %v4434_v2 = vadd.f32 %v4391_v37, %v4008_v30  ;;  %5915 = vmatmul.bf16.gmra.mxu2 %v11057_v63 }
 0x2fd   : > { %5040 = vst [vmem:[#allocation2 + $0x94] sm:$0xf] %v4836_v43  ;;  %6293 = vmatmul.bf16.gmra.mxu3 %v13203_v20  ;;  %v5423_v37 = vsel %vm11335_vm2, %v5418_v5, %v5422_v1  ;;  %v5413_v13 = vsel %vm11335_vm2, %v5408_v52, %v5412_v3  ;;  %v6079_v31 = vrot.slane %v6077_v9, 4  ;;  %v6078_v47 = vsel %vm11636_vm5, %v10425_v11, %v6077_v9 }
 0x2fe   : > { %5043 = vst [vmem:[#allocation2 + $0x98] sm:$0x1] %v5042_v49  ;;  %v4839_v18 = vshrl.u32 %v4623_v59, 16  ;;  %v4470_v0 = vmul.f32 %v13261_v27, %v4434_v2  ;;  %v4842_v48 = vshll.u32 %v4623_v59, 16  ;;  %v5560_v28 = vunpack.c.l.b16 %v5423_v37  ;;  %v5096_v49 = vld [vmem:[#allocation2 + $0x90] sm:$0xf] }
 0x2ff   : > { %6607 = vmatmul.bf16.gmra.mxu0 %v11097_v45  ;;  %v3286_v25 = vpop.f32.mrf.mxu2  ;;  %v3968_v21 = vpop.f32.mrf.mxu3  ;;  %v5559_v24 = vunpack.c.l.b16 %v5413_v13  ;;  %v6081_v8 = vsel %vm11636_vm5, %v6079_v31, %v6080_v23  ;;  %v3013_v46 = vadd.f32 %v14980_v60, %v14979_v51  ;;  %v6164_v2 = vunpack.c.l.b16 %v6078_v47 }
 0x300   : > { %v4841_v38 = vrot.slane %v4839_v18, 7  ;;  %v4506_v20 = vadd.f32 %v13270_v56, %v4470_v0  ;;  %v3327_v33 = vadd.f32 %v3286_v25, %v14978_v61  ;;  %v5425_v1 = vshrl.u32 %v5096_v49, 16  ;;  %v11117_v18 = vld [vmem:[%s14927_s4 + $0x108] sm:$0xff]  ;;  %v5048_v61 = vld [vmem:[#allocation2 + $0xa4] sm:$0x1] }
 0x301   : > { %v13313_v4 = vpop.f32.mrf.mxu1  ;;  %v5580_v43 = vpack.c.b16 %v5560_v28, %v5559_v24  ;;  %v5428_v25 = vshll.u32 %v5096_v49, 16  ;;  %7262 = vmatpush.bf16.msrb.mxu1 %v11117_v18  ;;  %v11058_v24 = vld [vmem:[#allocation2 + $0x48] sm:$0xff] }
 0x302   : > { %v4844_v54 = vor.u32 %v4842_v48, %v4841_v38  ;;  %v4538_v26 = vmax.f32 %v4506_v20, 0.0  ;;  %v4009_v29 = vadd.f32 %v3968_v21, %v3327_v33  ;;  %v4396_v22 = vpop.f32.mrf.mxu0  ;;  %v4845_v32 = vrot.slane %v4841_v38, 4  ;;  %v5980_v49 = vld [vmem:[#allocation2 + $0x6c] sm:$0xe] }
 0x303   : > { %v5427_v20 = vrot.slane %v5425_v1, 4  ;;  %v5430_v13 = vrot.slane %v5428_v25, 5 }
 0x304   : > { %v5045_v3 = vsel %vm12598_vm10, %v4844_v54, %v5044_v40  ;;  %v4624_v30 = vpack.c.bf16 %v4538_v26, %v4538_v26  ;;  %v4435_v63 = vadd.f32 %v4394_v19, %v4009_v29  ;;  %v13324_v59 = vld [vmem:[#allocation2 + $0x94] sm:$0xf]  ;;  %v6165_v19 = vunpack.c.l.b16 %v6081_v8 }
 0x305   : > { %5046 = vst [vmem:[#allocation2 + $0x9c] sm:$0xf] %v5045_v3  ;;  %v13327_v5 = vld [vmem:[#allocation2 + $0x98] sm:$0x1]  ;;  %v5434_v21 = vshll.u32 %v13324_v59, 16  ;;  %v5438_v37 = vshrl.u32 %v13324_v59, 16  ;;  %v5431_v8 = vor.u32 %v5430_v13, %v5427_v20 }
 0x306   : > { %v4847_v45 = vshrl.u32 %v4624_v30, 16  ;;  %v4471_v36 = vmul.f32 %v13261_v27, %v4435_v63  ;;  %v4850_v0 = vshll.u32 %v4624_v30, 16  ;;  %v5444_v31 = vshll.u32 %v13327_v5, 16 }
 0x307   : > { %v3288_v52 = vpop.f32.mrf.mxu2  ;;  %v3970_v48 = vpop.f32.mrf.mxu3  ;;  %v5436_v40 = vrot.slane %v5434_v21, 5  ;;  %v5440_v28 = vrot.slane %v5438_v37, 4  ;;  %v13338_v30 = vpack.c.b16 %v6165_v19, %v6164_v2  ;;  %v5432_v18 = vrot.slane %v5431_v8, 4  ;;  %v14981_v21 = vld [vmem:[#allocation19_spill] sm:$0xff] }
 0x308   : > { %v4849_v11 = vrot.slane %v4847_v45, 7  ;;  %v4507_v9 = vadd.f32 %v13270_v56, %v4471_v36  ;;  %v3328_v38 = vadd.f32 %v3288_v52, %v3013_v46  ;;  %v5446_v36 = vrot.slane %v5444_v31, 5 }
 0x309   : > { %v13335_v33 = vpop.f32.mrf.mxu1  ;;  %v5441_v3 = vor.u32 %v5440_v28, %v5436_v40  ;;  %v10426_v52 = vrot.slane %v5980_v49, 9 }
 0x30a   : > { %5712 = vmatmul.bf16.gmra.mxu1 %v5580_v43  ;;  %v4852_v23 = vor.u32 %v4850_v0, %v4849_v11  ;;  %v4854_v54 = vrot.slane %v4849_v11, 4  ;;  %v4539_v26 = vmax.f32 %v4507_v9, 0.0  ;;  %v4010_v29 = vadd.f32 %v3970_v48, %v3328_v38  ;;  %v4399_v47 = vpop.f32.mrf.mxu0  ;;  %v11098_v43 = vld [vmem:[#allocation2 + $0x54] sm:$0xff]  ;;  %v5051_v9 = vld [vmem:[#allocation2 + $0xa8] sm:$0xf] }
 0x30b   : > { %v5442_v45 = vrot.slane %v5441_v3, 4  ;;  %v6084_v48 = vrot.slane %v13201_v15, 5  ;;  %v5437_v11 = vsel %vm11335_vm2, %v5432_v18, %v5436_v40 }
 0x30c   : > { %v4853_v63 = vsel %vm12658_vm12, %v4845_v32, %v4852_v23  ;;  %v5049_v51 = vsel %vm12668_vm13, %v4854_v54, %v5048_v61  ;;  %v4625_v60 = vpack.c.bf16 %v4539_v26, %v4539_v26  ;;  %v4436_v46 = vadd.f32 %v4396_v22, %v4010_v29  ;;  %5920 = vmatmul.bf16.gmra.mxu2 %v11058_v24 }
 0x30d   : > { %5047 = vst [vmem:[#allocation2 + $0xa0] sm:$0xf] %v4853_v63  ;;  %6298 = vmatmul.bf16.gmra.mxu3 %v13251_v58  ;;  %v5447_v22 = vsel %vm11335_vm2, %v5442_v45, %v5446_v36  ;;  %v6086_v20 = vrot.slane %v6084_v48, 4  ;;  %v6087_v61 = vrot.slane %v13206_v16, 5  ;;  %v6085_v15 = vsel %vm11636_vm5, %v10426_v52, %v6084_v48  ;;  %v14982_v16 = vld [vmem:[#allocation21_spill] sm:$0xff]  ;;  %v14983_v63 = vld [vmem:[#allocation20_spill] sm:$0xff] }
 0x30e   : > { %5050 = vst [vmem:[#allocation2 + $0xa4] sm:$0x1] %v5049_v51  ;;  %v4856_v1 = vshrl.u32 %v4625_v60, 16  ;;  %v4472_v2 = vmul.f32 %v13261_v27, %v4436_v46  ;;  %v4859_v32 = vshll.u32 %v4625_v60, 16  ;;  %v5562_v38 = vunpack.c.l.b16 %v5447_v22  ;;  %v5098_v46 = vld [vmem:[#allocation2 + $0x9c] sm:$0xf] }
 0x30f   : > { %6612 = vmatmul.bf16.gmra.mxu0 %v11098_v43  ;;  %v3291_v19 = vpop.f32.mrf.mxu2  ;;  %v3973_v0 = vpop.f32.mrf.mxu3  ;;  %v5561_v26 = vunpack.c.l.b16 %v5437_v11  ;;  %v6088_v29 = vsel %vm11636_vm5, %v6086_v20, %v6087_v61  ;;  %v3015_v51 = vadd.f32 %v14983_v63, %v14982_v16  ;;  %v6166_v49 = vunpack.c.l.b16 %v6085_v15  ;;  %v11059_v15 = vld [vmem:[#allocation2 + $0x54] sm:$0xff] }
 0x310   : > { %v4858_v25 = vrot.slane %v4856_v1, 7  ;;  %v4508_v58 = vadd.f32 %v13270_v56, %v4472_v2  ;;  %v3329_v37 = vadd.f32 %v3291_v19, %v14981_v21  ;;  %v5449_v2 = vshrl.u32 %v5098_v46, 16 }
 0x311   : > { %v13354_v23 = vpop.f32.mrf.mxu1  ;;  %v5581_v60 = vpack.c.b16 %v5562_v38, %v5561_v26  ;;  %v6167_v18 = vunpack.c.l.b16 %v6088_v29 }
 0x312   : > { %v4861_v13 = vor.u32 %v4859_v32, %v4858_v25  ;;  %v4540_v28 = vmax.f32 %v4508_v58, 0.0  ;;  %v4011_v31 = vadd.f32 %v3973_v0, %v3329_v37  ;;  %v4401_v54 = vpop.f32.mrf.mxu0  ;;  %v4862_v24 = vrot.slane %v4858_v25, 4  ;;  %v5055_v37 = vld [vmem:[#allocation2 + $0xb0] sm:$0x1] }
 0x313   : > { %v5451_v21 = vrot.slane %v5449_v2, 4 }
 0x314   : > { %v5052_v40 = vsel %vm12598_vm10, %v4861_v13, %v5051_v9  ;;  %v4626_v8 = vpack.c.bf16 %v4540_v28, %v4540_v28  ;;  %v4437_v3 = vadd.f32 %v4399_v47, %v4011_v31  ;;  %v13364_v43 = vld [vmem:[#allocation2 + $0xa0] sm:$0xf]  ;;  %v5452_v47 = vshll.u32 %v5098_v46, 16 }
 0x315   : > { %5053 = vst [vmem:[#allocation2 + $0xa8] sm:$0xf] %v5052_v40  ;;  %v13367_v1 = vld [vmem:[#allocation2 + $0xa4] sm:$0x1]  ;;  %v5458_v22 = vshll.u32 %v13364_v43, 16  ;;  %v5462_v52 = vshrl.u32 %v13364_v43, 16 }
 0x316   : > { %v4864_v45 = vshrl.u32 %v4626_v8, 16  ;;  %v4473_v36 = vmul.f32 %v13261_v27, %v4437_v3  ;;  %v4867_v32 = vshll.u32 %v4626_v8, 16  ;;  %v5454_v11 = vrot.slane %v5452_v47, 5  ;;  %v11099_v46 = vld [vmem:[#allocation2 + $0x60] sm:$0xff] }
 0x317   : > { %v3293_v19 = vpop.f32.mrf.mxu2  ;;  %v3975_v0 = vpop.f32.mrf.mxu3  ;;  %v5460_v9 = vrot.slane %v5458_v22, 5  ;;  %v5464_v38 = vrot.slane %v5462_v52, 4  ;;  %v5468_v20 = vshll.u32 %v13367_v1, 16  ;;  %v13373_v8 = vpack.c.b16 %v6167_v18, %v6166_v49 }
 0x318   : > { %v4866_v48 = vrot.slane %v4864_v45, 7  ;;  %v4509_v25 = vadd.f32 %v13270_v56, %v4473_v36  ;;  %v3330_v58 = vadd.f32 %v3293_v19, %v3015_v51  ;;  %v5455_v29 = vor.u32 %v5454_v11, %v5451_v21  ;;  %v5981_v21 = vld [vmem:[#allocation2 + $0x78] sm:$0xe] }
 0x319   : > { %v5465_v40 = vor.u32 %v5464_v38, %v5460_v9  ;;  %v5470_v2 = vrot.slane %v5468_v20, 5 }
 0x31a   : > { %5717 = vmatmul.bf16.gmra.mxu1 %v5581_v60  ;;  %v4869_v61 = vor.u32 %v4867_v32, %v4866_v48  ;;  %v4871_v13 = vrot.slane %v4866_v48, 4  ;;  %v4541_v28 = vmax.f32 %v4509_v25, 0.0  ;;  %v4012_v31 = vadd.f32 %v3975_v0, %v3330_v58  ;;  %v13379_v60 = vpop.f32.mrf.mxu1  ;;  %v14984_v48 = vld [vmem:[#allocation22_spill] sm:$0xff] }
 0x31b   : > { %v5456_v45 = vrot.slane %v5455_v29, 4  ;;  %v5466_v36 = vrot.slane %v5465_v40, 4  ;;  %v10427_v40 = vrot.slane %v5981_v21, 9 }
 0x31c   : > { %v4404_v26 = vpop.f32.mrf.mxu0  ;;  %v4870_v3 = vsel %vm12658_vm12, %v4862_v24, %v4869_v61  ;;  %v5056_v16 = vsel %vm12668_vm13, %v4871_v13, %v5055_v37  ;;  %v4627_v63 = vpack.c.bf16 %v4541_v28, %v4541_v28  ;;  %v4438_v51 = vadd.f32 %v4401_v54, %v4012_v31  ;;  %5925 = vmatmul.bf16.gmra.mxu2 %v11059_v15  ;;  %v5100_v24 = vld [vmem:[#allocation2 + $0xa8] sm:$0xf]  ;;  %v5058_v37 = vld [vmem:[#allocation2 + $0xb4] sm:$0xf]  ;;  %v14985_v28 = vld [vmem:[#allocation3_spill] sm:$0xff] }
 0x31d   : > { %5054 = vst [vmem:[#allocation2 + $0xac] sm:$0xf] %v4870_v3  ;;  %6303 = vmatmul.bf16.gmra.mxu3 %v13298_v7  ;;  %v5461_v54 = vsel %vm11335_vm2, %v5456_v45, %v5460_v9  ;;  %v5471_v47 = vsel %vm11335_vm2, %v5466_v36, %v5470_v2  ;;  %v11116_v7 = vld [vmem:[%s14927_s4 + $0x100] sm:$0xff]  ;;  %v5473_v58 = vshrl.u32 %v5100_v24, 16  ;;  %v5476_v38 = vshll.u32 %v5100_v24, 16 }
 0x31e   : > { %5057 = vst [vmem:[#allocation2 + $0xb0] sm:$0x1] %v5056_v16  ;;  %v4873_v49 = vshrl.u32 %v4627_v63, 16  ;;  %v4474_v18 = vmul.f32 %v13261_v27, %v4438_v51  ;;  %v4876_v32 = vshll.u32 %v4627_v63, 16  ;;  %v5564_v11 = vunpack.c.l.b16 %v5471_v47  ;;  %7263 = vmatpush.bf16.msrb.mxu1 %v11116_v7 }
 0x31f   : > { %6617 = vmatmul.bf16.gmra.mxu0 %v11099_v46  ;;  %v3296_v19 = vpop.f32.mrf.mxu2  ;;  %v3978_v0 = vpop.f32.mrf.mxu3  ;;  %v6091_v9 = vrot.slane %v13237_v53, 5  ;;  %v3017_v31 = vadd.f32 %v13148_v42, %v14985_v28  ;;  %v5563_v29 = vunpack.c.l.b16 %v5461_v54  ;;  %v5475_v45 = vrot.slane %v5473_v58, 4 }
 0x320   : > { %v4875_v22 = vrot.slane %v4873_v49, 7  ;;  %v4510_v52 = vadd.f32 %v13270_v56, %v4474_v18  ;;  %v3331_v25 = vadd.f32 %v3296_v19, %v14984_v48  ;;  %v5478_v36 = vrot.slane %v5476_v38, 5 }
 0x321   : > { %v6093_v3 = vrot.slane %v6091_v9, 4  ;;  %v5582_v53 = vpack.c.b16 %v5564_v11, %v5563_v29  ;;  %v6094_v49 = vrot.slane %v13240_v50, 5 }
 0x322   : > { %v4878_v20 = vor.u32 %v4876_v32, %v4875_v22  ;;  %v4542_v61 = vmax.f32 %v4510_v52, 0.0  ;;  %v4013_v13 = vadd.f32 %v3978_v0, %v3331_v25  ;;  %v4879_v0 = vrot.slane %v4875_v22, 4  ;;  %v11131_v22 = vld [vmem:[%s14927_s4 + $0x178] sm:$0xff] }
 0x323   : > { %v6095_v50 = vsel %vm11636_vm5, %v6093_v3, %v6094_v49  ;;  %v5479_v11 = vor.u32 %v5478_v36, %v5475_v45  ;;  %7682 = vmatpush.bf16.msra.mxu2 %v11131_v22  ;;  %v11100_v36 = vld [vmem:[#allocation2 + $0x6c] sm:$0xff] }
 0x324   : > { %v4406_v15 = vpop.f32.mrf.mxu0  ;;  %v5059_v16 = vsel %vm12598_vm10, %v4878_v20, %v5058_v37  ;;  %v4628_v63 = vpack.c.bf16 %v4542_v61, %v4542_v61  ;;  %v4439_v51 = vadd.f32 %v4404_v26, %v4013_v13  ;;  %v13397_v46 = vld [vmem:[#allocation2 + $0xac] sm:$0xf]  ;;  %v6092_v26 = vsel %vm11636_vm5, %v10427_v40, %v6091_v9  ;;  %v5062_v37 = vld [vmem:[#allocation2 + $0xbc] sm:$0x1]  ;;  %v11060_v40 = vld [vmem:[#allocation2 + $0x60] sm:$0xff] }
 0x325   : > { %5060 = vst [vmem:[#allocation2 + $0xb4] sm:$0xf] %v5059_v16  ;;  %v5482_v2 = vshll.u32 %v13397_v46, 16  ;;  %v13404_v32 = vld [vmem:[#allocation2 + $0xb0] sm:$0x1]  ;;  %v5486_v19 = vshrl.u32 %v13397_v46, 16  ;;  %v6168_v9 = vunpack.c.l.b16 %v6092_v26  ;;  %v6169_v20 = vunpack.c.l.b16 %v6095_v50 }
 0x326   : > { %v4881_v42 = vshrl.u32 %v4628_v63, 16  ;;  %v4475_v18 = vmul.f32 %v13261_v27, %v4439_v51  ;;  %v4884_v54 = vshll.u32 %v4628_v63, 16  ;;  %v5492_v38 = vshll.u32 %v13404_v32, 16 }
 0x327   : > { %v13402_v24 = vpop.f32.mrf.mxu1  ;;  %v3298_v47 = vpop.f32.mrf.mxu2  ;;  %v5484_v52 = vrot.slane %v5482_v2, 5  ;;  %v5488_v21 = vrot.slane %v5486_v19, 4  ;;  %v13418_v16 = vpack.c.b16 %v6169_v20, %v6168_v9  ;;  %v5480_v49 = vrot.slane %v5479_v11, 4 }
 0x328   : > { %v3980_v7 = vpop.f32.mrf.mxu3  ;;  %v4883_v48 = vrot.slane %v4881_v42, 7  ;;  %v4511_v25 = vadd.f32 %v13270_v56, %v4475_v18  ;;  %v3332_v58 = vadd.f32 %v3298_v47, %v3017_v31  ;;  %v5494_v18 = vrot.slane %v5492_v38, 5 }
 0x329   : > { %v5489_v31 = vor.u32 %v5488_v21, %v5484_v52 }
 0x32a   : > { %5722 = vmatmul.bf16.gmra.mxu1 %v5582_v53  ;;  %v4886_v61 = vor.u32 %v4884_v54, %v4883_v48  ;;  %v4888_v13 = vrot.slane %v4883_v48, 4  ;;  %v4543_v28 = vmax.f32 %v4511_v25, 0.0  ;;  %v4014_v29 = vadd.f32 %v3980_v7, %v3332_v58 }
 0x32b   : > { %v5490_v42 = vrot.slane %v5489_v31, 4  ;;  %v5485_v7 = vsel %vm11335_vm2, %v5480_v49, %v5484_v52 }
 0x32c   : > { %v13416_v3 = vpop.f32.mrf.mxu0  ;;  %v4887_v63 = vsel %vm12658_vm12, %v4879_v0, %v4886_v61  ;;  %v5063_v51 = vsel %vm12668_vm13, %v4888_v13, %v5062_v37  ;;  %v4629_v45 = vpack.c.bf16 %v4543_v28, %v4543_v28  ;;  %v4440_v53 = vadd.f32 %v4406_v15, %v4014_v29  ;;  %5930 = vmatmul.bf16.gmra.mxu2 %v11060_v40  ;;  %v5102_v2 = vld [vmem:[#allocation2 + $0xb4] sm:$0xf]  ;;  %v11155_v15 = vld [vmem:[%s14927_s4 + $0x1b8] sm:$0xff]  ;;  %v5065_v37 = vld [vmem:[#allocation2 + $0xc0] sm:$0xf] }
 0x32d   : > { %5061 = vst [vmem:[#allocation2 + $0xb8] sm:$0xf] %v4887_v63  ;;  %6308 = vmatmul.bf16.gmra.mxu3 %v13338_v30  ;;  %v5495_v30 = vsel %vm11335_vm2, %v5490_v42, %v5494_v18  ;;  %v5497_v50 = vshrl.u32 %v5102_v2, 16  ;;  %v5500_v48 = vshll.u32 %v5102_v2, 16  ;;  %v5565_v52 = vunpack.c.l.b16 %v5485_v7  ;;  %v11171_v7 = vld [vmem:[%s14927_s4 + $0x238] sm:$0xff] }
 0x32e   : > { %5064 = vst [vmem:[#allocation2 + $0xbc] sm:$0x1] %v5063_v51  ;;  %v4890_v19 = vshrl.u32 %v4629_v45, 16  ;;  %v4476_v26 = vmul.f32 %v13261_v27, %v4440_v53  ;;  %v4893_v58 = vshll.u32 %v4629_v45, 16  ;;  %7997 = vmatpush.bf16.msra.mxu3 %v11155_v15  ;;  %v5566_v11 = vunpack.c.l.b16 %v5495_v30  ;;  %v5069_v15 = vld [vmem:[#allocation2 + $0xc8] sm:$0x1]  ;;  %9105 = vmatpush.bf16.msra.mxu1 %v11171_v7 }
 0x32f   : > { %v13426_v54 = vpop.f32.mrf.mxu1  ;;  %6622 = vmatmul.bf16.gmra.mxu0 %v11100_v36  ;;  %v5891_v0 = vpop.f32.mrf.mxu2  ;;  %v5499_v29 = vrot.slane %v5497_v50, 4 }
 0x330   : > { %v6269_v47 = vpop.f32.mrf.mxu3  ;;  %v4892_v25 = vrot.slane %v4890_v19, 7  ;;  %v4512_v27 = vadd.f32 %v13270_v56, %v4476_v26  ;;  %v5892_v21 = vadd.f32 %v5891_v0, %v13176_v10  ;;  %v5502_v56 = vrot.slane %v5500_v48, 5 }
 0x331   : > { %v5583_v10 = vpack.c.b16 %v5566_v11, %v5565_v52 }
 0x332   : > { %v4895_v38 = vor.u32 %v4893_v58, %v4892_v25  ;;  %v4544_v22 = vmax.f32 %v4512_v27, 0.0  ;;  %v13437_v9 = vadd.f32 %v6269_v47, %v5892_v21  ;;  %v5503_v0 = vor.u32 %v5502_v56, %v5499_v29  ;;  %v11061_v27 = vld [vmem:[#allocation2 + $0x6c] sm:$0xff] }
 0x333   : > { %v4896_v30 = vrot.slane %v4892_v25, 4  ;;  %v13468_v25 = vld [vmem:[#allocation2 + $0x10] sm:$0xf] }
 0x334   : > { %v13439_v20 = vpop.f32.mrf.mxu0  ;;  %v5066_v61 = vsel %vm12598_vm10, %v4895_v38, %v5065_v37  ;;  %v4630_v13 = vpack.c.bf16 %v4544_v22, %v4544_v22  ;;  %v13443_v28 = vld [vmem:[#allocation2 + $0xb8] sm:$0xf] }
 0x335   : > { %5067 = vst [vmem:[#allocation2 + $0xc0] sm:$0xf] %v5066_v61  ;;  %v13445_v40 = vld [vmem:[#allocation2 + $0xbc] sm:$0x1]  ;;  %v5506_v31 = vshll.u32 %v13443_v28, 16  ;;  %v5510_v63 = vshrl.u32 %v13443_v28, 16 }
 0x336   : > { %v4898_v51 = vshrl.u32 %v4630_v13, 16  ;;  %v4901_v18 = vshll.u32 %v4630_v13, 16  ;;  %v5516_v26 = vshll.u32 %v13445_v40, 16  ;;  %v11101_v38 = vld [vmem:[#allocation2 + $0x78] sm:$0xff]  ;;  %v5504_v61 = vrot.slane %v5503_v0, 4 }
 0x337   : > { %v13449_v45 = vpop.f32.mrf.mxu1  ;;  %v5893_v53 = vpop.f32.mrf.mxu2  ;;  %v5508_v2 = vrot.slane %v5506_v31, 5  ;;  %v5512_v49 = vrot.slane %v5510_v63, 4  ;;  %v6757_v31 = vshrl.u32 %v13468_v25, 16 }
 0x338   : > { %v6271_v36 = vpop.f32.mrf.mxu3  ;;  %v4900_v42 = vrot.slane %v4898_v51, 7  ;;  %v5894_v19 = vadd.f32 %v5893_v53, %v13212_v6  ;;  %v5518_v22 = vrot.slane %v5516_v26, 5 }
 0x339   : > { %v5513_v47 = vor.u32 %v5512_v49, %v5508_v2  ;;  %v5509_v56 = vsel %vm11335_vm2, %v5504_v61, %v5508_v2  ;;  %v6098_v61 = vrot.slane %v13287_v35, 5 }
 0x33a   : > { %5727 = vmatmul.bf16.gmra.mxu1 %v5583_v10  ;;  %v4903_v50 = vor.u32 %v4901_v18, %v4900_v42  ;;  %v4905_v48 = vrot.slane %v4900_v42, 4  ;;  %v13459_v58 = vadd.f32 %v6271_v36, %v5894_v19  ;;  %v6695_v10 = vld [vmem:[#allocation2 + $0xc] sm:$0xf]  ;;  %v5567_v53 = vunpack.c.l.b16 %v5509_v56 }
 0x33b   : > { %v5514_v6 = vrot.slane %v5513_v47, 4  ;;  %v6744_v36 = vshrl.u32 %v6695_v10, 16  ;;  %v6747_v49 = vshll.u32 %v6695_v10, 16  ;;  %v6759_v18 = vrot.slane %v6757_v31, 4  ;;  %v11154_v10 = vld [vmem:[%s14927_s4 + $0x1b0] sm:$0xff] }
 0x33c   : > { %v13461_v21 = vpop.f32.mrf.mxu0  ;;  %v4904_v37 = vsel %vm12658_vm12, %v4896_v30, %v4903_v50  ;;  %v5070_v11 = vsel %vm12668_vm13, %v4905_v48, %v5069_v15  ;;  %5935 = vmatmul.bf16.gmra.mxu2 %v11061_v27  ;;  %v13485_v15 = vld [vmem:[#allocation2 + $0x14] sm:$0x1]  ;;  %v11062_v27 = vld [vmem:[#allocation2 + $0x78] sm:$0xff]  ;;  %7998 = vmatpush.bf16.msra.mxu3 %v11154_v10 }
 0x33d   : > { %14986 = vst [vmem:[#allocation4_spill] sm:$0xff] %v13461_v21  ;;  %6313 = vmatmul.bf16.gmra.mxu3 %v13373_v8  ;;  %v5519_v14 = vsel %vm11335_vm2, %v5514_v6, %v5518_v22  ;;  %v6753_v8 = vshll.u32 %v13468_v25, 16  ;;  %v6746_v0 = vrot.slane %v6744_v36, 4  ;;  %v6749_v47 = vrot.slane %v6747_v49, 5  ;;  %v11130_v50 = vld [vmem:[%s14927_s4 + $0x170] sm:$0xff]  ;;  %v11102_v22 = vld [vmem:[#allocation2 + $0x84] sm:$0xff] }
 0x33e   : > { %5068 = vst [vmem:[#allocation2 + $0xc4] sm:$0xf] %v4904_v37  ;;  %v5568_v63 = vunpack.c.l.b16 %v5519_v14  ;;  %v6763_v6 = vshll.u32 %v13485_v15, 16  ;;  %7683 = vmatpush.bf16.msra.mxu2 %v11130_v50  ;;  %v5982_v49 = vld [vmem:[#allocation2 + $0x84] sm:$0xe] }
 0x33f   : > { %5071 = vst [vmem:[#allocation2 + $0xc8] sm:$0x1] %v5070_v11  ;;  %v13470_v52 = vpop.f32.mrf.mxu1  ;;  %6627 = vmatmul.bf16.gmra.mxu0 %v11101_v38  ;;  %v5896_v13 = vpop.f32.mrf.mxu2  ;;  %v6755_v42 = vrot.slane %v6753_v8, 5  ;;  %v6750_v11 = vor.u32 %v6749_v47, %v6746_v0  ;;  %v13496_v38 = vld [vmem:[#allocation2 + $0x1c] sm:$0xf] }
 0x340   : > { %v6274_v29 = vpop.f32.mrf.mxu3  ;;  %v5897_v12 = vadd.f32 %v5896_v13, %v13226_v34  ;;  %v5584_v19 = vpack.c.b16 %v5568_v63, %v5567_v53  ;;  %v6765_v13 = vrot.slane %v6763_v6, 5  ;;  %v6781_v56 = vshrl.u32 %v13496_v38, 16  ;;  %v6700_v6 = vld [vmem:[#allocation2 + $0x20] sm:$0x1] }
 0x341   : > { %v6760_v30 = vor.u32 %v6759_v18, %v6755_v42  ;;  %v6751_v63 = vrot.slane %v6750_v11, 4  ;;  %v6100_v53 = vrot.slane %v6098_v61, 4 }
 0x342   : > { %v13479_v51 = vadd.f32 %v6274_v29, %v5897_v12  ;;  %v6698_v29 = vld [vmem:[#allocation2 + $0x18] sm:$0xf]  ;;  %v6777_v12 = vshll.u32 %v13496_v38, 16  ;;  %v6783_v47 = vrot.slane %v6781_v56, 4 }
 0x343   : > { %v6756_v36 = vsel %vm11335_vm2, %v6751_v63, %v6755_v42  ;;  %v6768_v18 = vshrl.u32 %v6698_v29, 16 }
 0x344   : > { %14987 = vst [vmem:[#allocation5_spill] sm:$0xff] %v13479_v51  ;;  %v13481_v17 = vpop.f32.mrf.mxu0  ;;  %v13515_v0 = vrot.slane %v6777_v12, 5 }
 0x345   : > { %14988 = vst [vmem:[#allocation6_spill] sm:$0xff] %v13481_v17  ;;  %v6770_v42 = vrot.slane %v6768_v18, 4 }
 0x347   : > { %v13483_v34 = vpop.f32.mrf.mxu1  ;;  %v5898_v26 = vpop.f32.mrf.mxu2 }
 0x348   : > { %v6276_v2 = vpop.f32.mrf.mxu3  ;;  %v5899_v7 = vadd.f32 %v5898_v26, %v13248_v44  ;;  %v6761_v44 = vrot.slane %v6760_v30, 4  ;;  %v10428_v30 = vrot.slane %v5982_v49, 9 }
 0x34a   : > { %5732 = vmatmul.bf16.gmra.mxu1 %v5584_v19  ;;  %v13491_v48 = vadd.f32 %v6276_v2, %v5899_v7  ;;  %v6771_v19 = vshll.u32 %v6698_v29, 16  ;;  %v6101_v2 = vrot.slane %v13290_v57, 5  ;;  %v6784_v57 = vor.u32 %v6783_v47, %v13515_v0  ;;  %v11103_v47 = vld [vmem:[#allocation2 + $0x90] sm:$0xff] }
 0x34c   : > { %14989 = vst [vmem:[#allocation7_spill] sm:$0xff] %v13491_v48  ;;  %v13494_v37 = vpop.f32.mrf.mxu0  ;;  %5940 = vmatmul.bf16.gmra.mxu2 %v11062_v27  ;;  %v6102_v50 = vsel %vm11636_vm5, %v6100_v53, %v6101_v2  ;;  %v7144_v27 = vunpack.c.l.b16 %v6756_v36  ;;  %v6773_v11 = vrot.slane %v6771_v19, 5  ;;  %v11063_v36 = vld [vmem:[#allocation2 + $0x84] sm:$0xff]  ;;  %v6785_v49 = vrot.slane %v6784_v57, 4 }
 0x34d   : > { %14990 = vst [vmem:[#allocation9_spill] sm:$0xff] %v13494_v37  ;;  %6318 = vmatmul.bf16.gmra.mxu3 %v13418_v16  ;;  %v6766_v16 = vsel %vm11335_vm2, %v6761_v44, %v6765_v13  ;;  %v6099_v44 = vsel %vm11636_vm5, %v10428_v30, %v6098_v61  ;;  %v11162_v13 = vld [vmem:[%s14927_s4 + $0x1f0] sm:$0xff]  ;;  %v6171_v10 = vunpack.c.l.b16 %v6102_v50  ;;  %v6702_v2 = vld [vmem:[#allocation2 + $0x28] sm:$0xf]  ;;  %v6105_v30 = vrot.slane %v13324_v59, 5 }
 0x34e   : > { %8680 = vmatpush.bf16.msra.mxu0 %v11162_v13  ;;  %v6170_v63 = vunpack.c.l.b16 %v6099_v44  ;;  %v11170_v61 = vld [vmem:[%s14927_s4 + $0x230] sm:$0xff]  ;;  %v6701_v13 = vld [vmem:[#allocation2 + $0x24] sm:$0xf] }
 0x34f   : > { %v13500_v14 = vpop.f32.mrf.mxu1  ;;  %6632 = vmatmul.bf16.gmra.mxu0 %v11102_v22  ;;  %v5901_v8 = vpop.f32.mrf.mxu2  ;;  %9106 = vmatpush.bf16.msra.mxu1 %v11170_v61  ;;  %v5983_v61 = vld [vmem:[#allocation2 + $0x90] sm:$0xe] }
 0x350   : > { %v6279_v31 = vpop.f32.mrf.mxu3  ;;  %v5902_v35 = vadd.f32 %v5901_v8, %v13276_v55  ;;  %v7145_v55 = vunpack.c.l.b16 %v6766_v16  ;;  %v7378_v16 = vld [vmem:[#allocation2 + $0x18] sm:$0xe]  ;;  %v6191_v19 = vpack.c.b16 %v6171_v10, %v6170_v63 }
 0x351   : > { %v10642_v50 = vrot.slane %v7378_v16, 9  ;;  %v6792_v16 = vshrl.u32 %v6701_v13, 16 }
 0x352   : > { %v13512_v26 = vadd.f32 %v6279_v31, %v5902_v35  ;;  %v7176_v29 = vpack.c.b16 %v7145_v55, %v7144_v27  ;;  %v6787_v31 = vshll.u32 %v6700_v6, 16  ;;  %v6774_v35 = vor.u32 %v6773_v11, %v6770_v42 }
 0x353   : > { %v7453_v11 = vrot.slane %v6700_v6, 5 }
 0x354   : > { %14991 = vst [vmem:[#allocation8_spill] sm:$0xff] %v13512_v26  ;;  %v13517_v7 = vpop.f32.mrf.mxu0  ;;  %v6789_v55 = vrot.slane %v6787_v31, 5  ;;  %v6775_v27 = vrot.slane %v6774_v35, 4  ;;  %v6107_v31 = vrot.slane %v6105_v30, 4 }
 0x355   : > { %14992 = vst [vmem:[#allocation11_spill] sm:$0xff] %v13517_v7 }
 0x356   : > { %v6790_v57 = vsel %vm11335_vm2, %v6785_v49, %v6789_v55  ;;  %v6780_v6 = vsel %vm11335_vm2, %v6775_v27, %v13515_v0  ;;  %v10429_v27 = vrot.slane %v5983_v61, 9 }
 0x357   : > { %v13521_v22 = vpop.f32.mrf.mxu1  ;;  %v5903_v12 = vpop.f32.mrf.mxu2  ;;  %v7147_v35 = vunpack.c.l.b16 %v6790_v57  ;;  %v7146_v0 = vunpack.c.l.b16 %v6780_v6  ;;  %v6703_v57 = vld [vmem:[#allocation2 + $0x2c] sm:$0x1] }
 0x358   : > { %v6281_v56 = vpop.f32.mrf.mxu3  ;;  %v5904_v8 = vadd.f32 %v5903_v12, %v13295_v62  ;;  %v7450_v62 = vrot.slane %v13496_v38, 5  ;;  %v6805_v12 = vshrl.u32 %v6702_v2, 16 }
 0x35a   : > { %7264 = vmatmul.bf16.vlgmr.msrb.gmra.mxu1 %v7176_v29  ;;  %v13533_v53 = vadd.f32 %v6281_v56, %v5904_v8  ;;  %v7452_v42 = vrot.slane %v7450_v62, 4  ;;  %v6801_v29 = vshll.u32 %v6702_v2, 16  ;;  %v7451_v38 = vsel %vm11636_vm5, %v10642_v50, %v7450_v62  ;;  %v7379_v50 = vld [vmem:[#allocation2 + $0x24] sm:$0xe] }
 0x35b   : > { %v7572_v49 = vunpack.c.l.b16 %v7451_v38  ;;  %v6108_v62 = vrot.slane %v13327_v5, 5  ;;  %v6807_v55 = vrot.slane %v6805_v12, 4  ;;  %v10643_v38 = vrot.slane %v7379_v50, 9  ;;  %v6705_v50 = vld [vmem:[#allocation2 + $0x34] sm:$0xf] }
 0x35c   : > { %14993 = vst [vmem:[#allocation12_spill] sm:$0xff] %v13533_v53  ;;  %v13535_v18 = vpop.f32.mrf.mxu0  ;;  %5945 = vmatmul.bf16.gmra.mxu2 %v11063_v36  ;;  %v7454_v59 = vsel %vm11636_vm5, %v7452_v42, %v7453_v11  ;;  %v6795_v36 = vshll.u32 %v6701_v13, 16  ;;  %v6794_v13 = vrot.slane %v6792_v16, 4  ;;  %v7177_v5 = vpack.c.b16 %v7147_v35, %v7146_v0  ;;  %v6704_v35 = vld [vmem:[#allocation2 + $0x30] sm:$0xf] }
 0x35d   : > { %14994 = vst [vmem:[#allocation10_spill] sm:$0xff] %v13535_v18  ;;  %6323 = vmatmul.bf16.gmra.mxu3 %v6191_v19  ;;  %v7573_v63 = vunpack.c.l.b16 %v7454_v59  ;;  %v6109_v11 = vsel %vm11636_vm5, %v6107_v31, %v6108_v62  ;;  %v6811_v62 = vshll.u32 %v6703_v57, 16  ;;  %v11064_v0 = vld [vmem:[#allocation2 + $0x90] sm:$0xff]  ;;  %v6816_v18 = vshrl.u32 %v6704_v35, 16 }
 0x35e   : > { %v6797_v12 = vrot.slane %v6795_v36, 5  ;;  %v6173_v6 = vunpack.c.l.b16 %v6109_v11 }
 0x35f   : > { %v13539_v44 = vpop.f32.mrf.mxu1  ;;  %6637 = vmatmul.bf16.gmra.mxu0 %v11103_v47  ;;  %v5906_v56 = vpop.f32.mrf.mxu2  ;;  %v13554_v47 = vrot.slane %v6801_v29, 5  ;;  %v13558_v42 = vpack.c.b16 %v7573_v63, %v7572_v49  ;;  %v6106_v29 = vsel %vm11636_vm5, %v10429_v27, %v6105_v30  ;;  %v7460_v49 = vrot.slane %v6703_v57, 5  ;;  %v11129_v30 = vld [vmem:[%s14927_s4 + $0x168] sm:$0xff] }
 0x360   : > { %v6284_v10 = vpop.f32.mrf.mxu3  ;;  %v5907_v8 = vadd.f32 %v5906_v56, %v13313_v4  ;;  %v7457_v56 = vrot.slane %v6702_v2, 5  ;;  %v6172_v2 = vunpack.c.l.b16 %v6106_v29  ;;  %v6798_v27 = vor.u32 %v6797_v12, %v6794_v13  ;;  %7684 = vmatpush.bf16.msra.mxu2 %v11129_v30  ;;  %v7380_v29 = vld [vmem:[#allocation2 + $0x30] sm:$0xe] }
 0x361   : > { %v6808_v59 = vor.u32 %v6807_v55, %v13554_v47  ;;  %v6112_v57 = vrot.slane %v13364_v43, 5  ;;  %v6813_v13 = vrot.slane %v6811_v62, 5  ;;  %v6825_v12 = vshll.u32 %v6705_v50, 16  ;;  %v11153_v43 = vld [vmem:[%s14927_s4 + $0x1a8] sm:$0xff] }
 0x362   : > { %v13551_v19 = vadd.f32 %v6284_v10, %v5907_v8  ;;  %v7458_v61 = vsel %vm11636_vm5, %v10643_v38, %v7457_v56  ;;  %v7459_v31 = vrot.slane %v7457_v56, 4  ;;  %7999 = vmatpush.bf16.msra.mxu3 %v11153_v43 }
 0x363   : > { %v7574_v11 = vunpack.c.l.b16 %v7458_v61  ;;  %v6829_v61 = vshrl.u32 %v6705_v50, 16 }
 0x364   : > { %14995 = vst [vmem:[#allocation14_spill] sm:$0xff] %v13551_v19  ;;  %v13556_v4 = vpop.f32.mrf.mxu0  ;;  %v7461_v36 = vsel %vm11636_vm5, %v7459_v31, %v7460_v49 }
 0x365   : > { %14996 = vst [vmem:[#allocation15_spill] sm:$0xff] %v13556_v4  ;;  %v7575_v38 = vunpack.c.l.b16 %v7461_v36  ;;  %v13580_v4 = vld [vmem:[#allocation2 + $0x38] sm:$0x1]  ;;  %v5984_v36 = vld [vmem:[#allocation2 + $0x9c] sm:$0xe] }
 0x366   : > { %v7467_v62 = vrot.slane %v13580_v4, 5 }
 0x367   : > { %v13562_v10 = vpop.f32.mrf.mxu1  ;;  %v5908_v8 = vpop.f32.mrf.mxu2  ;;  %v13582_v31 = vpack.c.b16 %v7575_v38, %v7574_v11 }
 0x368   : > { %v6286_v63 = vpop.f32.mrf.mxu3  ;;  %v5909_v16 = vadd.f32 %v5908_v8, %v13335_v33  ;;  %v6192_v33 = vpack.c.b16 %v6173_v6, %v6172_v2  ;;  %v11104_v8 = vld [vmem:[#allocation2 + $0x9c] sm:$0xff]  ;;  %v6819_v6 = vshll.u32 %v6704_v35, 16 }
 0x36a   : > { %7269 = vmatmul.bf16.gmra.mxu1 %v7177_v5  ;;  %v13575_v55 = vadd.f32 %v6286_v63, %v5909_v16  ;;  %v6809_v5 = vrot.slane %v6808_v59, 4  ;;  %v7464_v63 = vrot.slane %v6705_v50, 5  ;;  %v6799_v59 = vrot.slane %v6798_v27, 4 }
 0x36b   : > { %v10644_v16 = vrot.slane %v7380_v29, 9  ;;  %v13596_v27 = vrot.slane %v6816_v18, 4  ;;  %v10430_v18 = vrot.slane %v5984_v36, 9  ;;  %v13620_v36 = vld [vmem:[#allocation2 + $0x44] sm:$0x1] }
 0x36c   : > { %14997 = vst [vmem:[#allocation13_spill] sm:$0xff] %v13575_v55  ;;  %v13577_v56 = vpop.f32.mrf.mxu0  ;;  %5950 = vmatmul.bf16.gmra.mxu2 %v11064_v0  ;;  %v6814_v30 = vsel %vm11335_vm2, %v6809_v5, %v6813_v13  ;;  %v6114_v0 = vrot.slane %v6112_v57, 4  ;;  %v7466_v11 = vrot.slane %v7464_v63, 4  ;;  %v6804_v35 = vsel %vm11335_vm2, %v6799_v59, %v13554_v47  ;;  %v7381_v55 = vld [vmem:[#allocation2 + $0x3c] sm:$0xe] }
 0x36d   : > { %14998 = vst [vmem:[#allocation17_spill] sm:$0xff] %v13577_v56  ;;  %6328 = vmatmul.bf16.gmra.mxu3 %v6192_v33  ;;  %v6708_v33 = vld [vmem:[#allocation2 + $0x40] sm:$0xf]  ;;  %v7465_v29 = vsel %vm11636_vm5, %v10644_v16, %v7464_v63  ;;  %v6115_v5 = vrot.slane %v13367_v1, 5  ;;  %v6831_v13 = vrot.slane %v6829_v61, 4  ;;  %v7149_v47 = vunpack.c.l.b16 %v6814_v30 }
 0x36e   : > { %v13603_v56 = vld [vmem:[#allocation2 + $0x3c] sm:$0xf]  ;;  %v6821_v59 = vrot.slane %v6819_v6, 5  ;;  %v6849_v16 = vshll.u32 %v6708_v33, 16  ;;  %v7576_v1 = vunpack.c.l.b16 %v7465_v29  ;;  %v7148_v61 = vunpack.c.l.b16 %v6804_v35 }
 0x36f   : > { %v13584_v49 = vpop.f32.mrf.mxu1  ;;  %6642 = vmatmul.bf16.gmra.mxu0 %v11104_v8  ;;  %v5911_v2 = vpop.f32.mrf.mxu2  ;;  %v13601_v8 = vrot.slane %v6825_v12, 5  ;;  %v6116_v63 = vsel %vm11636_vm5, %v6114_v0, %v6115_v5  ;;  %v6113_v19 = vsel %vm11636_vm5, %v10430_v18, %v6112_v57  ;;  %v13617_v30 = vld [vmem:[#allocation2 + $0x1c] sm:$0xf]  ;;  %v6843_v0 = vshll.u32 %v13603_v56, 16  ;;  %v8800_v18 = vld [vmem:[#allocation2 + $0x18] sm:$0xe] }
 0x370   : > { %v5912_v50 = vadd.f32 %v5911_v2, %v13354_v23  ;;  %v6289_v38 = vpop.f32.mrf.mxu3  ;;  %v7468_v23 = vsel %vm11636_vm5, %v7466_v11, %v7467_v62  ;;  %v6835_v11 = vshll.u32 %v13580_v4, 16  ;;  %v6840_v62 = vshrl.u32 %v13603_v56, 16  ;;  %v11161_v4 = vld [vmem:[%s14927_s4 + $0x1e8] sm:$0xff] }
 0x371   : > { %v7577_v12 = vunpack.c.l.b16 %v7468_v23  ;;  %v6832_v6 = vor.u32 %v6831_v13, %v13601_v8  ;;  %v6175_v35 = vunpack.c.l.b16 %v6116_v63  ;;  %v6822_v57 = vor.u32 %v6821_v59, %v13596_v27  ;;  %8681 = vmatpush.bf16.msra.mxu0 %v11161_v4  ;;  %v13635_v63 = vld [vmem:[#allocation2 + $0x20] sm:$0x1] }
 0x372   : > { %v13607_v2 = vadd.f32 %v6289_v38, %v5912_v50  ;;  %v6853_v50 = vshrl.u32 %v6708_v33, 16  ;;  %v10645_v5 = vrot.slane %v7381_v55, 9  ;;  %v7471_v23 = vrot.slane %v6708_v33, 5 }
 0x373   : > { %v13623_v38 = vpack.c.b16 %v7577_v12, %v7576_v1  ;;  %v7178_v13 = vpack.c.b16 %v7149_v47, %v7148_v61  ;;  %v13631_v7 = vrot.slane %v6849_v16, 5  ;;  %v8866_v56 = vrot.slane %v13617_v30, 5  ;;  %v11065_v61 = vld [vmem:[#allocation2 + $0x9c] sm:$0xff] }
 0x374   : > { %14999 = vst [vmem:[#allocation18_spill] sm:$0xff] %v13607_v2  ;;  %v13609_v43 = vpop.f32.mrf.mxu0  ;;  %v6174_v2 = vunpack.c.l.b16 %v6113_v19  ;;  %v7472_v27 = vsel %vm11636_vm5, %v10645_v5, %v7471_v23  ;;  %v7473_v59 = vrot.slane %v7471_v23, 4  ;;  %v7474_v55 = vrot.slane %v13620_v36, 5  ;;  %v11169_v19 = vld [vmem:[%s14927_s4 + $0x228] sm:$0xff] }
 0x375   : > { %15000 = vst [vmem:[#allocation16_spill] sm:$0xff] %v13609_v43  ;;  %v6833_v33 = vrot.slane %v6832_v6, 4  ;;  %v13640_v47 = vrot.slane %v6853_v50, 4  ;;  %v10865_v16 = vrot.slane %v8800_v18, 9  ;;  %v13648_v5 = vld [vmem:[#allocation2 + $0x28] sm:$0xf]  ;;  %9107 = vmatpush.bf16.msra.mxu1 %v11169_v19  ;;  %v7578_v50 = vunpack.c.l.b16 %v7472_v27 }
 0x376   : > { %v6193_v4 = vpack.c.b16 %v6175_v35, %v6174_v2  ;;  %v7475_v23 = vsel %vm11636_vm5, %v7473_v59, %v7474_v55  ;;  %v13652_v6 = vld [vmem:[#allocation2 + $0x48] sm:$0xf]  ;;  %v6837_v35 = vrot.slane %v6835_v11, 5  ;;  %v13659_v53 = vrot.slane %v6840_v62, 4  ;;  %v13663_v55 = vld [vmem:[#allocation2 + $0x2c] sm:$0x1] }
 0x377   : > { %v13625_v29 = vpop.f32.mrf.mxu1  ;;  %v5913_v43 = vpop.f32.mrf.mxu2  ;;  %v8867_v18 = vsel %vm11636_vm5, %v10865_v16, %v8866_v56  ;;  %v11105_v2 = vld [vmem:[#allocation2 + $0xa8] sm:$0xff]  ;;  %v6823_v59 = vrot.slane %v6822_v57, 4  ;;  %v8801_v19 = vld [vmem:[#allocation2 + $0x24] sm:$0xe]  ;;  %v8873_v16 = vrot.slane %v13648_v5, 5  ;;  %v8876_v48 = vrot.slane %v13663_v55, 5 }
 0x378   : > { %v5914_v1 = vadd.f32 %v5913_v43, %v13379_v60  ;;  %v6291_v12 = vpop.f32.mrf.mxu3  ;;  %v8868_v60 = vrot.slane %v8866_v56, 4  ;;  %v6838_v11 = vsel %vm11335_vm2, %v6833_v33, %v6837_v35  ;;  %v11128_v62 = vld [vmem:[%s14927_s4 + $0x160] sm:$0xff]  ;;  %v13691_v35 = vld [vmem:[#allocation2 + $0x4c] sm:$0xf] }
 0x379   : > { %v11160_v57 = vld [vmem:[%s14927_s4 + $0x1e0] sm:$0xff]  ;;  %v6828_v33 = vsel %vm11335_vm2, %v6823_v59, %v13601_v8  ;;  %7685 = vmatpush.bf16.msra.mxu2 %v11128_v62  ;;  %v11151_v8 = vld [vmem:[%s14927_s4 + $0x198] sm:$0xff]  ;;  %v6867_v59 = vshll.u32 %v13652_v6, 16  ;;  %v7151_v17 = vunpack.c.l.b16 %v6838_v11  ;;  %v6122_v62 = vrot.slane %v13404_v32, 5 }
 0x37a   : > { %7274 = vmatmul.bf16.gmra.mxu1 %v7178_v13  ;;  %v13645_v43 = vadd.f32 %v6291_v12, %v5914_v1  ;;  %v7579_v13 = vunpack.c.l.b16 %v7475_v23  ;;  %v8869_v1 = vrot.slane %v13635_v63, 5  ;;  %8682 = vmatpush.bf16.msra.mxu0 %v11160_v57 }
 0x37c   : > { %15001 = vst [vmem:[#allocation19_spill] sm:$0xff] %v13645_v43  ;;  %v13657_v12 = vpop.f32.mrf.mxu0  ;;  %5955 = vmatmul.bf16.gmra.mxu2 %v11065_v61  ;;  %v13661_v43 = vrot.slane %v6843_v0, 5  ;;  %v13665_v27 = vpack.c.b16 %v7579_v13, %v7578_v50  ;;  %v8870_v56 = vsel %vm11636_vm5, %v8868_v60, %v8869_v1  ;;  %v11152_v0 = vld [vmem:[%s14927_s4 + $0x1a0] sm:$0xff]  ;;  %v6864_v60 = vshrl.u32 %v13652_v6, 16 }
 0x37d   : > { %15002 = vst [vmem:[#allocation21_spill] sm:$0xff] %v13657_v12  ;;  %6333 = vmatmul.bf16.gmra.mxu3 %v6193_v4  ;;  %v8993_v61 = vunpack.c.l.b16 %v8867_v18  ;;  %v8994_v4 = vunpack.c.l.b16 %v8870_v56  ;;  %v15004_v13 = vrot.slane %v13397_v46, 5  ;;  %v8875_v12 = vrot.slane %v8873_v16, 4  ;;  %v11127_v18 = vld [vmem:[%s14927_s4 + $0x158] sm:$0xff]  ;;  %v13701_v56 = vld [vmem:[#allocation2 + $0x34] sm:$0xf] }
 0x37e   : > { %15003 = vst [vmem:[#allocation20_spill] sm:$0xff] %v13665_v27  ;;  %8000 = vmatpush.bf16.msra.mxu3 %v11152_v0  ;;  %v6859_v0 = vshll.u32 %v13620_v36, 16  ;;  %v7150_v6 = vunpack.c.l.b16 %v6828_v33  ;;  %v13719_v36 = vld [vmem:[#allocation2 + $0x50] sm:$0x1]  ;;  %v13721_v57 = vrot.slane %v6864_v60, 4  ;;  %7686 = vmatpush.bf16.msra.mxu2 %v11127_v18 }
 0x37f   : > { %v13670_v23 = vpop.f32.mrf.mxu1  ;;  %6647 = vmatmul.bf16.gmra.mxu0 %v11105_v2  ;;  %v5916_v50 = vpop.f32.mrf.mxu2  ;;  %v6121_v1 = vrot.slane %v15004_v13, 4  ;;  %v6856_v2 = vor.u32 %v13640_v47, %v13631_v7  ;;  %v13703_v47 = vpack.c.b16 %v8994_v4, %v8993_v61  ;;  %v10866_v13 = vrot.slane %v8801_v19, 9  ;;  %v7382_v19 = vld [vmem:[#allocation2 + $0x48] sm:$0xe] }
 0x380   : > { %v5917_v37 = vadd.f32 %v5916_v50, %v13402_v24  ;;  %v6294_v26 = vpop.f32.mrf.mxu3  ;;  %v5985_v24 = vld [vmem:[#allocation2 + $0xa8] sm:$0xe]  ;;  %v11159_v50 = vld [vmem:[%s14927_s4 + $0x1d8] sm:$0xff]  ;;  %v6846_v61 = vor.u32 %v13661_v43, %v13659_v53  ;;  %v8877_v4 = vsel %vm11636_vm5, %v8875_v12, %v8876_v48  ;;  %v6869_v53 = vrot.slane %v6867_v59, 5  ;;  %v11158_v59 = vld [vmem:[%s14927_s4 + $0x1d0] sm:$0xff] }
 0x381   : > { %15005 = vst [vmem:[#allocation22_spill] sm:$0xff] %v13703_v47  ;;  %v8874_v11 = vsel %vm11636_vm5, %v10866_v13, %v8873_v16  ;;  %v6123_v32 = vsel %vm11636_vm5, %v6121_v1, %v6122_v62  ;;  %v10431_v33 = vrot.slane %v5985_v24, 9  ;;  %v13726_v47 = vrot.slane %v6856_v2, 4  ;;  %8683 = vmatpush.bf16.msra.mxu0 %v11159_v50  ;;  %v13729_v1 = vld [vmem:[#allocation2 + $0x38] sm:$0x1] }
 0x382   : > { %v13711_v27 = vadd.f32 %v6294_v26, %v5917_v37  ;;  %v8802_v37 = vld [vmem:[#allocation2 + $0x30] sm:$0xe]  ;;  %v8880_v26 = vrot.slane %v13701_v56, 5  ;;  %8001 = vmatpush.bf16.msra.mxu3 %v11151_v8  ;;  %v7478_v43 = vrot.slane %v13691_v35, 5  ;;  %v7179_v16 = vpack.c.b16 %v7151_v17, %v7150_v6 }
 0x383   : > { %v10646_v60 = vrot.slane %v7382_v19, 9  ;;  %v8995_v13 = vunpack.c.l.b16 %v8874_v11  ;;  %v8996_v62 = vunpack.c.l.b16 %v8877_v4  ;;  %v15008_v12 = vrot.slane %v13397_v46, 5  ;;  %v11126_v17 = vld [vmem:[%s14927_s4 + $0x150] sm:$0xff] }
 0x384   : > { %15006 = vst [vmem:[#allocation3_spill] sm:$0xff] %v13711_v27  ;;  %v13733_v48 = vpop.f32.mrf.mxu0  ;;  %v6177_v18 = vunpack.c.l.b16 %v6123_v32  ;;  %v11150_v8 = vld [vmem:[%s14927_s4 + $0x190] sm:$0xff]  ;;  %v7481_v24 = vrot.slane %v13719_v36, 5  ;;  %v10867_v50 = vrot.slane %v8802_v37, 9  ;;  %v7480_v19 = vrot.slane %v7478_v43, 4  ;;  %7687 = vmatpush.bf16.msra.mxu2 %v11126_v17 }
 0x385   : > { %15007 = vst [vmem:[#allocation23_spill] sm:$0xff] %v13733_v48  ;;  %v6120_v2 = vsel %vm11636_vm5, %v10431_v33, %v15008_v12  ;;  %v7479_v6 = vsel %vm11636_vm5, %v10646_v60, %v7478_v43  ;;  %v13751_v11 = vpack.c.b16 %v8996_v62, %v8995_v13  ;;  %v8882_v32 = vrot.slane %v8880_v26, 4  ;;  %8684 = vmatpush.bf16.msra.mxu0 %v11158_v59  ;;  %v11125_v43 = vld [vmem:[%s14927_s4 + $0x148] sm:$0xff] }
 0x386   : > { %v6847_v12 = vrot.slane %v6846_v61, 4  ;;  %v6861_v48 = vrot.slane %v6859_v0, 5  ;;  %8002 = vmatpush.bf16.msra.mxu3 %v11150_v8  ;;  %v8883_v21 = vrot.slane %v13729_v1, 5  ;;  %v6176_v51 = vunpack.c.l.b16 %v6120_v2  ;;  %v13768_v13 = vld [vmem:[#allocation2 + $0xc] sm:$0xe] }
 0x387   : > { %v13731_v27 = vpop.f32.mrf.mxu1  ;;  %v5918_v46 = vpop.f32.mrf.mxu2  ;;  %15009 = vst [vmem:[#allocation24_spill] sm:$0xff] %v13751_v11  ;;  %v6870_v37 = vor.u32 %v6869_v53, %v13721_v57  ;;  %v7482_v0 = vsel %vm11636_vm5, %v7480_v19, %v7481_v24  ;;  %v8881_v61 = vsel %vm11636_vm5, %v10867_v50, %v8880_v26  ;;  %v7580_v57 = vunpack.c.l.b16 %v7479_v6  ;;  %v11157_v8 = vld [vmem:[%s14927_s4 + $0x1c8] sm:$0xff]  ;;  %v11106_v24 = vld [vmem:[#allocation2 + $0xb4] sm:$0xff] }
 0x388   : > { %v5919_v4 = vadd.f32 %v5918_v46, %v13426_v54  ;;  %v6296_v33 = vpop.f32.mrf.mxu3  ;;  %v11149_v54 = vld [vmem:[%s14927_s4 + $0x188] sm:$0xff]  ;;  %v7581_v53 = vunpack.c.l.b16 %v7482_v0  ;;  %v8884_v62 = vsel %vm11636_vm5, %v8882_v32, %v8883_v21  ;;  %v6194_v2 = vpack.c.b16 %v6177_v18, %v6176_v51  ;;  %v13780_v46 = vld [vmem:[#allocation2 + $0x40] sm:$0xf]  ;;  %7688 = vmatpush.bf16.msra.mxu2 %v11125_v43  ;;  %v8118_v18 = vld [vmem:[#allocation2 + $0x18] sm:$0xf] }
 0x389   : > { %v6862_v17 = vsel %vm11335_vm2, %v13726_v47, %v6861_v48  ;;  %v7443_v26 = vrot.slane %v13468_v25, 5  ;;  %v8998_v59 = vunpack.c.l.b16 %v8884_v62  ;;  %v6126_v50 = vrot.slane %v13443_v28, 5  ;;  %8685 = vmatpush.bf16.msra.mxu0 %v11157_v8  ;;  %v5986_v8 = vld [vmem:[#allocation2 + $0xb4] sm:$0xe] }
 0x38a   : > { %7279 = vmatmul.bf16.gmra.mxu1 %v7179_v16  ;;  %v13766_v60 = vadd.f32 %v6296_v33, %v5919_v4  ;;  %v11066_v16 = vld [vmem:[#allocation2 + $0xa8] sm:$0xff]  ;;  %8003 = vmatpush.bf16.msra.mxu3 %v11149_v54  ;;  %v13782_v21 = vpack.c.b16 %v7581_v53, %v7580_v57  ;;  %v8997_v51 = vunpack.c.l.b16 %v8881_v61  ;;  %v6852_v47 = vsel %vm11335_vm2, %v6847_v12, %v13631_v7  ;;  %v11124_v4 = vld [vmem:[%s14927_s4 + $0x140] sm:$0xff] }
 0x38b   : > { %v13787_v48 = vrot.slane %v6870_v37, 4  ;;  %v10641_v25 = vrot.slane %v13768_v13, 9  ;;  %v13792_v28 = vunpack.c.l.b16 %v6862_v17  ;;  %v6873_v19 = vshll.u32 %v13691_v35, 16  ;;  %v11148_v7 = vld [vmem:[%s14927_s4 + $0x180] sm:$0xff] }
 0x38c   : > { %15010 = vst [vmem:[#allocation25_spill] sm:$0xff] %v13766_v60  ;;  %5960 = vmatmul.bf16.gmra.mxu2 %v11066_v16  ;;  %v6877_v32 = vshrl.u32 %v13691_v35, 16  ;;  %v13802_v33 = vld [vmem:[#allocation2 + $0x44] sm:$0x1]  ;;  %v13804_v12 = vpack.c.b16 %v8998_v59, %v8997_v51  ;;  %v7445_v54 = vrot.slane %v7443_v26, 4  ;;  %v7446_v0 = vrot.slane %v13485_v15, 5  ;;  %v13812_v16 = vpop.f32.mrf.mxu0 }
 0x38d   : > { %6338 = vmatmul.bf16.gmra.mxu3 %v6194_v2  ;;  %v11156_v35 = vld [vmem:[%s14927_s4 + $0x1c0] sm:$0xff]  ;;  %v8887_v61 = vrot.slane %v13780_v46, 5  ;;  %15012 = vst [vmem:[#allocation27_spill] sm:$0xff] %v13812_v16  ;;  %v6128_v53 = vrot.slane %v6126_v50, 4  ;;  %v8167_v62 = vshrl.u32 %v8118_v18, 16  ;;  %v8170_v2 = vshll.u32 %v8118_v18, 16  ;;  %7689 = vmatpush.bf16.msra.mxu2 %v11124_v4 }
 0x38e   : > { %15011 = vst [vmem:[#allocation26_spill] sm:$0xff] %v13804_v12  ;;  %8004 = vmatpush.bf16.msra.mxu3 %v11148_v7  ;;  %v7152_v17 = vunpack.c.l.b16 %v6852_v47  ;;  %v8803_v59 = vld [vmem:[#allocation2 + $0x3c] sm:$0xe]  ;;  %v8890_v51 = vrot.slane %v13802_v33, 5  ;;  %v6129_v15 = vrot.slane %v13445_v40, 5  ;;  %v13819_v12 = vrot.slane %v6873_v19, 5  ;;  %8686 = vmatpush.bf16.msra.mxu0 %v11156_v35 }
 0x38f   : > { %v13790_v6 = vpop.f32.mrf.mxu1  ;;  %6652 = vmatmul.bf16.gmra.mxu0 %v11106_v24  ;;  %v5921_v37 = vpop.f32.mrf.mxu2  ;;  %v8889_v24 = vrot.slane %v8887_v61, 4  ;;  %v6879_v11 = vrot.slane %v6877_v32, 4  ;;  %v8176_v7 = vshll.u32 %v13617_v30, 16  ;;  %v8180_v47 = vshrl.u32 %v13617_v30, 16  ;;  %v13824_v18 = vld [vmem:[#allocation2 + $0x58] sm:$0xf] }
 0x390   : > { %v5922_v13 = vadd.f32 %v5921_v37, %v13449_v45  ;;  %v6299_v57 = vpop.f32.mrf.mxu3  ;;  %v7180_v45 = vpack.c.b16 %v13792_v28, %v7152_v17  ;;  %v7383_v4 = vld [vmem:[#allocation2 + $0x54] sm:$0xe]  ;;  %v6130_v40 = vsel %vm11636_vm5, %v6128_v53, %v6129_v15  ;;  %v13830_v19 = vld [vmem:[#allocation2 + $0x5c] sm:$0x1]  ;;  %v7485_v32 = vrot.slane %v13824_v18, 5 }
 0x391   : > { %v8891_v37 = vsel %vm11636_vm5, %v8889_v24, %v8890_v51  ;;  %v10868_v28 = vrot.slane %v8803_v59, 9  ;;  %v7444_v35 = vsel %vm11636_vm5, %v10641_v25, %v7443_v26  ;;  %v7447_v30 = vsel %vm11636_vm5, %v7445_v54, %v7446_v0 }
 0x392   : > { %v13816_v43 = vadd.f32 %v6299_v57, %v5922_v13  ;;  %v10432_v13 = vrot.slane %v5986_v8, 9  ;;  %v8169_v57 = vrot.slane %v8167_v62, 4  ;;  %v8172_v17 = vrot.slane %v8170_v2, 5 }
 0x393   : > { %v6880_v53 = vor.u32 %v6879_v11, %v13819_v12  ;;  %v10647_v24 = vrot.slane %v7383_v4, 9  ;;  %v8888_v51 = vsel %vm11636_vm5, %v10868_v28, %v8887_v61  ;;  %v6179_v15 = vunpack.c.l.b16 %v6130_v40  ;;  %v11168_v61 = vld [vmem:[%s14927_s4 + $0x220] sm:$0xff] }
 0x394   : > { %15013 = vst [vmem:[#allocation28_spill] sm:$0xff] %v13816_v43  ;;  %v6127_v8 = vsel %vm11636_vm5, %v10432_v13, %v6126_v50  ;;  %v7487_v43 = vrot.slane %v7485_v32, 4  ;;  %v7488_v26 = vrot.slane %v13830_v19, 5  ;;  %v9000_v25 = vunpack.c.l.b16 %v8891_v37  ;;  %v13853_v37 = vpop.f32.mrf.mxu0  ;;  %9108 = vmatpush.bf16.msra.mxu1 %v11168_v61 }
 0x395   : > { %v8178_v62 = vrot.slane %v8176_v7, 5  ;;  %v8182_v2 = vrot.slane %v8180_v47, 4  ;;  %v7486_v50 = vsel %vm11636_vm5, %v10647_v24, %v7485_v32  ;;  %v6178_v11 = vunpack.c.l.b16 %v6127_v8  ;;  %15014 = vst [vmem:[#allocation29_spill] sm:$0xff] %v13853_v37  ;;  %v11067_v7 = vld [vmem:[#allocation2 + $0xb4] sm:$0xff] }
 0x396   : > { %v8173_v4 = vor.u32 %v8172_v17, %v8169_v57  ;;  %v7489_v13 = vsel %vm11636_vm5, %v7487_v43, %v7488_v26  ;;  %v8999_v40 = vunpack.c.l.b16 %v8888_v51  ;;  %v6881_v47 = vrot.slane %v6880_v53, 4  ;;  %v11107_v43 = vld [vmem:[#allocation2 + $0xc0] sm:$0xff] }
 0x397   : > { %v13837_v16 = vpop.f32.mrf.mxu1  ;;  %v5923_v59 = vpop.f32.mrf.mxu2  ;;  %v7571_v32 = vunpack.c.l.b16 %v7447_v30  ;;  %v6195_v28 = vpack.c.b16 %v6179_v15, %v6178_v11  ;;  %v7582_v57 = vunpack.c.l.b16 %v7486_v50  ;;  %v7583_v17 = vunpack.c.l.b16 %v7489_v13  ;;  %v6713_v11 = vld [vmem:[#allocation2 + $0x54] sm:$0xf] }
 0x398   : > { %v5924_v54 = vadd.f32 %v5923_v59, %v13470_v52  ;;  %v6301_v0 = vpop.f32.mrf.mxu3  ;;  %v13861_v8 = vpack.c.b16 %v9000_v25, %v8999_v40  ;;  %v15017_v24 = vshll.u32 %v13719_v36, 16  ;;  %v7570_v59 = vunpack.c.l.b16 %v7444_v35  ;;  %v13876_v35 = vld [vmem:[#allocation2 + $0x50] sm:$0x1] }
 0x399   : > { %v8183_v26 = vor.u32 %v8182_v2, %v8178_v62  ;;  %v8186_v36 = vshll.u32 %v13635_v63, 16  ;;  %v8200_v63 = vshll.u32 %v13648_v5, 16 }
 0x39a   : > { %7284 = vmatmul.bf16.gmra.mxu1 %v7180_v45  ;;  %v13855_v52 = vadd.f32 %v6301_v0, %v5924_v54  ;;  %v6876_v45 = vsel %vm11335_vm2, %v13787_v48, %v13819_v12  ;;  %15016 = vst [vmem:[#allocation31_spill] sm:$0xff] %v13861_v8  ;;  %v6885_v51 = vrot.slane %v15017_v24, 5  ;;  %v8121_v54 = vld [vmem:[#allocation2 + $0x24] sm:$0xf]  ;;  %v13865_v0 = vld [vmem:[#allocation2 + $0x4c] sm:$0xf]  ;;  %v13867_v12 = vpack.c.b16 %v7583_v17, %v7582_v57 }
 0x39b   : > { %v8174_v48 = vrot.slane %v8173_v4, 4  ;;  %v7154_v15 = vunpack.c.l.b16 %v6876_v45  ;;  %v13873_v25 = vpack.c.b16 %v7571_v32, %v7570_v59  ;;  %v8191_v4 = vshrl.u32 %v8121_v54, 16  ;;  %v8804_v57 = vld [vmem:[#allocation2 + $0x48] sm:$0xe] }
 0x39c   : > { %15015 = vst [vmem:[#allocation30_spill] sm:$0xff] %v13855_v52  ;;  %5965 = vmatmul.bf16.gmra.mxu2 %v11067_v7  ;;  %v6886_v53 = vsel %vm11335_vm2, %v6881_v47, %v6885_v51  ;;  %v8194_v61 = vshll.u32 %v8121_v54, 16  ;;  %v8894_v13 = vrot.slane %v13865_v0, 5  ;;  %v8184_v47 = vrot.slane %v8183_v26, 4  ;;  %v13893_v8 = vpop.f32.mrf.mxu0  ;;  %v13897_v52 = vld [vmem:[#allocation2 + $0x68] sm:$0x1] }
 0x39d   : > { %6343 = vmatmul.bf16.gmra.mxu3 %v6195_v28  ;;  %15018 = vst [vmem:[#allocation32_spill] sm:$0xff] %v13867_v12  ;;  %v8179_v50 = vsel %vm11335_vm2, %v8174_v48, %v8178_v62  ;;  %v6897_v45 = vshll.u32 %v13824_v18, 16  ;;  %v6901_v32 = vshrl.u32 %v13824_v18, 16  ;;  %v8204_v28 = vshrl.u32 %v13648_v5, 16  ;;  %v13889_v48 = vld [vmem:[#allocation2 + $0x64] sm:$0xf] }
 0x39e   : > { %v8896_v17 = vrot.slane %v8894_v13, 4  ;;  %v8897_v62 = vrot.slane %v13876_v35, 5  ;;  %v7155_v24 = vunpack.c.l.b16 %v6886_v53  ;;  %v8188_v51 = vrot.slane %v8186_v36, 5  ;;  %15020 = vst [vmem:[#allocation34_spill] sm:$0xff] %v13893_v8 }
 0x39f   : > { %v13869_v30 = vpop.f32.mrf.mxu1  ;;  %6657 = vmatmul.bf16.gmra.mxu0 %v11107_v43  ;;  %v5926_v2 = vpop.f32.mrf.mxu2  ;;  %v6888_v59 = vshrl.u32 %v6713_v11, 16  ;;  %v6891_v54 = vshll.u32 %v6713_v11, 16  ;;  %v8193_v26 = vrot.slane %v8191_v4, 4  ;;  %v13895_v5 = vrot.slane %v6897_v45, 5 }
 0x3a0   : > { %v5927_v40 = vadd.f32 %v5926_v2, %v13483_v34  ;;  %v6304_v7 = vpop.f32.mrf.mxu3  ;;  %v8567_v34 = vunpack.c.l.b16 %v8179_v50  ;;  %v7384_v2 = vld [vmem:[#allocation2 + $0x60] sm:$0xe]  ;;  %v8898_v18 = vsel %vm11636_vm5, %v8896_v17, %v8897_v62  ;;  %v6903_v37 = vrot.slane %v6901_v32, 4 }
 0x3a1   : > { %v7492_v53 = vrot.slane %v13889_v48, 5  ;;  %v10869_v36 = vrot.slane %v8804_v57, 9  ;;  %v8189_v50 = vsel %vm11335_vm2, %v8184_v47, %v8188_v51  ;;  %v8196_v11 = vrot.slane %v8194_v61, 5 }
 0x3a2   : > { %v13887_v43 = vadd.f32 %v6304_v7, %v5927_v40  ;;  %v13902_v4 = vrot.slane %v8200_v63, 5  ;;  %v8206_v40 = vrot.slane %v8204_v28, 4  ;;  %v7181_v17 = vpack.c.b16 %v7155_v24, %v7154_v15 }
 0x3a3   : > { %v6890_v62 = vrot.slane %v6888_v59, 4  ;;  %v10648_v8 = vrot.slane %v7384_v2, 9  ;;  %v8895_v45 = vsel %vm11636_vm5, %v10869_v36, %v8894_v13  ;;  %v7494_v60 = vrot.slane %v7492_v53, 4 }
 0x3a4   : > { %15019 = vst [vmem:[#allocation33_spill] sm:$0xff] %v13887_v43  ;;  %v6893_v43 = vrot.slane %v6891_v54, 5  ;;  %v7495_v57 = vrot.slane %v13897_v52, 5  ;;  %v9002_v12 = vunpack.c.l.b16 %v8898_v18  ;;  %v8568_v63 = vunpack.c.l.b16 %v8189_v50  ;;  %v8124_v50 = vld [vmem:[#allocation2 + $0x30] sm:$0xf] }
 0x3a5   : > { %v6904_v28 = vor.u32 %v6903_v37, %v13895_v5  ;;  %v7493_v15 = vsel %vm11636_vm5, %v10648_v8, %v7492_v53  ;;  %v8197_v24 = vor.u32 %v8196_v11, %v8193_v26  ;;  %v8207_v51 = vor.u32 %v8206_v40, %v13902_v4  ;;  %v11132_v37 = vld [vmem:[#allocation2 + $0x18] sm:$0xff] }
 0x3a6   : > { %v7496_v13 = vsel %vm11636_vm5, %v7494_v60, %v7495_v57  ;;  %v9001_v59 = vunpack.c.l.b16 %v8895_v45  ;;  %v6907_v2 = vshll.u32 %v13830_v19, 16  ;;  %v8224_v18 = vshll.u32 %v13701_v56, 16  ;;  %v13924_v40 = vld [vmem:[#allocation2 + $0x58] sm:$0xf]  ;;  %v13929_v45 = vpop.f32.mrf.mxu0 }
 0x3a7   : > { %v13904_v7 = vpop.f32.mrf.mxu1  ;;  %v5928_v32 = vpop.f32.mrf.mxu2  ;;  %v6894_v36 = vor.u32 %v6893_v43, %v6890_v62  ;;  %v7584_v8 = vunpack.c.l.b16 %v7493_v15  ;;  %v7585_v53 = vunpack.c.l.b16 %v7496_v13  ;;  %v8599_v11 = vpack.c.b16 %v8568_v63, %v8567_v34  ;;  %15023 = vst [vmem:[#allocation37_spill] sm:$0xff] %v13929_v45 }
 0x3a8   : > { %v5929_v47 = vadd.f32 %v5928_v32, %v13500_v14  ;;  %v6306_v61 = vpop.f32.mrf.mxu3  ;;  %v8210_v14 = vshll.u32 %v13663_v55, 16  ;;  %v13921_v26 = vpack.c.b16 %v9002_v12, %v9001_v59  ;;  %v6905_v60 = vrot.slane %v6904_v28, 4 }
 0x3a9   : > { %v8228_v19 = vshrl.u32 %v13701_v56, 16  ;;  %v13927_v55 = vpack.c.b16 %v7585_v53, %v7584_v8  ;;  %v6909_v62 = vrot.slane %v6907_v2, 5  ;;  %v8198_v12 = vrot.slane %v8197_v24, 4 }
 0x3aa   : > { %7289 = vmatmul.bf16.gmra.mxu1 %v7181_v17  ;;  %v13916_v54 = vadd.f32 %v6306_v61, %v5929_v47  ;;  %15022 = vst [vmem:[#allocation36_spill] sm:$0xff] %v13921_v26  ;;  %v8208_v17 = vrot.slane %v8207_v51, 4  ;;  %v8212_v32 = vrot.slane %v8210_v14, 5  ;;  %v8215_v57 = vshrl.u32 %v8124_v50, 16  ;;  %v6716_v61 = vld [vmem:[#allocation2 + $0x60] sm:$0xf] }
 0x3ab   : > { %v6895_v47 = vrot.slane %v6894_v36, 4  ;;  %v8218_v63 = vshll.u32 %v8124_v50, 16  ;;  %v13935_v28 = vrot.slane %v8224_v18, 5  ;;  %v8901_v56 = vrot.slane %v13924_v40, 5 }
 0x3ac   : > { %15021 = vst [vmem:[#allocation35_spill] sm:$0xff] %v13916_v54  ;;  %7690 = vmatmul.bf16.vlgmr.msra.gmra.mxu2 %v13873_v25  ;;  %v13933_v25 = vld [vmem:[#allocation2 + $0x5c] sm:$0x1]  ;;  %v6910_v13 = vsel %vm11335_vm2, %v6905_v60, %v6909_v62  ;;  %v6921_v24 = vshll.u32 %v13889_v48, 16  ;;  %v6925_v59 = vshrl.u32 %v13889_v48, 16  ;;  %v8213_v2 = vsel %vm11335_vm2, %v8208_v17, %v8212_v32 }
 0x3ad   : > { %8005 = vmatmul.bf16.vlgmr.msra.gmra.mxu3 %v11132_v37  ;;  %v8230_v14 = vrot.slane %v8228_v19, 4  ;;  %v8805_v37 = vld [vmem:[#allocation2 + $0x54] sm:$0xe]  ;;  %v8903_v36 = vrot.slane %v8901_v56, 4  ;;  %v8904_v18 = vrot.slane %v13933_v25, 5  ;;  %v6912_v8 = vshrl.u32 %v6716_v61, 16 }
 0x3ae   : > { %v6915_v53 = vshll.u32 %v6716_v61, 16  ;;  %v8203_v48 = vsel %vm11335_vm2, %v8198_v12, %v13902_v4  ;;  %v8217_v60 = vrot.slane %v8215_v57, 4  ;;  %v13954_v17 = vld [vmem:[#allocation2 + $0x70] sm:$0xf]  ;;  %v7385_v19 = vld [vmem:[#allocation2 + $0x6c] sm:$0xe] }
 0x3af   : > { %v13931_v43 = vpop.f32.mrf.mxu1  ;;  %8687 = vmatmul.bf16.vlgmr.msra.gmra.mxu0 %v8599_v11  ;;  %v5931_v34 = vpop.f32.mrf.mxu2  ;;  %v7157_v11 = vunpack.c.l.b16 %v6910_v13  ;;  %v8905_v62 = vsel %vm11636_vm5, %v8903_v36, %v8904_v18  ;;  %v13958_v32 = vrot.slane %v6921_v24, 5  ;;  %v8220_v13 = vrot.slane %v8218_v63, 5 }
 0x3b0   : > { %v5932_v15 = vadd.f32 %v5931_v34, %v13521_v22  ;;  %v6309_v51 = vpop.f32.mrf.mxu3  ;;  %v6900_v22 = vsel %vm11335_vm2, %v6895_v47, %v13895_v5  ;;  %v6927_v34 = vrot.slane %v6925_v59, 4  ;;  %v7499_v5 = vrot.slane %v13954_v17, 5 }
 0x3b1   : > { %v10870_v47 = vrot.slane %v8805_v37, 9  ;;  %v7156_v61 = vunpack.c.l.b16 %v6900_v22  ;;  %v8231_v4 = vor.u32 %v8230_v14, %v13935_v28  ;;  %v6914_v57 = vrot.slane %v6912_v8, 4  ;;  %v13969_v37 = vpop.f32.mrf.mxu0 }
 0x3b2   : > { %v13946_v50 = vadd.f32 %v6309_v51, %v5932_v15  ;;  %v13960_v15 = vld [vmem:[#allocation2 + $0x74] sm:$0x1]  ;;  %v8570_v51 = vunpack.c.l.b16 %v8213_v2  ;;  %v6917_v26 = vrot.slane %v6915_v53, 5  ;;  %v7501_v18 = vrot.slane %v7499_v5, 4  ;;  %15025 = vst [vmem:[#allocation39_spill] sm:$0xff] %v13969_v37  ;;  %v11167_v53 = vld [vmem:[%s14927_s4 + $0x218] sm:$0xff] }
 0x3b3   : > { %v8902_v24 = vsel %vm11636_vm5, %v10870_v47, %v8901_v56  ;;  %v7182_v36 = vpack.c.b16 %v7157_v11, %v7156_v61  ;;  %v7502_v45 = vrot.slane %v13960_v15, 5  ;;  %v9004_v54 = vunpack.c.l.b16 %v8905_v62  ;;  %9109 = vmatpush.bf16.msra.mxu1 %v11167_v53  ;;  %v11134_v37 = vld [vmem:[#allocation2 + $0x30] sm:$0xff] }
 0x3b4   : > { %15024 = vst [vmem:[#allocation38_spill] sm:$0xff] %v13946_v50  ;;  %v10649_v50 = vrot.slane %v7385_v19, 9  ;;  %v6928_v14 = vor.u32 %v6927_v34, %v13958_v32  ;;  %v8234_v22 = vshll.u32 %v13729_v1, 16  ;;  %v8221_v56 = vor.u32 %v8220_v13, %v8217_v60  ;;  %v11133_v1 = vld [vmem:[#allocation2 + $0x24] sm:$0xff] }
 0x3b5   : > { %v7503_v11 = vsel %vm11636_vm5, %v7501_v18, %v7502_v45  ;;  %v9003_v19 = vunpack.c.l.b16 %v8902_v24  ;;  %v6931_v34 = vshll.u32 %v13897_v52, 16  ;;  %v8232_v47 = vrot.slane %v8231_v4, 4  ;;  %v8127_v45 = vld [vmem:[#allocation2 + $0x3c] sm:$0xf] }
 0x3b6   : > { %v7500_v8 = vsel %vm11636_vm5, %v10649_v50, %v7499_v5  ;;  %v6918_v61 = vor.u32 %v6917_v26, %v6914_v57  ;;  %v7587_v5 = vunpack.c.l.b16 %v7503_v11  ;;  %v8222_v24 = vrot.slane %v8221_v56, 4  ;;  %v14003_v11 = vld [vmem:[#allocation2 + $0x64] sm:$0xf] }
 0x3b7   : > { %v13964_v12 = vpop.f32.mrf.mxu1  ;;  %v5933_v59 = vpop.f32.mrf.mxu2  ;;  %v7586_v50 = vunpack.c.l.b16 %v7500_v8  ;;  %v13984_v60 = vpack.c.b16 %v9004_v54, %v9003_v19  ;;  %v8252_v52 = vshrl.u32 %v13780_v46, 16  ;;  %v6933_v57 = vrot.slane %v6931_v34, 5 }
 0x3b8   : > { %v5934_v63 = vadd.f32 %v5933_v59, %v13539_v44  ;;  %v6311_v2 = vpop.f32.mrf.mxu3  ;;  %v8569_v44 = vunpack.c.l.b16 %v8203_v48  ;;  %v8236_v59 = vrot.slane %v8234_v22, 5  ;;  %v8248_v48 = vshll.u32 %v13780_v46, 16 }
 0x3b9   : > { %15027 = vst [vmem:[#allocation41_spill] sm:$0xff] %v13984_v60  ;;  %v13989_v4 = vpack.c.b16 %v7587_v5, %v7586_v50  ;;  %v8227_v18 = vsel %vm11335_vm2, %v8222_v24, %v13935_v28  ;;  %v6945_v56 = vshll.u32 %v13954_v17, 16  ;;  %v6949_v53 = vshrl.u32 %v13954_v17, 16  ;;  %v14009_v34 = vpop.f32.mrf.mxu0 }
 0x3ba   : > { %7294 = vmatmul.bf16.gmra.mxu1 %v7182_v36  ;;  %v13981_v62 = vadd.f32 %v6311_v2, %v5934_v63  ;;  %v8600_v13 = vpack.c.b16 %v8570_v51, %v8569_v44  ;;  %v6929_v36 = vrot.slane %v6928_v14, 4  ;;  %v8237_v54 = vsel %vm11335_vm2, %v8232_v47, %v8236_v59  ;;  %v6719_v63 = vld [vmem:[#allocation2 + $0x6c] sm:$0xf]  ;;  %15028 = vst [vmem:[#allocation42_spill] sm:$0xff] %v14009_v34 }
 0x3bb   : > { %v6919_v51 = vrot.slane %v6918_v61, 4  ;;  %v8239_v2 = vshrl.u32 %v8127_v45, 16  ;;  %v8242_v14 = vshll.u32 %v8127_v45, 16  ;;  %v14005_v19 = vunpack.c.l.b16 %v8237_v54 }
 0x3bc   : > { %15026 = vst [vmem:[#allocation40_spill] sm:$0xff] %v13981_v62  ;;  %7695 = vmatmul.bf16.gmra.mxu2 %v13558_v42  ;;  %v6934_v8 = vsel %vm11335_vm2, %v6929_v36, %v6933_v57  ;;  %v14007_v44 = vrot.slane %v8248_v48, 5  ;;  %v8254_v28 = vrot.slane %v8252_v52, 4  ;;  %v6939_v61 = vshll.u32 %v6719_v63, 16  ;;  %v7386_v36 = vld [vmem:[#allocation2 + $0x78] sm:$0xe] }
 0x3bd   : > { %8010 = vmatmul.bf16.gmra.mxu3 %v11133_v1  ;;  %v6936_v1 = vshrl.u32 %v6719_v63, 16  ;;  %v7159_v50 = vunpack.c.l.b16 %v6934_v8  ;;  %v8571_v5 = vunpack.c.l.b16 %v8227_v18  ;;  %v8241_v17 = vrot.slane %v8239_v2, 4  ;;  %v14021_v52 = vld [vmem:[#allocation2 + $0x80] sm:$0x1] }
 0x3be   : > { %v8908_v59 = vrot.slane %v14003_v11, 5  ;;  %v14019_v45 = vrot.slane %v6945_v56, 5  ;;  %v6951_v24 = vrot.slane %v6949_v53, 4  ;;  %v8244_v48 = vrot.slane %v8242_v14, 5 }
 0x3bf   : > { %v13991_v26 = vpop.f32.mrf.mxu1  ;;  %8692 = vmatmul.bf16.gmra.mxu0 %v8600_v13  ;;  %v5936_v42 = vpop.f32.mrf.mxu2  ;;  %v14016_v13 = vld [vmem:[#allocation2 + $0x7c] sm:$0xf]  ;;  %v6938_v63 = vrot.slane %v6936_v1, 4  ;;  %v6941_v2 = vrot.slane %v6939_v61, 5  ;;  %v10650_v8 = vrot.slane %v7386_v36, 9  ;;  %v7509_v60 = vrot.slane %v14021_v52, 5 }
 0x3c0   : > { %v5937_v46 = vadd.f32 %v5936_v42, %v13562_v10  ;;  %v6314_v22 = vpop.f32.mrf.mxu3  ;;  %v6924_v10 = vsel %vm11335_vm2, %v6919_v51, %v13958_v32  ;;  %v7506_v57 = vrot.slane %v14016_v13, 5  ;;  %v8601_v32 = vpack.c.b16 %v14005_v19, %v8571_v5  ;;  %v8130_v51 = vld [vmem:[#allocation2 + $0x48] sm:$0xf] }
 0x3c1   : > { %v7158_v54 = vunpack.c.l.b16 %v6924_v10  ;;  %v8258_v42 = vshll.u32 %v13802_v33, 16  ;;  %v8806_v10 = vld [vmem:[#allocation2 + $0x60] sm:$0xe]  ;;  %v6952_v5 = vor.u32 %v6951_v24, %v14019_v45  ;;  %v8245_v34 = vor.u32 %v8244_v48, %v8241_v17 }
 0x3c2   : > { %v14011_v47 = vadd.f32 %v6314_v22, %v5937_v46  ;;  %v8255_v46 = vor.u32 %v8254_v28, %v14007_v44  ;;  %v14029_v22 = vld [vmem:[#allocation2 + $0x68] sm:$0x1]  ;;  %v7508_v53 = vrot.slane %v7506_v57, 4  ;;  %v7507_v1 = vsel %vm11636_vm5, %v10650_v8, %v7506_v57  ;;  %v14044_v8 = vpop.f32.mrf.mxu0 }
 0x3c3   : > { %v7183_v14 = vpack.c.b16 %v7159_v50, %v7158_v54  ;;  %v8263_v28 = vshrl.u32 %v8130_v51, 16  ;;  %v8266_v61 = vshll.u32 %v8130_v51, 16  ;;  %v8911_v36 = vrot.slane %v14029_v22, 5 }
 0x3c4   : > { %15029 = vst [vmem:[#allocation43_spill] sm:$0xff] %v14011_v47  ;;  %v8910_v47 = vrot.slane %v8908_v59, 4  ;;  %v7510_v50 = vsel %vm11636_vm5, %v7508_v53, %v7509_v60  ;;  %v6955_v62 = vshll.u32 %v13960_v15, 16  ;;  %v6942_v24 = vor.u32 %v6941_v2, %v6938_v63 }
 0x3c5   : > { %v7588_v17 = vunpack.c.l.b16 %v7507_v1  ;;  %v7589_v48 = vunpack.c.l.b16 %v7510_v50  ;;  %v6953_v60 = vrot.slane %v6952_v5, 4  ;;  %v8246_v51 = vrot.slane %v8245_v34, 4 }
 0x3c6   : > { %v8912_v57 = vsel %vm11636_vm5, %v8910_v47, %v8911_v36  ;;  %v8265_v15 = vrot.slane %v8263_v28, 4  ;;  %v6957_v2 = vrot.slane %v6955_v62, 5  ;;  %v8272_v34 = vshll.u32 %v13865_v0, 16 }
 0x3c7   : > { %v14026_v18 = vpop.f32.mrf.mxu1  ;;  %v5938_v56 = vpop.f32.mrf.mxu2  ;;  %v8251_v47 = vsel %vm11335_vm2, %v8246_v51, %v14007_v44  ;;  %v9006_v5 = vunpack.c.l.b16 %v8912_v57  ;;  %v6969_v44 = vshll.u32 %v14016_v13, 16  ;;  %v6973_v28 = vshrl.u32 %v14016_v13, 16  ;;  %v14076_v57 = vld [vmem:[#allocation2 + $0x88] sm:$0xf] }
 0x3c8   : > { %v5939_v19 = vadd.f32 %v5938_v56, %v13584_v49  ;;  %v6316_v33 = vpop.f32.mrf.mxu3  ;;  %v8256_v49 = vrot.slane %v8255_v46, 4  ;;  %v10871_v56 = vrot.slane %v8806_v10, 9  ;;  %v8268_v46 = vrot.slane %v8266_v61, 5  ;;  %v14065_v61 = vld [vmem:[#allocation2 + $0x70] sm:$0xf] }
 0x3c9   : > { %v14049_v10 = vpack.c.b16 %v7589_v48, %v7588_v17  ;;  %v6958_v62 = vsel %vm11335_vm2, %v6953_v60, %v6957_v2  ;;  %v8573_v48 = vunpack.c.l.b16 %v8251_v47  ;;  %v8915_v13 = vrot.slane %v14065_v61, 5 }
 0x3ca   : > { %7299 = vmatmul.bf16.gmra.mxu1 %v7183_v14  ;;  %v14039_v54 = vadd.f32 %v6316_v33, %v5939_v19  ;;  %v8260_v14 = vrot.slane %v8258_v42, 5  ;;  %v8909_v53 = vsel %vm11636_vm5, %v10871_v56, %v8908_v59  ;;  %v6943_v59 = vrot.slane %v6942_v24, 4  ;;  %v14088_v47 = vpop.f32.mrf.mxu0 }
 0x3cb   : > { %v8276_v19 = vshrl.u32 %v13865_v0, 16  ;;  %v9005_v33 = vunpack.c.l.b16 %v8909_v53  ;;  %v8269_v36 = vor.u32 %v8268_v46, %v8265_v15  ;;  %v7161_v17 = vunpack.c.l.b16 %v6958_v62  ;;  %v7387_v15 = vld [vmem:[#allocation2 + $0x84] sm:$0xe] }
 0x3cc   : > { %7700 = vmatmul.bf16.gmra.mxu2 %v13582_v31  ;;  %v8261_v31 = vsel %vm11335_vm2, %v8256_v49, %v8260_v14  ;;  %v14079_v60 = vrot.slane %v6969_v44, 5  ;;  %v6975_v51 = vrot.slane %v6973_v28, 4  ;;  %v14081_v14 = vrot.slane %v8272_v34, 5  ;;  %v14093_v34 = vld [vmem:[#allocation2 + $0x74] sm:$0x1] }
 0x3cd   : > { %8015 = vmatmul.bf16.gmra.mxu3 %v11134_v37  ;;  %v6722_v37 = vld [vmem:[#allocation2 + $0x78] sm:$0xf]  ;;  %v14067_v50 = vunpack.c.l.b16 %v8261_v31  ;;  %v14069_v49 = vpack.c.b16 %v9006_v5, %v9005_v33  ;;  %v8278_v53 = vrot.slane %v8276_v19, 4  ;;  %v6663_v46 = vadd.f32 %v13416_v3, %v13437_v9  ;;  %v14091_v5 = vld [vmem:[#allocation2 + $0x8c] sm:$0x1] }
 0x3ce   : > { %v6960_v56 = vshrl.u32 %v6722_v37, 16  ;;  %v6963_v24 = vshll.u32 %v6722_v37, 16  ;;  %v7513_v31 = vrot.slane %v14076_v57, 5  ;;  %v8133_v9 = vld [vmem:[#allocation2 + $0x54] sm:$0xf]  ;;  %v8917_v62 = vrot.slane %v8915_v13, 4 }
 0x3cf   : > { %v14051_v63 = vpop.f32.mrf.mxu1  ;;  %8697 = vmatmul.bf16.gmra.mxu0 %v8601_v32  ;;  %v5941_v42 = vpop.f32.mrf.mxu2  ;;  %15030 = vst [vmem:[#allocation44_spill] sm:$0xff] %v14069_v49 }
 0x3d0   : > { %v5942_v1 = vadd.f32 %v5941_v42, %v13625_v29  ;;  %v6319_v32 = vpop.f32.mrf.mxu3  ;;  %v6948_v29 = vsel %vm11335_vm2, %v6943_v59, %v14019_v45  ;;  %v14085_v45 = vrot.slane %v8269_v36, 4  ;;  %v8602_v59 = vpack.c.b16 %v14067_v50, %v8573_v48 }
 0x3d1   : > { %v7160_v2 = vunpack.c.l.b16 %v6948_v29  ;;  %v6962_v37 = vrot.slane %v6960_v56, 4  ;;  %v6965_v33 = vrot.slane %v6963_v24, 5  ;;  %v6976_v36 = vor.u32 %v6975_v51, %v14079_v60  ;;  %v11166_v56 = vld [vmem:[%s14927_s4 + $0x210] sm:$0xff] }
 0x3d2   : > { %v14071_v0 = vadd.f32 %v6319_v32, %v5942_v1  ;;  %v10651_v32 = vrot.slane %v7387_v15, 9  ;;  %v8279_v50 = vor.u32 %v8278_v53, %v14081_v14  ;;  %v8282_v29 = vshll.u32 %v13876_v35, 16  ;;  %v8807_v15 = vld [vmem:[#allocation2 + $0x6c] sm:$0xe]  ;;  %9110 = vmatpush.bf16.msra.mxu1 %v11166_v56 }
 0x3d3   : > { %v7184_v1 = vpack.c.b16 %v7161_v17, %v7160_v2  ;;  %v7515_v17 = vrot.slane %v7513_v31, 4  ;;  %v7516_v48 = vrot.slane %v14091_v5, 5  ;;  %v6979_v51 = vshll.u32 %v14021_v52, 16  ;;  %v11135_v2 = vld [vmem:[#allocation2 + $0x3c] sm:$0xff] }
 0x3d4   : > { %v7514_v24 = vsel %vm11636_vm5, %v10651_v32, %v7513_v31  ;;  %v8287_v53 = vshrl.u32 %v8133_v9, 16  ;;  %v8290_v35 = vshll.u32 %v8133_v9, 16  ;;  %v6977_v32 = vrot.slane %v6976_v36, 4 }
 0x3d5   : > { %v10872_v49 = vrot.slane %v8807_v15, 9  ;;  %v6664_v52 = vadd.f32 %v13439_v20, %v13459_v58  ;;  %v8300_v9 = vshrl.u32 %v13924_v40, 16 }
 0x3d7   : > { %v7265_v42 = vpop.f32.mrf.mxu1  ;;  %v5943_v3 = vpop.f32.mrf.mxu2  ;;  %v8916_v36 = vsel %vm11636_vm5, %v10872_v49, %v8915_v13  ;;  %v6997_v49 = vshrl.u32 %v14076_v57, 16  ;;  %v8302_v13 = vrot.slane %v8300_v9, 4 }
 0x3d8   : > { %v14095_v19 = vadd.f32 %v7265_v42, %v6663_v46  ;;  %v5944_v44 = vadd.f32 %v5943_v3, %v13670_v23  ;;  %v6321_v28 = vpop.f32.mrf.mxu3  ;;  %v8918_v23 = vrot.slane %v14093_v34, 5  ;;  %v6966_v42 = vor.u32 %v6965_v33, %v6962_v37 }
 0x3d9   : > { %v7517_v3 = vsel %vm11636_vm5, %v7515_v17, %v7516_v48  ;;  %v8280_v37 = vrot.slane %v8279_v50, 4  ;;  %v8284_v33 = vrot.slane %v8282_v29, 5  ;;  %v6981_v17 = vrot.slane %v6979_v51, 5  ;;  %v6725_v50 = vld [vmem:[#allocation2 + $0x84] sm:$0xf] }
 0x3da   : > { %7304 = vmatmul.bf16.gmra.mxu1 %v7184_v1  ;;  %v14108_v46 = vadd.f32 %v6321_v28, %v5944_v44  ;;  %v8296_v1 = vshll.u32 %v13924_v40, 16  ;;  %v8919_v31 = vsel %vm11636_vm5, %v8917_v62, %v8918_v23  ;;  %v7590_v44 = vunpack.c.l.b16 %v7514_v24  ;;  %v14122_v62 = vld [vmem:[#allocation2 + $0x7c] sm:$0xf]  ;;  %v14132_v40 = vpop.f32.mrf.mxu0 }
 0x3db   : > { %v7591_v28 = vunpack.c.l.b16 %v7517_v3  ;;  %v14120_v48 = vrot.slane %v8287_v53, 4  ;;  %v6967_v58 = vrot.slane %v6966_v42, 4  ;;  %v8292_v29 = vrot.slane %v8290_v35, 5  ;;  %15032 = vst [vmem:[#allocation46_spill] sm:$0xff] %v14132_v40  ;;  %v8808_v42 = vld [vmem:[#allocation2 + $0x78] sm:$0xe] }
 0x3dc   : > { %15031 = vst [vmem:[#allocation45_spill] sm:$0xff] %v14108_v46  ;;  %7705 = vmatmul.bf16.gmra.mxu2 %v13623_v38  ;;  %v14130_v15 = vrot.slane %v8296_v1, 5  ;;  %v6982_v51 = vsel %vm11335_vm2, %v6977_v32, %v6981_v17  ;;  %v6993_v53 = vshll.u32 %v14076_v57, 16  ;;  %v9008_v3 = vunpack.c.l.b16 %v8919_v31 }
 0x3dd   : > { %8020 = vmatmul.bf16.gmra.mxu3 %v11135_v2  ;;  %v14124_v38 = vpack.c.b16 %v7591_v28, %v7590_v44  ;;  %v9007_v2 = vunpack.c.l.b16 %v8916_v36  ;;  %v8922_v35 = vrot.slane %v14122_v62, 5  ;;  %v6984_v44 = vshrl.u32 %v6725_v50, 16 }
 0x3de   : > { %v6987_v28 = vshll.u32 %v6725_v50, 16  ;;  %v7163_v32 = vunpack.c.l.b16 %v6982_v51  ;;  %v8275_v57 = vsel %vm11335_vm2, %v14085_v45, %v14081_v14  ;;  %v8285_v31 = vsel %vm11335_vm2, %v8280_v37, %v8284_v33 }
 0x3df   : > { %v7267_v56 = vpop.f32.mrf.mxu1  ;;  %8702 = vmatmul.bf16.gmra.mxu0 %v8602_v59  ;;  %v5946_v20 = vpop.f32.mrf.mxu2  ;;  %v14153_v9 = vpack.c.b16 %v9008_v3, %v9007_v2  ;;  %v6999_v17 = vrot.slane %v6997_v49, 4  ;;  %v10873_v36 = vrot.slane %v8808_v42, 9  ;;  %v6986_v14 = vrot.slane %v6984_v44, 4 }
 0x3e0   : > { %v14128_v24 = vadd.f32 %v7267_v56, %v6664_v52  ;;  %v5947_v59 = vadd.f32 %v5946_v20, %v13731_v27  ;;  %v6324_v23 = vpop.f32.mrf.mxu3  ;;  %v6972_v27 = vsel %vm11335_vm2, %v6967_v58, %v14079_v60  ;;  %v14145_v52 = vld [vmem:[#allocation2 + $0x80] sm:$0x1]  ;;  %v14155_v56 = vrot.slane %v6993_v53, 5  ;;  %v15035_v20 = vld [vmem:[#allocation5_spill] sm:$0xff] }
 0x3e1   : > { %15034 = vst [vmem:[#allocation48_spill] sm:$0xff] %v14153_v9  ;;  %v8924_v60 = vrot.slane %v8922_v35, 4  ;;  %v15036_v58 = vld [vmem:[#allocation4_spill] sm:$0xff]  ;;  %v8925_v51 = vrot.slane %v14145_v52, 5  ;;  %v6989_v45 = vrot.slane %v6987_v28, 5  ;;  %v8293_v37 = vor.u32 %v8292_v29, %v14120_v48 }
 0x3e2   : > { %v14140_v1 = vadd.f32 %v6324_v23, %v5947_v59  ;;  %v6665_v50 = vadd.f32 %v15036_v58, %v15035_v20  ;;  %v7162_v59 = vunpack.c.l.b16 %v6972_v27  ;;  %v8303_v23 = vor.u32 %v8302_v13, %v14130_v15  ;;  %v8136_v29 = vld [vmem:[#allocation2 + $0x60] sm:$0xf] }
 0x3e3   : > { %v8923_v33 = vsel %vm11636_vm5, %v10873_v36, %v8922_v35  ;;  %v8306_v3 = vshll.u32 %v13933_v25, 16  ;;  %v8926_v42 = vsel %vm11636_vm5, %v8924_v60, %v8925_v51  ;;  %v8575_v20 = vunpack.c.l.b16 %v8275_v57  ;;  %v14174_v36 = vpop.f32.mrf.mxu0  ;;  %v11136_v57 = vld [vmem:[#allocation2 + $0x48] sm:$0xff] }
 0x3e4   : > { %15033 = vst [vmem:[#allocation47_spill] sm:$0xff] %v14140_v1  ;;  %v7185_v49 = vpack.c.b16 %v7163_v32, %v7162_v59  ;;  %v8576_v44 = vunpack.c.l.b16 %v8285_v31  ;;  %v7000_v28 = vor.u32 %v6999_v17, %v14155_v56  ;;  %v14171_v48 = vrot.slane %v8303_v23, 4  ;;  %v14183_v17 = vld [vmem:[#allocation2 + $0x94] sm:$0xf]  ;;  %v15040_v23 = vld [vmem:[#allocation20_spill] sm:$0xff] }
 0x3e5   : > { %v8320_v35 = vshll.u32 %v14003_v11, 16  ;;  %v9010_v32 = vunpack.c.l.b16 %v8926_v42  ;;  %15037 = vst [vmem:[#allocation5_spill] sm:$0xff] %v14174_v36  ;;  %v6990_v60 = vor.u32 %v6989_v45, %v6986_v14  ;;  %v14179_v58 = vrot.slane %v8293_v37, 4  ;;  %v14193_v45 = vld [vmem:[#allocation2 + $0x88] sm:$0xf]  ;;  %v15045_v36 = vld [vmem:[#allocation8_spill] sm:$0xff] }
 0x3e6   : > { %v14181_v31 = vrot.slane %v8306_v3, 5  ;;  %v8603_v51 = vpack.c.b16 %v8576_v44, %v8575_v20  ;;  %v8311_v14 = vshrl.u32 %v8136_v29, 16  ;;  %v8809_v37 = vld [vmem:[#allocation2 + $0x84] sm:$0xe]  ;;  %v8314_v42 = vshll.u32 %v8136_v29, 16 }
 0x3e7   : > { %v7270_v1 = vpop.f32.mrf.mxu1  ;;  %v5948_v2 = vpop.f32.mrf.mxu2 }
 0x3e8   : > { %v14164_v53 = vadd.f32 %v7270_v1, %v6665_v50  ;;  %v5949_v13 = vadd.f32 %v5948_v2, %v13790_v6  ;;  %v6326_v27 = vpop.f32.mrf.mxu3  ;;  %v9009_v1 = vunpack.c.l.b16 %v8923_v33  ;;  %v7003_v6 = vshll.u32 %v14091_v5, 16  ;;  %v15042_v2 = vld [vmem:[#allocation6_spill] sm:$0xff] }
 0x3e9   : > { %v8324_v50 = vshrl.u32 %v14003_v11, 16  ;;  %v7001_v33 = vrot.slane %v7000_v28, 4  ;;  %v8299_v5 = vsel %vm11335_vm2, %v14179_v58, %v14130_v15  ;;  %v8309_v11 = vsel %vm11335_vm2, %v14171_v48, %v14181_v31  ;;  %v6728_v28 = vld [vmem:[#allocation2 + $0x90] sm:$0xf] }
 0x3ea   : > { %7309 = vmatmul.bf16.gmra.mxu1 %v7185_v49  ;;  %v14176_v25 = vadd.f32 %v6326_v27, %v5949_v13  ;;  %v14186_v59 = vpack.c.b16 %v9010_v32, %v9009_v1  ;;  %v15041_v49 = vld [vmem:[#allocation7_spill] sm:$0xff]  ;;  %v14201_v13 = vrot.slane %v8320_v35, 5  ;;  %v14203_v27 = vld [vmem:[#allocation2 + $0x8c] sm:$0x1]  ;;  %v6991_v15 = vrot.slane %v6990_v60, 4 }
 0x3eb   : > { %v6666_v3 = vadd.f32 %v15042_v2, %v15041_v49  ;;  %v7005_v44 = vrot.slane %v7003_v6, 5  ;;  %v7017_v1 = vshll.u32 %v14183_v17, 16  ;;  %v7021_v32 = vshrl.u32 %v14183_v17, 16  ;;  %v8139_v2 = vld [vmem:[#allocation2 + $0x6c] sm:$0xf] }
 0x3ec   : > { %15038 = vst [vmem:[#allocation4_spill] sm:$0xff] %v14176_v25  ;;  %7710 = vmatmul.bf16.gmra.mxu2 %v15040_v23  ;;  %v8326_v23 = vrot.slane %v8324_v50, 4  ;;  %v10874_v49 = vrot.slane %v8809_v37, 9  ;;  %v8929_v48 = vrot.slane %v14193_v45, 5  ;;  %v6996_v60 = vsel %vm11335_vm2, %v6991_v15, %v14155_v56 }
 0x3ed   : > { %15039 = vst [vmem:[#allocation49_spill] sm:$0xff] %v14186_v59  ;;  %8025 = vmatmul.bf16.gmra.mxu3 %v11136_v57  ;;  %v7006_v6 = vsel %vm11335_vm2, %v7001_v33, %v7005_v44  ;;  %v8313_v31 = vrot.slane %v8311_v14, 4  ;;  %v8932_v37 = vrot.slane %v14203_v27, 5  ;;  %v7023_v59 = vrot.slane %v7021_v32, 4  ;;  %v14226_v14 = vpop.f32.mrf.mxu0 }
 0x3ee   : > { %v8931_v50 = vrot.slane %v8929_v48, 4  ;;  %v7165_v9 = vunpack.c.l.b16 %v7006_v6  ;;  %v8316_v56 = vrot.slane %v8314_v42, 5  ;;  %v8327_v15 = vor.u32 %v8326_v23, %v14201_v13  ;;  %15044 = vst [vmem:[#allocation7_spill] sm:$0xff] %v14226_v14 }
 0x3ef   : > { %v7272_v20 = vpop.f32.mrf.mxu1  ;;  %8707 = vmatmul.bf16.gmra.mxu0 %v8603_v51  ;;  %v5951_v57 = vpop.f32.mrf.mxu2  ;;  %v7008_v51 = vshrl.u32 %v6728_v28, 16  ;;  %v8335_v44 = vshrl.u32 %v8139_v2, 16  ;;  %v8344_v32 = vshll.u32 %v14065_v61, 16  ;;  %v8348_v42 = vshrl.u32 %v14065_v61, 16 }
 0x3f0   : > { %v14207_v58 = vadd.f32 %v7272_v20, %v6666_v3  ;;  %v5952_v29 = vadd.f32 %v5951_v57, %v13837_v16  ;;  %v6329_v35 = vpop.f32.mrf.mxu3  ;;  %v8930_v3 = vsel %vm11636_vm5, %v10874_v49, %v8929_v48  ;;  %v7011_v16 = vshll.u32 %v6728_v28, 16 }
 0x3f1   : > { %v14221_v57 = vrot.slane %v7017_v1, 5  ;;  %v8933_v33 = vsel %vm11636_vm5, %v8931_v50, %v8932_v37  ;;  %v8338_v49 = vshll.u32 %v8139_v2, 16  ;;  %v9011_v48 = vunpack.c.l.b16 %v8930_v3  ;;  %v14230_v1 = vld [vmem:[#allocation2 + $0x98] sm:$0x1] }
 0x3f2   : > { %v14219_v20 = vadd.f32 %v6329_v35, %v5952_v29  ;;  %v9012_v25 = vunpack.c.l.b16 %v8933_v33  ;;  %v15046_v29 = vld [vmem:[#allocation9_spill] sm:$0xff]  ;;  %v7164_v28 = vunpack.c.l.b16 %v6996_v60  ;;  %v7010_v6 = vrot.slane %v7008_v51, 4 }
 0x3f3   : > { %v6667_v35 = vadd.f32 %v15046_v29, %v15045_v36  ;;  %v7024_v50 = vor.u32 %v7023_v59, %v14221_v57  ;;  %v8317_v14 = vor.u32 %v8316_v56, %v8313_v31  ;;  %v8330_v36 = vshll.u32 %v14029_v22, 16 }
 0x3f4   : > { %15043 = vst [vmem:[#allocation20_spill] sm:$0xff] %v14219_v20  ;;  %v7013_v20 = vrot.slane %v7011_v16, 5  ;;  %v14235_v37 = vpack.c.b16 %v9012_v25, %v9011_v48  ;;  %v7186_v3 = vpack.c.b16 %v7165_v9, %v7164_v28  ;;  %v8577_v46 = vunpack.c.l.b16 %v8299_v5  ;;  %v11165_v25 = vld [vmem:[%s14927_s4 + $0x208] sm:$0xff]  ;;  %v11137_v16 = vld [vmem:[#allocation2 + $0x54] sm:$0xff]  ;;  %v15048_v28 = vld [vmem:[#allocation12_spill] sm:$0xff] }
 0x3f5   : > { %v8578_v40 = vunpack.c.l.b16 %v8309_v11  ;;  %v7027_v61 = vshll.u32 %v14230_v1, 16  ;;  %v14242_v51 = vrot.slane %v8327_v15, 4  ;;  %v14247_v59 = vrot.slane %v8335_v44, 4  ;;  %9111 = vmatpush.bf16.msra.mxu1 %v11165_v25  ;;  %v8810_v25 = vld [vmem:[#allocation2 + $0x90] sm:$0xe] }
 0x3f6   : > { %15047 = vst [vmem:[#allocation6_spill] sm:$0xff] %v14235_v37  ;;  %v14249_v9 = vrot.slane %v8338_v49, 5  ;;  %v14251_v31 = vrot.slane %v8344_v32, 5  ;;  %v7025_v5 = vrot.slane %v7024_v50, 4  ;;  %v8350_v11 = vrot.slane %v8348_v42, 4  ;;  %v15049_v32 = vld [vmem:[#allocation11_spill] sm:$0xff] }
 0x3f7   : > { %v7275_v23 = vpop.f32.mrf.mxu1  ;;  %v5953_v33 = vpop.f32.mrf.mxu2  ;;  %v14255_v56 = vrot.slane %v8317_v14, 4  ;;  %v14257_v15 = vrot.slane %v8330_v36, 5  ;;  %v8604_v48 = vpack.c.b16 %v8578_v40, %v8577_v46  ;;  %v7029_v44 = vrot.slane %v7027_v61, 5  ;;  %v7388_v49 = vld [vmem:[#allocation2 + $0x90] sm:$0xe] }
 0x3f8   : > { %v14237_v2 = vadd.f32 %v7275_v23, %v6667_v35  ;;  %v5954_v60 = vadd.f32 %v5953_v33, %v13869_v30  ;;  %v6331_v29 = vpop.f32.mrf.mxu3  ;;  %v7014_v30 = vor.u32 %v7013_v20, %v7010_v6  ;;  %v14260_v35 = vld [vmem:[#allocation2 + $0xa0] sm:$0xf]  ;;  %v6668_v23 = vadd.f32 %v15049_v32, %v15048_v28  ;;  %v14274_v46 = vpop.f32.mrf.mxu0  ;;  %v6731_v50 = vld [vmem:[#allocation2 + $0x9c] sm:$0xf] }
 0x3f9   : > { %v8333_v14 = vsel %vm11335_vm2, %v14242_v51, %v14257_v15  ;;  %v7030_v6 = vsel %vm11335_vm2, %v7025_v5, %v7029_v44  ;;  %v8351_v33 = vor.u32 %v8350_v11, %v14251_v31  ;;  %v10652_v61 = vrot.slane %v7388_v49, 9 }
 0x3fa   : > { %7314 = vmatmul.bf16.gmra.mxu1 %v7186_v3  ;;  %v14253_v22 = vadd.f32 %v6331_v29, %v5954_v60  ;;  %v7015_v42 = vrot.slane %v7014_v30, 4  ;;  %v8341_v3 = vor.u32 %v14249_v9, %v14247_v59  ;;  %v7041_v29 = vshll.u32 %v14260_v35, 16  ;;  %v14290_v9 = vld [vmem:[#allocation2 + $0x98] sm:$0x1] }
 0x3fb   : > { %v7520_v51 = vrot.slane %v14183_v17, 5  ;;  %v7045_v59 = vshrl.u32 %v14260_v35, 16  ;;  %v7032_v15 = vshrl.u32 %v6731_v50, 16  ;;  %v7523_v17 = vrot.slane %v14230_v1, 5  ;;  %v15051_v1 = vld [vmem:[#allocation14_spill] sm:$0xff] }
 0x3fc   : > { %7715 = vmatmul.bf16.gmra.mxu2 %v13782_v21  ;;  %v14272_v21 = vld [vmem:[#allocation2 + $0x94] sm:$0xf]  ;;  %v7020_v5 = vsel %vm11335_vm2, %v7015_v42, %v14221_v57  ;;  %v7035_v28 = vshll.u32 %v6731_v50, 16  ;;  %v10875_v32 = vrot.slane %v8810_v25, 9  ;;  %v8939_v42 = vrot.slane %v14290_v9, 5 }
 0x3fd   : > { %8030 = vmatmul.bf16.gmra.mxu3 %v11137_v16  ;;  %v8936_v11 = vrot.slane %v14272_v21, 5  ;;  %v7522_v44 = vrot.slane %v7520_v51, 4  ;;  %v8354_v50 = vshll.u32 %v14093_v34, 16 }
 0x3ff   : > { %v7277_v40 = vpop.f32.mrf.mxu1  ;;  %8712 = vmatmul.bf16.gmra.mxu0 %v8604_v48  ;;  %v5956_v60 = vpop.f32.mrf.mxu2  ;;  %v7521_v48 = vsel %vm11636_vm5, %v10652_v61, %v7520_v51  ;;  %v7524_v57 = vsel %vm11636_vm5, %v7522_v44, %v7523_v17  ;;  %v8937_v61 = vsel %vm11636_vm5, %v10875_v32, %v8936_v11  ;;  %v15052_v51 = vld [vmem:[#allocation10_spill] sm:$0xff]  ;;  %v7037_v44 = vrot.slane %v7035_v28, 5  ;;  %v8142_v28 = vld [vmem:[#allocation2 + $0x78] sm:$0xf] }
 0x400   : > { %v14281_v36 = vadd.f32 %v7277_v40, %v6668_v23  ;;  %v5957_v30 = vadd.f32 %v5956_v60, %v13904_v7  ;;  %v6334_v16 = vpop.f32.mrf.mxu3  ;;  %v7167_v7 = vunpack.c.l.b16 %v7030_v6  ;;  %v14298_v23 = vrot.slane %v7041_v29, 5 }
 0x401   : > { %v8938_v40 = vrot.slane %v8936_v11, 4  ;;  %v7047_v60 = vrot.slane %v7045_v59, 4  ;;  %v7592_v20 = vunpack.c.l.b16 %v7521_v48  ;;  %v7593_v37 = vunpack.c.l.b16 %v7524_v57  ;;  %v14314_v11 = vld [vmem:[#allocation2 + $0xa4] sm:$0x1] }
 0x402   : > { %v14296_v49 = vadd.f32 %v6334_v16, %v5957_v30  ;;  %v6669_v30 = vadd.f32 %v15052_v51, %v15051_v1  ;;  %v7166_v6 = vunpack.c.l.b16 %v7020_v5  ;;  %v7034_v16 = vrot.slane %v7032_v15, 4  ;;  %v14316_v5 = vpop.f32.mrf.mxu0 }
 0x403   : > { %v8940_v29 = vsel %vm11636_vm5, %v8938_v40, %v8939_v42  ;;  %v8352_v17 = vrot.slane %v8351_v33, 4  ;;  %v9013_v32 = vunpack.c.l.b16 %v8937_v61  ;;  %v8580_v40 = vunpack.c.l.b16 %v8333_v14 }
 0x404   : > { %15050 = vst [vmem:[#allocation8_spill] sm:$0xff] %v14296_v49  ;;  %v14310_v49 = vpack.c.b16 %v7593_v37, %v7592_v20  ;;  %v7187_v48 = vpack.c.b16 %v7167_v7, %v7166_v6  ;;  %v9014_v1 = vunpack.c.l.b16 %v8940_v29  ;;  %v7048_v15 = vor.u32 %v7047_v60, %v14298_v23  ;;  %v14332_v6 = vld [vmem:[#allocation2 + $0xac] sm:$0xf] }
 0x405   : > { %v8356_v37 = vrot.slane %v8354_v50, 5  ;;  %v15055_v7 = vsel %vm11335_vm2, %v14255_v56, %v14201_v13  ;;  %v7051_v61 = vshll.u32 %v14314_v11, 16  ;;  %v7038_v14 = vor.u32 %v7037_v44, %v7034_v16  ;;  %v15057_v56 = vld [vmem:[#allocation13_spill] sm:$0xff] }
 0x406   : > { %v14320_v20 = vpack.c.b16 %v9014_v1, %v9013_v32  ;;  %v8579_v42 = vunpack.c.l.b16 %v15055_v7  ;;  %v8359_v50 = vshrl.u32 %v8142_v28, 16  ;;  %v8362_v29 = vshll.u32 %v8142_v28, 16  ;;  %v15058_v1 = vld [vmem:[#allocation15_spill] sm:$0xff] }
 0x407   : > { %v7280_v25 = vpop.f32.mrf.mxu1  ;;  %v5958_v57 = vpop.f32.mrf.mxu2  ;;  %v8357_v60 = vsel %vm11335_vm2, %v8352_v17, %v8356_v37  ;;  %v8368_v32 = vshll.u32 %v14122_v62, 16  ;;  %v8372_v13 = vshrl.u32 %v14122_v62, 16  ;;  %v7053_v17 = vrot.slane %v7051_v61, 5 }
 0x408   : > { %v14312_v59 = vadd.f32 %v7280_v25, %v6669_v30  ;;  %v5959_v34 = vadd.f32 %v5958_v57, %v13931_v43  ;;  %v6336_v51 = vpop.f32.mrf.mxu3  ;;  %15053 = vst [vmem:[#allocation9_spill] sm:$0xff] %v14320_v20  ;;  %v8342_v43 = vrot.slane %v8341_v3, 4  ;;  %v11138_v30 = vld [vmem:[#allocation2 + $0x60] sm:$0xff]  ;;  %v7049_v57 = vrot.slane %v7048_v15, 4 }
 0x409   : > { %v15056_v25 = vld [vmem:[#allocation32_spill] sm:$0xff]  ;;  %v6670_v3 = vadd.f32 %v15058_v1, %v15057_v56  ;;  %v7069_v15 = vshrl.u32 %v14332_v6, 16  ;;  %v7039_v37 = vrot.slane %v7038_v14, 4  ;;  %v8361_v7 = vrot.slane %v8359_v50, 4 }
 0x40a   : > { %7319 = vmatmul.bf16.gmra.mxu1 %v7187_v48  ;;  %v14322_v33 = vadd.f32 %v6336_v51, %v5959_v34  ;;  %v8605_v48 = vpack.c.b16 %v8580_v40, %v8579_v42  ;;  %v8347_v16 = vsel %vm11335_vm2, %v8342_v43, %v14251_v31  ;;  %v14342_v34 = vunpack.c.l.b16 %v8357_v60  ;;  %v6734_v51 = vld [vmem:[#allocation2 + $0xa8] sm:$0xf]  ;;  %v14357_v50 = vpop.f32.mrf.mxu0 }
 0x40b   : > { %v7065_v40 = vshll.u32 %v14332_v6, 16  ;;  %v8364_v42 = vrot.slane %v8362_v29, 5  ;;  %v7054_v61 = vsel %vm11335_vm2, %v7049_v57, %v7053_v17  ;;  %v14351_v43 = vrot.slane %v8368_v32, 5  ;;  %15059 = vst [vmem:[#allocation11_spill] sm:$0xff] %v14357_v50 }
 0x40c   : > { %15054 = vst [vmem:[#allocation12_spill] sm:$0xff] %v14322_v33  ;;  %7720 = vmatmul.bf16.gmra.mxu2 %v15056_v25  ;;  %v8374_v60 = vrot.slane %v8372_v13, 4  ;;  %v7056_v56 = vshrl.u32 %v6734_v51, 16  ;;  %v7059_v1 = vshll.u32 %v6734_v51, 16  ;;  %v7527_v14 = vrot.slane %v14260_v35, 5 }
 0x40d   : > { %8035 = vmatmul.bf16.gmra.mxu3 %v11138_v30  ;;  %v7389_v30 = vld [vmem:[#allocation2 + $0x9c] sm:$0xe]  ;;  %v7169_v32 = vunpack.c.l.b16 %v7054_v61  ;;  %v8581_v13 = vunpack.c.l.b16 %v8347_v16 }
 0x40e   : > { %v10653_v57 = vrot.slane %v7389_v30, 9  ;;  %v7529_v17 = vrot.slane %v7527_v14, 4  ;;  %v8375_v35 = vor.u32 %v8374_v60, %v14351_v43  ;;  %v8378_v60 = vshll.u32 %v14145_v52, 16  ;;  %v8811_v33 = vld [vmem:[#allocation2 + $0x9c] sm:$0xe] }
 0x40f   : > { %v7282_v44 = vpop.f32.mrf.mxu1  ;;  %8717 = vmatmul.bf16.gmra.mxu0 %v8605_v48  ;;  %v5961_v62 = vpop.f32.mrf.mxu2  ;;  %v7044_v48 = vsel %vm11335_vm2, %v7039_v37, %v14298_v23  ;;  %v15061_v23 = vld [vmem:[#allocation18_spill] sm:$0xff]  ;;  %v15062_v37 = vld [vmem:[#allocation17_spill] sm:$0xff] }
 0x410   : > { %v14346_v28 = vadd.f32 %v7282_v44, %v6670_v3  ;;  %v5962_v25 = vadd.f32 %v5961_v62, %v13964_v12  ;;  %v6339_v31 = vpop.f32.mrf.mxu3  ;;  %v14361_v12 = vrot.slane %v7065_v40, 5  ;;  %v7071_v3 = vrot.slane %v7069_v15, 4  ;;  %v14363_v44 = vld [vmem:[#allocation2 + $0xa0] sm:$0xf]  ;;  %v14371_v40 = vld [vmem:[#allocation2 + $0xb0] sm:$0x1] }
 0x411   : > { %v7530_v62 = vrot.slane %v14314_v11, 5  ;;  %v6671_v51 = vadd.f32 %v15062_v37, %v15061_v23  ;;  %v7168_v20 = vunpack.c.l.b16 %v7044_v48  ;;  %v7058_v15 = vrot.slane %v7056_v56, 4 }
 0x412   : > { %v14359_v29 = vadd.f32 %v6339_v31, %v5962_v25  ;;  %v7528_v25 = vsel %vm11636_vm5, %v10653_v57, %v7527_v14  ;;  %v7061_v31 = vrot.slane %v7059_v1, 5  ;;  %v8943_v16 = vrot.slane %v14363_v44, 5 }
 0x413   : > { %v7531_v30 = vsel %vm11636_vm5, %v7529_v17, %v7530_v62  ;;  %v8606_v11 = vpack.c.b16 %v14342_v34, %v8581_v13  ;;  %v7072_v23 = vor.u32 %v7071_v3, %v14361_v12  ;;  %v8365_v48 = vor.u32 %v8364_v42, %v8361_v7  ;;  %v14385_v7 = vld [vmem:[#allocation2 + $0xa4] sm:$0x1] }
 0x414   : > { %15060 = vst [vmem:[#allocation14_spill] sm:$0xff] %v14359_v29  ;;  %v7188_v14 = vpack.c.b16 %v7169_v32, %v7168_v20  ;;  %v8145_v29 = vld [vmem:[#allocation2 + $0x84] sm:$0xf]  ;;  %v7594_v56 = vunpack.c.l.b16 %v7528_v25  ;;  %v7595_v1 = vunpack.c.l.b16 %v7531_v30  ;;  %v7075_v50 = vshll.u32 %v14371_v40, 16 }
 0x415   : > { %v8392_v34 = vshll.u32 %v14193_v45, 16  ;;  %v8396_v3 = vshrl.u32 %v14193_v45, 16  ;;  %v7062_v52 = vor.u32 %v7061_v31, %v7058_v15  ;;  %v8376_v42 = vrot.slane %v8375_v35, 4  ;;  %v11164_v20 = vld [vmem:[%s14927_s4 + $0x200] sm:$0xff]  ;;  %v14394_v45 = vld [vmem:[#allocation2 + $0xb8] sm:$0xf]  ;;  %v14397_v31 = vpop.f32.mrf.mxu0 }
 0x416   : > { %v14390_v32 = vpack.c.b16 %v7595_v1, %v7594_v56  ;;  %v8945_v13 = vrot.slane %v8943_v16, 4  ;;  %v7073_v25 = vrot.slane %v7072_v23, 4  ;;  %v8366_v30 = vrot.slane %v8365_v48, 4  ;;  %9112 = vmatpush.bf16.msra.mxu1 %v11164_v20  ;;  %v15066_v48 = vld [vmem:[#allocation16_spill] sm:$0xff]  ;;  %v6737_v20 = vld [vmem:[#allocation2 + $0xb4] sm:$0xf] }
 0x417   : > { %v7285_v61 = vpop.f32.mrf.mxu1  ;;  %v5963_v57 = vpop.f32.mrf.mxu2  ;;  %v8386_v15 = vshll.u32 %v8145_v29, 16  ;;  %v8946_v35 = vrot.slane %v14385_v7, 5  ;;  %v7077_v56 = vrot.slane %v7075_v50, 5  ;;  %v14400_v1 = vrot.slane %v8392_v34, 5 }
 0x418   : > { %v14379_v37 = vadd.f32 %v7285_v61, %v6671_v51  ;;  %v5964_v17 = vadd.f32 %v5963_v57, %v13991_v26  ;;  %v6341_v62 = vpop.f32.mrf.mxu3  ;;  %v11139_v51 = vld [vmem:[#allocation2 + $0x6c] sm:$0xff]  ;;  %v10876_v61 = vrot.slane %v8811_v33, 9  ;;  %v8380_v57 = vrot.slane %v8378_v60, 5  ;;  %v15065_v33 = vld [vmem:[#allocation19_spill] sm:$0xff] }
 0x419   : > { %v6672_v60 = vadd.f32 %v15066_v48, %v15065_v33  ;;  %v7078_v50 = vsel %vm11335_vm2, %v7073_v25, %v7077_v56  ;;  %v7089_v34 = vshll.u32 %v14394_v45, 16  ;;  %v8388_v33 = vrot.slane %v8386_v15, 5 }
 0x41a   : > { %15063 = vst [vmem:[#allocation10_spill] sm:$0xff] %v14379_v37  ;;  %7324 = vmatmul.bf16.gmra.mxu1 %v7188_v14  ;;  %v14392_v26 = vadd.f32 %v6341_v62, %v5964_v17  ;;  %v8383_v14 = vshrl.u32 %v8145_v29, 16  ;;  %v8398_v17 = vrot.slane %v8396_v3, 4  ;;  %v8944_v23 = vsel %vm11636_vm5, %v10876_v61, %v8943_v16 }
 0x41b   : > { %v7063_v62 = vrot.slane %v7062_v52, 4  ;;  %v8381_v29 = vsel %vm11335_vm2, %v8376_v42, %v8380_v57  ;;  %v8947_v37 = vsel %vm11636_vm5, %v8945_v13, %v8946_v35  ;;  %v7093_v16 = vshrl.u32 %v14394_v45, 16  ;;  %v7390_v42 = vld [vmem:[#allocation2 + $0xa8] sm:$0xe] }
 0x41c   : > { %15064 = vst [vmem:[#allocation32_spill] sm:$0xff] %v14392_v26  ;;  %7725 = vmatmul.bf16.gmra.mxu2 %v13927_v55  ;;  %v9016_v3 = vunpack.c.l.b16 %v8947_v37  ;;  %v9015_v57 = vunpack.c.l.b16 %v8944_v23  ;;  %v7080_v25 = vshrl.u32 %v6737_v20, 16  ;;  %v8399_v35 = vor.u32 %v8398_v17, %v14400_v1 }
 0x41d   : > { %8040 = vmatmul.bf16.gmra.mxu3 %v11139_v51  ;;  %v8385_v51 = vrot.slane %v8383_v14, 4  ;;  %v7171_v56 = vunpack.c.l.b16 %v7078_v50  ;;  %v7083_v26 = vshll.u32 %v6737_v20, 16  ;;  %v7534_v37 = vrot.slane %v14332_v6, 5 }
 0x41e   : > { %v14426_v15 = vrot.slane %v7089_v34, 5  ;;  %v7095_v23 = vrot.slane %v7093_v16, 4  ;;  %v7537_v17 = vrot.slane %v14371_v40, 5  ;;  %v8402_v6 = vshll.u32 %v14203_v27, 16  ;;  %v15071_v16 = vld [vmem:[#allocation21_spill] sm:$0xff] }
 0x41f   : > { %v7287_v55 = vpop.f32.mrf.mxu1  ;;  %8722 = vmatmul.bf16.gmra.mxu0 %v8606_v11  ;;  %v5966_v52 = vpop.f32.mrf.mxu2  ;;  %v7068_v11 = vsel %vm11335_vm2, %v7063_v62, %v14361_v12  ;;  %v8584_v12 = vunpack.c.l.b16 %v8381_v29  ;;  %v7536_v62 = vrot.slane %v7534_v37, 4  ;;  %v8389_v20 = vor.u32 %v8388_v33, %v8385_v51  ;;  %v14443_v33 = vld [vmem:[#allocation2 + $0xbc] sm:$0x1] }
 0x420   : > { %v14414_v61 = vadd.f32 %v7287_v55, %v6672_v60  ;;  %v5967_v48 = vadd.f32 %v5966_v52, %v14026_v18  ;;  %v6344_v13 = vpop.f32.mrf.mxu3  ;;  %v14422_v60 = vpack.c.b16 %v9016_v3, %v9015_v57  ;;  %v10654_v18 = vrot.slane %v7390_v42, 9  ;;  %v14433_v3 = vld [vmem:[#allocation2 + $0xac] sm:$0xf]  ;;  %v15070_v52 = vld [vmem:[#allocation3_spill] sm:$0xff] }
 0x421   : > { %v8371_v55 = vsel %vm11335_vm2, %v8366_v30, %v14351_v43  ;;  %v7170_v50 = vunpack.c.l.b16 %v7068_v11  ;;  %v6673_v42 = vadd.f32 %v15071_v16, %v15070_v52  ;;  %v7082_v57 = vrot.slane %v7080_v25, 4  ;;  %v14441_v30 = vpop.f32.mrf.mxu0  ;;  %v8812_v25 = vld [vmem:[#allocation2 + $0xa8] sm:$0xe] }
 0x422   : > { %15067 = vst [vmem:[#allocation13_spill] sm:$0xff] %v14414_v61  ;;  %v14424_v14 = vadd.f32 %v6344_v13, %v5967_v48  ;;  %v7535_v34 = vsel %vm11636_vm5, %v10654_v18, %v7534_v37  ;;  %v7085_v48 = vrot.slane %v7083_v26, 5  ;;  %v7538_v43 = vsel %vm11636_vm5, %v7536_v62, %v7537_v17  ;;  %v14485_v61 = vld [vmem:[#allocation2 + $0xb8] sm:$0xf] }
 0x423   : > { %15068 = vst [vmem:[#allocation15_spill] sm:$0xff] %v14422_v60  ;;  %v7189_v29 = vpack.c.b16 %v7171_v56, %v7170_v50  ;;  %v8583_v51 = vunpack.c.l.b16 %v8371_v55  ;;  %v7096_v27 = vor.u32 %v7095_v23, %v14426_v15  ;;  %v8400_v13 = vrot.slane %v8399_v35, 4  ;;  %v14452_v55 = vld [vmem:[#allocation2 + $0xb0] sm:$0x1] }
 0x424   : > { %15069 = vst [vmem:[#allocation18_spill] sm:$0xff] %v14424_v14  ;;  %v7596_v18 = vunpack.c.l.b16 %v7535_v34  ;;  %v7597_v52 = vunpack.c.l.b16 %v7538_v43  ;;  %v8950_v26 = vrot.slane %v14433_v3, 5  ;;  %v14450_v16 = vrot.slane %v8389_v20, 4  ;;  %v15081_v14 = vld [vmem:[#allocation28_spill] sm:$0xff] }
 0x425   : > { %15072 = vst [vmem:[#allocation17_spill] sm:$0xff] %v14441_v30  ;;  %v8404_v56 = vrot.slane %v8402_v6, 5  ;;  %v8607_v50 = vpack.c.b16 %v8584_v12, %v8583_v51  ;;  %v7086_v23 = vor.u32 %v7085_v48, %v7082_v57  ;;  %v7099_v35 = vshll.u32 %v14443_v33, 16  ;;  %v14467_v57 = vld [vmem:[#allocation2 + $0xc4] sm:$0xf] }
 0x426   : > { %v14457_v34 = vpack.c.b16 %v7597_v52, %v7596_v18  ;;  %v10877_v6 = vrot.slane %v8812_v25, 9  ;;  %v7097_v12 = vrot.slane %v7096_v27, 4  ;;  %v8416_v48 = vshll.u32 %v14272_v21, 16  ;;  %v15075_v25 = vld [vmem:[#allocation25_spill] sm:$0xff]  ;;  %v15076_v27 = vld [vmem:[#allocation23_spill] sm:$0xff] }
 0x427   : > { %v7290_v40 = vpop.f32.mrf.mxu1  ;;  %v5968_v37 = vpop.f32.mrf.mxu2  ;;  %v8405_v20 = vsel %vm11335_vm2, %v8400_v13, %v8404_v56  ;;  %v8953_v51 = vrot.slane %v14452_v55, 5  ;;  %v8420_v52 = vshrl.u32 %v14272_v21, 16  ;;  %v7101_v56 = vrot.slane %v7099_v35, 5 }
 0x428   : > { %v14446_v11 = vadd.f32 %v7290_v40, %v6673_v42  ;;  %v5969_v62 = vadd.f32 %v5968_v37, %v14051_v63  ;;  %v6346_v17 = vpop.f32.mrf.mxu3  ;;  %v14455_v42 = vld [vmem:[#allocation2 + $0x90] sm:$0xf]  ;;  %v11140_v40 = vld [vmem:[#allocation2 + $0x78] sm:$0xff]  ;;  %v8951_v13 = vsel %vm11636_vm5, %v10877_v6, %v8950_v26  ;;  %v6740_v63 = vld [vmem:[#allocation2 + $0xc0] sm:$0xf]  ;;  %v14481_v37 = vunpack.c.l.b16 %v8405_v20 }
 0x429   : > { %v7113_v18 = vshll.u32 %v14467_v57, 16  ;;  %v7117_v21 = vshrl.u32 %v14467_v57, 16  ;;  %v7102_v35 = vsel %vm11335_vm2, %v7097_v12, %v7101_v56  ;;  %v7104_v60 = vshrl.u32 %v6740_v63, 16 }
 0x42a   : > { %15073 = vst [vmem:[#allocation19_spill] sm:$0xff] %v14446_v11  ;;  %7329 = vmatmul.bf16.gmra.mxu1 %v7189_v29  ;;  %v14459_v43 = vadd.f32 %v6346_v17, %v5969_v62  ;;  %v8952_v29 = vrot.slane %v8950_v26, 4  ;;  %v6674_v62 = vadd.f32 %v15076_v27, %v15075_v25  ;;  %v7087_v17 = vrot.slane %v7086_v23, 4  ;;  %v7391_v26 = vld [vmem:[#allocation2 + $0xb4] sm:$0xe] }
 0x42b   : > { %v10655_v12 = vrot.slane %v7391_v26, 9 }
 0x42c   : > { %15074 = vst [vmem:[#allocation16_spill] sm:$0xff] %v14459_v43  ;;  %7730 = vmatmul.bf16.gmra.mxu2 %v13989_v4  ;;  %v8954_v11 = vsel %vm11636_vm5, %v8952_v29, %v8953_v51  ;;  %v9017_v29 = vunpack.c.l.b16 %v8951_v13  ;;  %v7092_v27 = vsel %vm11335_vm2, %v7087_v17, %v14426_v15  ;;  %v8957_v13 = vrot.slane %v14485_v61, 5 }
 0x42d   : > { %8045 = vmatmul.bf16.gmra.mxu3 %v11140_v40  ;;  %v9018_v6 = vunpack.c.l.b16 %v8954_v11  ;;  %v14491_v40 = vrot.slane %v8416_v48, 5  ;;  %v7541_v11 = vrot.slane %v14394_v45, 5  ;;  %v7119_v43 = vrot.slane %v7117_v21, 4 }
 0x42e   : > { %v7544_v45 = vrot.slane %v14443_v33, 5 }
 0x42f   : > { %v7292_v4 = vpop.f32.mrf.mxu1  ;;  %8727 = vmatmul.bf16.gmra.mxu0 %v8607_v50  ;;  %v7691_v23 = vpop.f32.mrf.mxu2  ;;  %v14502_v48 = vpack.c.b16 %v9018_v6, %v9017_v29  ;;  %v7542_v15 = vsel %vm11636_vm5, %v10655_v12, %v7541_v11  ;;  %v7543_v17 = vrot.slane %v7541_v11, 4  ;;  %v7172_v6 = vunpack.c.l.b16 %v7092_v27  ;;  %v14514_v29 = vld [vmem:[#allocation2 + $0xc8] sm:$0x1] }
 0x430   : > { %v14487_v25 = vadd.f32 %v7292_v4, %v6674_v62  ;;  %v14493_v50 = vpop.f32.mrf.mxu0  ;;  %v7771_v20 = vadd.f32 %v7691_v23, %v14095_v19  ;;  %v8006_v51 = vpop.f32.mrf.mxu3  ;;  %v8813_v62 = vld [vmem:[#allocation2 + $0xb4] sm:$0xe]  ;;  %v7107_v4 = vshll.u32 %v6740_v63, 16  ;;  %v7173_v19 = vunpack.c.l.b16 %v7102_v35 }
 0x431   : > { %15078 = vst [vmem:[#allocation21_spill] sm:$0xff] %v14493_v50  ;;  %v14507_v23 = vrot.slane %v7113_v18, 5  ;;  %v10878_v63 = vrot.slane %v8813_v62, 9  ;;  %v15082_v50 = vld [vmem:[#allocation27_spill] sm:$0xff]  ;;  %v7106_v35 = vrot.slane %v7104_v60, 4  ;;  %v7545_v21 = vsel %vm11636_vm5, %v7543_v17, %v7544_v45 }
 0x432   : > { %15077 = vst [vmem:[#allocation3_spill] sm:$0xff] %v14487_v25  ;;  %v14500_v25 = vld [vmem:[#allocation2 + $0xbc] sm:$0x1]  ;;  %v14505_v56 = vadd.f32 %v8006_v51, %v7771_v20  ;;  %v6675_v26 = vadd.f32 %v15082_v50, %v15081_v14  ;;  %v7109_v18 = vrot.slane %v7107_v4, 5  ;;  %v7598_v62 = vunpack.c.l.b16 %v7542_v15 }
 0x433   : > { %15079 = vst [vmem:[#allocation25_spill] sm:$0xff] %v14502_v48  ;;  %v8959_v48 = vrot.slane %v8957_v13, 4  ;;  %v8960_v20 = vrot.slane %v14500_v25, 5  ;;  %v8958_v51 = vsel %vm11636_vm5, %v10878_v63, %v8957_v13  ;;  %v7120_v33 = vor.u32 %v7119_v43, %v14507_v23 }
 0x434   : > { %15080 = vst [vmem:[#allocation23_spill] sm:$0xff] %v14505_v56  ;;  %v7599_v12 = vunpack.c.l.b16 %v7545_v21  ;;  %v7190_v27 = vpack.c.b16 %v7173_v19, %v7172_v6  ;;  %v7123_v60 = vshll.u32 %v14514_v29, 16  ;;  %v8422_v4 = vrot.slane %v8420_v52, 4 }
 0x435   : > { %v8961_v14 = vsel %vm11636_vm5, %v8959_v48, %v8960_v20  ;;  %v9019_v13 = vunpack.c.l.b16 %v8958_v51  ;;  %v15083_v43 = vsel %vm11335_vm2, %v14450_v16, %v14400_v1  ;;  %v7121_v52 = vrot.slane %v7120_v33, 4  ;;  %v7392_v33 = vld [vmem:[#allocation2 + $0xc0] sm:$0xe] }
 0x436   : > { %v14528_v30 = vpack.c.b16 %v7599_v12, %v7598_v62  ;;  %v9020_v63 = vunpack.c.l.b16 %v8961_v14  ;;  %v8585_v48 = vunpack.c.l.b16 %v15083_v43  ;;  %v15085_v21 = vshll.u32 %v14455_v42, 16  ;;  %v15086_v62 = vld [vmem:[#allocation30_spill] sm:$0xff]  ;;  %v15087_v12 = vld [vmem:[#allocation29_spill] sm:$0xff] }
 0x437   : > { %v7295_v11 = vpop.f32.mrf.mxu1  ;;  %v7693_v56 = vpop.f32.mrf.mxu2  ;;  %v7125_v16 = vrot.slane %v7123_v60, 5  ;;  %v10656_v43 = vrot.slane %v7392_v33, 9 }
 0x438   : > { %v14524_v50 = vadd.f32 %v7295_v11, %v6675_v26  ;;  %v7772_v17 = vadd.f32 %v7693_v56, %v14128_v24  ;;  %v8008_v45 = vpop.f32.mrf.mxu3  ;;  %v14535_v15 = vpop.f32.mrf.mxu0  ;;  %v7110_v26 = vor.u32 %v7109_v18, %v7106_v35  ;;  %v14539_v6 = vpack.c.b16 %v9020_v63, %v9019_v13  ;;  %v11141_v24 = vld [vmem:[#allocation2 + $0x84] sm:$0xff] }
 0x439   : > { %v15084_v56 = vshrl.u32 %v14455_v42, 16  ;;  %v8412_v51 = vrot.slane %v15085_v21, 5  ;;  %v8423_v11 = vor.u32 %v8422_v4, %v14491_v40  ;;  %v8608_v1 = vpack.c.b16 %v14481_v37, %v8585_v48  ;;  %v8814_v4 = vld [vmem:[#allocation2 + $0xc0] sm:$0xe] }
 0x43a   : > { %7334 = vmatmul.bf16.gmra.mxu1 %v7190_v27  ;;  %v14537_v19 = vadd.f32 %v8008_v45, %v7772_v17  ;;  %v6676_v35 = vadd.f32 %v15087_v12, %v15086_v62  ;;  %v8426_v18 = vshll.u32 %v14290_v9, 16  ;;  %v7111_v27 = vrot.slane %v7110_v26, 4  ;;  %v14553_v17 = vld [vmem:[#allocation2 + $0xc4] sm:$0xf] }
 0x43b   : > { %v8409_v20 = vrot.slane %v15084_v56, 4  ;;  %v7126_v42 = vsel %vm11335_vm2, %v7121_v52, %v7125_v16  ;;  %v8424_v45 = vrot.slane %v8423_v11, 4  ;;  %v7548_v48 = vrot.slane %v14467_v57, 5 }
 0x43c   : > { %7735 = vmatmul.bf16.gmra.mxu2 %v14049_v10  ;;  %v7116_v9 = vsel %vm11335_vm2, %v7111_v27, %v14507_v23  ;;  %v7175_v26 = vunpack.c.l.b16 %v7126_v42  ;;  %v8428_v52 = vrot.slane %v8426_v18, 5  ;;  %v10879_v56 = vrot.slane %v8814_v4, 9  ;;  %v8151_v42 = vld [vmem:[#allocation2 + $0x9c] sm:$0xf] }
 0x43d   : > { %8050 = vmatmul.bf16.gmra.mxu3 %v11141_v24  ;;  %v8413_v60 = vor.u32 %v8412_v51, %v8409_v20  ;;  %v14562_v24 = vld [vmem:[#allocation2 + $0xc8] sm:$0x1]  ;;  %v8964_v21 = vrot.slane %v14553_v17, 5  ;;  %v7550_v20 = vrot.slane %v7548_v48, 4  ;;  %v7551_v51 = vrot.slane %v14514_v29, 5  ;;  %v15089_v29 = vld [vmem:[#allocation34_spill] sm:$0xff] }
 0x43e   : > { %v7174_v11 = vunpack.c.l.b16 %v7116_v9  ;;  %v8429_v57 = vsel %vm11335_vm2, %v8424_v45, %v8428_v52  ;;  %v8440_v16 = vshll.u32 %v14363_v44, 16  ;;  %v8967_v33 = vrot.slane %v14562_v24, 5 }
 0x43f   : > { %v7297_v14 = vpop.f32.mrf.mxu1  ;;  %8732 = vmatmul.bf16.gmra.mxu0 %v8608_v1  ;;  %v7696_v37 = vpop.f32.mrf.mxu2  ;;  %v8414_v23 = vrot.slane %v8413_v60, 4  ;;  %v7552_v12 = vsel %vm11636_vm5, %v7550_v20, %v7551_v51  ;;  %v8966_v18 = vrot.slane %v8964_v21, 4  ;;  %v8444_v4 = vshrl.u32 %v14363_v44, 16 }
 0x440   : > { %v14555_v10 = vadd.f32 %v7297_v14, %v6676_v35  ;;  %v7773_v13 = vadd.f32 %v7696_v37, %v14164_v53  ;;  %v8011_v63 = vpop.f32.mrf.mxu3  ;;  %v7549_v53 = vsel %vm11636_vm5, %v10656_v43, %v7548_v48  ;;  %v14573_v62 = vpop.f32.mrf.mxu0  ;;  %v8965_v35 = vsel %vm11636_vm5, %v10879_v56, %v8964_v21  ;;  %v15088_v14 = vld [vmem:[#allocation33_spill] sm:$0xff] }
 0x441   : > { %v6677_v27 = vadd.f32 %v15089_v29, %v15088_v14  ;;  %v7600_v37 = vunpack.c.l.b16 %v7549_v53  ;;  %v7601_v60 = vunpack.c.l.b16 %v7552_v12  ;;  %v8968_v9 = vsel %vm11636_vm5, %v8966_v18, %v8967_v33  ;;  %v11142_v33 = vld [vmem:[#allocation2 + $0x90] sm:$0xff] }
 0x442   : > { %v14565_v1 = vadd.f32 %v8011_v63, %v7773_v13  ;;  %v7191_v13 = vpack.c.b16 %v7175_v26, %v7174_v11  ;;  %v8419_v63 = vsel %vm11335_vm2, %v8414_v23, %v14491_v40  ;;  %v9021_v56 = vunpack.c.l.b16 %v8965_v35 }
 0x443   : > { %v14590_v52 = vpack.c.b16 %v7601_v60, %v7600_v37  ;;  %v9022_v21 = vunpack.c.l.b16 %v8968_v9  ;;  %v8588_v20 = vunpack.c.l.b16 %v8429_v57  ;;  %v8431_v51 = vshrl.u32 %v8151_v42, 16 }
 0x444   : > { %v8434_v26 = vshll.u32 %v8151_v42, 16  ;;  %v8442_v11 = vrot.slane %v8440_v16, 5  ;;  %v8446_v12 = vrot.slane %v8444_v4, 4  ;;  %v8587_v18 = vunpack.c.l.b16 %v8419_v63 }
 0x445   : > { %v14593_v40 = vpack.c.b16 %v9022_v21, %v9021_v56  ;;  %v8433_v35 = vrot.slane %v8431_v51, 4 }
 0x446   : > { %v8609_v14 = vpack.c.b16 %v8588_v20, %v8587_v18  ;;  %v8436_v29 = vrot.slane %v8434_v26, 5  ;;  %v8447_v57 = vor.u32 %v8446_v12, %v8442_v11  ;;  %v8154_v26 = vld [vmem:[#allocation2 + $0xa8] sm:$0xf]  ;;  %v8464_v12 = vshll.u32 %v14433_v3, 16 }
 0x447   : > { %v7300_v45 = vpop.f32.mrf.mxu1  ;;  %v7698_v48 = vpop.f32.mrf.mxu2 }
 0x448   : > { %v14588_v43 = vadd.f32 %v7300_v45, %v6677_v27  ;;  %v7774_v44 = vadd.f32 %v7698_v48, %v14207_v58  ;;  %v8013_v53 = vpop.f32.mrf.mxu3  ;;  %v15090_v27 = vld [vmem:[#allocation35_spill] sm:$0xff]  ;;  %v15091_v58 = vld [vmem:[#allocation37_spill] sm:$0xff]  ;;  %v14600_v42 = vpop.f32.mrf.mxu0  ;;  %v8450_v45 = vshll.u32 %v14385_v7, 16  ;;  %v8437_v63 = vor.u32 %v8436_v29, %v8433_v35 }
 0x449   : > { %v6678_v37 = vadd.f32 %v15091_v58, %v15090_v27  ;;  %v8448_v9 = vrot.slane %v8447_v57, 4  ;;  %v8468_v7 = vshrl.u32 %v14433_v3, 16  ;;  %v8458_v57 = vshll.u32 %v8154_v26, 16 }
 0x44a   : > { %7339 = vmatmul.bf16.gmra.mxu1 %v7191_v13  ;;  %v14595_v23 = vadd.f32 %v8013_v53, %v7774_v44  ;;  %v8452_v56 = vrot.slane %v8450_v45, 5  ;;  %v8438_v21 = vrot.slane %v8437_v63, 4  ;;  %v15092_v44 = vld [vmem:[#allocation38_spill] sm:$0xff]  ;;  %v15093_v53 = vld [vmem:[#allocation39_spill] sm:$0xff] }
 0x44b   : > { %v6679_v20 = vadd.f32 %v15093_v53, %v15092_v44  ;;  %v8470_v45 = vrot.slane %v8468_v7, 4 }
 0x44c   : > { %7740 = vmatmul.bf16.gmra.mxu2 %v14124_v38  ;;  %v8453_v51 = vsel %vm11335_vm2, %v8448_v9, %v8452_v56  ;;  %v8460_v9 = vrot.slane %v8458_v57, 5  ;;  %v15095_v56 = vld [vmem:[#allocation40_spill] sm:$0xff] }
 0x44d   : > { %8055 = vmatmul.bf16.gmra.mxu3 %v11142_v33  ;;  %v8590_v58 = vunpack.c.l.b16 %v8453_v51 }
 0x44f   : > { %v7302_v16 = vpop.f32.mrf.mxu1  ;;  %8737 = vmatmul.bf16.gmra.mxu0 %v8609_v14  ;;  %v7701_v60 = vpop.f32.mrf.mxu2  ;;  %v8443_v14 = vsel %vm11335_vm2, %v8438_v21, %v8442_v11  ;;  %v15096_v21 = vld [vmem:[#allocation42_spill] sm:$0xff] }
 0x450   : > { %v14602_v4 = vadd.f32 %v7302_v16, %v6678_v37  ;;  %v7775_v13 = vadd.f32 %v7701_v60, %v14237_v2  ;;  %v8016_v38 = vpop.f32.mrf.mxu3  ;;  %v14618_v35 = vpop.f32.mrf.mxu0  ;;  %v8455_v37 = vshrl.u32 %v8154_v26, 16  ;;  %v15094_v16 = vld [vmem:[#allocation22_spill] sm:$0xff]  ;;  %v8466_v60 = vrot.slane %v8464_v12, 5 }
 0x451   : > { %v8474_v26 = vshll.u32 %v14452_v55, 16  ;;  %v8488_v55 = vshll.u32 %v14485_v61, 16 }
 0x452   : > { %v14606_v48 = vadd.f32 %v8016_v38, %v7775_v13  ;;  %v8589_v13 = vunpack.c.l.b16 %v8443_v14  ;;  %v11143_v38 = vld [vmem:[#allocation2 + $0x9c] sm:$0xff]  ;;  %v8457_v11 = vrot.slane %v8455_v37, 4  ;;  %v8471_v44 = vor.u32 %v8470_v45, %v8466_v60 }
 0x454   : > { %v8610_v63 = vpack.c.b16 %v8590_v58, %v8589_v13  ;;  %v15097_v58 = vld [vmem:[#allocation43_spill] sm:$0xff] }
 0x455   : > { %v6681_v37 = vadd.f32 %v14044_v8, %v15097_v58  ;;  %v8498_v58 = vshll.u32 %v14500_v25, 16 }
 0x457   : > { %v7305_v18 = vpop.f32.mrf.mxu1  ;;  %v7703_v33 = vpop.f32.mrf.mxu2 }
 0x458   : > { %v14614_v2 = vadd.f32 %v7305_v18, %v6679_v20  ;;  %v7776_v29 = vadd.f32 %v7703_v33, %v14281_v36  ;;  %v8018_v27 = vpop.f32.mrf.mxu3  ;;  %v6680_v36 = vadd.f32 %v15096_v21, %v15095_v56  ;;  %v8461_v18 = vor.u32 %v8460_v9, %v8457_v11  ;;  %v14631_v33 = vpop.f32.mrf.mxu0  ;;  %v15098_v21 = vld [vmem:[#allocation24_spill] sm:$0xff] }
 0x45a   : > { %9113 = vmatmul.bf16.vlgmr.msra.gmra.mxu1 %v15094_v16  ;;  %v14622_v3 = vadd.f32 %v8018_v27, %v7776_v29  ;;  %v8476_v29 = vrot.slane %v8474_v26, 5  ;;  %v8462_v27 = vrot.slane %v8461_v18, 4  ;;  %v8157_v16 = vld [vmem:[#allocation2 + $0xb4] sm:$0xf]  ;;  %v11144_v26 = vld [vmem:[#allocation2 + $0xa8] sm:$0xff] }
 0x45b   : > { %v8479_v56 = vshrl.u32 %v8157_v16, 16  ;;  %v8482_v8 = vshll.u32 %v8157_v16, 16  ;;  %v8500_v16 = vrot.slane %v8498_v58, 5 }
 0x45c   : > { %7745 = vmatmul.bf16.gmra.mxu2 %v14310_v49  ;;  %v8472_v49 = vrot.slane %v8471_v44, 4  ;;  %v8490_v44 = vrot.slane %v8488_v55, 5 }
 0x45d   : > { %8060 = vmatmul.bf16.gmra.mxu3 %v11143_v38  ;;  %v8484_v18 = vrot.slane %v8482_v8, 5  ;;  %v15100_v8 = vld [vmem:[#allocation26_spill] sm:$0xff] }
 0x45e   : > { %v8477_v57 = vsel %vm11335_vm2, %v8472_v49, %v8476_v29 }
 0x45f   : > { %v7307_v53 = vpop.f32.mrf.mxu1  ;;  %8742 = vmatmul.bf16.gmra.mxu0 %v8610_v63  ;;  %v7706_v51 = vpop.f32.mrf.mxu2  ;;  %v8467_v63 = vsel %vm11335_vm2, %v8462_v27, %v8466_v60  ;;  %v8592_v9 = vunpack.c.l.b16 %v8477_v57  ;;  %v8481_v60 = vrot.slane %v8479_v56, 4 }
 0x460   : > { %v14627_v20 = vadd.f32 %v7307_v53, %v6680_v36  ;;  %v7777_v12 = vadd.f32 %v7706_v51, %v14312_v59  ;;  %v8021_v7 = vpop.f32.mrf.mxu3  ;;  %v8492_v59 = vshrl.u32 %v14485_v61, 16  ;;  %v8591_v61 = vunpack.c.l.b16 %v8467_v63 }
 0x462   : > { %v14633_v14 = vadd.f32 %v8021_v7, %v7777_v12  ;;  %v8494_v53 = vrot.slane %v8492_v59, 4  ;;  %v14649_v12 = vpop.f32.mrf.mxu0  ;;  %v8611_v7 = vpack.c.b16 %v8592_v9, %v8591_v61 }
 0x464   : > { %v8495_v49 = vor.u32 %v8494_v53, %v8490_v44 }
 0x466   : > { %v8496_v57 = vrot.slane %v8495_v49, 4 }
 0x467   : > { %v7310_v45 = vpop.f32.mrf.mxu1  ;;  %v7708_v38 = vpop.f32.mrf.mxu2 }
 0x468   : > { %v14641_v13 = vadd.f32 %v7310_v45, %v6681_v37  ;;  %v7778_v11 = vadd.f32 %v7708_v38, %v14346_v28  ;;  %v8023_v36 = vpop.f32.mrf.mxu3  ;;  %v6682_v28 = vadd.f32 %v14088_v47, %v14039_v54  ;;  %v8485_v37 = vor.u32 %v8484_v18, %v8481_v60  ;;  %v15102_v60 = vld [vmem:[#allocation5_spill] sm:$0xff] }
 0x469   : > { %v8501_v45 = vsel %vm11335_vm2, %v8496_v57, %v8500_v16  ;;  %v8512_v54 = vshll.u32 %v14553_v17, 16  ;;  %v8516_v47 = vshrl.u32 %v14553_v17, 16 }
 0x46a   : > { %9118 = vmatmul.bf16.gmra.mxu1 %v15098_v21  ;;  %v14647_v51 = vadd.f32 %v8023_v36, %v7778_v11  ;;  %v8486_v55 = vrot.slane %v8485_v37, 4  ;;  %v14663_v38 = vpop.f32.mrf.mxu0  ;;  %v8160_v11 = vld [vmem:[#allocation2 + $0xc0] sm:$0xf]  ;;  %v8594_v56 = vunpack.c.l.b16 %v8501_v45  ;;  %v8522_v37 = vshll.u32 %v14562_v24, 16  ;;  %v15105_v24 = vld [vmem:[#allocation31_spill] sm:$0xff] }
 0x46b   : > { %v8506_v21 = vshll.u32 %v8160_v11, 16  ;;  %v8514_v36 = vrot.slane %v8512_v54, 5  ;;  %v8518_v53 = vrot.slane %v8516_v47, 4 }
 0x46c   : > { %7750 = vmatmul.bf16.gmra.mxu2 %v14390_v32  ;;  %v15099_v32 = vld [vmem:[#allocation46_spill] sm:$0xff]  ;;  %v8491_v25 = vsel %vm11335_vm2, %v8486_v55, %v8490_v44 }
 0x46d   : > { %8065 = vmatmul.bf16.gmra.mxu3 %v11144_v26  ;;  %v6683_v59 = vadd.f32 %v15099_v32, %v14071_v0  ;;  %v8503_v0 = vshrl.u32 %v8160_v11, 16  ;;  %v8593_v61 = vunpack.c.l.b16 %v8491_v25  ;;  %v11145_v26 = vld [vmem:[#allocation2 + $0xb4] sm:$0xff]  ;;  %v8508_v49 = vrot.slane %v8506_v21, 5 }
 0x46e   : > { %v8524_v32 = vrot.slane %v8522_v37, 5  ;;  %v14689_v21 = vld [vmem:[#allocation2 + $0xd4] sm:$0x1]  ;;  %v15106_v37 = vld [vmem:[#allocation4_spill] sm:$0xff] }
 0x46f   : > { %v7312_v29 = vpop.f32.mrf.mxu1  ;;  %8747 = vmatmul.bf16.gmra.mxu0 %v8611_v7  ;;  %v8612_v17 = vpack.c.b16 %v8594_v56, %v8593_v61  ;;  %v15101_v7 = vld [vmem:[#allocation45_spill] sm:$0xff] }
 0x470   : > { %v14654_v27 = vadd.f32 %v7312_v29, %v6682_v28  ;;  %v6684_v18 = vadd.f32 %v15102_v60, %v15101_v7  ;;  %v8505_v28 = vrot.slane %v8503_v0, 4  ;;  %v8519_v29 = vor.u32 %v8518_v53, %v8514_v36  ;;  %v14687_v0 = vld [vmem:[#allocation2 + $0xd0] sm:$0xf]  ;;  %v11146_v60 = vld [vmem:[#allocation2 + $0xc0] sm:$0xff] }
 0x471   : > { %v8536_v7 = vshll.u32 %v14687_v0, 16 }
 0x472   : > { %v14676_v57 = vpop.f32.mrf.mxu0  ;;  %v8509_v16 = vor.u32 %v8508_v49, %v8505_v28  ;;  %v8520_v55 = vrot.slane %v8519_v29, 4 }
 0x474   : > { %v8510_v54 = vrot.slane %v8509_v16, 4  ;;  %v8525_v47 = vsel %vm11335_vm2, %v8520_v55, %v8524_v32  ;;  %v6686_v16 = vadd.f32 %v14274_v46, %v15106_v37  ;;  %v15107_v46 = vld [vmem:[#allocation20_spill] sm:$0xff] }
 0x475   : > { %v8596_v56 = vunpack.c.l.b16 %v8525_v47 }
 0x476   : > { %v8515_v25 = vsel %vm11335_vm2, %v8510_v54, %v8514_v36  ;;  %v8546_v36 = vshll.u32 %v14689_v21, 16 }
 0x477   : > { %v7315_v63 = vpop.f32.mrf.mxu1  ;;  %v8595_v61 = vunpack.c.l.b16 %v8515_v25 }
 0x478   : > { %v14665_v9 = vadd.f32 %v7315_v63, %v6683_v59  ;;  %v15104_v59 = vld [vmem:[#allocation7_spill] sm:$0xff]  ;;  %v8548_v54 = vrot.slane %v8546_v36, 5 }
 0x479   : > { %v8613_v28 = vpack.c.b16 %v8596_v56, %v8595_v61  ;;  %v15109_v36 = vld [vmem:[#allocation11_spill] sm:$0xff] }
 0x47a   : > { %9123 = vmatmul.bf16.gmra.mxu1 %v15100_v8  ;;  %v8163_v8 = vld [vmem:[#allocation2 + $0xcc] sm:$0xf]  ;;  %v14691_v53 = vpop.f32.mrf.mxu0  ;;  %v6688_v41 = vadd.f32 %v15109_v36, %v14253_v22  ;;  %v15119_v36 = vld [vmem:[#allocation48_spill] sm:$0xff] }
 0x47c   : > { %7755 = vmatmul.bf16.gmra.mxu2 %v14457_v34  ;;  %v15103_v34 = vld [vmem:[#allocation47_spill] sm:$0xff] }
 0x47d   : > { %8070 = vmatmul.bf16.gmra.mxu3 %v11145_v26  ;;  %v6685_v45 = vadd.f32 %v15104_v59, %v15103_v34  ;;  %v8527_v26 = vshrl.u32 %v8163_v8, 16 }
 0x47f   : > { %v7317_v44 = vpop.f32.mrf.mxu1  ;;  %8752 = vmatmul.bf16.gmra.mxu0 %v8612_v17  ;;  %v8530_v17 = vshll.u32 %v8163_v8, 16  ;;  %v8529_v49 = vrot.slane %v8527_v26, 4 }
 0x480   : > { %v14673_v58 = vadd.f32 %v7317_v44, %v6684_v18  ;;  %v8540_v18 = vshrl.u32 %v14687_v0, 16  ;;  %v8538_v44 = vrot.slane %v8536_v7, 5  ;;  %v15108_v7 = vld [vmem:[#allocation36_spill] sm:$0xff] }
 0x481   : > { %v8532_v29 = vrot.slane %v8530_v17, 5 }
 0x482   : > { %v8542_v55 = vrot.slane %v8540_v18, 4  ;;  %v14705_v56 = vpop.f32.mrf.mxu0 }
 0x483   : > { %v8533_v34 = vor.u32 %v8532_v29, %v8529_v49  ;;  %v15110_v29 = vld [vmem:[#allocation8_spill] sm:$0xff] }
 0x485   : > { %v8534_v47 = vrot.slane %v8533_v34, 4 }
 0x487   : > { %v7320_v63 = vpop.f32.mrf.mxu1 }
 0x488   : > { %v14682_v11 = vadd.f32 %v7320_v63, %v6685_v45  ;;  %v8543_v45 = vor.u32 %v8542_v55, %v8538_v44  ;;  %v15111_v55 = vld [vmem:[#allocation41_spill] sm:$0xff] }
 0x48a   : > { %9128 = vmatmul.bf16.gmra.mxu1 %v15105_v24  ;;  %v8544_v63 = vrot.slane %v8543_v45, 4  ;;  %v6687_v24 = vadd.f32 %v14316_v5, %v15107_v46  ;;  %v15116_v46 = vld [vmem:[#allocation44_spill] sm:$0xff] }
 0x48c   : > { %7760 = vmatmul.bf16.gmra.mxu2 %v14528_v30  ;;  %v8539_v30 = vsel %vm11335_vm2, %v8534_v47, %v8538_v44  ;;  %v8549_v25 = vsel %vm11335_vm2, %v8544_v63, %v8548_v54  ;;  %v6689_v44 = vadd.f32 %v14397_v31, %v15110_v29  ;;  %v15114_v54 = vld [vmem:[#allocation14_spill] sm:$0xff]  ;;  %v15115_v47 = vld [vmem:[#allocation21_spill] sm:$0xff]  ;;  %v15117_v31 = vld [vmem:[#allocation32_spill] sm:$0xff] }
 0x48d   : > { %8075 = vmatmul.bf16.gmra.mxu3 %v11146_v60  ;;  %v8597_v61 = vunpack.c.l.b16 %v8539_v30  ;;  %v8598_v26 = vunpack.c.l.b16 %v8549_v25  ;;  %v11147_v60 = vld [vmem:[#allocation2 + $0xcc] sm:$0xff]  ;;  %v6691_v63 = vadd.f32 %v15115_v47, %v15114_v54  ;;  %v8769_v47 = vadd.f32 %v14631_v33, %v14537_v19 }
 0x48e   : > { %v15123_v33 = vld [vmem:[#allocation6_spill] sm:$0xff] }
 0x48f   : > { %v7322_v32 = vpop.f32.mrf.mxu1  ;;  %8757 = vmatmul.bf16.gmra.mxu0 %v8613_v28  ;;  %v8614_v18 = vpack.c.b16 %v8598_v26, %v8597_v61  ;;  %v14715_v28 = vpop.f32.mrf.mxu0  ;;  %v15118_v26 = vld [vmem:[#allocation18_spill] sm:$0xff] }
 0x490   : > { %v14699_v59 = vadd.f32 %v7322_v32, %v6686_v16  ;;  %v15112_v32 = vld [vmem:[#allocation12_spill] sm:$0xff] }
 0x497   : > { %v7325_v8 = vpop.f32.mrf.mxu1 }
 0x498   : > { %v14709_v17 = vadd.f32 %v7325_v8, %v6687_v24  ;;  %v6692_v24 = vadd.f32 %v14535_v15, %v15117_v31  ;;  %v8026_v31 = vpop.f32.mrf.mxu3 }
 0x49a   : > { %9133 = vmatmul.bf16.gmra.mxu1 %v15108_v7  ;;  %v6693_v7 = vadd.f32 %v14573_v62, %v15118_v26 }
 0x49c   : > { %7765 = vmatmul.bf16.gmra.mxu2 %v14590_v52  ;;  %v15113_v52 = vld [vmem:[#allocation17_spill] sm:$0xff] }
 0x49d   : > { %8080 = vmatmul.bf16.gmra.mxu3 %v11147_v60  ;;  %v6690_v34 = vadd.f32 %v15113_v52, %v15112_v32  ;;  %v14756_v52 = vld [vmem:[%s14929_s6] ss:$0 sm:$0xff] }
 0x49f   : > { %v7327_v49 = vpop.f32.mrf.mxu1  ;;  %8762 = vmatmul.bf16.gmra.mxu0 %v8614_v18 }
 0x4a0   : > { %v14717_v5 = vadd.f32 %v7327_v49, %v6688_v41  ;;  %v15120_v41 = vld [vmem:[#allocation16_spill] sm:$0xff] }
 0x4a1   : > { %v6694_v49 = vadd.f32 %v14600_v42, %v15120_v41 }
 0x4a7   : > { %v7330_v37 = vpop.f32.mrf.mxu1 }
 0x4a8   : > { %v14721_v16 = vadd.f32 %v7330_v37, %v6689_v44  ;;  %v15121_v37 = vld [vmem:[#allocation23_spill] sm:$0xff] }
 0x4a9   : > { %v8768_v15 = vadd.f32 %v14618_v35, %v15121_v37  ;;  %v7711_v35 = vpop.f32.mrf.mxu2 }
 0x4aa   : > { %9138 = vmatmul.bf16.gmra.mxu1 %v15111_v55  ;;  %v14751_v55 = vld [vmem:[%s14928_s5] ss:$0 sm:$0xff] }
 0x4af   : > { %v7332_v45 = vpop.f32.mrf.mxu1 }
 0x4b0   : > { %v14726_v22 = vadd.f32 %v7332_v45, %v6690_v34  ;;  %v15122_v34 = vld [vmem:[#allocation49_spill] sm:$0xff] }
 0x4b7   : > { %v7335_v30 = vpop.f32.mrf.mxu1 }
 0x4b8   : > { %v14730_v25 = vadd.f32 %v7335_v30, %v6691_v63 }
 0x4ba   : > { %9143 = vmatmul.bf16.gmra.mxu1 %v15116_v46 }
 0x4bf   : > { %v7337_v8 = vpop.f32.mrf.mxu1 }
 0x4c0   : > { %v14735_v61 = vadd.f32 %v7337_v8, %v6692_v24  ;;  %v14772_v8 = vpop.f32.mrf.mxu0 }
 0x4c7   : > { %v7340_v60 = vpop.f32.mrf.mxu1 }
 0x4c8   : > { %v14739_v18 = vadd.f32 %v7340_v60, %v6693_v7  ;;  %v8770_v7 = vadd.f32 %v14649_v12, %v14565_v1  ;;  %v7713_v60 = vpop.f32.mrf.mxu2 }
 0x4ca   : > { %9148 = vmatmul.bf16.gmra.mxu1 %v15119_v36 }
 0x4cf   : > { %v7342_v29 = vpop.f32.mrf.mxu1 }
 0x4d0   : > { %v14744_v44 = vadd.f32 %v7342_v29, %v6694_v49  ;;  %v8028_v29 = vpop.f32.mrf.mxu3  ;;  %v7716_v12 = vpop.f32.mrf.mxu2 }
 0x4d7   : > { %v9114_v62 = vpop.f32.mrf.mxu1 }
 0x4d8   : > { %v9194_v32 = vadd.f32 %v9114_v62, %v8768_v15  ;;  %v8771_v15 = vadd.f32 %v14663_v38, %v14595_v23  ;;  %v15124_v38 = vld [vmem:[#allocation9_spill] sm:$0xff] }
 0x4da   : > { %v9230_v42 = vmul.f32 %v14751_v55, %v9194_v32  ;;  %9153 = vmatmul.bf16.gmra.mxu1 %v15122_v34  ;;  %v8710_v32 = vpop.f32.mrf.mxu0 }
 0x4dc   : > { %v9266_v45 = vadd.f32 %v14756_v52, %v9230_v42 }
 0x4de   : > { %v9298_v54 = vmax.f32 %v9266_v45, 0.0 }
 0x4df   : > { %v9116_v63 = vpop.f32.mrf.mxu1 }
 0x4e0   : > { %9330 = vst [vmem:[%s14765_s8] sm:$0xff] %v9298_v54  ;;  %v9195_v30 = vadd.f32 %v9116_v63, %v8769_v47  ;;  %v8772_v54 = vadd.f32 %v14676_v57, %v14606_v48  ;;  %v8031_v47 = vpop.f32.mrf.mxu3 }
 0x4e2   : > { %v9231_v46 = vmul.f32 %v14751_v55, %v9195_v30 }
 0x4e4   : > { %v9267_v24 = vadd.f32 %v14756_v52, %v9231_v46  ;;  %v8713_v46 = vpop.f32.mrf.mxu0 }
 0x4e6   : > { %v9299_v26 = vmax.f32 %v9267_v24, 0.0  ;;  %v7718_v24 = vpop.f32.mrf.mxu2 }
 0x4e7   : > { %v9119_v36 = vpop.f32.mrf.mxu1 }
 0x4e8   : > { %9331 = vst [vmem:[%s14765_s8 + $0x8] sm:$0xff] %v9299_v26  ;;  %v9196_v41 = vadd.f32 %v9119_v36, %v8770_v7  ;;  %v8773_v36 = vadd.f32 %v14691_v53, %v14622_v3  ;;  %v8033_v57 = vpop.f32.mrf.mxu3  ;;  %v15125_v53 = vld [vmem:[#allocation15_spill] sm:$0xff] }
 0x4ea   : > { %v9232_v19 = vmul.f32 %v14751_v55, %v9196_v41  ;;  %9158 = vmatmul.bf16.gmra.mxu1 %v15123_v33 }
 0x4ec   : > { %v9268_v49 = vadd.f32 %v14756_v52, %v9232_v19  ;;  %v14795_v33 = vpop.f32.mrf.mxu0 }
 0x4ee   : > { %v9300_v37 = vmax.f32 %v9268_v49, 0.0 }
 0x4ef   : > { %v9121_v62 = vpop.f32.mrf.mxu1 }
 0x4f0   : > { %9332 = vst [vmem:[%s14765_s8 + $0x10] sm:$0xff] %v9300_v37  ;;  %v9197_v1 = vadd.f32 %v9121_v62, %v8771_v15  ;;  %v7721_v37 = vpop.f32.mrf.mxu2  ;;  %v8774_v62 = vadd.f32 %v14705_v56, %v14633_v14 }
 0x4f2   : > { %v9233_v42 = vmul.f32 %v14751_v55, %v9197_v1 }
 0x4f4   : > { %v9269_v34 = vadd.f32 %v14756_v52, %v9233_v42 }
 0x4f6   : > { %v9301_v45 = vmax.f32 %v9269_v34, 0.0  ;;  %v8036_v34 = vpop.f32.mrf.mxu3 }
 0x4f7   : > { %v9124_v63 = vpop.f32.mrf.mxu1 }
 0x4f8   : > { %9333 = vst [vmem:[%s14765_s8 + $0x18] sm:$0xff] %v9301_v45  ;;  %v9198_v30 = vadd.f32 %v9124_v63, %v8772_v54  ;;  %v15126_v54 = vld [vmem:[#allocation10_spill] sm:$0xff] }
 0x4f9   : > { %v7779_v63 = vadd.f32 %v7711_v35, %v15126_v54 }
 0x4fa   : > { %v9234_v23 = vmul.f32 %v14751_v55, %v9198_v30  ;;  %9163 = vmatmul.bf16.gmra.mxu1 %v15124_v38  ;;  %v8718_v30 = vpop.f32.mrf.mxu0  ;;  %v8775_v38 = vadd.f32 %v14715_v28, %v14647_v51 }
 0x4fc   : > { %v9270_v26 = vadd.f32 %v14756_v52, %v9234_v23 }
 0x4fe   : > { %v9302_v7 = vmax.f32 %v9270_v26, 0.0  ;;  %v7723_v26 = vpop.f32.mrf.mxu2 }
 0x4ff   : > { %v9126_v41 = vpop.f32.mrf.mxu1 }
 0x500   : > { %9334 = vst [vmem:[%s14765_s8 + $0x20] sm:$0xff] %v9302_v7  ;;  %v9199_v48 = vadd.f32 %v9126_v41, %v8773_v36  ;;  %v8094_v7 = vadd.f32 %v8026_v31, %v7779_v63 }
 0x502   : > { %v9235_v19 = vmul.f32 %v14751_v55, %v9199_v48  ;;  %v8038_v48 = vpop.f32.mrf.mxu3  ;;  %v8776_v35 = vadd.f32 %v14772_v8, %v8094_v7 }
 0x504   : > { %v9271_v49 = vadd.f32 %v14756_v52, %v9235_v19  ;;  %v15127_v19 = vld [vmem:[#allocation13_spill] sm:$0xff] }
 0x506   : > { %v9303_v15 = vmax.f32 %v9271_v49, 0.0  ;;  %v7780_v49 = vadd.f32 %v7713_v60, %v15127_v19  ;;  %v7726_v28 = vpop.f32.mrf.mxu2 }
 0x507   : > { %v9129_v1 = vpop.f32.mrf.mxu1 }
 0x508   : > { %9335 = vst [vmem:[%s14765_s8 + $0x28] sm:$0xff] %v9303_v15  ;;  %v9200_v42 = vadd.f32 %v9129_v1, %v8774_v62  ;;  %v14812_v1 = vpop.f32.mrf.mxu0 }
 0x50a   : > { %v9236_v3 = vmul.f32 %v14751_v55, %v9200_v42  ;;  %9168 = vmatmul.bf16.gmra.mxu1 %v15125_v53  ;;  %v8095_v42 = vadd.f32 %v8028_v29, %v7780_v49 }
 0x50c   : > { %v9272_v45 = vadd.f32 %v14756_v52, %v9236_v3  ;;  %v15128_v3 = vld [vmem:[#allocation25_spill] sm:$0xff]  ;;  %v8777_v63 = vadd.f32 %v8710_v32, %v8095_v42 }
 0x50e   : > { %v9304_v23 = vmax.f32 %v9272_v45, 0.0  ;;  %v15129_v45 = vld [vmem:[#allocation19_spill] sm:$0xff]  ;;  %v7728_v29 = vpop.f32.mrf.mxu2 }
 0x50f   : > { %v9131_v14 = vpop.f32.mrf.mxu1  ;;  %v7781_v54 = vadd.f32 %v7716_v12, %v15129_v45 }
 0x510   : > { %9336 = vst [vmem:[%s14765_s8 + $0x30] sm:$0xff] %v9304_v23  ;;  %v9201_v56 = vadd.f32 %v9131_v14, %v8775_v38  ;;  %v8041_v23 = vpop.f32.mrf.mxu3 }
 0x511   : > { %v8096_v14 = vadd.f32 %v8031_v47, %v7781_v54 }
 0x512   : > { %v9237_v36 = vmul.f32 %v14751_v55, %v9201_v56  ;;  %v8723_v56 = vpop.f32.mrf.mxu0 }
 0x514   : > { %v9273_v41 = vadd.f32 %v14756_v52, %v9237_v36 }
 0x516   : > { %v9305_v15 = vmax.f32 %v9273_v41, 0.0  ;;  %v15130_v41 = vld [vmem:[#allocation3_spill] sm:$0xff] }
 0x517   : > { %v9134_v62 = vpop.f32.mrf.mxu1  ;;  %v7782_v19 = vadd.f32 %v7718_v24, %v15130_v41 }
 0x518   : > { %9337 = vst [vmem:[%s14765_s8 + $0x38] sm:$0xff] %v9305_v15  ;;  %v9202_v51 = vadd.f32 %v9134_v62, %v8776_v35  ;;  %v8778_v15 = vadd.f32 %v8713_v46, %v8096_v14  ;;  %v8043_v32 = vpop.f32.mrf.mxu3 }
 0x519   : > { %v8097_v62 = vadd.f32 %v8033_v57, %v7782_v19 }
 0x51a   : > { %v9238_v31 = vmul.f32 %v14751_v55, %v9202_v51  ;;  %9173 = vmatmul.bf16.gmra.mxu1 %v15128_v3  ;;  %v8725_v47 = vpop.f32.mrf.mxu0  ;;  %v7783_v3 = vadd.f32 %v7721_v37, %v14524_v50  ;;  %v8971_v37 = vrot.slane %v14687_v0, 5 }
 0x51b   : > { %v8779_v24 = vadd.f32 %v14795_v33, %v8097_v62 }
 0x51c   : > { %v9274_v53 = vadd.f32 %v14756_v52, %v9238_v31  ;;  %v7731_v31 = vpop.f32.mrf.mxu2  ;;  %v8098_v54 = vadd.f32 %v8036_v34, %v7783_v3 }
 0x51e   : > { %v9306_v60 = vmax.f32 %v9274_v53, 0.0  ;;  %v8780_v14 = vadd.f32 %v8718_v30, %v8098_v54 }
 0x51f   : > { %v9136_v8 = vpop.f32.mrf.mxu1 }
 0x520   : > { %9338 = vst [vmem:[%s14765_s8 + $0x40] sm:$0xff] %v9306_v60  ;;  %v9203_v38 = vadd.f32 %v9136_v8, %v8777_v63  ;;  %v8046_v60 = vpop.f32.mrf.mxu3 }
 0x522   : > { %v9239_v7 = vmul.f32 %v14751_v55, %v9203_v38  ;;  %v8728_v8 = vpop.f32.mrf.mxu0 }
 0x524   : > { %v9275_v36 = vadd.f32 %v14756_v52, %v9239_v7  ;;  %v7733_v7 = vpop.f32.mrf.mxu2 }
 0x526   : > { %v9307_v49 = vmax.f32 %v9275_v36, 0.0  ;;  %v8815_v36 = vld [vmem:[#allocation2 + $0xcc] sm:$0xe] }
 0x527   : > { %v9139_v12 = vpop.f32.mrf.mxu1  ;;  %v10880_v19 = vrot.slane %v8815_v36, 9 }
 0x528   : > { %9339 = vst [vmem:[%s14765_s8 + $0x48] sm:$0xff] %v9307_v49  ;;  %v9204_v35 = vadd.f32 %v9139_v12, %v8778_v15  ;;  %v8973_v49 = vrot.slane %v8971_v37, 4  ;;  %v8048_v30 = vpop.f32.mrf.mxu3  ;;  %v7785_v15 = vadd.f32 %v7726_v28, %v14588_v43 }
 0x52a   : > { %v9240_v51 = vmul.f32 %v14751_v55, %v9204_v35  ;;  %9178 = vmatmul.bf16.gmra.mxu1 %v14539_v6  ;;  %v7784_v6 = vadd.f32 %v7723_v26, %v14555_v10  ;;  %v8974_v10 = vrot.slane %v14689_v21, 5 }
 0x52c   : > { %v9276_v42 = vadd.f32 %v14756_v52, %v9240_v51  ;;  %v8099_v41 = vadd.f32 %v8038_v48, %v7784_v6  ;;  %v8972_v48 = vsel %vm11636_vm5, %v10880_v19, %v8971_v37  ;;  %v8975_v62 = vsel %vm11636_vm5, %v8973_v49, %v8974_v10  ;;  %v7736_v21 = vpop.f32.mrf.mxu2 }
 0x52d   : > { %v9024_v43 = vunpack.c.l.b16 %v8975_v62  ;;  %v7788_v49 = vadd.f32 %v7733_v7, %v14627_v20 }
 0x52e   : > { %v9308_v53 = vmax.f32 %v9276_v42, 0.0  ;;  %v8781_v0 = vadd.f32 %v14812_v1, %v8099_v41  ;;  %v8100_v42 = vadd.f32 %v8041_v23, %v7785_v15  ;;  %v7786_v1 = vadd.f32 %v7728_v29, %v14602_v4 }
 0x52f   : > { %v9141_v46 = vpop.f32.mrf.mxu1 }
 0x530   : > { %9340 = vst [vmem:[%s14765_s8 + $0x50] sm:$0xff] %v9308_v53  ;;  %v9205_v45 = vadd.f32 %v9141_v46, %v8779_v24  ;;  %v9023_v53 = vunpack.c.l.b16 %v8972_v48  ;;  %v8782_v46 = vadd.f32 %v8723_v56, %v8100_v42  ;;  %v8051_v39 = vpop.f32.mrf.mxu3 }
 0x532   : > { %v9241_v57 = vmul.f32 %v14751_v55, %v9205_v45  ;;  %v9040_v45 = vpack.c.b16 %v9024_v43, %v9023_v53 }
 0x534   : > { %v9277_v63 = vadd.f32 %v14756_v52, %v9241_v57 }
 0x536   : > { %v9309_v38 = vmax.f32 %v9277_v63, 0.0  ;;  %v8101_v63 = vadd.f32 %v8043_v32, %v7786_v1 }
 0x537   : > { %v9144_v50 = vpop.f32.mrf.mxu1 }
 0x538   : > { %9341 = vst [vmem:[%s14765_s8 + $0x58] sm:$0xff] %v9309_v38  ;;  %v9206_v33 = vadd.f32 %v9144_v50, %v8780_v14  ;;  %v7738_v38 = vpop.f32.mrf.mxu2  ;;  %v7787_v50 = vadd.f32 %v7731_v31, %v14614_v2  ;;  %v8783_v29 = vadd.f32 %v8725_v47, %v8101_v63  ;;  %v8103_v47 = vadd.f32 %v8048_v30, %v7788_v49 }
 0x539   : > { %v7790_v53 = vadd.f32 %v7738_v38, %v14654_v27 }
 0x53a   : > { %v9242_v34 = vmul.f32 %v14751_v55, %v9206_v33  ;;  %9183 = vmatmul.bf16.gmra.mxu1 %v14593_v40  ;;  %v8730_v40 = vpop.f32.mrf.mxu0  ;;  %v8053_v33 = vpop.f32.mrf.mxu3  ;;  %v8102_v36 = vadd.f32 %v8046_v60, %v7787_v50 }
 0x53b   : > { %v8785_v62 = vadd.f32 %v8730_v40, %v8103_v47 }
 0x53c   : > { %v9278_v26 = vadd.f32 %v14756_v52, %v9242_v34 }
 0x53e   : > { %v9310_v12 = vmax.f32 %v9278_v26, 0.0  ;;  %v8784_v26 = vadd.f32 %v8728_v8, %v8102_v36 }
 0x53f   : > { %v9146_v35 = vpop.f32.mrf.mxu1 }
 0x540   : > { %9342 = vst [vmem:[%s14765_s8 + $0x60] sm:$0xff] %v9310_v12  ;;  %v9207_v51 = vadd.f32 %v9146_v35, %v8781_v0  ;;  %v7741_v19 = vpop.f32.mrf.mxu2  ;;  %v7789_v0 = vadd.f32 %v7736_v21, %v14641_v13 }
 0x542   : > { %v9243_v3 = vmul.f32 %v14751_v55, %v9207_v51  ;;  %v8733_v6 = vpop.f32.mrf.mxu0  ;;  %v8056_v12 = vpop.f32.mrf.mxu3  ;;  %v8104_v8 = vadd.f32 %v8051_v39, %v7789_v0  ;;  %v7791_v39 = vadd.f32 %v7741_v19, %v14665_v9 }
 0x544   : > { %v9279_v28 = vadd.f32 %v14756_v52, %v9243_v3 }
 0x546   : > { %v9311_v24 = vmax.f32 %v9279_v28, 0.0  ;;  %v8786_v28 = vadd.f32 %v8733_v6, %v8104_v8  ;;  %v8106_v6 = vadd.f32 %v8056_v12, %v7791_v39 }
 0x547   : > { %v9149_v54 = vpop.f32.mrf.mxu1 }
 0x548   : > { %9343 = vst [vmem:[%s14765_s8 + $0x68] sm:$0xff] %v9311_v24  ;;  %v9208_v57 = vadd.f32 %v9149_v54, %v8782_v46  ;;  %v7743_v51 = vpop.f32.mrf.mxu2  ;;  %v8105_v24 = vadd.f32 %v8053_v33, %v7790_v53 }
 0x54a   : > { %v9244_v23 = vmul.f32 %v14751_v55, %v9208_v57  ;;  %9188 = vmatmul.bf16.gmra.mxu1 %v9040_v45  ;;  %v8735_v32 = vpop.f32.mrf.mxu0  ;;  %v8058_v3 = vpop.f32.mrf.mxu3 }
 0x54b   : > { %v8787_v57 = vadd.f32 %v8735_v32, %v8105_v24 }
 0x54c   : > { %v9280_v14 = vadd.f32 %v14756_v52, %v9244_v23 }
 0x54e   : > { %v9312_v4 = vmax.f32 %v9280_v14, 0.0 }
 0x54f   : > { %v9151_v56 = vpop.f32.mrf.mxu1 }
 0x550   : > { %9344 = vst [vmem:[%s14765_s8 + $0x70] sm:$0xff] %v9312_v4  ;;  %v9209_v37 = vadd.f32 %v9151_v56, %v8783_v29  ;;  %v7746_v40 = vpop.f32.mrf.mxu2  ;;  %v7792_v29 = vadd.f32 %v7743_v51, %v14673_v58 }
 0x552   : > { %v9245_v41 = vmul.f32 %v14751_v55, %v9209_v37  ;;  %v8738_v35 = vpop.f32.mrf.mxu0  ;;  %v8061_v63 = vpop.f32.mrf.mxu3 }
 0x553   : > { %v8788_v37 = vadd.f32 %v8738_v35, %v8106_v6 }
 0x554   : > { %v9281_v34 = vadd.f32 %v14756_v52, %v9245_v41  ;;  %v8107_v41 = vadd.f32 %v8058_v3, %v7792_v29 }
 0x556   : > { %v9313_v10 = vmax.f32 %v9281_v34, 0.0 }
 0x557   : > { %v9154_v2 = vpop.f32.mrf.mxu1 }
 0x558   : > { %9345 = vst [vmem:[%s14765_s8 + $0x78] sm:$0xff] %v9313_v10  ;;  %v9210_v31 = vadd.f32 %v9154_v2, %v8784_v26  ;;  %v7748_v50 = vpop.f32.mrf.mxu2  ;;  %v7793_v10 = vadd.f32 %v7746_v40, %v14682_v11 }
 0x559   : > { %v7794_v0 = vadd.f32 %v7748_v50, %v14699_v59 }
 0x55a   : > { %v9246_v15 = vmul.f32 %v14751_v55, %v9210_v31  ;;  %v8740_v21 = vpop.f32.mrf.mxu0  ;;  %v8063_v36 = vpop.f32.mrf.mxu3  ;;  %v8108_v47 = vadd.f32 %v8061_v63, %v7793_v10 }
 0x55b   : > { %v8789_v2 = vadd.f32 %v8740_v21, %v8107_v41 }
 0x55c   : > { %v9282_v60 = vadd.f32 %v14756_v52, %v9246_v15 }
 0x55e   : > { %v9314_v48 = vmax.f32 %v9282_v60, 0.0 }
 0x55f   : > { %v9156_v20 = vpop.f32.mrf.mxu1 }
 0x560   : > { %9346 = vst [vmem:[%s14765_s8 + $0x80] sm:$0xff] %v9314_v48  ;;  %v9211_v7 = vadd.f32 %v9156_v20, %v8785_v62  ;;  %v7751_v49 = vpop.f32.mrf.mxu2 }
 0x561   : > { %v7795_v3 = vadd.f32 %v7751_v49, %v14709_v17 }
 0x562   : > { %v9247_v42 = vmul.f32 %v14751_v55, %v9211_v7  ;;  %v8743_v38 = vpop.f32.mrf.mxu0  ;;  %v8066_v12 = vpop.f32.mrf.mxu3  ;;  %v8109_v7 = vadd.f32 %v8063_v36, %v7794_v0 }
 0x563   : > { %v8790_v62 = vadd.f32 %v8743_v38, %v8108_v47 }
 0x564   : > { %v9283_v30 = vadd.f32 %v14756_v52, %v9247_v42 }
 0x566   : > { %v9315_v43 = vmax.f32 %v9283_v30, 0.0 }
 0x567   : > { %v9159_v13 = vpop.f32.mrf.mxu1 }
 0x568   : > { %9347 = vst [vmem:[%s14765_s8 + $0x88] sm:$0xff] %v9315_v43  ;;  %v9212_v1 = vadd.f32 %v9159_v13, %v8786_v28  ;;  %v7753_v51 = vpop.f32.mrf.mxu2 }
 0x56a   : > { %v9248_v46 = vmul.f32 %v14751_v55, %v9212_v1  ;;  %v8745_v34 = vpop.f32.mrf.mxu0  ;;  %v8068_v30 = vpop.f32.mrf.mxu3  ;;  %v8110_v1 = vadd.f32 %v8066_v12, %v7795_v3 }
 0x56b   : > { %v8791_v43 = vadd.f32 %v8745_v34, %v8109_v7 }
 0x56c   : > { %v9284_v45 = vadd.f32 %v14756_v52, %v9248_v46  ;;  %v7796_v46 = vadd.f32 %v7753_v51, %v14717_v5 }
 0x56e   : > { %v9316_v54 = vmax.f32 %v9284_v45, 0.0  ;;  %v8111_v63 = vadd.f32 %v8068_v30, %v7796_v46 }
 0x56f   : > { %v9161_v27 = vpop.f32.mrf.mxu1 }
 0x570   : > { %9348 = vst [vmem:[%s14765_s8 + $0x90] sm:$0xff] %v9316_v54  ;;  %v9213_v23 = vadd.f32 %v9161_v27, %v8787_v57  ;;  %v7756_v21 = vpop.f32.mrf.mxu2 }
 0x572   : > { %v9249_v14 = vmul.f32 %v14751_v55, %v9213_v23  ;;  %v8748_v35 = vpop.f32.mrf.mxu0  ;;  %v8071_v54 = vpop.f32.mrf.mxu3 }
 0x573   : > { %v8792_v39 = vadd.f32 %v8748_v35, %v8110_v1 }
 0x574   : > { %v9285_v4 = vadd.f32 %v14756_v52, %v9249_v14  ;;  %v7797_v14 = vadd.f32 %v7756_v21, %v14721_v16 }
 0x576   : > { %v9317_v56 = vmax.f32 %v9285_v4, 0.0 }
 0x577   : > { %v9164_v9 = vpop.f32.mrf.mxu1 }
 0x578   : > { %9349 = vst [vmem:[%s14765_s8 + $0x98] sm:$0xff] %v9317_v56  ;;  %v9214_v33 = vadd.f32 %v9164_v9, %v8788_v37  ;;  %v7758_v6 = vpop.f32.mrf.mxu2  ;;  %v8112_v37 = vadd.f32 %v8071_v54, %v7797_v14 }
 0x57a   : > { %v9250_v32 = vmul.f32 %v14751_v55, %v9214_v33  ;;  %v8750_v28 = vpop.f32.mrf.mxu0  ;;  %v8073_v56 = vpop.f32.mrf.mxu3 }
 0x57b   : > { %v8793_v4 = vadd.f32 %v8750_v28, %v8111_v63 }
 0x57c   : > { %v9286_v19 = vadd.f32 %v14756_v52, %v9250_v32  ;;  %v7798_v32 = vadd.f32 %v7758_v6, %v14726_v22 }
 0x57e   : > { %v9318_v26 = vmax.f32 %v9286_v19, 0.0  ;;  %v8113_v10 = vadd.f32 %v8073_v56, %v7798_v32 }
 0x57f   : > { %v9166_v58 = vpop.f32.mrf.mxu1 }
 0x580   : > { %9350 = vst [vmem:[%s14765_s8 + $0xa0] sm:$0xff] %v9318_v26  ;;  %v9215_v31 = vadd.f32 %v9166_v58, %v8789_v2  ;;  %v7761_v41 = vpop.f32.mrf.mxu2 }
 0x581   : > { %v7799_v47 = vadd.f32 %v7761_v41, %v14730_v25 }
 0x582   : > { %v9251_v15 = vmul.f32 %v14751_v55, %v9215_v31  ;;  %v8753_v27 = vpop.f32.mrf.mxu0  ;;  %v8076_v2 = vpop.f32.mrf.mxu3 }
 0x583   : > { %v8794_v19 = vadd.f32 %v8753_v27, %v8112_v37  ;;  %v8114_v35 = vadd.f32 %v8076_v2, %v7799_v47 }
 0x584   : > { %v9287_v60 = vadd.f32 %v14756_v52, %v9251_v15 }
 0x586   : > { %v9319_v48 = vmax.f32 %v9287_v60, 0.0 }
 0x587   : > { %v9169_v11 = vpop.f32.mrf.mxu1 }
 0x588   : > { %9351 = vst [vmem:[%s14765_s8 + $0xa8] sm:$0xff] %v9319_v48  ;;  %v9216_v20 = vadd.f32 %v9169_v11, %v8790_v62  ;;  %v7763_v60 = vpop.f32.mrf.mxu2 }
 0x589   : > { %v7800_v11 = vadd.f32 %v7763_v60, %v14735_v61 }
 0x58a   : > { %v9252_v8 = vmul.f32 %v14751_v55, %v9216_v20  ;;  %v8755_v33 = vpop.f32.mrf.mxu0  ;;  %v8078_v51 = vpop.f32.mrf.mxu3 }
 0x58b   : > { %v8795_v12 = vadd.f32 %v8755_v33, %v8113_v10  ;;  %v8115_v3 = vadd.f32 %v8078_v51, %v7800_v11 }
 0x58c   : > { %v9288_v42 = vadd.f32 %v14756_v52, %v9252_v8 }
 0x58e   : > { %v9320_v53 = vmax.f32 %v9288_v42, 0.0 }
 0x58f   : > { %v9171_v59 = vpop.f32.mrf.mxu1 }
 0x590   : > { %9352 = vst [vmem:[%s14765_s8 + $0xb0] sm:$0xff] %v9320_v53  ;;  %v9217_v13 = vadd.f32 %v9171_v59, %v8791_v43  ;;  %v7766_v30 = vpop.f32.mrf.mxu2 }
 0x591   : > { %v7801_v28 = vadd.f32 %v7766_v30, %v14739_v18 }
 0x592   : > { %v9253_v40 = vmul.f32 %v14751_v55, %v9217_v13  ;;  %v8758_v31 = vpop.f32.mrf.mxu0  ;;  %v8081_v59 = vpop.f32.mrf.mxu3 }
 0x593   : > { %v8796_v7 = vadd.f32 %v8758_v31, %v8114_v35 }
 0x594   : > { %v9289_v24 = vadd.f32 %v14756_v52, %v9253_v40 }
 0x596   : > { %v9321_v45 = vmax.f32 %v9289_v24, 0.0  ;;  %v8116_v24 = vadd.f32 %v8081_v59, %v7801_v28 }
 0x597   : > { %v9174_v17 = vpop.f32.mrf.mxu1 }
 0x598   : > { %9353 = vst [vmem:[%s14765_s8 + $0xb8] sm:$0xff] %v9321_v45  ;;  %v9218_v57 = vadd.f32 %v9174_v17, %v8792_v39  ;;  %v7768_v45 = vpop.f32.mrf.mxu2 }
 0x599   : > { %v7802_v17 = vadd.f32 %v7768_v45, %v14744_v44 }
 0x59a   : > { %v9254_v23 = vmul.f32 %v14751_v55, %v9218_v57  ;;  %v8760_v42 = vpop.f32.mrf.mxu0  ;;  %v8083_v63 = vpop.f32.mrf.mxu3 }
 0x59b   : > { %v8797_v21 = vadd.f32 %v8760_v42, %v8115_v3 }
 0x59c   : > { %v9290_v38 = vadd.f32 %v14756_v52, %v9254_v23  ;;  %v8117_v23 = vadd.f32 %v8083_v63, %v7802_v17 }
 0x59e   : > { %v9322_v50 = vmax.f32 %v9290_v38, 0.0 }
 0x59f   : > { %v9176_v5 = vpop.f32.mrf.mxu1 }
 0x5a0   : > { %9354 = vst [vmem:[%s14765_s8 + $0xc0] sm:$0xff] %v9322_v50  ;;  %v9219_v29 = vadd.f32 %v9176_v5, %v8793_v4 }
 0x5a2   : > { %v9255_v9 = vmul.f32 %v14751_v55, %v9219_v29  ;;  %v8763_v40 = vpop.f32.mrf.mxu0 }
 0x5a3   : > { %v8798_v54 = vadd.f32 %v8763_v40, %v8116_v24 }
 0x5a4   : > { %v9291_v36 = vadd.f32 %v14756_v52, %v9255_v9 }
 0x5a6   : > { %v9323_v34 = vmax.f32 %v9291_v36, 0.0 }
 0x5a7   : > { %v9179_v16 = vpop.f32.mrf.mxu1 }
 0x5a8   : > { %9355 = vst [vmem:[%s14765_s8 + $0xc8] sm:$0xff] %v9323_v34  ;;  %v9220_v49 = vadd.f32 %v9179_v16, %v8794_v19 }
 0x5aa   : > { %v9256_v26 = vmul.f32 %v14751_v55, %v9220_v49  ;;  %v8765_v38 = vpop.f32.mrf.mxu0 }
 0x5ab   : > { %v8799_v50 = vadd.f32 %v8765_v38, %v8117_v23 }
 0x5ac   : > { %v9292_v58 = vadd.f32 %v14756_v52, %v9256_v26 }
 0x5ae   : > { %v9324_v15 = vmax.f32 %v9292_v58, 0.0 }
 0x5af   : > { %v9181_v22 = vpop.f32.mrf.mxu1 }
 0x5b0   : > { %9356 = vst [vmem:[%s14765_s8 + $0xd0] sm:$0xff] %v9324_v15  ;;  %v9221_v0 = vadd.f32 %v9181_v22, %v8795_v12 }
 0x5b2   : > { %v9257_v48 = vmul.f32 %v14751_v55, %v9221_v0 }
 0x5b4   : > { %v9293_v62 = vadd.f32 %v14756_v52, %v9257_v48 }
 0x5b6   : > { %v9325_v20 = vmax.f32 %v9293_v62, 0.0 }
 0x5b7   : > { %v9184_v8 = vpop.f32.mrf.mxu1 }
 0x5b8   : > { %9357 = vst [vmem:[%s14765_s8 + $0xd8] sm:$0xff] %v9325_v20  ;;  %v9222_v25 = vadd.f32 %v9184_v8, %v8796_v7 }
 0x5ba   : > { %v9258_v53 = vmul.f32 %v14751_v55, %v9222_v25 }
 0x5bc   : > { %v9294_v43 = vadd.f32 %v14756_v52, %v9258_v53 }
 0x5be   : > { %v9326_v13 = vmax.f32 %v9294_v43, 0.0 }
 0x5bf   : > { %v9186_v61 = vpop.f32.mrf.mxu1 }
 0x5c0   : > { %9358 = vst [vmem:[%s14765_s8 + $0xe0] sm:$0xff] %v9326_v13  ;;  %v9223_v1 = vadd.f32 %v9186_v61, %v8797_v21 }
 0x5c2   : > { %v9259_v46 = vmul.f32 %v14751_v55, %v9223_v1 }
 0x5c4   : > { %v9295_v39 = vadd.f32 %v14756_v52, %v9259_v46 }
 0x5c6   : > { %v9327_v57 = vmax.f32 %v9295_v39, 0.0 }
 0x5c7   : > { %v9189_v18 = vpop.f32.mrf.mxu1 }
 0x5c8   : > { %9359 = vst [vmem:[%s14765_s8 + $0xe8] sm:$0xff] %v9327_v57  ;;  %v9224_v27 = vadd.f32 %v9189_v18, %v8798_v54 }
 0x5ca   : > { %v9260_v6 = vmul.f32 %v14751_v55, %v9224_v27 }
 0x5cc   : > { %v9296_v14 = vadd.f32 %v14756_v52, %v9260_v6 }
 0x5ce   : > { %v9328_v4 = vmax.f32 %v9296_v14, 0.0 }
 0x5cf   : > { %v9191_v5 = vpop.f32.mrf.mxu1 }
 0x5d0   : > { %9360 = vst [vmem:[%s14765_s8 + $0xf0] sm:$0xff] %v9328_v4  ;;  %v9225_v29 = vadd.f32 %v9191_v5, %v8799_v50 }
 0x5d2   : > { %v9261_v56 = vmul.f32 %v14751_v55, %v9225_v29 }
 0x5d4   : > { %v9297_v44 = vadd.f32 %v14756_v52, %v9261_v56 }
 0x5d6   : > { %v9329_v37 = vmax.f32 %v9297_v44, 0.0 }
 0x5d8   : > { %9361 = vst [vmem:[%s14765_s8 + $0xf8] sm:$0xff] %v9329_v37 }
 0x5d9 PF: > { %s17_s24 = sadd.s32 1, %s11238_s24  }
 0x5da   : > { %p14_p4 = scmp.ge.s32.totalorder %s17_s24, 4  }
 0x5dc   :  { %16 = sbr.rel (!%p14_p4) target bundleno = 1 (0x1), region = 98 }

</bundles_post_ra>
